<compile_context>
chip_gen: v5e
topology: v5e:2x2
jax: 0.10.0
libtpu: 0.0.40
codegen_flags: <defaults>
</compile_context>

<pallas_src>
import numpy as np
import jax
import jax.numpy as jnp
from jax.experimental import pallas as pl
from jax.experimental.pallas import tpu as pltpu


def _round_up(x, m):
    return ((x + m - 1) // m) * m


def _choose_tile(hw, desired):
    """Spatial tile (rows): multiple of 8, <= desired, minimizing pad waste."""
    hw8 = _round_up(hw, 8)
    t_max = min(_round_up(desired, 8), hw8)
    best_t = t_max
    best_pad = _round_up(hw8, t_max) - hw
    t = t_max - 8
    while t >= max(8, t_max // 2) and best_pad > hw8 - hw:
        pad = _round_up(hw8, t) - hw
        if pad < best_pad:
            best_t, best_pad = t, pad
        t -= 8
    return best_t


def _chip_defaults():
    """(tile_hw, vmem_limit_bytes) sized per TPU generation."""
    kind = ""
    try:
        kind = jax.devices()[0].device_kind.lower()
    except Exception:
        pass
    if "v7" in kind or "7x" in kind:
        return 512, 48 * 1024 * 1024       # 64 MiB physical VMEM: keep headroom
    if "v6" in kind or "v5" in kind or "v4" in kind:
        return 1024, 64 * 1024 * 1024      # 128 MiB physical VMEM
    return 512, 32 * 1024 * 1024           # unknown chip: conservative


# -----------------------------------------------------------------------------
# Pallas kernel: bilinear reconstruct + weight_net + weighted fusion +
#                bottleneck 1x1 conv + ReLU, fused per spatial tile.
# -----------------------------------------------------------------------------
def _ctx_kernel(x_ref, u_ref, p_ref, pw_ref, wn_ref, bn_ref, wb1_ref, wb2_ref,
                bb_ref, o_ref):
    x = x_ref[...]                                   # (T, Cp) channels-last rows
    # x @ Wn^T + bn once; f32 accumulation on the MXU, bf16 operands.
    xw = jnp.dot(x, wn_ref[...], preferred_element_type=jnp.float32) + bn_ref[...]
    num = jnp.zeros(xw.shape, jnp.float32)
    den = jnp.zeros(xw.shape, jnp.float32)
    for k in range(u_ref.shape[0]):                  # static unroll over scales
        u_k = u_ref[k]
        # weight_net linearity: sigmoid(Wn(x - m_k) + bn) = sigmoid(xw - U_k@(P_k@Wn^T))
        proj = jnp.dot(u_k, pw_ref[k], preferred_element_type=jnp.float32)
        w_k = 0.5 * jnp.tanh(0.5 * (xw - proj)) + 0.5        # EUP tanh sigmoid
        m_k = jnp.dot(u_k, p_ref[k], preferred_element_type=jnp.float32)
        num = num + m_k * w_k
        den = den + w_k
    # den = sum of 4 sigmoids in (0,4); clamp guards f32 underflow to 0.
    den = jnp.maximum(den, 1e-20)
    overall = num * pl.reciprocal(den, approx=True)           # EUP slot
    cdt = wb1_ref.dtype
    out = (jnp.dot(overall.astype(cdt), wb1_ref[...],
                   preferred_element_type=jnp.float32)
           + jnp.dot(x, wb2_ref[...], preferred_element_type=jnp.float32)
           + bb_ref[...])
    o_ref[...] = jnp.maximum(out, 0.0).astype(o_ref.dtype)    # ReLU


def contextual_pallas(x_nc, u, p_all, pw_all, wn_t, bn, wb1, wb2, bb, *,
                      tile_hw, vmem_limit_bytes, out_dtype):
    B, HWp, cp = x_nc.shape
    out_fp = wb1.shape[1]
    n_scales, _, kdim = u.shape
    grid = (B, HWp // tile_hw)

    def _run(single_buffer):
        def const_spec(shape, index_map):
            # Grid-invariant (or per-batch) operands: single-buffer to save VMEM.
            if single_buffer:
                return pl.BlockSpec(shape, index_map,
                                    pipeline_mode=pl.Buffered(1))
            return pl.BlockSpec(shape, index_map)

        in_specs = [
            pl.BlockSpec((None, tile_hw, cp), lambda b, i: (b, i, 0)),        # x
            pl.BlockSpec((n_scales, tile_hw, kdim), lambda b, i: (0, i, 0)),  # U
            const_spec((n_scales, None, kdim, cp), lambda b, i: (0, b, 0, 0)),    # P
            const_spec((n_scales, None, kdim, cp), lambda b, i: (0, b, 0, 0)),    # P@Wn^T
            const_spec((cp, cp), lambda b, i: (0, 0)),                        # Wn^T
            const_spec((1, cp), lambda b, i: (0, 0)),                         # bn
            const_spec((cp, out_fp), lambda b, i: (0, 0)),                    # Wb (overall half)
            const_spec((cp, out_fp), lambda b, i: (0, 0)),                    # Wb (x half)
            const_spec((1, out_fp), lambda b, i: (0, 0)),                     # bb
        ]
        return pl.pallas_call(
            _ctx_kernel,
            out_shape=jax.ShapeDtypeStruct((B, HWp, out_fp), out_dtype),
            grid_spec=pltpu.PrefetchScalarGridSpec(
                num_scalar_prefetch=0,
                grid=grid,
                in_specs=in_specs,
                out_specs=pl.BlockSpec((None, tile_hw, out_fp),
                                       lambda b, i: (b, i, 0)),
            ),
            compiler_params=pltpu.CompilerParams(
                dimension_semantics=("parallel", "parallel"),
                vmem_limit_bytes=vmem_limit_bytes,
            ),
        )(x_nc, u, p_all, pw_all, wn_t, bn, wb1, wb2, bb)

    try:
        return _run(True)
    except Exception:
        # pl.Buffered(1) unsupported on this JAX build: fall back to the
        # default double-buffered pipeline (correctness unaffected).
        return _run(False)


# -----------------------------------------------------------------------------
# Host-side glue: adaptive avg pool / tiny 1x1 scale conv / bilinear tables.
# These produce only a few KB and feed the kernel.
# -----------------------------------------------------------------------------
def adaptive_pool_matrix(in_size, out_size):
    # PyTorch AdaptiveAvgPool2d bins: start=floor(i*in/out), end=ceil((i+1)*in/out)
    M = np.zeros((out_size, in_size), np.float32)
    for i in range(out_size):
        start = (i * in_size) // out_size
        end = -((-(i + 1) * in_size) // out_size)
        M[i, start:end] = 1.0 / (end - start)
    return jnp.asarray(M)


def bilinear_matrix(in_size, out_size):
    # F.upsample(mode='bilinear') == F.interpolate(..., align_corners=False)
    # TODO(synk): flip to align_corners=True for checkpoints trained pre-0.4.
    dst = np.arange(out_size, dtype=np.float64)
    src = np.clip((dst + 0.5) * (in_size / out_size) - 0.5, 0.0, in_size - 1)
    i0 = np.floor(src).astype(np.int64)
    i1 = np.minimum(i0 + 1, in_size - 1)
    frac = (src - i0).astype(np.float32)
    M = np.zeros((out_size, in_size), np.float32)
    M[np.arange(out_size), i0] += 1.0 - frac
    M[np.arange(out_size), i1] += frac
    return jnp.asarray(M)


def _build_scale_inputs(feats, scale_w, wn_t_pad, sizes, c_pad):
    """Per scale: pooled+1x1-conv'd features P_k, their weight_net projection
    P_k@Wn^T, and per-pixel bilinear interpolation rows U_k (kron of 1D)."""
    B, C, H, W = feats.shape
    kdim = max(sizes) ** 2                              # 36 for (1,2,3,6)
    u_list, p_list, pw_list = [], [], []
    for k, s in enumerate(sizes):
        Ph = adaptive_pool_matrix(H, s)
        Pw_ = adaptive_pool_matrix(W, s)
        pooled = jnp.einsum('ph,bchw,qw->bcpq', Ph, feats, Pw_)      # (B,C,s,s)
        conv = jnp.einsum('oc,bcpq->bpqo', scale_w[k], pooled)       # ch-last
        P = conv.reshape(B, s * s, C)
        P = jnp.pad(P, ((0, 0), (0, kdim - s * s), (0, c_pad - C)))  # (B,36,Cp)
        PW = jnp.einsum('bkc,cd->bkd', P, wn_t_pad)                  # P_k @ Wn^T
        p_list.append(P)
        pw_list.append(PW)
        Uh = bilinear_matrix(s, H)                                   # (H, s)
        Uw = bilinear_matrix(s, W)                                   # (W, s)
        U = jnp.einsum('hp,wq->hwpq', Uh, Uw).reshape(H * W, s * s)
        u_list.append(jnp.pad(U, ((0, 0), (0, kdim - s * s))))       # (HW,36)
    return (jnp.stack(u_list, axis=0), jnp.stack(p_list, axis=0),
            jnp.stack(pw_list, axis=0))


def contextual_module_forward(feats, params, sizes=(1, 2, 3, 6), *,
                              tile_hw=None, matmul_dtype=jnp.bfloat16,
                              out_dtype=jnp.float32, channels_last=False,
                              vmem_limit_bytes=None):
    B, C, H, W = feats.shape
    HW = H * W
    out_f = params['wb'].shape[0]
    c_pad = _round_up(C, 128)
    out_fp = _round_up(out_f, 128)

    chip_tile, chip_vmem = _chip_defaults()
    if tile_hw is None:
        tile_hw = chip_tile
    if vmem_limit_bytes is None:
        vmem_limit_bytes = chip_vmem

    hw8 = _round_up(HW, 8)
    tile = _choose_tile(HW, tile_hw)
    # v7x has 2 TensorCores: keep >= 2 steps in the ('parallel','parallel') grid.
    if B == 1 and _round_up(HW, tile) // tile < 2 and hw8 >= 16:
        tile = _round_up(hw8 // 2, 8)
    hw_pad = _round_up(HW, tile)

    # Lane-dense (multiple-of-128) zero-padded weights; padding is exact
    # (padded channels of `overall` come out 0 and are sliced away).
    wn_t = jnp.zeros((c_pad, c_pad), jnp.float32).at[:C, :C].set(params['wn'].T)
    bn = jnp.zeros((1, c_pad), jnp.float32).at[0, :C].set(params['bn'])
    wb = params['wb']                                                # (out_f, 2C)
    wb1 = jnp.zeros((c_pad, out_fp), jnp.float32).at[:C, :out_f].set(wb[:, :C].T)
    wb2 = jnp.zeros((c_pad, out_fp), jnp.float32).at[:C, :out_f].set(wb[:, C:].T)
    bb = jnp.zeros((1, out_fp), jnp.float32).at[0, :out_f].set(params['bb'])

    u, p_all, pw_all = _build_scale_inputs(feats, params['scale_w'], wn_t,
                                           sizes, c_pad)

    # Channels-last flattened spatial rows; pad channels to 128 multiple and
    # rows to the spatial tile (pad rows are zero, finite, and sliced away).
    x_nc = jnp.transpose(feats, (0, 2, 3, 1)).reshape(B, HW, C)
    x_nc = jnp.pad(x_nc, ((0, 0), (0, hw_pad - HW), (0, c_pad - C)))
    u = jnp.pad(u, ((0, 0), (0, hw_pad - HW), (0, 0)))

    # All MXU operands in bf16 by default (f32 accumulation) on every TPU
    # generation; biases stay f32 so element-wise math stays f32 (v5e-safe).
    md = matmul_dtype
    out = contextual_pallas(
        x_nc.astype(md), u.astype(md), p_all.astype(md), pw_all.astype(md),
        wn_t.astype(md), bn, wb1.astype(md), wb2.astype(md), bb,
        tile_hw=tile, vmem_limit_bytes=vmem_limit_bytes, out_dtype=out_dtype)

    out = out[:, :HW, :out_f].reshape(B, H, W, out_f)
    if channels_last:
        return out                                        # NHWC, no transpose
    # TODO(synk): consuming NHWC downstream (or fusing the next 1x1 conv into
    # wb) would avoid this extra HBM read+write transpose outside the kernel.
    return jnp.transpose(out, (0, 3, 1, 2))               # NCHW module parity


# -----------------------------------------------------------------------------
# Pure-JAX reference (same math, no Pallas) for sanity checking.
# -----------------------------------------------------------------------------
def _multi_scales(feats, scale_weights, sizes):
    B, C, H, W = feats.shape
    ms = []
    for k, s in enumerate(sizes):
        Ph = adaptive_pool_matrix(H, s)
        Pw = adaptive_pool_matrix(W, s)
        pooled = jnp.einsum('ph,bchw,qw->bcpq', Ph, feats, Pw)
        conv = jnp.einsum('oc,bcpq->bopq', scale_weights[k], pooled)
        Uh = bilinear_matrix(s, H)
        Uw = bilinear_matrix(s, W)
        up = jnp.einsum('hp,bopq,wq->bohw', Uh, conv, Uw)
        ms.append(up)
    return jnp.stack(ms, axis=0)


def contextual_module_ref(feats, params, sizes=(1, 2, 3, 6)):
    ms = _multi_scales(feats, params['scale_w'], sizes)
    num = jnp.zeros_like(feats)
    den = jnp.zeros_like(feats)
    for k in range(len(sizes)):
        d = feats - ms[k]
        w = jax.nn.sigmoid(
            jnp.einsum('oc,bchw->bohw', params['wn'], d)
            + params['bn'][None, :, None, None])
        num = num + ms[k] * w
        den = den + w
    overall = num / den
    cat = jnp.concatenate([overall, feats], axis=1)
    out = (jnp.einsum('oc,bchw->bohw', params['wb'], cat)
           + params['bb'][None, :, None, None])
    return jnp.maximum(out, 0.0)


# -----------------------------------------------------------------------------
# Deterministic parameter init (normal std=0.01 conv weights, zero biases)
# -----------------------------------------------------------------------------
def init_params(key, features, out_features, sizes=(1, 2, 3, 6)):
    k1, k2, k3 = jax.random.split(key, 3)
    scale_w = 0.01 * jax.random.normal(
        k1, (len(sizes), features, features), jnp.float32)           # (out,in)
    wn = 0.01 * jax.random.normal(k2, (features, features), jnp.float32)
    bn = jnp.zeros((features,), jnp.float32)
    wb = 0.01 * jax.random.normal(k3, (out_features, 2 * features), jnp.float32)
    bb = jnp.zeros((out_features,), jnp.float32)
    return dict(scale_w=scale_w, wn=wn, bn=bn, wb=wb, bb=bb)


if __name__ == "__main__":
    B, C, H, W = 2, 8, 16, 16
    OUT_F = 32

    key = jax.random.PRNGKey(0)
    k_x, k_p = jax.random.split(key)
    feats = jax.random.normal(k_x, (B, C, H, W), jnp.float32)
    params = init_params(k_p, C, OUT_F)

    ref = jax.block_until_ready(contextual_module_ref(feats, params))

    # f32-operand path: tight check against the pure-JAX reference.
    out_f32 = jax.block_until_ready(
        contextual_module_forward(feats, params, matmul_dtype=jnp.float32))
    assert out_f32.shape == (B, OUT_F, H, W)
    np.testing.assert_allclose(np.asarray(out_f32), np.asarray(ref),
                               rtol=2e-3, atol=5e-4)

    # Default path: bf16 MXU operands (f32 accumulation) on all generations.
    out = jax.block_until_ready(contextual_module_forward(feats, params))
    assert out.shape == (B, OUT_F, H, W)
    assert bool(jnp.isfinite(out).all())
    np.testing.assert_allclose(np.asarray(out), np.asarray(ref),
                               rtol=2e-2, atol=2e-3)

    print("KERNEL_OK")
</pallas_src>

<mosaic_0001>
module attributes {stable_mosaic.version = 11 : i64} {
  func.func @_ctx_kernel(%arg0: i32, %arg1: i32, %arg2: memref<1x256x128xf32, #tpu.memory_space<vmem>>, %arg3: memref<4x256x36xf32, #tpu.memory_space<vmem>>, %arg4: memref<4x1x36x128xf32, #tpu.memory_space<vmem>>, %arg5: memref<4x1x36x128xf32, #tpu.memory_space<vmem>>, %arg6: memref<128x128xf32, #tpu.memory_space<vmem>>, %arg7: memref<1x128xf32, #tpu.memory_space<vmem>>, %arg8: memref<128x128xf32, #tpu.memory_space<vmem>>, %arg9: memref<128x128xf32, #tpu.memory_space<vmem>>, %arg10: memref<1x128xf32, #tpu.memory_space<vmem>>, %arg11: memref<1x256x128xf32, #tpu.memory_space<vmem>>) attributes {dimension_semantics = [#tpu.dimension_semantics<parallel>, #tpu.dimension_semantics<parallel>], iteration_bounds = array<i64: 2, 1>, scalar_prefetch = 0 : i64, scratch_operands = 0 : i64, tpu.core_type = #tpu.core_type<tc>, window_params = [{transform_indices = @transform_0, window_bounds = array<i64: 1, 256, 128>}, {transform_indices = @transform_1, window_bounds = array<i64: 4, 256, 36>}, {pipeline_mode = #tpu.pipeline_mode<synchronous>, transform_indices = @transform_2, window_bounds = array<i64: 4, 1, 36, 128>}, {pipeline_mode = #tpu.pipeline_mode<synchronous>, transform_indices = @transform_3, window_bounds = array<i64: 4, 1, 36, 128>}, {pipeline_mode = #tpu.pipeline_mode<synchronous>, transform_indices = @transform_4, window_bounds = array<i64: 128, 128>}, {pipeline_mode = #tpu.pipeline_mode<synchronous>, transform_indices = @transform_5, window_bounds = array<i64: 1, 128>}, {pipeline_mode = #tpu.pipeline_mode<synchronous>, transform_indices = @transform_6, window_bounds = array<i64: 128, 128>}, {pipeline_mode = #tpu.pipeline_mode<synchronous>, transform_indices = @transform_7, window_bounds = array<i64: 128, 128>}, {pipeline_mode = #tpu.pipeline_mode<synchronous>, transform_indices = @transform_8, window_bounds = array<i64: 1, 128>}, {transform_indices = @transform_9, window_bounds = array<i64: 1, 256, 128>}]} {
    %c0 = arith.constant 0 : index
    %c0_0 = arith.constant 0 : index
    %c0_1 = arith.constant 0 : index
    %0 = vector.load %arg2[%c0, %c0_0, %c0_1] : memref<1x256x128xf32, #tpu.memory_space<vmem>>, vector<1x256x128xf32>
    %1 = vector.shape_cast %0 : vector<1x256x128xf32> to vector<256x128xf32>
    %c0_2 = arith.constant 0 : index
    %c0_3 = arith.constant 0 : index
    %2 = vector.load %arg6[%c0_2, %c0_3] : memref<128x128xf32, #tpu.memory_space<vmem>>, vector<128x128xf32>
    %cst = arith.constant dense<0.000000e+00> : vector<256x128xf32>
    %3 = tpu.matmul %1, %2, %cst {dimension_numbers = #tpu.dot_dimension_numbers<[1], [0], [0], [1], [0, 0, 1, 1], [], []>} : vector<256x128xf32>, vector<128x128xf32>, vector<256x128xf32> -> vector<256x128xf32>
    %c0_4 = arith.constant 0 : index
    %c0_5 = arith.constant 0 : index
    %4 = vector.load %arg7[%c0_4, %c0_5] : memref<1x128xf32, #tpu.memory_space<vmem>>, vector<1x128xf32>
    %5 = vector.broadcast %4 : vector<1x128xf32> to vector<256x128xf32>
    %6 = arith.addf %3, %5 : vector<256x128xf32>
    %cst_6 = arith.constant 0.000000e+00 : f32
    %7 = vector.broadcast %cst_6 : f32 to vector<256x128xf32>
    %cst_7 = arith.constant 0.000000e+00 : f32
    %8 = vector.broadcast %cst_7 : f32 to vector<256x128xf32>
    %c0_8 = arith.constant 0 : index
    %c0_9 = arith.constant 0 : index
    %c0_10 = arith.constant 0 : index
    %9 = vector.load %arg3[%c0_8, %c0_9, %c0_10] : memref<4x256x36xf32, #tpu.memory_space<vmem>>, vector<1x256x36xf32>
    %10 = vector.shape_cast %9 : vector<1x256x36xf32> to vector<256x36xf32>
    %c0_11 = arith.constant 0 : index
    %c0_12 = arith.constant 0 : index
    %c0_13 = arith.constant 0 : index
    %c0_14 = arith.constant 0 : index
    %11 = vector.load %arg5[%c0_11, %c0_12, %c0_13, %c0_14] : memref<4x1x36x128xf32, #tpu.memory_space<vmem>>, vector<1x1x36x128xf32>
    %12 = vector.shape_cast %11 : vector<1x1x36x128xf32> to vector<36x128xf32>
    %cst_15 = arith.constant dense<0.000000e+00> : vector<256x128xf32>
    %13 = tpu.matmul %10, %12, %cst_15 {dimension_numbers = #tpu.dot_dimension_numbers<[1], [0], [0], [1], [0, 0, 1, 1], [], []>} : vector<256x36xf32>, vector<36x128xf32>, vector<256x128xf32> -> vector<256x128xf32>
    %14 = arith.subf %6, %13 : vector<256x128xf32>
    %cst_16 = arith.constant 5.000000e-01 : f32
    %15 = vector.broadcast %cst_16 : f32 to vector<256x128xf32>
    %16 = arith.mulf %15, %14 : vector<256x128xf32>
    %17 = math.tanh %16 : vector<256x128xf32>
    %cst_17 = arith.constant 5.000000e-01 : f32
    %18 = vector.broadcast %cst_17 : f32 to vector<256x128xf32>
    %19 = arith.mulf %18, %17 : vector<256x128xf32>
    %cst_18 = arith.constant 5.000000e-01 : f32
    %20 = vector.broadcast %cst_18 : f32 to vector<256x128xf32>
    %21 = arith.addf %19, %20 : vector<256x128xf32>
    %c0_19 = arith.constant 0 : index
    %c0_20 = arith.constant 0 : index
    %c0_21 = arith.constant 0 : index
    %c0_22 = arith.constant 0 : index
    %22 = vector.load %arg4[%c0_19, %c0_20, %c0_21, %c0_22] : memref<4x1x36x128xf32, #tpu.memory_space<vmem>>, vector<1x1x36x128xf32>
    %23 = vector.shape_cast %22 : vector<1x1x36x128xf32> to vector<36x128xf32>
    %cst_23 = arith.constant dense<0.000000e+00> : vector<256x128xf32>
    %24 = tpu.matmul %10, %23, %cst_23 {dimension_numbers = #tpu.dot_dimension_numbers<[1], [0], [0], [1], [0, 0, 1, 1], [], []>} : vector<256x36xf32>, vector<36x128xf32>, vector<256x128xf32> -> vector<256x128xf32>
    %25 = arith.mulf %24, %21 : vector<256x128xf32>
    %26 = arith.addf %7, %25 : vector<256x128xf32>
    %27 = arith.addf %8, %21 : vector<256x128xf32>
    %c1 = arith.constant 1 : index
    %c0_24 = arith.constant 0 : index
    %c0_25 = arith.constant 0 : index
    %28 = vector.load %arg3[%c1, %c0_24, %c0_25] : memref<4x256x36xf32, #tpu.memory_space<vmem>>, vector<1x256x36xf32>
    %29 = vector.shape_cast %28 : vector<1x256x36xf32> to vector<256x36xf32>
    %c1_26 = arith.constant 1 : index
    %c0_27 = arith.constant 0 : index
    %c0_28 = arith.constant 0 : index
    %c0_29 = arith.constant 0 : index
    %30 = vector.load %arg5[%c1_26, %c0_27, %c0_28, %c0_29] : memref<4x1x36x128xf32, #tpu.memory_space<vmem>>, vector<1x1x36x128xf32>
    %31 = vector.shape_cast %30 : vector<1x1x36x128xf32> to vector<36x128xf32>
    %cst_30 = arith.constant dense<0.000000e+00> : vector<256x128xf32>
    %32 = tpu.matmul %29, %31, %cst_30 {dimension_numbers = #tpu.dot_dimension_numbers<[1], [0], [0], [1], [0, 0, 1, 1], [], []>} : vector<256x36xf32>, vector<36x128xf32>, vector<256x128xf32> -> vector<256x128xf32>
    %33 = arith.subf %6, %32 : vector<256x128xf32>
    %cst_31 = arith.constant 5.000000e-01 : f32
    %34 = vector.broadcast %cst_31 : f32 to vector<256x128xf32>
    %35 = arith.mulf %34, %33 : vector<256x128xf32>
    %36 = math.tanh %35 : vector<256x128xf32>
    %cst_32 = arith.constant 5.000000e-01 : f32
    %37 = vector.broadcast %cst_32 : f32 to vector<256x128xf32>
    %38 = arith.mulf %37, %36 : vector<256x128xf32>
    %cst_33 = arith.constant 5.000000e-01 : f32
    %39 = vector.broadcast %cst_33 : f32 to vector<256x128xf32>
    %40 = arith.addf %38, %39 : vector<256x128xf32>
    %c1_34 = arith.constant 1 : index
    %c0_35 = arith.constant 0 : index
    %c0_36 = arith.constant 0 : index
    %c0_37 = arith.constant 0 : index
    %41 = vector.load %arg4[%c1_34, %c0_35, %c0_36, %c0_37] : memref<4x1x36x128xf32, #tpu.memory_space<vmem>>, vector<1x1x36x128xf32>
    %42 = vector.shape_cast %41 : vector<1x1x36x128xf32> to vector<36x128xf32>
    %cst_38 = arith.constant dense<0.000000e+00> : vector<256x128xf32>
    %43 = tpu.matmul %29, %42, %cst_38 {dimension_numbers = #tpu.dot_dimension_numbers<[1], [0], [0], [1], [0, 0, 1, 1], [], []>} : vector<256x36xf32>, vector<36x128xf32>, vector<256x128xf32> -> vector<256x128xf32>
    %44 = arith.mulf %43, %40 : vector<256x128xf32>
    %45 = arith.addf %26, %44 : vector<256x128xf32>
    %46 = arith.addf %27, %40 : vector<256x128xf32>
    %c2 = arith.constant 2 : index
    %c0_39 = arith.constant 0 : index
    %c0_40 = arith.constant 0 : index
    %47 = vector.load %arg3[%c2, %c0_39, %c0_40] : memref<4x256x36xf32, #tpu.memory_space<vmem>>, vector<1x256x36xf32>
    %48 = vector.shape_cast %47 : vector<1x256x36xf32> to vector<256x36xf32>
    %c2_41 = arith.constant 2 : index
    %c0_42 = arith.constant 0 : index
    %c0_43 = arith.constant 0 : index
    %c0_44 = arith.constant 0 : index
    %49 = vector.load %arg5[%c2_41, %c0_42, %c0_43, %c0_44] : memref<4x1x36x128xf32, #tpu.memory_space<vmem>>, vector<1x1x36x128xf32>
    %50 = vector.shape_cast %49 : vector<1x1x36x128xf32> to vector<36x128xf32>
    %cst_45 = arith.constant dense<0.000000e+00> : vector<256x128xf32>
    %51 = tpu.matmul %48, %50, %cst_45 {dimension_numbers = #tpu.dot_dimension_numbers<[1], [0], [0], [1], [0, 0, 1, 1], [], []>} : vector<256x36xf32>, vector<36x128xf32>, vector<256x128xf32> -> vector<256x128xf32>
    %52 = arith.subf %6, %51 : vector<256x128xf32>
    %cst_46 = arith.constant 5.000000e-01 : f32
    %53 = vector.broadcast %cst_46 : f32 to vector<256x128xf32>
    %54 = arith.mulf %53, %52 : vector<256x128xf32>
    %55 = math.tanh %54 : vector<256x128xf32>
    %cst_47 = arith.constant 5.000000e-01 : f32
    %56 = vector.broadcast %cst_47 : f32 to vector<256x128xf32>
    %57 = arith.mulf %56, %55 : vector<256x128xf32>
    %cst_48 = arith.constant 5.000000e-01 : f32
    %58 = vector.broadcast %cst_48 : f32 to vector<256x128xf32>
    %59 = arith.addf %57, %58 : vector<256x128xf32>
    %c2_49 = arith.constant 2 : index
    %c0_50 = arith.constant 0 : index
    %c0_51 = arith.constant 0 : index
    %c0_52 = arith.constant 0 : index
    %60 = vector.load %arg4[%c2_49, %c0_50, %c0_51, %c0_52] : memref<4x1x36x128xf32, #tpu.memory_space<vmem>>, vector<1x1x36x128xf32>
    %61 = vector.shape_cast %60 : vector<1x1x36x128xf32> to vector<36x128xf32>
    %cst_53 = arith.constant dense<0.000000e+00> : vector<256x128xf32>
    %62 = tpu.matmul %48, %61, %cst_53 {dimension_numbers = #tpu.dot_dimension_numbers<[1], [0], [0], [1], [0, 0, 1, 1], [], []>} : vector<256x36xf32>, vector<36x128xf32>, vector<256x128xf32> -> vector<256x128xf32>
    %63 = arith.mulf %62, %59 : vector<256x128xf32>
    %64 = arith.addf %45, %63 : vector<256x128xf32>
    %65 = arith.addf %46, %59 : vector<256x128xf32>
    %c3 = arith.constant 3 : index
    %c0_54 = arith.constant 0 : index
    %c0_55 = arith.constant 0 : index
    %66 = vector.load %arg3[%c3, %c0_54, %c0_55] : memref<4x256x36xf32, #tpu.memory_space<vmem>>, vector<1x256x36xf32>
    %67 = vector.shape_cast %66 : vector<1x256x36xf32> to vector<256x36xf32>
    %c3_56 = arith.constant 3 : index
    %c0_57 = arith.constant 0 : index
    %c0_58 = arith.constant 0 : index
    %c0_59 = arith.constant 0 : index
    %68 = vector.load %arg5[%c3_56, %c0_57, %c0_58, %c0_59] : memref<4x1x36x128xf32, #tpu.memory_space<vmem>>, vector<1x1x36x128xf32>
    %69 = vector.shape_cast %68 : vector<1x1x36x128xf32> to vector<36x128xf32>
    %cst_60 = arith.constant dense<0.000000e+00> : vector<256x128xf32>
    %70 = tpu.matmul %67, %69, %cst_60 {dimension_numbers = #tpu.dot_dimension_numbers<[1], [0], [0], [1], [0, 0, 1, 1], [], []>} : vector<256x36xf32>, vector<36x128xf32>, vector<256x128xf32> -> vector<256x128xf32>
    %71 = arith.subf %6, %70 : vector<256x128xf32>
    %cst_61 = arith.constant 5.000000e-01 : f32
    %72 = vector.broadcast %cst_61 : f32 to vector<256x128xf32>
    %73 = arith.mulf %72, %71 : vector<256x128xf32>
    %74 = math.tanh %73 : vector<256x128xf32>
    %cst_62 = arith.constant 5.000000e-01 : f32
    %75 = vector.broadcast %cst_62 : f32 to vector<256x128xf32>
    %76 = arith.mulf %75, %74 : vector<256x128xf32>
    %cst_63 = arith.constant 5.000000e-01 : f32
    %77 = vector.broadcast %cst_63 : f32 to vector<256x128xf32>
    %78 = arith.addf %76, %77 : vector<256x128xf32>
    %c3_64 = arith.constant 3 : index
    %c0_65 = arith.constant 0 : index
    %c0_66 = arith.constant 0 : index
    %c0_67 = arith.constant 0 : index
    %79 = vector.load %arg4[%c3_64, %c0_65, %c0_66, %c0_67] : memref<4x1x36x128xf32, #tpu.memory_space<vmem>>, vector<1x1x36x128xf32>
    %80 = vector.shape_cast %79 : vector<1x1x36x128xf32> to vector<36x128xf32>
    %cst_68 = arith.constant dense<0.000000e+00> : vector<256x128xf32>
    %81 = tpu.matmul %67, %80, %cst_68 {dimension_numbers = #tpu.dot_dimension_numbers<[1], [0], [0], [1], [0, 0, 1, 1], [], []>} : vector<256x36xf32>, vector<36x128xf32>, vector<256x128xf32> -> vector<256x128xf32>
    %82 = arith.mulf %81, %78 : vector<256x128xf32>
    %83 = arith.addf %64, %82 : vector<256x128xf32>
    %84 = arith.addf %65, %78 : vector<256x128xf32>
    %cst_69 = arith.constant 9.99999968E-21 : f32
    %85 = vector.broadcast %cst_69 : f32 to vector<256x128xf32>
    %86 = arith.maximumf %84, %85 : vector<256x128xf32>
    %87 = tpu.reciprocal %86 {approx = true} : vector<256x128xf32> -> vector<256x128xf32>
    %88 = arith.mulf %83, %87 : vector<256x128xf32>
    %c0_70 = arith.constant 0 : index
    %c0_71 = arith.constant 0 : index
    %89 = vector.load %arg8[%c0_70, %c0_71] : memref<128x128xf32, #tpu.memory_space<vmem>>, vector<128x128xf32>
    %cst_72 = arith.constant dense<0.000000e+00> : vector<256x128xf32>
    %90 = tpu.matmul %88, %89, %cst_72 {dimension_numbers = #tpu.dot_dimension_numbers<[1], [0], [0], [1], [0, 0, 1, 1], [], []>} : vector<256x128xf32>, vector<128x128xf32>, vector<256x128xf32> -> vector<256x128xf32>
    %c0_73 = arith.constant 0 : index
    %c0_74 = arith.constant 0 : index
    %91 = vector.load %arg9[%c0_73, %c0_74] : memref<128x128xf32, #tpu.memory_space<vmem>>, vector<128x128xf32>
    %cst_75 = arith.constant dense<0.000000e+00> : vector<256x128xf32>
    %92 = tpu.matmul %1, %91, %cst_75 {dimension_numbers = #tpu.dot_dimension_numbers<[1], [0], [0], [1], [0, 0, 1, 1], [], []>} : vector<256x128xf32>, vector<128x128xf32>, vector<256x128xf32> -> vector<256x128xf32>
    %93 = arith.addf %90, %92 : vector<256x128xf32>
    %c0_76 = arith.constant 0 : index
    %c0_77 = arith.constant 0 : index
    %94 = vector.load %arg10[%c0_76, %c0_77] : memref<1x128xf32, #tpu.memory_space<vmem>>, vector<1x128xf32>
    %95 = vector.broadcast %94 : vector<1x128xf32> to vector<256x128xf32>
    %96 = arith.addf %93, %95 : vector<256x128xf32>
    %cst_78 = arith.constant 0.000000e+00 : f32
    %97 = vector.broadcast %cst_78 : f32 to vector<256x128xf32>
    %98 = arith.maximumf %96, %97 : vector<256x128xf32>
    %c0_79 = arith.constant 0 : index
    %c0_80 = arith.constant 0 : index
    %c0_81 = arith.constant 0 : index
    %99 = vector.load %arg11[%c0_79, %c0_80, %c0_81] : memref<1x256x128xf32, #tpu.memory_space<vmem>>, vector<1x256x128xf32>
    %100 = vector.shape_cast %99 : vector<1x256x128xf32> to vector<256x128xf32>
    %101 = vector.shape_cast %98 : vector<256x128xf32> to vector<1x256x128xf32>
    tpu.vector_store %arg11[%c0_79, %c0_80, %c0_81], %101 {strides = array<i32>} : memref<1x256x128xf32, #tpu.memory_space<vmem>>, vector<1x256x128xf32>,
    return
  }
  func.func @transform_0(%arg0: i32, %arg1: i32) -> (i32, i32, i32) {
    %c0_i32 = arith.constant 0 : i32
    %c0_i32_0 = arith.constant 0 : i32
    return %arg0, %arg1, %c0_i32 : i32, i32, i32
  }
  func.func @transform_1(%arg0: i32, %arg1: i32) -> (i32, i32, i32) {
    %c0_i32 = arith.constant 0 : i32
    %c0_i32_0 = arith.constant 0 : i32
    %c0_i32_1 = arith.constant 0 : i32
    return %c0_i32, %arg1, %c0_i32_0 : i32, i32, i32
  }
  func.func @transform_2(%arg0: i32, %arg1: i32) -> (i32, i32, i32, i32) {
    %c0_i32 = arith.constant 0 : i32
    %c0_i32_0 = arith.constant 0 : i32
    %c0_i32_1 = arith.constant 0 : i32
    %c0_i32_2 = arith.constant 0 : i32
    return %c0_i32, %arg0, %c0_i32_0, %c0_i32_1 : i32, i32, i32, i32
  }
  func.func @transform_3(%arg0: i32, %arg1: i32) -> (i32, i32, i32, i32) {
    %c0_i32 = arith.constant 0 : i32
    %c0_i32_0 = arith.constant 0 : i32
    %c0_i32_1 = arith.constant 0 : i32
    %c0_i32_2 = arith.constant 0 : i32
    return %c0_i32, %arg0, %c0_i32_0, %c0_i32_1 : i32, i32, i32, i32
  }
  func.func @transform_4(%arg0: i32, %arg1: i32) -> (i32, i32) {
    %c0_i32 = arith.constant 0 : i32
    %c0_i32_0 = arith.constant 0 : i32
    %c0_i32_1 = arith.constant 0 : i32
    return %c0_i32, %c0_i32_0 : i32, i32
  }
  func.func @transform_5(%arg0: i32, %arg1: i32) -> (i32, i32) {
    %c0_i32 = arith.constant 0 : i32
    %c0_i32_0 = arith.constant 0 : i32
    %c0_i32_1 = arith.constant 0 : i32
    return %c0_i32, %c0_i32_0 : i32, i32
  }
  func.func @transform_6(%arg0: i32, %arg1: i32) -> (i32, i32) {
    %c0_i32 = arith.constant 0 : i32
    %c0_i32_0 = arith.constant 0 : i32
    %c0_i32_1 = arith.constant 0 : i32
    return %c0_i32, %c0_i32_0 : i32, i32
  }
  func.func @transform_7(%arg0: i32, %arg1: i32) -> (i32, i32) {
    %c0_i32 = arith.constant 0 : i32
    %c0_i32_0 = arith.constant 0 : i32
    %c0_i32_1 = arith.constant 0 : i32
    return %c0_i32, %c0_i32_0 : i32, i32
  }
  func.func @transform_8(%arg0: i32, %arg1: i32) -> (i32, i32) {
    %c0_i32 = arith.constant 0 : i32
    %c0_i32_0 = arith.constant 0 : i32
    %c0_i32_1 = arith.constant 0 : i32
    return %c0_i32, %c0_i32_0 : i32, i32
  }
  func.func @transform_9(%arg0: i32, %arg1: i32) -> (i32, i32, i32) {
    %c0_i32 = arith.constant 0 : i32
    %c0_i32_0 = arith.constant 0 : i32
    return %arg0, %arg1, %c0_i32 : i32, i32, i32
  }
}

module attributes {stable_mosaic.version = 11 : i64} {
  func.func @_ctx_kernel(%arg0: i32, %arg1: i32, %arg2: memref<1x256x128xf32, #tpu.memory_space<vmem>>, %arg3: memref<4x256x36xf32, #tpu.memory_space<vmem>>, %arg4: memref<4x1x36x128xf32, #tpu.memory_space<vmem>>, %arg5: memref<4x1x36x128xf32, #tpu.memory_space<vmem>>, %arg6: memref<128x128xf32, #tpu.memory_space<vmem>>, %arg7: memref<1x128xf32, #tpu.memory_space<vmem>>, %arg8: memref<128x128xf32, #tpu.memory_space<vmem>>, %arg9: memref<128x128xf32, #tpu.memory_space<vmem>>, %arg10: memref<1x128xf32, #tpu.memory_space<vmem>>, %arg11: memref<1x256x128xf32, #tpu.memory_space<vmem>>) attributes {dimension_semantics = [#tpu.dimension_semantics<parallel>, #tpu.dimension_semantics<parallel>], iteration_bounds = array<i64: 2, 1>, scalar_prefetch = 0 : i64, scratch_operands = 0 : i64, tpu.core_type = #tpu.core_type<tc>, window_params = [{transform_indices = @transform_0, window_bounds = array<i64: 1, 256, 128>}, {transform_indices = @transform_1, window_bounds = array<i64: 4, 256, 36>}, {transform_indices = @transform_2, window_bounds = array<i64: 4, 1, 36, 128>}, {transform_indices = @transform_3, window_bounds = array<i64: 4, 1, 36, 128>}, {pipeline_mode = #tpu.pipeline_mode<synchronous>, transform_indices = @transform_4, window_bounds = array<i64: 128, 128>}, {pipeline_mode = #tpu.pipeline_mode<synchronous>, transform_indices = @transform_5, window_bounds = array<i64: 1, 128>}, {pipeline_mode = #tpu.pipeline_mode<synchronous>, transform_indices = @transform_6, window_bounds = array<i64: 128, 128>}, {pipeline_mode = #tpu.pipeline_mode<synchronous>, transform_indices = @transform_7, window_bounds = array<i64: 128, 128>}, {pipeline_mode = #tpu.pipeline_mode<synchronous>, transform_indices = @transform_8, window_bounds = array<i64: 1, 128>}, {transform_indices = @transform_9, window_bounds = array<i64: 1, 256, 128>}]} {
    %c0 = arith.constant 0 : index
    %c0_0 = arith.constant 0 : index
    %c0_1 = arith.constant 0 : index
    %0 = vector.load %arg2[%c0, %c0_0, %c0_1] : memref<1x256x128xf32, #tpu.memory_space<vmem>>, vector<1x256x128xf32>
    %1 = vector.shape_cast %0 : vector<1x256x128xf32> to vector<256x128xf32>
    %c0_2 = arith.constant 0 : index
    %c0_3 = arith.constant 0 : index
    %2 = vector.load %arg6[%c0_2, %c0_3] : memref<128x128xf32, #tpu.memory_space<vmem>>, vector<128x128xf32>
    %cst = arith.constant dense<0.000000e+00> : vector<256x128xf32>
    %3 = tpu.matmul %1, %2, %cst {dimension_numbers = #tpu.dot_dimension_numbers<[1], [0], [0], [1], [0, 0, 1, 1], [], []>} : vector<256x128xf32>, vector<128x128xf32>, vector<256x128xf32> -> vector<256x128xf32>
    %c0_4 = arith.constant 0 : index
    %c0_5 = arith.constant 0 : index
    %4 = vector.load %arg7[%c0_4, %c0_5] : memref<1x128xf32, #tpu.memory_space<vmem>>, vector<1x128xf32>
    %5 = vector.broadcast %4 : vector<1x128xf32> to vector<256x128xf32>
    %6 = arith.addf %3, %5 : vector<256x128xf32>
    %cst_6 = arith.constant 0.000000e+00 : f32
    %7 = vector.broadcast %cst_6 : f32 to vector<256x128xf32>
    %cst_7 = arith.constant 0.000000e+00 : f32
    %8 = vector.broadcast %cst_7 : f32 to vector<256x128xf32>
    %c0_8 = arith.constant 0 : index
    %c0_9 = arith.constant 0 : index
    %c0_10 = arith.constant 0 : index
    %9 = vector.load %arg3[%c0_8, %c0_9, %c0_10] : memref<4x256x36xf32, #tpu.memory_space<vmem>>, vector<1x256x36xf32>
    %10 = vector.shape_cast %9 : vector<1x256x36xf32> to vector<256x36xf32>
    %c0_11 = arith.constant 0 : index
    %c0_12 = arith.constant 0 : index
    %c0_13 = arith.constant 0 : index
    %c0_14 = arith.constant 0 : index
    %11 = vector.load %arg5[%c0_11, %c0_12, %c0_13, %c0_14] : memref<4x1x36x128xf32, #tpu.memory_space<vmem>>, vector<1x1x36x128xf32>
    %12 = vector.shape_cast %11 : vector<1x1x36x128xf32> to vector<36x128xf32>
    %cst_15 = arith.constant dense<0.000000e+00> : vector<256x128xf32>
    %13 = tpu.matmul %10, %12, %cst_15 {dimension_numbers = #tpu.dot_dimension_numbers<[1], [0], [0], [1], [0, 0, 1, 1], [], []>} : vector<256x36xf32>, vector<36x128xf32>, vector<256x128xf32> -> vector<256x128xf32>
    %14 = arith.subf %6, %13 : vector<256x128xf32>
    %cst_16 = arith.constant 5.000000e-01 : f32
    %15 = vector.broadcast %cst_16 : f32 to vector<256x128xf32>
    %16 = arith.mulf %15, %14 : vector<256x128xf32>
    %17 = math.tanh %16 : vector<256x128xf32>
    %cst_17 = arith.constant 5.000000e-01 : f32
    %18 = vector.broadcast %cst_17 : f32 to vector<256x128xf32>
    %19 = arith.mulf %18, %17 : vector<256x128xf32>
    %cst_18 = arith.constant 5.000000e-01 : f32
    %20 = vector.broadcast %cst_18 : f32 to vector<256x128xf32>
    %21 = arith.addf %19, %20 : vector<256x128xf32>
    %c0_19 = arith.constant 0 : index
    %c0_20 = arith.constant 0 : index
    %c0_21 = arith.constant 0 : index
    %c0_22 = arith.constant 0 : index
    %22 = vector.load %arg4[%c0_19, %c0_20, %c0_21, %c0_22] : memref<4x1x36x128xf32, #tpu.memory_space<vmem>>, vector<1x1x36x128xf32>
    %23 = vector.shape_cast %22 : vector<1x1x36x128xf32> to vector<36x128xf32>
    %cst_23 = arith.constant dense<0.000000e+00> : vector<256x128xf32>
    %24 = tpu.matmul %10, %23, %cst_23 {dimension_numbers = #tpu.dot_dimension_numbers<[1], [0], [0], [1], [0, 0, 1, 1], [], []>} : vector<256x36xf32>, vector<36x128xf32>, vector<256x128xf32> -> vector<256x128xf32>
    %25 = arith.mulf %24, %21 : vector<256x128xf32>
    %26 = arith.addf %7, %25 : vector<256x128xf32>
    %27 = arith.addf %8, %21 : vector<256x128xf32>
    %c1 = arith.constant 1 : index
    %c0_24 = arith.constant 0 : index
    %c0_25 = arith.constant 0 : index
    %28 = vector.load %arg3[%c1, %c0_24, %c0_25] : memref<4x256x36xf32, #tpu.memory_space<vmem>>, vector<1x256x36xf32>
    %29 = vector.shape_cast %28 : vector<1x256x36xf32> to vector<256x36xf32>
    %c1_26 = arith.constant 1 : index
    %c0_27 = arith.constant 0 : index
    %c0_28 = arith.constant 0 : index
    %c0_29 = arith.constant 0 : index
    %30 = vector.load %arg5[%c1_26, %c0_27, %c0_28, %c0_29] : memref<4x1x36x128xf32, #tpu.memory_space<vmem>>, vector<1x1x36x128xf32>
    %31 = vector.shape_cast %30 : vector<1x1x36x128xf32> to vector<36x128xf32>
    %cst_30 = arith.constant dense<0.000000e+00> : vector<256x128xf32>
    %32 = tpu.matmul %29, %31, %cst_30 {dimension_numbers = #tpu.dot_dimension_numbers<[1], [0], [0], [1], [0, 0, 1, 1], [], []>} : vector<256x36xf32>, vector<36x128xf32>, vector<256x128xf32> -> vector<256x128xf32>
    %33 = arith.subf %6, %32 : vector<256x128xf32>
    %cst_31 = arith.constant 5.000000e-01 : f32
    %34 = vector.broadcast %cst_31 : f32 to vector<256x128xf32>
    %35 = arith.mulf %34, %33 : vector<256x128xf32>
    %36 = math.tanh %35 : vector<256x128xf32>
    %cst_32 = arith.constant 5.000000e-01 : f32
    %37 = vector.broadcast %cst_32 : f32 to vector<256x128xf32>
    %38 = arith.mulf %37, %36 : vector<256x128xf32>
    %cst_33 = arith.constant 5.000000e-01 : f32
    %39 = vector.broadcast %cst_33 : f32 to vector<256x128xf32>
    %40 = arith.addf %38, %39 : vector<256x128xf32>
    %c1_34 = arith.constant 1 : index
    %c0_35 = arith.constant 0 : index
    %c0_36 = arith.constant 0 : index
    %c0_37 = arith.constant 0 : index
    %41 = vector.load %arg4[%c1_34, %c0_35, %c0_36, %c0_37] : memref<4x1x36x128xf32, #tpu.memory_space<vmem>>, vector<1x1x36x128xf32>
    %42 = vector.shape_cast %41 : vector<1x1x36x128xf32> to vector<36x128xf32>
    %cst_38 = arith.constant dense<0.000000e+00> : vector<256x128xf32>
    %43 = tpu.matmul %29, %42, %cst_38 {dimension_numbers = #tpu.dot_dimension_numbers<[1], [0], [0], [1], [0, 0, 1, 1], [], []>} : vector<256x36xf32>, vector<36x128xf32>, vector<256x128xf32> -> vector<256x128xf32>
    %44 = arith.mulf %43, %40 : vector<256x128xf32>
    %45 = arith.addf %26, %44 : vector<256x128xf32>
    %46 = arith.addf %27, %40 : vector<256x128xf32>
    %c2 = arith.constant 2 : index
    %c0_39 = arith.constant 0 : index
    %c0_40 = arith.constant 0 : index
    %47 = vector.load %arg3[%c2, %c0_39, %c0_40] : memref<4x256x36xf32, #tpu.memory_space<vmem>>, vector<1x256x36xf32>
    %48 = vector.shape_cast %47 : vector<1x256x36xf32> to vector<256x36xf32>
    %c2_41 = arith.constant 2 : index
    %c0_42 = arith.constant 0 : index
    %c0_43 = arith.constant 0 : index
    %c0_44 = arith.constant 0 : index
    %49 = vector.load %arg5[%c2_41, %c0_42, %c0_43, %c0_44] : memref<4x1x36x128xf32, #tpu.memory_space<vmem>>, vector<1x1x36x128xf32>
    %50 = vector.shape_cast %49 : vector<1x1x36x128xf32> to vector<36x128xf32>
    %cst_45 = arith.constant dense<0.000000e+00> : vector<256x128xf32>
    %51 = tpu.matmul %48, %50, %cst_45 {dimension_numbers = #tpu.dot_dimension_numbers<[1], [0], [0], [1], [0, 0, 1, 1], [], []>} : vector<256x36xf32>, vector<36x128xf32>, vector<256x128xf32> -> vector<256x128xf32>
    %52 = arith.subf %6, %51 : vector<256x128xf32>
    %cst_46 = arith.constant 5.000000e-01 : f32
    %53 = vector.broadcast %cst_46 : f32 to vector<256x128xf32>
    %54 = arith.mulf %53, %52 : vector<256x128xf32>
    %55 = math.tanh %54 : vector<256x128xf32>
    %cst_47 = arith.constant 5.000000e-01 : f32
    %56 = vector.broadcast %cst_47 : f32 to vector<256x128xf32>
    %57 = arith.mulf %56, %55 : vector<256x128xf32>
    %cst_48 = arith.constant 5.000000e-01 : f32
    %58 = vector.broadcast %cst_48 : f32 to vector<256x128xf32>
    %59 = arith.addf %57, %58 : vector<256x128xf32>
    %c2_49 = arith.constant 2 : index
    %c0_50 = arith.constant 0 : index
    %c0_51 = arith.constant 0 : index
    %c0_52 = arith.constant 0 : index
    %60 = vector.load %arg4[%c2_49, %c0_50, %c0_51, %c0_52] : memref<4x1x36x128xf32, #tpu.memory_space<vmem>>, vector<1x1x36x128xf32>
    %61 = vector.shape_cast %60 : vector<1x1x36x128xf32> to vector<36x128xf32>
    %cst_53 = arith.constant dense<0.000000e+00> : vector<256x128xf32>
    %62 = tpu.matmul %48, %61, %cst_53 {dimension_numbers = #tpu.dot_dimension_numbers<[1], [0], [0], [1], [0, 0, 1, 1], [], []>} : vector<256x36xf32>, vector<36x128xf32>, vector<256x128xf32> -> vector<256x128xf32>
    %63 = arith.mulf %62, %59 : vector<256x128xf32>
    %64 = arith.addf %45, %63 : vector<256x128xf32>
    %65 = arith.addf %46, %59 : vector<256x128xf32>
    %c3 = arith.constant 3 : index
    %c0_54 = arith.constant 0 : index
    %c0_55 = arith.constant 0 : index
    %66 = vector.load %arg3[%c3, %c0_54, %c0_55] : memref<4x256x36xf32, #tpu.memory_space<vmem>>, vector<1x256x36xf32>
    %67 = vector.shape_cast %66 : vector<1x256x36xf32> to vector<256x36xf32>
    %c3_56 = arith.constant 3 : index
    %c0_57 = arith.constant 0 : index
    %c0_58 = arith.constant 0 : index
    %c0_59 = arith.constant 0 : index
    %68 = vector.load %arg5[%c3_56, %c0_57, %c0_58, %c0_59] : memref<4x1x36x128xf32, #tpu.memory_space<vmem>>, vector<1x1x36x128xf32>
    %69 = vector.shape_cast %68 : vector<1x1x36x128xf32> to vector<36x128xf32>
    %cst_60 = arith.constant dense<0.000000e+00> : vector<256x128xf32>
    %70 = tpu.matmul %67, %69, %cst_60 {dimension_numbers = #tpu.dot_dimension_numbers<[1], [0], [0], [1], [0, 0, 1, 1], [], []>} : vector<256x36xf32>, vector<36x128xf32>, vector<256x128xf32> -> vector<256x128xf32>
    %71 = arith.subf %6, %70 : vector<256x128xf32>
    %cst_61 = arith.constant 5.000000e-01 : f32
    %72 = vector.broadcast %cst_61 : f32 to vector<256x128xf32>
    %73 = arith.mulf %72, %71 : vector<256x128xf32>
    %74 = math.tanh %73 : vector<256x128xf32>
    %cst_62 = arith.constant 5.000000e-01 : f32
    %75 = vector.broadcast %cst_62 : f32 to vector<256x128xf32>
    %76 = arith.mulf %75, %74 : vector<256x128xf32>
    %cst_63 = arith.constant 5.000000e-01 : f32
    %77 = vector.broadcast %cst_63 : f32 to vector<256x128xf32>
    %78 = arith.addf %76, %77 : vector<256x128xf32>
    %c3_64 = arith.constant 3 : index
    %c0_65 = arith.constant 0 : index
    %c0_66 = arith.constant 0 : index
    %c0_67 = arith.constant 0 : index
    %79 = vector.load %arg4[%c3_64, %c0_65, %c0_66, %c0_67] : memref<4x1x36x128xf32, #tpu.memory_space<vmem>>, vector<1x1x36x128xf32>
    %80 = vector.shape_cast %79 : vector<1x1x36x128xf32> to vector<36x128xf32>
    %cst_68 = arith.constant dense<0.000000e+00> : vector<256x128xf32>
    %81 = tpu.matmul %67, %80, %cst_68 {dimension_numbers = #tpu.dot_dimension_numbers<[1], [0], [0], [1], [0, 0, 1, 1], [], []>} : vector<256x36xf32>, vector<36x128xf32>, vector<256x128xf32> -> vector<256x128xf32>
    %82 = arith.mulf %81, %78 : vector<256x128xf32>
    %83 = arith.addf %64, %82 : vector<256x128xf32>
    %84 = arith.addf %65, %78 : vector<256x128xf32>
    %cst_69 = arith.constant 9.99999968E-21 : f32
    %85 = vector.broadcast %cst_69 : f32 to vector<256x128xf32>
    %86 = arith.maximumf %84, %85 : vector<256x128xf32>
    %87 = tpu.reciprocal %86 {approx = true} : vector<256x128xf32> -> vector<256x128xf32>
    %88 = arith.mulf %83, %87 : vector<256x128xf32>
    %c0_70 = arith.constant 0 : index
    %c0_71 = arith.constant 0 : index
    %89 = vector.load %arg8[%c0_70, %c0_71] : memref<128x128xf32, #tpu.memory_space<vmem>>, vector<128x128xf32>
    %cst_72 = arith.constant dense<0.000000e+00> : vector<256x128xf32>
    %90 = tpu.matmul %88, %89, %cst_72 {dimension_numbers = #tpu.dot_dimension_numbers<[1], [0], [0], [1], [0, 0, 1, 1], [], []>} : vector<256x128xf32>, vector<128x128xf32>, vector<256x128xf32> -> vector<256x128xf32>
    %c0_73 = arith.constant 0 : index
    %c0_74 = arith.constant 0 : index
    %91 = vector.load %arg9[%c0_73, %c0_74] : memref<128x128xf32, #tpu.memory_space<vmem>>, vector<128x128xf32>
    %cst_75 = arith.constant dense<0.000000e+00> : vector<256x128xf32>
    %92 = tpu.matmul %1, %91, %cst_75 {dimension_numbers = #tpu.dot_dimension_numbers<[1], [0], [0], [1], [0, 0, 1, 1], [], []>} : vector<256x128xf32>, vector<128x128xf32>, vector<256x128xf32> -> vector<256x128xf32>
    %93 = arith.addf %90, %92 : vector<256x128xf32>
    %c0_76 = arith.constant 0 : index
    %c0_77 = arith.constant 0 : index
    %94 = vector.load %arg10[%c0_76, %c0_77] : memref<1x128xf32, #tpu.memory_space<vmem>>, vector<1x128xf32>
    %95 = vector.broadcast %94 : vector<1x128xf32> to vector<256x128xf32>
    %96 = arith.addf %93, %95 : vector<256x128xf32>
    %cst_78 = arith.constant 0.000000e+00 : f32
    %97 = vector.broadcast %cst_78 : f32 to vector<256x128xf32>
    %98 = arith.maximumf %96, %97 : vector<256x128xf32>
    %c0_79 = arith.constant 0 : index
    %c0_80 = arith.constant 0 : index
    %c0_81 = arith.constant 0 : index
    %99 = vector.load %arg11[%c0_79, %c0_80, %c0_81] : memref<1x256x128xf32, #tpu.memory_space<vmem>>, vector<1x256x128xf32>
    %100 = vector.shape_cast %99 : vector<1x256x128xf32> to vector<256x128xf32>
    %101 = vector.shape_cast %98 : vector<256x128xf32> to vector<1x256x128xf32>
    tpu.vector_store %arg11[%c0_79, %c0_80, %c0_81], %101 {strides = array<i32>} : memref<1x256x128xf32, #tpu.memory_space<vmem>>, vector<1x256x128xf32>,
    return
  }
  func.func @transform_0(%arg0: i32, %arg1: i32) -> (i32, i32, i32) {
    %c0_i32 = arith.constant 0 : i32
    %c0_i32_0 = arith.constant 0 : i32
    return %arg0, %arg1, %c0_i32 : i32, i32, i32
  }
  func.func @transform_1(%arg0: i32, %arg1: i32) -> (i32, i32, i32) {
    %c0_i32 = arith.constant 0 : i32
    %c0_i32_0 = arith.constant 0 : i32
    %c0_i32_1 = arith.constant 0 : i32
    return %c0_i32, %arg1, %c0_i32_0 : i32, i32, i32
  }
  func.func @transform_2(%arg0: i32, %arg1: i32) -> (i32, i32, i32, i32) {
    %c0_i32 = arith.constant 0 : i32
    %c0_i32_0 = arith.constant 0 : i32
    %c0_i32_1 = arith.constant 0 : i32
    %c0_i32_2 = arith.constant 0 : i32
    return %c0_i32, %arg0, %c0_i32_0, %c0_i32_1 : i32, i32, i32, i32
  }
  func.func @transform_3(%arg0: i32, %arg1: i32) -> (i32, i32, i32, i32) {
    %c0_i32 = arith.constant 0 : i32
    %c0_i32_0 = arith.constant 0 : i32
    %c0_i32_1 = arith.constant 0 : i32
    %c0_i32_2 = arith.constant 0 : i32
    return %c0_i32, %arg0, %c0_i32_0, %c0_i32_1 : i32, i32, i32, i32
  }
  func.func @transform_4(%arg0: i32, %arg1: i32) -> (i32, i32) {
    %c0_i32 = arith.constant 0 : i32
    %c0_i32_0 = arith.constant 0 : i32
    %c0_i32_1 = arith.constant 0 : i32
    return %c0_i32, %c0_i32_0 : i32, i32
  }
  func.func @transform_5(%arg0: i32, %arg1: i32) -> (i32, i32) {
    %c0_i32 = arith.constant 0 : i32
    %c0_i32_0 = arith.constant 0 : i32
    %c0_i32_1 = arith.constant 0 : i32
    return %c0_i32, %c0_i32_0 : i32, i32
  }
  func.func @transform_6(%arg0: i32, %arg1: i32) -> (i32, i32) {
    %c0_i32 = arith.constant 0 : i32
    %c0_i32_0 = arith.constant 0 : i32
    %c0_i32_1 = arith.constant 0 : i32
    return %c0_i32, %c0_i32_0 : i32, i32
  }
  func.func @transform_7(%arg0: i32, %arg1: i32) -> (i32, i32) {
    %c0_i32 = arith.constant 0 : i32
    %c0_i32_0 = arith.constant 0 : i32
    %c0_i32_1 = arith.constant 0 : i32
    return %c0_i32, %c0_i32_0 : i32, i32
  }
  func.func @transform_8(%arg0: i32, %arg1: i32) -> (i32, i32) {
    %c0_i32 = arith.constant 0 : i32
    %c0_i32_0 = arith.constant 0 : i32
    %c0_i32_1 = arith.constant 0 : i32
    return %c0_i32, %c0_i32_0 : i32, i32
  }
  func.func @transform_9(%arg0: i32, %arg1: i32) -> (i32, i32, i32) {
    %c0_i32 = arith.constant 0 : i32
    %c0_i32_0 = arith.constant 0 : i32
    return %arg0, %arg1, %c0_i32 : i32, i32, i32
  }
}

</mosaic_0001>

<bundles_post_ra>
// kernel: tpu_custom_call.1
= control target key start
LH: loop header
LB: loop body
LE: loop exit
PB: predicated region body
PF: predicated region fallthrough
CT: control target
= control target key end

     0   :  { %14 = vsyncpa [#allocation5], 0  ;;  %s7433_s0 = inlined_call_operand.vmem [shape: f32[2,256,128], index: 0, kind: input, shape index: {}]   ;;  %s7434_s1 = inlined_call_operand.vmem [shape: f32[4,256,36], index: 1, kind: input, shape index: {}]   ;;  %s7435_s2 = inlined_call_operand.vmem [shape: f32[4,2,36,128], index: 2, kind: input, shape index: {}]   ;;  %s7436_s3 = inlined_call_operand.vmem [shape: f32[4,2,36,128], index: 3, kind: input, shape index: {}]   ;;  %s7437_s4 = inlined_call_operand.vmem [shape: f32[128,128], index: 4, kind: input, shape index: {}]   ;;  %s7438_s5 = inlined_call_operand.vmem [shape: f32[1,128], index: 5, kind: input, shape index: {}]   ;;  %s7439_s6 = inlined_call_operand.vmem [shape: f32[128,128], index: 6, kind: input, shape index: {}]   ;;  %s7440_s7 = inlined_call_operand.vmem [shape: f32[128,128], index: 7, kind: input, shape index: {}]   ;;  %s7441_s8 = inlined_call_operand.vmem [shape: f32[1,128], index: 8, kind: input, shape index: {}]   ;;  %s7442_s9 = inlined_call_operand.hbm [shape: f32[2,256,128], index: 9, kind: output, shape index: {}]  }
   0x1   :  { %16 = vsyncpa [#allocation5 + $0x1], 0  ;;  %s4842_s30 = smov 0   ;;  %s4844_s10 = smov 0  }
   0x2   :  { %s4846_s11 = smov 0   ;;  %s4848_s12 = smov 0  }
   0x3   :  { %s4850_s13 = smov 0   ;;  %s4852_s14 = smov 0  }
   0x4 LB: > { %s3900_s15 = sadd.s32 4294967295, %s4788_s14   ;;  %s3901_s16 = sadd.s32 4294967294, %s4788_s14   ;;  %s4788_s14 = sphi %s4852_s14, %s22_s14   ;;  %s4784_s13 = sphi %s4850_s13, %s7789_s13   ;;  %s4780_s12 = sphi %s4848_s12, %s7788_s12   ;;  %s4776_s11 = sphi %s4846_s11, %s7787_s11   ;;  %s4772_s10 = sphi %s4844_s10, %s7786_s10   ;;  %s4768_s30 = sphi %s4842_s30, %s7785_s30  }
   0x5   : > { %s34_s17 = sadd.s32 1, %s4784_s13  ;;  %s95_s18 = sadd.s32 1, %s4776_s11 }
   0x6   : > { %p36_p0 = scmp.ge.s32.totalorder %s34_s17, 2  ;;  %p108_p1 = scmp.ne.s32.totalorder %s4772_s10, %s4768_s30 }
   0x7   : > { %p109_p2 = scmp.eq.s32.totalorder %s3900_s15, 0  ;;  %p264_p3 = scmp.ne.s32.totalorder %s4776_s11, %s4772_s10 }
   0x8   : > { %s7791_s17 = smov (%p36_p0, %s34_s17), 0  ;;  %p265_p5 = scmp.eq.s32.totalorder %s3900_s15, 1 }
   0x9   : > { %p4882_p4 = por %p109_p2, %p108_p1  ;;  %s92_s20 = ssub.s32 %s4784_s13, %s7791_s17 }
   0xa   : > { %p271_p6 = scmp.eq.s32.totalorder %s3901_s16, 1  ;;  %p93_p7 = scmp.eq.s32.totalorder %s92_s20, 0 }
   0xb   : > { %p4888_p8 = por %p265_p5, %p264_p3  ;;  %p3902_p10 = scmp.ge.s32.totalorder %s4788_s14, 1 }
   0xc   : > { %p4892_p9 = por %p271_p6, %p108_p1  ;;  %p278_p11 = scmp.lt.s32.totalorder %s4788_s14, 3 }
   0xd   : > { %s4898_s23 = scalar_select %p93_p7, %s4776_s11, %s95_s18  }
   0xe   : > { %p4901_p12 = pnand %p3902_p10, %p278_p11 }
  0x10   : > { %282 = sbr.rel (%p4901_p12) target bundleno = 71 (0x47), region = 12 }
  0x15   : > { %295 = sbr.rel (!%p4882_p4) target bundleno = 46 (0x2e), region = 20 }
  0x16   : > { %s4293_s25 = smul.u32 (%p4882_p4), 40, %s4780_s12 }
  0x18   : > { %s4913_s28 = scalar_lea.vmem (%p4882_p4), %s7435_s2, %s4293_s25 }
  0x19   : > { %v365_v0 = vld [vmem:[%s4913_s28] sm:$0xff] (%p4882_p4)  ;;  %v367_v1 = vld [vmem:[%s4913_s28 + $0x8] sm:$0xff] (%p4882_p4)  ;;  %v369_v2 = vld [vmem:[%s4913_s28 + $0x10] sm:$0xff] (%p4882_p4) }
  0x1a   : > { %366 = vst [vmem:[#allocation2] sm:$0xff] %v365_v0  ;;  %v371_v3 = vld [vmem:[%s4913_s28 + $0x18] sm:$0xff]  ;;  %v373_v4 = vld [vmem:[%s4913_s28 + $0x20] sm:$0xff]  ;;  %v375_v5 = vld [vmem:[%s4913_s28 + $0x50] sm:$0xff] }
  0x1b   : > { %368 = vst [vmem:[#allocation2 + $0x38] sm:$0xff] %v367_v1  ;;  %v377_v6 = vld [vmem:[%s4913_s28 + $0x58] sm:$0xff]  ;;  %v379_v7 = vld [vmem:[%s4913_s28 + $0x60] sm:$0xff]  ;;  %v381_v8 = vld [vmem:[%s4913_s28 + $0x68] sm:$0xff] }
  0x1c   : > { %370 = vst [vmem:[#allocation2 + $0x50] sm:$0xff] %v369_v2  ;;  %v383_v9 = vld [vmem:[%s4913_s28 + $0x70] sm:$0xff]  ;;  %v385_v10 = vld [vmem:[%s4913_s28 + $0xa0] sm:$0xff]  ;;  %v387_v11 = vld [vmem:[%s4913_s28 + $0xa8] sm:$0xff] }
  0x1d   : > { %372 = vst [vmem:[#allocation2 + $0x18] sm:$0xff] %v371_v3  ;;  %v389_v12 = vld [vmem:[%s4913_s28 + $0xb0] sm:$0xff]  ;;  %v391_v13 = vld [vmem:[%s4913_s28 + $0xb8] sm:$0xff]  ;;  %v393_v14 = vld [vmem:[%s4913_s28 + $0xc0] sm:$0xff] }
  0x1e   : > { %374 = vst [vmem:[#allocation2 + $0x30] sm:$0xff] %v373_v4  ;;  %v395_v15 = vld [vmem:[%s4913_s28 + $0xf0] sm:$0xff]  ;;  %v397_v16 = vld [vmem:[%s4913_s28 + $0xf8] sm:$0xff]  ;;  %v399_v17 = vld [vmem:[%s4913_s28 + $0x100] sm:$0xff] }
  0x1f   : > { %376 = vst [vmem:[#allocation2 + $0x68] sm:$0xff] %v375_v5  ;;  %v401_v18 = vld [vmem:[%s4913_s28 + $0x108] sm:$0xff]  ;;  %v403_v19 = vld [vmem:[%s4913_s28 + $0x110] sm:$0xff] }
  0x20   : > { %378 = vst [vmem:[#allocation2 + $0x78] sm:$0xff] %v377_v6 }
  0x21   : > { %380 = vst [vmem:[#allocation2 + $0x80] sm:$0xff] %v379_v7 }
  0x22   : > { %382 = vst [vmem:[#allocation2 + $0x8] sm:$0xff] %v381_v8 }
  0x23   : > { %384 = vst [vmem:[#allocation2 + $0x88] sm:$0xff] %v383_v9 }
  0x24   : > { %386 = vst [vmem:[#allocation2 + $0x28] sm:$0xff] %v385_v10 }
  0x25   : > { %388 = vst [vmem:[#allocation2 + $0x40] sm:$0xff] %v387_v11 }
  0x26   : > { %390 = vst [vmem:[#allocation2 + $0x58] sm:$0xff] %v389_v12 }
  0x27   : > { %392 = vst [vmem:[#allocation2 + $0x10] sm:$0xff] %v391_v13 }
  0x28   : > { %394 = vst [vmem:[#allocation2 + $0x98] sm:$0xff] %v393_v14 }
  0x29   : > { %396 = vst [vmem:[#allocation2 + $0x60] sm:$0xff] %v395_v15 }
  0x2a   : > { %398 = vst [vmem:[#allocation2 + $0x20] sm:$0xff] %v397_v16 }
  0x2b   : > { %400 = vst [vmem:[#allocation2 + $0x48] sm:$0xff] %v399_v17 }
  0x2c   : > { %402 = vst [vmem:[#allocation2 + $0x70] sm:$0xff] %v401_v18 }
  0x2d   : > { %404 = vst [vmem:[#allocation2 + $0x90] sm:$0xff] %v403_v19 }
  0x2e PF: > { %410 = sbr.rel (!%p4882_p4) target bundleno = 71 (0x47), region = 58 }
  0x2f   : > { %s4294_s29 = smul.u32 (%p4882_p4), 40, %s4780_s12 }
  0x31   : > { %s4941_s18 = scalar_lea.vmem (%p4882_p4), %s7436_s3, %s4294_s29 }
  0x32   : > { %v480_v20 = vld [vmem:[%s4941_s18] sm:$0xff] (%p4882_p4)  ;;  %v482_v21 = vld [vmem:[%s4941_s18 + $0x8] sm:$0xff] (%p4882_p4)  ;;  %v484_v22 = vld [vmem:[%s4941_s18 + $0x10] sm:$0xff] (%p4882_p4) }
  0x33   : > { %481 = vst [vmem:[#allocation3 + $0x28] sm:$0xff] %v480_v20  ;;  %v486_v23 = vld [vmem:[%s4941_s18 + $0x18] sm:$0xff]  ;;  %v488_v24 = vld [vmem:[%s4941_s18 + $0x20] sm:$0xff]  ;;  %v490_v25 = vld [vmem:[%s4941_s18 + $0x50] sm:$0xff] }
  0x34   : > { %483 = vst [vmem:[#allocation3 + $0x38] sm:$0xff] %v482_v21  ;;  %v492_v26 = vld [vmem:[%s4941_s18 + $0x58] sm:$0xff]  ;;  %v494_v27 = vld [vmem:[%s4941_s18 + $0x60] sm:$0xff]  ;;  %v496_v28 = vld [vmem:[%s4941_s18 + $0x68] sm:$0xff] }
  0x35   : > { %485 = vst [vmem:[#allocation3 + $0x68] sm:$0xff] %v484_v22  ;;  %v498_v29 = vld [vmem:[%s4941_s18 + $0x70] sm:$0xff]  ;;  %v500_v30 = vld [vmem:[%s4941_s18 + $0xa0] sm:$0xff]  ;;  %v502_v31 = vld [vmem:[%s4941_s18 + $0xa8] sm:$0xff] }
  0x36   : > { %487 = vst [vmem:[#allocation3 + $0x18] sm:$0xff] %v486_v23  ;;  %v504_v32 = vld [vmem:[%s4941_s18 + $0xb0] sm:$0xff]  ;;  %v506_v33 = vld [vmem:[%s4941_s18 + $0xb8] sm:$0xff]  ;;  %v508_v34 = vld [vmem:[%s4941_s18 + $0xc0] sm:$0xff] }
  0x37   : > { %489 = vst [vmem:[#allocation3 + $0x70] sm:$0xff] %v488_v24  ;;  %v510_v35 = vld [vmem:[%s4941_s18 + $0xf0] sm:$0xff]  ;;  %v512_v36 = vld [vmem:[%s4941_s18 + $0xf8] sm:$0xff]  ;;  %v514_v37 = vld [vmem:[%s4941_s18 + $0x100] sm:$0xff] }
  0x38   : > { %491 = vst [vmem:[#allocation3 + $0x30] sm:$0xff] %v490_v25  ;;  %v516_v38 = vld [vmem:[%s4941_s18 + $0x108] sm:$0xff]  ;;  %v518_v39 = vld [vmem:[%s4941_s18 + $0x110] sm:$0xff] }
  0x39   : > { %493 = vst [vmem:[#allocation3] sm:$0xff] %v492_v26 }
  0x3a   : > { %495 = vst [vmem:[#allocation3 + $0x20] sm:$0xff] %v494_v27 }
  0x3b   : > { %497 = vst [vmem:[#allocation3 + $0x88] sm:$0xff] %v496_v28 }
  0x3c   : > { %499 = vst [vmem:[#allocation3 + $0x90] sm:$0xff] %v498_v29 }
  0x3d   : > { %501 = vst [vmem:[#allocation3 + $0x40] sm:$0xff] %v500_v30 }
  0x3e   : > { %503 = vst [vmem:[#allocation3 + $0x8] sm:$0xff] %v502_v31 }
  0x3f   : > { %505 = vst [vmem:[#allocation3 + $0x80] sm:$0xff] %v504_v32 }
  0x40   : > { %507 = vst [vmem:[#allocation3 + $0x78] sm:$0xff] %v506_v33 }
  0x41   : > { %509 = vst [vmem:[#allocation3 + $0x50] sm:$0xff] %v508_v34 }
  0x42   : > { %511 = vst [vmem:[#allocation3 + $0x10] sm:$0xff] %v510_v35 }
  0x43   : > { %513 = vst [vmem:[#allocation3 + $0x60] sm:$0xff] %v512_v36 }
  0x44   : > { %515 = vst [vmem:[#allocation3 + $0x58] sm:$0xff] %v514_v37 }
  0x45   : > { %517 = vst [vmem:[#allocation3 + $0x98] sm:$0xff] %v516_v38 }
  0x46   : > { %519 = vst [vmem:[#allocation3 + $0x48] sm:$0xff] %v518_v39 }
  0x47 PF: > { %560 = sbr.rel (%p4901_p12) target bundleno = 1076 (0x434), region = 124 }
  0x4c   : > { %v671_v40 = vld [vmem:[%s7437_s4 + $0x78] sm:$0xff]  ;;  %v4968_v41 = vld [vmem:[#allocation3 + $0x70] sm:$0xf]  ;;  %vm923_vm0 = vcmask 1043456   ;;  %v669_v46 = vld [vmem:[%s7437_s4 + $0x68] sm:$0xff]  ;;  %vm826_vm1 = vcmask 293888  }
  0x4d   : > { %v4970_v42 = vld [vmem:[#allocation2 + $0x30] sm:$0xf]  ;;  %676 = vmatpush.msra.mxu0 %v671_v40  ;;  %4278 = vmatpush.msk.msra.mxu1 %vm923_vm0, %v4968_v41  ;;  %v4977_v44 = vld [vmem:[#allocation3 + $0x18] sm:$0xff]  ;;  %v4986_v47 = vld [vmem:[#allocation3 + $0x68] sm:$0xff]  ;;  %p608_p13 = scmp.lt.s32.totalorder %s4780_s12, 1  ;;  %s604_s18 = sand.u32 1, %s4772_s10  }
  0x4e   : > { %v670_v43 = vld [vmem:[%s7437_s4 + $0x70] sm:$0xff]  ;;  %v4979_v45 = vld [vmem:[#allocation2 + $0x18] sm:$0xff]  ;;  %4283 = vmatpush.msk.msra.mxu2 %vm923_vm0, %v4970_v42  ;;  %v668_v49 = vld [vmem:[%s7437_s4 + $0x60] sm:$0xff]  ;;  %s7076_s26 = sshll.u32 %s604_s18, 8  ;;  %s4277_s15 = sshll.u32 %s4780_s12, 8 }
  0x4f   : > { %677 = vmatpush.msra.mxu0 %v670_v43  ;;  %4279 = vmatpush.msra.mxu1 %v4977_v44  ;;  %v4989_v48 = vld [vmem:[#allocation2 + $0x50] sm:$0xff]  ;;  %v4995_v50 = vld [vmem:[#allocation3 + $0x38] sm:$0xff]  ;;  %v5004_v53 = vld [vmem:[#allocation3 + $0x28] sm:$0xff]  ;;  %s609_s28 = scalar_select %p608_p13, %s4780_s12, 1 }
  0x50   : > { %4284 = vmatpush.msra.mxu2 %v4979_v45  ;;  %v4998_v51 = vld [vmem:[#allocation2 + $0x38] sm:$0xff]  ;;  %v5006_v54 = vld [vmem:[#allocation3 + $0x90] sm:$0xf]  ;;  %v5009_v55 = vld [vmem:[#allocation2] sm:$0xff]  ;;  %s7090_s24 = scalar_lea.vmem [#allocation4], %s7076_s26  ;;  %s3772_s20 = scalar_lea.hbm %s7442_s9, %s4277_s15 }
  0x51   : > { %678 = vmatpush.msra.mxu0 %v669_v46  ;;  %4280 = vmatpush.msra.mxu1 %v4986_v47  ;;  %v667_v52 = vld [vmem:[%s7437_s4 + $0x58] sm:$0xff]  ;;  %v666_v57 = vld [vmem:[%s7437_s4 + $0x50] sm:$0xff]  ;;  %v5021_v58 = vld [vmem:[#allocation3 + $0x88] sm:$0xff]  ;;  %s4276_s25 = sshll.u32 %s609_s28, 8  ;;  %s3773_s26 = sshll.u32 %s7090_s24, 4  ;;  %s3774_s26 = int_to_ptr.vmem [resolvable:$true] %s3773_s26 }
  0x52   : > { %4285 = vmatpush.msra.mxu2 %v4989_v48  ;;  %v796_v56 = vld [vmem:[%s7434_s1 + $0x38] sm:$0xff]  ;;  %4288 = vmatpush.msk.msra.mxu3 %vm923_vm0, %v5006_v54  ;;  %v1833_v59 = vld [vmem:[#allocation2 + $0x88] sm:$0xf]  ;;  %v5029_v61 = vld [vmem:[#allocation3 + $0x20] sm:$0xff]  ;;  %s5090_s28 = scalar_lea.vmem %s7433_s0, %s4276_s25  ;;  %s3775_s25 = sshll.u32 %s3772_s20, 4  ;;  %s3776_s25 = int_to_ptr.hbm [resolvable:$true] %s3775_s25 }
  0x53   : > { %679 = vmatpush.msra.mxu0 %v668_v49  ;;  %4281 = vmatpush.msra.mxu1 %v4995_v50  ;;  %v665_v60 = vld [vmem:[%s7437_s4 + $0x48] sm:$0xff]  ;;  %v664_v62 = vld [vmem:[%s7437_s4 + $0x40] sm:$0xff]  ;;  %v663_v0 = vld [vmem:[%s7437_s4 + $0x38] sm:$0xff]  ;;  %s3759_s12 = scalar_lea.sflag [#allocation5], %s604_s18  ;;  %s4724_s27 = sshra.s32 %s3776_s25, 4  ;;  %s4725_s27 = int_to_ptr.hbm [resolvable:$true] %s4724_s27 }
  0x54   : > { %4286 = vmatpush.msra.mxu2 %v4998_v51  ;;  %4289 = vmatpush.msra.mxu3 %v5021_v58  ;;  %v5036_v63 = vld [vmem:[#allocation3] sm:$0xff]  ;;  %v5045_v2 = vld [vmem:[#allocation3 + $0x30] sm:$0xff]  ;;  %v5055_v4 = vld [vmem:[%s7434_s1 + $0x138] sm:$0xff]  ;;  %s4730_s16 = scalar_lea.hbm %s7442_s9, 512  ;;  %p4731_p3 = scmp.lt.s32.totalorder %s4725_s27, %s7442_s9 }
  0x55   : > { %680 = vmatpush.msra.mxu0 %v667_v52  ;;  %4282 = vmatpush.msra.mxu1 %v5004_v53  ;;  %v797_v1 = vld [vmem:[%s7434_s1 + $0x40] sm:$0xff]  ;;  %v662_v3 = vld [vmem:[%s7437_s4 + $0x30] sm:$0xff]  ;;  %v661_v5 = vld [vmem:[%s7437_s4 + $0x28] sm:$0xff] }
  0x56   : > { %4287 = vmatpush.msra.mxu2 %v5009_v55  ;;  %3919 = vmatmul.msk.f32.vlgmr.msra.gmra.mxu1 %vm826_vm1, %v796_v56  ;;  %v660_v6 = vld [vmem:[%s7437_s4 + $0x20] sm:$0xff]  ;;  %v659_v7 = vld [vmem:[%s7437_s4 + $0x18] sm:$0xff]  ;;  %v798_v8 = vld [vmem:[%s7434_s1 + $0x48] sm:$0xff] }
  0x57   : > { %3952 = vmatmul.msk.f32.vlgmr.msra.gmra.mxu2 %vm826_vm1, %v796_v56  ;;  %681 = vmatpush.msra.mxu0 %v666_v57  ;;  %v658_v9 = vld [vmem:[%s7437_s4 + $0x10] sm:$0xff]  ;;  %v5081_v10 = vld [vmem:[%s7434_s1 + $0x140] sm:$0xff]  ;;  %v657_v11 = vld [vmem:[%s7437_s4 + $0x8] sm:$0xff] }
  0x58   : > { %4042 = vmatpush.msk.msrb.mxu1 %vm923_vm0, %v1833_v59  ;;  %4290 = vmatpush.msra.mxu3 %v5029_v61  ;;  %v1832_v12 = vld [vmem:[#allocation2 + $0x8] sm:$0xff]  ;;  %v656_v13 = vld [vmem:[%s7437_s4] sm:$0xff]  ;;  %v799_v15 = vld [vmem:[%s7434_s1 + $0x50] sm:$0xff] }
  0x59   : > { %682 = vmatpush.msra.mxu0 %v665_v60  ;;  %v624_v14 = vld [vmem:[%s5090_s28] sm:$0xff]  ;;  %v5107_v16 = vld [vmem:[%s7434_s1 + $0x148] sm:$0xff]  ;;  %v800_v18 = vld [vmem:[%s7434_s1 + $0x58] sm:$0xff] }
  0x5a   : > { %4291 = vmatpush.msra.mxu3 %v5036_v63  ;;  %1849 = vmatpush.msrb.mxu1 %v1832_v12  ;;  %v625_v17 = vld [vmem:[%s5090_s28 + $0x8] sm:$0xff]  ;;  %v5123_v19 = vld [vmem:[%s7434_s1 + $0x150] sm:$0xff]  ;;  %v801_v21 = vld [vmem:[%s7434_s1 + $0x60] sm:$0xff] }
  0x5b   : > { %683 = vmatpush.msra.mxu0 %v664_v62  ;;  %v626_v20 = vld [vmem:[%s5090_s28 + $0x10] sm:$0xff]  ;;  %v5141_v22 = vld [vmem:[%s7434_s1 + $0x158] sm:$0xff]  ;;  %v802_v24 = vld [vmem:[%s7434_s1 + $0x68] sm:$0xff] }
  0x5c   : > { %4292 = vmatpush.msra.mxu3 %v5045_v2  ;;  %v627_v23 = vld [vmem:[%s5090_s28 + $0x18] sm:$0xff]  ;;  %v5156_v25 = vld [vmem:[%s7434_s1 + $0x160] sm:$0xff]  ;;  %v803_v27 = vld [vmem:[%s7434_s1 + $0x70] sm:$0xff] }
  0x5d   : > { %684 = vmatpush.msra.mxu0 %v663_v0  ;;  %4017 = vmatmul.msk.f32.vlgmr.msra.gmra.mxu3 %vm826_vm1, %v5055_v4  ;;  %v628_v26 = vld [vmem:[%s5090_s28 + $0x20] sm:$0xff]  ;;  %v5169_v28 = vld [vmem:[%s7434_s1 + $0x168] sm:$0xff]  ;;  %v804_v31 = vld [vmem:[%s7434_s1 + $0x78] sm:$0xff] }
  0x5e   : > { %3920 = vmatmul.msk.f32.gmra.mxu1 %vm826_vm1, %v797_v1  ;;  %v1831_v29 = vld [vmem:[#allocation2 + $0x80] sm:$0xff]  ;;  %v629_v30 = vld [vmem:[%s5090_s28 + $0x28] sm:$0xff]  ;;  %v5182_v32 = vld [vmem:[%s7434_s1 + $0x170] sm:$0xff] }
  0x5f   : > { %3953 = vmatmul.msk.f32.gmra.mxu2 %vm826_vm1, %v797_v1  ;;  %685 = vmatpush.msra.mxu0 %v662_v3  ;;  %v630_v33 = vld [vmem:[%s5090_s28 + $0x30] sm:$0xff]  ;;  %v805_v34 = vld [vmem:[%s7434_s1 + $0x80] sm:$0xff]  ;;  %v5195_v35 = vld [vmem:[%s7434_s1 + $0x178] sm:$0xff] }
  0x60   : > { %1850 = vmatpush.msrb.mxu1 %v1831_v29  ;;  %v631_v36 = vld [vmem:[%s5090_s28 + $0x38] sm:$0xff]  ;;  %v806_v37 = vld [vmem:[%s7434_s1 + $0x88] sm:$0xff]  ;;  %v5208_v38 = vld [vmem:[%s7434_s1 + $0x180] sm:$0xff] }
  0x61   : > { %686 = vmatpush.msra.mxu0 %v661_v5  ;;  %v632_v39 = vld [vmem:[%s5090_s28 + $0x40] sm:$0xff]  ;;  %v807_v40 = vld [vmem:[%s7434_s1 + $0x90] sm:$0xff]  ;;  %v808_v43 = vld [vmem:[%s7434_s1 + $0x98] sm:$0xff] }
  0x62   : > { %v1830_v46 = vld [vmem:[#allocation2 + $0x78] sm:$0xff]  ;;  %v2084_v52 = vld [vmem:[#allocation3 + $0x50] sm:$0xf]  ;;  %v5275_v57 = vld [vmem:[%s7434_s1 + $0x1a8] sm:$0xff] }
  0x63   : > { %687 = vmatpush.msra.mxu0 %v660_v6  ;;  %1851 = vmatpush.msrb.mxu1 %v1830_v46  ;;  %v635_v49 = vld [vmem:[%s5090_s28 + $0x58] sm:$0xff]  ;;  %v811_v56 = vld [vmem:[%s7434_s1 + $0xb0] sm:$0xff]  ;;  %v637_v59 = vld [vmem:[%s5090_s28 + $0x68] sm:$0xff] }
  0x64   : > { %4107 = vmatpush.msk.msrb.mxu2 %vm923_vm0, %v2084_v52  ;;  %v812_v62 = vld [vmem:[%s7434_s1 + $0xb8] sm:$0xff]  ;;  %v5290_v0 = vld [vmem:[%s7434_s1 + $0x1b0] sm:$0xff]  ;;  %v813_v6 = vld [vmem:[%s7434_s1 + $0xc0] sm:$0xff] }
  0x65   : > { %688 = vmatpush.msra.mxu0 %v659_v7  ;;  %4018 = vmatmul.msk.f32.gmra.mxu3 %vm826_vm1, %v5081_v10  ;;  %v638_v1 = vld [vmem:[%s5090_s28 + $0x70] sm:$0xff]  ;;  %v5307_v7 = vld [vmem:[%s7434_s1 + $0x1b8] sm:$0xff]  ;;  %v2080_v52 = vld [vmem:[#allocation3 + $0x40] sm:$0xff] }
  0x66   : > { %3921 = vmatmul.msk.f32.gmra.mxu1 %vm826_vm1, %v798_v8  ;;  %v2461_v29 = vld [vmem:[#allocation2 + $0x10] sm:$0xff] }
  0x67   : > { %3954 = vmatmul.msk.f32.gmra.mxu2 %vm826_vm1, %v798_v8  ;;  %689 = vmatpush.msra.mxu0 %v658_v9  ;;  %v639_v8 = vld [vmem:[%s5090_s28 + $0x78] sm:$0xff] }
  0x69   : > { %690 = vmatpush.msra.mxu0 %v657_v11  ;;  %v1829_v11 = vld [vmem:[#allocation2 + $0x68] sm:$0xff] }
  0x6a   : > { %1852 = vmatpush.msrb.mxu1 %v1829_v11  ;;  %v2460_v11 = vld [vmem:[#allocation2 + $0x58] sm:$0xff] }
  0x6b   : > { %691 = vmatpush.msra.mxu0 %v656_v13  ;;  %v814_v13 = vld [vmem:[%s7434_s1 + $0xc8] sm:$0xff] }
  0x6c   : > { %692 = vmatmul.f32.vlgmr.msra.gmra.mxu0 %v624_v14 }
  0x6d   : > { %3911 = vmatpush.msk.msrb.mxu0 %vm923_vm0, %v4968_v41  ;;  %4019 = vmatmul.msk.f32.gmra.mxu3 %vm826_vm1, %v5107_v16  ;;  %v5221_v41 = vld [vmem:[%s7434_s1 + $0x188] sm:$0xff] }
  0x6e   : > { %3922 = vmatmul.msk.f32.gmra.mxu1 %vm826_vm1, %v799_v15 }
  0x6f   : > { %3955 = vmatmul.msk.f32.gmra.mxu2 %vm826_vm1, %v799_v15  ;;  %939 = vmatpush.msrb.mxu0 %v4977_v44  ;;  %v5234_v44 = vld [vmem:[%s7434_s1 + $0x190] sm:$0xff]  ;;  %v5326_v15 = vld [vmem:[%s7434_s1 + $0x1c0] sm:$0xff] }
  0x71   : > { %940 = vmatpush.msrb.mxu0 %v4986_v47  ;;  %v809_v47 = vld [vmem:[%s7434_s1 + $0xa0] sm:$0xff] }
  0x73   : > { %941 = vmatpush.msrb.mxu0 %v4995_v50  ;;  %v810_v50 = vld [vmem:[%s7434_s1 + $0xa8] sm:$0xff] }
  0x74   : > { %695 = vmatmul.f32.gmra.mxu0 %v625_v17 }
  0x75   : > { %942 = vmatpush.msrb.mxu0 %v5004_v53  ;;  %4020 = vmatmul.msk.f32.gmra.mxu3 %vm826_vm1, %v5123_v19  ;;  %v2462_v53 = vld [vmem:[#allocation2 + $0x98] sm:$0xf] }
  0x76   : > { %3923 = vmatmul.msk.f32.gmra.mxu1 %vm826_vm1, %v800_v18  ;;  %4140 = vmatpush.msk.msrb.mxu3 %vm923_vm0, %v2462_v53  ;;  %v5389_v53 = vld [vmem:[%s7434_s1 + $0x1d8] sm:$0xff] }
  0x77   : > { %3944 = vmatpush.msk.msra.mxu0 %vm923_vm0, %v4970_v42  ;;  %3956 = vmatmul.msk.f32.gmra.mxu2 %vm826_vm1, %v800_v18  ;;  %v633_v42 = vld [vmem:[%s5090_s28 + $0x48] sm:$0xff]  ;;  %v640_v18 = vld [vmem:[%s5090_s28 + $0x80] sm:$0xff] }
  0x78   : > { %2478 = vmatpush.msrb.mxu3 %v2461_v29 }
  0x79   : > { %1220 = vmatpush.msra.mxu0 %v4979_v45  ;;  %v634_v45 = vld [vmem:[%s5090_s28 + $0x50] sm:$0xff] }
  0x7a   : > { %2479 = vmatpush.msrb.mxu3 %v2460_v11  ;;  %v820_v11 = vld [vmem:[%s7434_s1 + $0xf8] sm:$0xff] }
  0x7b   : > { %1221 = vmatpush.msra.mxu0 %v4989_v48  ;;  %v5247_v48 = vld [vmem:[%s7434_s1 + $0x198] sm:$0xff] }
  0x7c   : > { %698 = vmatmul.f32.gmra.mxu0 %v626_v20 }
  0x7d   : > { %1222 = vmatpush.msra.mxu0 %v4998_v51  ;;  %4021 = vmatmul.msk.f32.gmra.mxu3 %vm826_vm1, %v5141_v22  ;;  %v5260_v51 = vld [vmem:[%s7434_s1 + $0x1a0] sm:$0xff] }
  0x7e   : > { %3924 = vmatmul.msk.f32.gmra.mxu1 %vm826_vm1, %v801_v21 }
  0x7f   : > { %3957 = vmatmul.msk.f32.gmra.mxu2 %vm826_vm1, %v801_v21  ;;  %1223 = vmatpush.msra.mxu0 %v5009_v55  ;;  %v636_v55 = vld [vmem:[%s5090_s28 + $0x60] sm:$0xff] }
  0x84   : > { %701 = vmatmul.f32.gmra.mxu0 %v627_v23  ;;  %v815_v23 = vld [vmem:[%s7434_s1 + $0xd0] sm:$0xff] }
  0x85   : > { %4022 = vmatmul.msk.f32.gmra.mxu3 %vm826_vm1, %v5156_v25 }
  0x86   : > { %3925 = vmatmul.msk.f32.gmra.mxu1 %vm826_vm1, %v802_v24 }
  0x87   : > { %3958 = vmatmul.msk.f32.gmra.mxu2 %vm826_vm1, %v802_v24 }
  0x8c   : > { %704 = vmatmul.f32.gmra.mxu0 %v628_v26  ;;  %v5347_v26 = vld [vmem:[%s7434_s1 + $0x1c8] sm:$0xff] }
  0x8d   : > { %4023 = vmatmul.msk.f32.gmra.mxu3 %vm826_vm1, %v5169_v28 }
  0x8e   : > { %3926 = vmatmul.msk.f32.gmra.mxu1 %vm826_vm1, %v803_v27 }
  0x8f   : > { %3959 = vmatmul.msk.f32.gmra.mxu2 %vm826_vm1, %v803_v27  ;;  %v2083_v27 = vld [vmem:[#allocation3 + $0x78] sm:$0xff] }
  0x90   : > { %2196 = vmatpush.msrb.mxu2 %v2083_v27  ;;  %v2459_v27 = vld [vmem:[#allocation2 + $0x40] sm:$0xff] }
  0x91   : > { %2480 = vmatpush.msrb.mxu3 %v2459_v27  ;;  %v5453_v27 = vld [vmem:[%s7434_s1 + $0x1f0] sm:$0xff] }
  0x94   : > { %707 = vmatmul.f32.gmra.mxu0 %v629_v30 }
  0x95   : > { %4024 = vmatmul.msk.f32.gmra.mxu3 %vm826_vm1, %v5182_v32 }
  0x96   : > { %3927 = vmatmul.msk.f32.gmra.mxu1 %vm826_vm1, %v804_v31 }
  0x97   : > { %3960 = vmatmul.msk.f32.gmra.mxu2 %vm826_vm1, %v804_v31  ;;  %v641_v31 = vld [vmem:[%s5090_s28 + $0x88] sm:$0xff] }
  0x9c   : > { %710 = vmatmul.f32.gmra.mxu0 %v630_v33 }
  0x9d   : > { %4025 = vmatmul.msk.f32.gmra.mxu3 %vm826_vm1, %v5195_v35 }
  0x9e   : > { %3928 = vmatmul.msk.f32.gmra.mxu1 %vm826_vm1, %v805_v34 }
  0x9f   : > { %3961 = vmatmul.msk.f32.gmra.mxu2 %vm826_vm1, %v805_v34 }
  0xa4   : > { %713 = vmatmul.f32.gmra.mxu0 %v631_v36  ;;  %v816_v36 = vld [vmem:[%s7434_s1 + $0xd8] sm:$0xff] }
  0xa5   : > { %4026 = vmatmul.msk.f32.gmra.mxu3 %vm826_vm1, %v5208_v38 }
  0xa6   : > { %3929 = vmatmul.msk.f32.gmra.mxu1 %vm826_vm1, %v806_v37 }
  0xa7   : > { %3962 = vmatmul.msk.f32.gmra.mxu2 %vm826_vm1, %v806_v37 }
  0xac   : > { %716 = vmatmul.f32.gmra.mxu0 %v632_v39  ;;  %v5368_v39 = vld [vmem:[%s7434_s1 + $0x1d0] sm:$0xff] }
  0xad   : > { %4027 = vmatmul.msk.f32.gmra.mxu3 %vm826_vm1, %v5221_v41 }
  0xae   : > { %3930 = vmatmul.msk.f32.gmra.mxu1 %vm826_vm1, %v807_v40 }
  0xaf   : > { %3963 = vmatmul.msk.f32.gmra.mxu2 %vm826_vm1, %v807_v40 }
  0xb4   : > { %719 = vmatmul.f32.gmra.mxu0 %v633_v42  ;;  %v642_v42 = vld [vmem:[%s5090_s28 + $0x90] sm:$0xff] }
  0xb5   : > { %4028 = vmatmul.msk.f32.gmra.mxu3 %vm826_vm1, %v5234_v44 }
  0xb6   : > { %3931 = vmatmul.msk.f32.gmra.mxu1 %vm826_vm1, %v808_v43 }
  0xb7   : > { %3964 = vmatmul.msk.f32.gmra.mxu2 %vm826_vm1, %v808_v43  ;;  %v2082_v43 = vld [vmem:[#allocation3 + $0x80] sm:$0xff] }
  0xb8   : > { %2197 = vmatpush.msrb.mxu2 %v2082_v43  ;;  %v5431_v43 = vld [vmem:[%s7434_s1 + $0x1e8] sm:$0xff] }
  0xbc   : > { %722 = vmatmul.f32.gmra.mxu0 %v634_v45 }
  0xbd   : > { %4029 = vmatmul.msk.f32.gmra.mxu3 %vm826_vm1, %v5247_v48 }
  0xbe   : > { %3932 = vmatmul.msk.f32.gmra.mxu1 %vm826_vm1, %v809_v47 }
  0xbf   : > { %3965 = vmatmul.msk.f32.gmra.mxu2 %vm826_vm1, %v809_v47  ;;  %v817_v47 = vld [vmem:[%s7434_s1 + $0xe0] sm:$0xff] }
  0xc4   : > { %725 = vmatmul.f32.gmra.mxu0 %v635_v49 }
  0xc5   : > { %4030 = vmatmul.msk.f32.gmra.mxu3 %vm826_vm1, %v5260_v51 }
  0xc6   : > { %3933 = vmatmul.msk.f32.gmra.mxu1 %vm826_vm1, %v810_v50 }
  0xc7   : > { %3966 = vmatmul.msk.f32.gmra.mxu2 %vm826_vm1, %v810_v50  ;;  %v2081_v50 = vld [vmem:[#allocation3 + $0x8] sm:$0xff] }
  0xc8   : > { %2198 = vmatpush.msrb.mxu2 %v2081_v50 }
  0xca   : > { %2199 = vmatpush.msrb.mxu2 %v2080_v52  ;;  %v645_v52 = vld [vmem:[%s5090_s28 + $0xa8] sm:$0xff] }
  0xcc   : > { %728 = vmatmul.f32.gmra.mxu0 %v636_v55 }
  0xcd   : > { %4031 = vmatmul.msk.f32.gmra.mxu3 %vm826_vm1, %v5275_v57 }
  0xce   : > { %3934 = vmatmul.msk.f32.gmra.mxu1 %vm826_vm1, %v811_v56 }
  0xcf   : > { %3967 = vmatmul.msk.f32.gmra.mxu2 %vm826_vm1, %v811_v56  ;;  %v643_v56 = vld [vmem:[%s5090_s28 + $0x98] sm:$0xff] }
  0xd3   : > { %v5282_v60 = vpop.f32.mrf.mxu1 }
  0xd4   : > { %731 = vmatmul.f32.gmra.mxu0 %v637_v59 }
  0xd5   : > { %4032 = vmatmul.msk.f32.gmra.mxu3 %vm826_vm1, %v5290_v0 }
  0xd6   : > { %3935 = vmatmul.msk.f32.gmra.mxu1 %vm826_vm1, %v812_v62 }
  0xd7   : > { %3968 = vmatmul.msk.f32.gmra.mxu2 %vm826_vm1, %v812_v62 }
  0xda   : > { %v5297_v3 = vpop.f32.mrf.mxu2 }
  0xdb   : > { %v5299_v5 = vpop.f32.mrf.mxu1 }
  0xdc   : > { %734 = vmatmul.f32.gmra.mxu0 %v638_v1  ;;  %v818_v1 = vld [vmem:[%s7434_s1 + $0xe8] sm:$0xff] }
  0xdd   : > { %4033 = vmatmul.msk.f32.gmra.mxu3 %vm826_vm1, %v5307_v7 }
  0xde   : > { %3936 = vmatmul.msk.f32.gmra.mxu1 %vm826_vm1, %v813_v6 }
  0xdf   : > { %3969 = vmatmul.msk.f32.gmra.mxu2 %vm826_vm1, %v813_v6 }
  0xe0   : > { %v5321_v14 = vpop.f32.mrf.mxu3 }
  0xe2   : > { %v5314_v9 = vpop.f32.mrf.mxu2 }
  0xe3   : > { %7453 = vst [vmem:[#allocation7_spill] sm:$0xff] %v5314_v9  ;;  %v5316_v12 = vpop.f32.mrf.mxu1 }
  0xe4   : > { %737 = vmatmul.f32.gmra.mxu0 %v639_v8  ;;  %v5410_v8 = vld [vmem:[%s7434_s1 + $0x1e0] sm:$0xff] }
  0xe5   : > { %4034 = vmatmul.msk.f32.gmra.mxu3 %vm826_vm1, %v5326_v15 }
  0xe6   : > { %3937 = vmatmul.msk.f32.gmra.mxu1 %vm826_vm1, %v814_v13 }
  0xe7   : > { %3970 = vmatmul.msk.f32.gmra.mxu2 %vm826_vm1, %v814_v13 }
  0xe8   : > { %v5342_v24 = vpop.f32.mrf.mxu3 }
  0xe9   : > { %v5332_v17 = vpop.f32.mrf.mxu0 }
  0xea   : > { %v5335_v20 = vpop.f32.mrf.mxu2 }
  0xeb   : > { %7454 = vst [vmem:[#allocation8_spill] sm:$0xff] %v5335_v20  ;;  %v5337_v21 = vpop.f32.mrf.mxu1 }
  0xec   : > { %740 = vmatmul.f32.gmra.mxu0 %v640_v18  ;;  %v644_v18 = vld [vmem:[%s5090_s28 + $0xa0] sm:$0xff] }
  0xed   : > { %4035 = vmatmul.msk.f32.gmra.mxu3 %vm826_vm1, %v5347_v26 }
  0xee   : > { %3938 = vmatmul.msk.f32.gmra.mxu1 %vm826_vm1, %v815_v23 }
  0xef   : > { %3971 = vmatmul.msk.f32.gmra.mxu2 %vm826_vm1, %v815_v23 }
  0xf0   : > { %v5363_v37 = vpop.f32.mrf.mxu3 }
  0xf1   : > { %v5353_v30 = vpop.f32.mrf.mxu0 }
  0xf2   : > { %v5356_v33 = vpop.f32.mrf.mxu2 }
  0xf3   : > { %7455 = vst [vmem:[#allocation9_spill] sm:$0xff] %v5356_v33  ;;  %v5358_v34 = vpop.f32.mrf.mxu1 }
  0xf4   : > { %7456 = vst [vmem:[#allocation10_spill] sm:$0xff] %v5358_v34  ;;  %743 = vmatmul.f32.gmra.mxu0 %v641_v31  ;;  %v819_v31 = vld [vmem:[%s7434_s1 + $0xf0] sm:$0xff] }
  0xf5   : > { %4036 = vmatmul.msk.f32.gmra.mxu3 %vm826_vm1, %v5368_v39 }
  0xf6   : > { %3939 = vmatmul.msk.f32.gmra.mxu1 %vm826_vm1, %v816_v36 }
  0xf7   : > { %3972 = vmatmul.msk.f32.gmra.mxu2 %vm826_vm1, %v816_v36 }
  0xf8   : > { %v5384_v49 = vpop.f32.mrf.mxu3 }
  0xf9   : > { %v5374_v40 = vpop.f32.mrf.mxu0  ;;  %7459 = vst [vmem:[#allocation13_spill] sm:$0xff] %v5384_v49 }
  0xfa   : > { %v5377_v45 = vpop.f32.mrf.mxu2 }
  0xfb   : > { %7457 = vst [vmem:[#allocation11_spill] sm:$0xff] %v5377_v45  ;;  %v5379_v46 = vpop.f32.mrf.mxu1 }
  0xfc   : > { %7458 = vst [vmem:[#allocation12_spill] sm:$0xff] %v5379_v46  ;;  %746 = vmatmul.f32.gmra.mxu0 %v642_v42  ;;  %v2458_v42 = vld [vmem:[#allocation2 + $0x28] sm:$0xff]  ;;  %v4078_v46 = vld [vmem:[%s7434_s1 + $0x218] sm:$0xff] }
  0xfd   : > { %4037 = vmatmul.msk.f32.gmra.mxu3 %vm826_vm1, %v5389_v53 }
  0xfe   : > { %3940 = vmatmul.msk.f32.gmra.mxu1 %vm826_vm1, %v817_v47  ;;  %2481 = vmatpush.msrb.mxu3 %v2458_v42  ;;  %v646_v42 = vld [vmem:[%s5090_s28 + $0xb0] sm:$0xff] }
  0xff   : > { %3973 = vmatmul.msk.f32.gmra.mxu2 %vm826_vm1, %v817_v47  ;;  %v3091_v47 = vld [vmem:[#allocation2 + $0x90] sm:$0xf] }
 0x100   : > { %v5405_v6 = vpop.f32.mrf.mxu3  ;;  %4238 = vmatpush.msk.msra.mxu1 %vm923_vm0, %v3091_v47 }
 0x101   : > { %v5395_v55 = vpop.f32.mrf.mxu0  ;;  %7462 = vst [vmem:[#allocation16_spill] sm:$0xff] %v5405_v6  ;;  %v4079_v6 = vld [vmem:[%s7434_s1 + $0x220] sm:$0xff] }
 0x102   : > { %v5398_v59 = vpop.f32.mrf.mxu2 }
 0x103   : > { %7460 = vst [vmem:[#allocation14_spill] sm:$0xff] %v5398_v59  ;;  %v5400_v62 = vpop.f32.mrf.mxu1  ;;  %v5479_v59 = vld [vmem:[%s7434_s1 + $0x1f8] sm:$0xff] }
 0x104   : > { %7461 = vst [vmem:[#allocation15_spill] sm:$0xff] %v5400_v62  ;;  %749 = vmatmul.f32.gmra.mxu0 %v643_v56  ;;  %v4077_v62 = vld [vmem:[%s7434_s1 + $0x210] sm:$0xff] }
 0x105   : > { %4038 = vmatmul.msk.f32.gmra.mxu3 %vm826_vm1, %v5410_v8 }
 0x106   : > { %3941 = vmatmul.msk.f32.gmra.mxu1 %vm826_vm1, %v818_v1 }
 0x107   : > { %3974 = vmatmul.msk.f32.gmra.mxu2 %vm826_vm1, %v818_v1 }
 0x108   : > { %v5426_v36 = vpop.f32.mrf.mxu3 }
 0x109   : > { %v5416_v13 = vpop.f32.mrf.mxu0  ;;  %7465 = vst [vmem:[#allocation19_spill] sm:$0xff] %v5426_v36 }
 0x10a   : > { %v5419_v23 = vpop.f32.mrf.mxu2 }
 0x10b   : > { %7463 = vst [vmem:[#allocation17_spill] sm:$0xff] %v5419_v23  ;;  %v5421_v29 = vpop.f32.mrf.mxu1 }
 0x10c   : > { %7464 = vst [vmem:[#allocation18_spill] sm:$0xff] %v5421_v29  ;;  %752 = vmatmul.f32.gmra.mxu0 %v644_v18  ;;  %v4076_v29 = vld [vmem:[%s7434_s1 + $0x208] sm:$0xff] }
 0x10d   : > { %4039 = vmatmul.msk.f32.gmra.mxu3 %vm826_vm1, %v5431_v43 }
 0x10e   : > { %3942 = vmatmul.msk.f32.gmra.mxu1 %vm826_vm1, %v819_v31 }
 0x10f   : > { %3975 = vmatmul.msk.f32.gmra.mxu2 %vm826_vm1, %v819_v31 }
 0x110   : > { %v5448_v18 = vpop.f32.mrf.mxu3 }
 0x111   : > { %v5438_v50 = vpop.f32.mrf.mxu0  ;;  %7468 = vst [vmem:[#allocation22_spill] sm:$0xff] %v5448_v18 }
 0x112   : > { %v5441_v56 = vpop.f32.mrf.mxu2 }
 0x113   : > { %7466 = vst [vmem:[#allocation20_spill] sm:$0xff] %v5441_v56  ;;  %v5443_v1 = vpop.f32.mrf.mxu1 }
 0x114   : > { %7467 = vst [vmem:[#allocation21_spill] sm:$0xff] %v5443_v1  ;;  %755 = vmatmul.f32.gmra.mxu0 %v645_v52  ;;  %v5469_v52 = vld [vmem:[%s7434_s1 + $0x100] sm:$0xff]  ;;  %v5496_v1 = vld [vmem:[%s7434_s1 + $0x108] sm:$0xff] }
 0x115   : > { %4040 = vmatmul.msk.f32.gmra.mxu3 %vm826_vm1, %v5453_v27 }
 0x116   : > { %3943 = vmatmul.msk.f32.gmra.mxu1 %vm826_vm1, %v820_v11 }
 0x117   : > { %3976 = vmatmul.msk.f32.gmra.mxu2 %vm826_vm1, %v820_v11  ;;  %v4075_v11 = vld [vmem:[%s7434_s1 + $0x200] sm:$0xff] }
 0x118   : > { %v5471_v23 = vpop.f32.mrf.mxu3 }
 0x119   : > { %v5459_v31 = vpop.f32.mrf.mxu0  ;;  %7471 = vst [vmem:[#allocation25_spill] sm:$0xff] %v5471_v23 }
 0x11a   : > { %v5462_v47 = vpop.f32.mrf.mxu2 }
 0x11b   : > { %7469 = vst [vmem:[#allocation23_spill] sm:$0xff] %v5462_v47  ;;  %v5464_v56 = vpop.f32.mrf.mxu1 }
 0x11c   : > { %7470 = vst [vmem:[#allocation24_spill] sm:$0xff] %v5464_v56  ;;  %758 = vmatmul.f32.gmra.mxu0 %v646_v42  ;;  %v647_v42 = vld [vmem:[%s5090_s28 + $0xb8] sm:$0xff] }
 0x11d   : > { %4041 = vmatmul.msk.f32.gmra.mxu3 %vm826_vm1, %v5479_v59 }
 0x11e   : > { %4043 = vmatmul.msk.f32.vlgmr.msrb.gmra.mxu1 %vm826_vm1, %v5469_v52 }
 0x11f   : > { %4108 = vmatmul.msk.f32.vlgmr.msrb.gmra.mxu2 %vm826_vm1, %v4075_v11 }
 0x120   : > { %v5498_v23 = vpop.f32.mrf.mxu3 }
 0x121   : > { %v5486_v47 = vpop.f32.mrf.mxu0  ;;  %7474 = vst [vmem:[#allocation28_spill] sm:$0xff] %v5498_v23 }
 0x122   : > { %v5489_v56 = vpop.f32.mrf.mxu2 }
 0x123   : > { %7472 = vst [vmem:[#allocation26_spill] sm:$0xff] %v5489_v56  ;;  %v5491_v45 = vpop.f32.mrf.mxu1 }
 0x124   : > { %7473 = vst [vmem:[#allocation27_spill] sm:$0xff] %v5491_v45  ;;  %761 = vmatmul.f32.gmra.mxu0 %v647_v42  ;;  %v648_v45 = vld [vmem:[%s5090_s28 + $0xc0] sm:$0xff]  ;;  %v5517_v42 = vld [vmem:[%s7434_s1 + $0x110] sm:$0xff] }
 0x125   : > { %4141 = vmatmul.msk.f32.vlgmr.msrb.gmra.mxu3 %vm826_vm1, %v4075_v11 }
 0x126   : > { %4044 = vmatmul.msk.f32.gmra.mxu1 %vm826_vm1, %v5496_v1 }
 0x127   : > { %4109 = vmatmul.msk.f32.gmra.mxu2 %vm826_vm1, %v4076_v29 }
 0x128   : > { %v5519_v23 = vpop.f32.mrf.mxu3 }
 0x129   : > { %v5507_v56 = vpop.f32.mrf.mxu0  ;;  %7477 = vst [vmem:[#allocation31_spill] sm:$0xff] %v5519_v23 }
 0x12a   : > { %v5510_v18 = vpop.f32.mrf.mxu2 }
 0x12b   : > { %7475 = vst [vmem:[#allocation29_spill] sm:$0xff] %v5510_v18  ;;  %v5512_v33 = vpop.f32.mrf.mxu1  ;;  %v649_v18 = vld [vmem:[%s5090_s28 + $0xc8] sm:$0xff] }
 0x12c   : > { %7476 = vst [vmem:[#allocation30_spill] sm:$0xff] %v5512_v33  ;;  %764 = vmatmul.f32.gmra.mxu0 %v648_v45  ;;  %v5538_v45 = vld [vmem:[%s7434_s1 + $0x118] sm:$0xff] }
 0x12d   : > { %4142 = vmatmul.msk.f32.gmra.mxu3 %vm826_vm1, %v4076_v29 }
 0x12e   : > { %4045 = vmatmul.msk.f32.gmra.mxu1 %vm826_vm1, %v5517_v42 }
 0x12f   : > { %4110 = vmatmul.msk.f32.gmra.mxu2 %vm826_vm1, %v4077_v62 }
 0x130   : > { %v5540_v23 = vpop.f32.mrf.mxu3 }
 0x131   : > { %v5528_v11 = vpop.f32.mrf.mxu0  ;;  %7480 = vst [vmem:[#allocation34_spill] sm:$0xff] %v5540_v23 }
 0x132   : > { %v5531_v33 = vpop.f32.mrf.mxu2 }
 0x133   : > { %7478 = vst [vmem:[#allocation32_spill] sm:$0xff] %v5531_v33  ;;  %v5533_v36 = vpop.f32.mrf.mxu1  ;;  %v650_v33 = vld [vmem:[%s5090_s28 + $0xd0] sm:$0xff] }
 0x134   : > { %7479 = vst [vmem:[#allocation33_spill] sm:$0xff] %v5533_v36  ;;  %767 = vmatmul.f32.gmra.mxu0 %v649_v18  ;;  %v5559_v18 = vld [vmem:[%s7434_s1 + $0x120] sm:$0xff] }
 0x135   : > { %4143 = vmatmul.msk.f32.gmra.mxu3 %vm826_vm1, %v4077_v62  ;;  %v3090_v62 = vld [vmem:[#allocation2 + $0x70] sm:$0xff] }
 0x136   : > { %4046 = vmatmul.msk.f32.gmra.mxu1 %vm826_vm1, %v5538_v45 }
 0x137   : > { %4111 = vmatmul.msk.f32.gmra.mxu2 %vm826_vm1, %v4078_v46  ;;  %3107 = vmatpush.msra.mxu1 %v3090_v62 }
 0x138   : > { %v5561_v23 = vpop.f32.mrf.mxu3 }
 0x139   : > { %v5549_v29 = vpop.f32.mrf.mxu0  ;;  %7483 = vst [vmem:[#allocation37_spill] sm:$0xff] %v5561_v23  ;;  %v5580_v23 = vld [vmem:[%s7434_s1 + $0x128] sm:$0xff] }
 0x13a   : > { %v5552_v36 = vpop.f32.mrf.mxu2 }
 0x13b   : > { %7481 = vst [vmem:[#allocation35_spill] sm:$0xff] %v5552_v36  ;;  %v5554_v20 = vpop.f32.mrf.mxu1 }
 0x13c   : > { %7482 = vst [vmem:[#allocation36_spill] sm:$0xff] %v5554_v20  ;;  %770 = vmatmul.f32.gmra.mxu0 %v650_v33  ;;  %v651_v20 = vld [vmem:[%s5090_s28 + $0xd8] sm:$0xff] }
 0x13d   : > { %4144 = vmatmul.msk.f32.gmra.mxu3 %vm826_vm1, %v4078_v46  ;;  %v4080_v46 = vld [vmem:[%s7434_s1 + $0x228] sm:$0xff] }
 0x13e   : > { %4047 = vmatmul.msk.f32.gmra.mxu1 %vm826_vm1, %v5559_v18 }
 0x13f   : > { %4112 = vmatmul.msk.f32.gmra.mxu2 %vm826_vm1, %v4079_v6 }
 0x140   : > { %v5582_v9 = vpop.f32.mrf.mxu3 }
 0x141   : > { %v5570_v36 = vpop.f32.mrf.mxu0  ;;  %7487 = vst [vmem:[#allocation41_spill] sm:$0xff] %v5582_v9 }
 0x142   : > { %7484 = vst [vmem:[#allocation38_spill] sm:$0xff] %v5570_v36  ;;  %v5573_v34 = vpop.f32.mrf.mxu2 }
 0x143   : > { %7485 = vst [vmem:[#allocation39_spill] sm:$0xff] %v5573_v34  ;;  %v5575_v33 = vpop.f32.mrf.mxu1  ;;  %v652_v34 = vld [vmem:[%s5090_s28 + $0xe0] sm:$0xff] }
 0x144   : > { %7486 = vst [vmem:[#allocation40_spill] sm:$0xff] %v5575_v33  ;;  %773 = vmatmul.f32.gmra.mxu0 %v651_v20  ;;  %v5601_v20 = vld [vmem:[%s7434_s1 + $0x130] sm:$0xff] }
 0x145   : > { %4145 = vmatmul.msk.f32.gmra.mxu3 %vm826_vm1, %v4079_v6  ;;  %v4081_v6 = vld [vmem:[%s7434_s1 + $0x230] sm:$0xff] }
 0x146   : > { %4048 = vmatmul.msk.f32.gmra.mxu1 %vm826_vm1, %v5580_v23 }
 0x147   : > { %4113 = vmatmul.msk.f32.gmra.mxu2 %vm826_vm1, %v4080_v46 }
 0x148   : > { %v5603_v9 = vpop.f32.mrf.mxu3 }
 0x149   : > { %v5591_v62 = vpop.f32.mrf.mxu0  ;;  %7491 = vst [vmem:[#allocation45_spill] sm:$0xff] %v5603_v9  ;;  %v4082_v9 = vld [vmem:[%s7434_s1 + $0x238] sm:$0xff] }
 0x14a   : > { %7488 = vst [vmem:[#allocation42_spill] sm:$0xff] %v5591_v62  ;;  %v5594_v33 = vpop.f32.mrf.mxu2 }
 0x14b   : > { %7489 = vst [vmem:[#allocation43_spill] sm:$0xff] %v5594_v33  ;;  %v5596_v36 = vpop.f32.mrf.mxu1 }
 0x14c   : > { %7490 = vst [vmem:[#allocation44_spill] sm:$0xff] %v5596_v36  ;;  %776 = vmatmul.f32.gmra.mxu0 %v652_v34  ;;  %v653_v36 = vld [vmem:[%s5090_s28 + $0xe8] sm:$0xff] }
 0x14d   : > { %4146 = vmatmul.msk.f32.gmra.mxu3 %vm826_vm1, %v4080_v46 }
 0x14e   : > { %4049 = vmatmul.msk.f32.gmra.mxu1 %vm826_vm1, %v5601_v20 }
 0x14f   : > { %4114 = vmatmul.msk.f32.gmra.mxu2 %vm826_vm1, %v4081_v6 }
 0x150   : > { %v5619_v34 = vpop.f32.mrf.mxu3 }
 0x151   : > { %v5612_v33 = vpop.f32.mrf.mxu0  ;;  %7495 = vst [vmem:[#allocation49_spill] sm:$0xff] %v5619_v34  ;;  %v4083_v34 = vld [vmem:[%s7434_s1 + $0x240] sm:$0xff] }
 0x152   : > { %7492 = vst [vmem:[#allocation46_spill] sm:$0xff] %v5612_v33  ;;  %v5615_v62 = vpop.f32.mrf.mxu2 }
 0x153   : > { %7493 = vst [vmem:[#allocation47_spill] sm:$0xff] %v5615_v62  ;;  %v5617_v49 = vpop.f32.mrf.mxu1  ;;  %v654_v62 = vld [vmem:[%s5090_s28 + $0xf0] sm:$0xff] }
 0x154   : > { %7494 = vst [vmem:[#allocation48_spill] sm:$0xff] %v5617_v49  ;;  %779 = vmatmul.f32.gmra.mxu0 %v653_v36 }
 0x155   : > { %4147 = vmatmul.msk.f32.gmra.mxu3 %vm826_vm1, %v4081_v6  ;;  %v655_v6 = vld [vmem:[%s5090_s28 + $0xf8] sm:$0xff] }
 0x156   : > { %4050 = vmatmul.msk.f32.gmra.mxu1 %vm826_vm1, %v5055_v4 }
 0x157   : > { %4115 = vmatmul.msk.f32.gmra.mxu2 %vm826_vm1, %v4082_v9 }
 0x158   : > { %v5635_v36 = vpop.f32.mrf.mxu3 }
 0x159   : > { %v5628_v46 = vpop.f32.mrf.mxu0  ;;  %7498 = vst [vmem:[#allocation52_spill] sm:$0xff] %v5635_v36 }
 0x15a   : > { %v5631_v33 = vpop.f32.mrf.mxu2 }
 0x15b   : > { %7496 = vst [vmem:[#allocation50_spill] sm:$0xff] %v5631_v33  ;;  %v5633_v49 = vpop.f32.mrf.mxu1 }
 0x15c   : > { %7497 = vst [vmem:[#allocation51_spill] sm:$0xff] %v5633_v49  ;;  %782 = vmatmul.f32.gmra.mxu0 %v654_v62  ;;  %v4084_v62 = vld [vmem:[%s7434_s1 + $0x248] sm:$0xff] }
 0x15d   : > { %4148 = vmatmul.msk.f32.gmra.mxu3 %vm826_vm1, %v4082_v9  ;;  %v5665_v9 = vld [vmem:[%s7434_s1] sm:$0xff] }
 0x15e   : > { %4051 = vmatmul.msk.f32.gmra.mxu1 %vm826_vm1, %v5081_v10 }
 0x15f   : > { %4116 = vmatmul.msk.f32.gmra.mxu2 %vm826_vm1, %v4083_v34 }
 0x160   : > { %v5651_v36 = vpop.f32.mrf.mxu3 }
 0x161   : > { %v5644_v4 = vpop.f32.mrf.mxu0  ;;  %7502 = vst [vmem:[#allocation56_spill] sm:$0xff] %v5651_v36 }
 0x162   : > { %7499 = vst [vmem:[#allocation53_spill] sm:$0xff] %v5644_v4  ;;  %v5647_v33 = vpop.f32.mrf.mxu2 }
 0x163   : > { %7500 = vst [vmem:[#allocation54_spill] sm:$0xff] %v5647_v33  ;;  %v5649_v49 = vpop.f32.mrf.mxu1 }
 0x164   : > { %7501 = vst [vmem:[#allocation55_spill] sm:$0xff] %v5649_v49  ;;  %785 = vmatmul.f32.gmra.mxu0 %v655_v6 }
 0x165   : > { %4149 = vmatmul.msk.f32.gmra.mxu3 %vm826_vm1, %v4083_v34 }
 0x166   : > { %4052 = vmatmul.msk.f32.gmra.mxu1 %vm826_vm1, %v5107_v16  ;;  %v4085_v16 = vld [vmem:[%s7434_s1 + $0x250] sm:$0xff] }
 0x167   : > { %4117 = vmatmul.msk.f32.gmra.mxu2 %vm826_vm1, %v4084_v62 }
 0x168   : > { %v5671_v49 = vpop.f32.mrf.mxu3 }
 0x169   : > { %v5660_v10 = vpop.f32.mrf.mxu0  ;;  %7506 = vst [vmem:[#allocation60_spill] sm:$0xff] %v5671_v49 }
 0x16a   : > { %7503 = vst [vmem:[#allocation57_spill] sm:$0xff] %v5660_v10  ;;  %v5667_v33 = vpop.f32.mrf.mxu2 }
 0x16b   : > { %7504 = vst [vmem:[#allocation58_spill] sm:$0xff] %v5667_v33  ;;  %v5669_v6 = vpop.f32.mrf.mxu1  ;;  %v5690_v33 = vld [vmem:[%s7434_s1 + $0x8] sm:$0xff] }
 0x16c   : > { %7505 = vst [vmem:[#allocation59_spill] sm:$0xff] %v5669_v6  ;;  %3912 = vmatmul.msk.f32.vlgmr.msrb.gmra.mxu0 %vm826_vm1, %v5665_v9 }
 0x16d   : > { %4009 = vmatpush.msk.msrb.mxu0 %vm923_vm0, %v5006_v54  ;;  %4150 = vmatmul.msk.f32.gmra.mxu3 %vm826_vm1, %v4084_v62 }
 0x16e   : > { %4053 = vmatmul.msk.f32.gmra.mxu1 %vm826_vm1, %v5123_v19 }
 0x16f   : > { %4118 = vmatmul.msk.f32.gmra.mxu2 %vm826_vm1, %v4085_v16  ;;  %1567 = vmatpush.msrb.mxu0 %v5021_v58  ;;  %v4086_v58 = vld [vmem:[%s7434_s1 + $0x258] sm:$0xff] }
 0x170   : > { %v5697_v19 = vpop.f32.mrf.mxu3 }
 0x171   : > { %v5685_v34 = vpop.f32.mrf.mxu0  ;;  %1568 = vmatpush.msrb.mxu0 %v5029_v61  ;;  %7510 = vst [vmem:[#allocation64_spill] sm:$0xff] %v5697_v19  ;;  %v3089_v61 = vld [vmem:[#allocation2 + $0x48] sm:$0xff] }
 0x172   : > { %7507 = vst [vmem:[#allocation61_spill] sm:$0xff] %v5685_v34  ;;  %v5693_v6 = vpop.f32.mrf.mxu2  ;;  %3108 = vmatpush.msra.mxu1 %v3089_v61  ;;  %v5737_v61 = vld [vmem:[%s7434_s1 + $0x18] sm:$0xff] }
 0x173   : > { %7508 = vst [vmem:[#allocation62_spill] sm:$0xff] %v5693_v6  ;;  %v5695_v54 = vpop.f32.mrf.mxu1  ;;  %1569 = vmatpush.msrb.mxu0 %v5036_v63  ;;  %v5715_v63 = vld [vmem:[%s7434_s1 + $0x10] sm:$0xff] }
 0x174   : > { %7509 = vst [vmem:[#allocation63_spill] sm:$0xff] %v5695_v54  ;;  %3913 = vmatmul.msk.f32.gmra.mxu0 %vm826_vm1, %v5690_v33 }
 0x175   : > { %1570 = vmatpush.msrb.mxu0 %v5045_v2  ;;  %4151 = vmatmul.msk.f32.gmra.mxu3 %vm826_vm1, %v4085_v16 }
 0x176   : > { %4054 = vmatmul.msk.f32.gmra.mxu1 %vm826_vm1, %v5141_v22  ;;  %v4087_v22 = vld [vmem:[%s7434_s1 + $0x260] sm:$0xff] }
 0x177   : > { %4119 = vmatmul.msk.f32.gmra.mxu2 %vm826_vm1, %v4086_v58 }
 0x178   : > { %v5721_v2 = vpop.f32.mrf.mxu3 }
 0x179   : > { %v5710_v62 = vpop.f32.mrf.mxu0  ;;  %7514 = vst [vmem:[#allocation68_spill] sm:$0xff] %v5721_v2 }
 0x17a   : > { %7511 = vst [vmem:[#allocation65_spill] sm:$0xff] %v5710_v62  ;;  %v5717_v6 = vpop.f32.mrf.mxu2 }
 0x17b   : > { %7512 = vst [vmem:[#allocation66_spill] sm:$0xff] %v5717_v6  ;;  %v5719_v54 = vpop.f32.mrf.mxu1 }
 0x17c   : > { %7513 = vst [vmem:[#allocation67_spill] sm:$0xff] %v5719_v54  ;;  %3914 = vmatmul.msk.f32.gmra.mxu0 %vm826_vm1, %v5715_v63 }
 0x17d   : > { %4152 = vmatmul.msk.f32.gmra.mxu3 %vm826_vm1, %v4086_v58 }
 0x17e   : > { %4055 = vmatmul.msk.f32.gmra.mxu1 %vm826_vm1, %v5156_v25  ;;  %v4088_v25 = vld [vmem:[%s7434_s1 + $0x268] sm:$0xff] }
 0x17f   : > { %4120 = vmatmul.msk.f32.gmra.mxu2 %vm826_vm1, %v4087_v22 }
 0x180   : > { %v5743_v2 = vpop.f32.mrf.mxu3 }
 0x181   : > { %v5732_v16 = vpop.f32.mrf.mxu0  ;;  %7518 = vst [vmem:[#allocation72_spill] sm:$0xff] %v5743_v2 }
 0x182   : > { %7515 = vst [vmem:[#allocation69_spill] sm:$0xff] %v5732_v16  ;;  %v5739_v6 = vpop.f32.mrf.mxu2 }
 0x183   : > { %7516 = vst [vmem:[#allocation70_spill] sm:$0xff] %v5739_v6  ;;  %v5741_v54 = vpop.f32.mrf.mxu1  ;;  %v5759_v6 = vld [vmem:[%s7434_s1 + $0x20] sm:$0xff] }
 0x184   : > { %7517 = vst [vmem:[#allocation71_spill] sm:$0xff] %v5741_v54  ;;  %3915 = vmatmul.msk.f32.gmra.mxu0 %vm826_vm1, %v5737_v61 }
 0x185   : > { %4153 = vmatmul.msk.f32.gmra.mxu3 %vm826_vm1, %v4087_v22  ;;  %v3431_v22 = vld [vmem:[%s7440_s7 + $0x78] sm:$0xff] }
 0x186   : > { %4056 = vmatmul.msk.f32.gmra.mxu1 %vm826_vm1, %v5169_v28  ;;  %v4089_v28 = vld [vmem:[%s7434_s1 + $0x270] sm:$0xff]  ;;  %3432 = vmatpush.msra.mxu2 %v3431_v22 }
 0x187   : > { %4121 = vmatmul.msk.f32.gmra.mxu2 %vm826_vm1, %v4088_v25  ;;  %v5809_v22 = vld [vmem:[%s7434_s1 + $0x30] sm:$0xff] }
 0x188   : > { %v5765_v19 = vpop.f32.mrf.mxu3 }
 0x189   : > { %v5754_v58 = vpop.f32.mrf.mxu0  ;;  %7522 = vst [vmem:[#allocation76_spill] sm:$0xff] %v5765_v19  ;;  %v5787_v19 = vld [vmem:[%s7434_s1 + $0x28] sm:$0xff] }
 0x18a   : > { %7519 = vst [vmem:[#allocation73_spill] sm:$0xff] %v5754_v58  ;;  %v5761_v54 = vpop.f32.mrf.mxu2 }
 0x18b   : > { %7520 = vst [vmem:[#allocation74_spill] sm:$0xff] %v5761_v54  ;;  %v5763_v2 = vpop.f32.mrf.mxu1  ;;  %v3415_v54 = vld [vmem:[%s7439_s6 + $0x78] sm:$0xff] }
 0x18c   : > { %7521 = vst [vmem:[#allocation75_spill] sm:$0xff] %v5763_v2  ;;  %3916 = vmatmul.msk.f32.gmra.mxu0 %vm826_vm1, %v5759_v6  ;;  %3545 = vmatpush.msra.mxu3 %v3415_v54 }
 0x18d   : > { %4154 = vmatmul.msk.f32.gmra.mxu3 %vm826_vm1, %v4088_v25  ;;  %v4090_v25 = vld [vmem:[%s7434_s1 + $0x278] sm:$0xff] }
 0x18e   : > { %4057 = vmatmul.msk.f32.gmra.mxu1 %vm826_vm1, %v5182_v32 }
 0x18f   : > { %4122 = vmatmul.msk.f32.gmra.mxu2 %vm826_vm1, %v4089_v28 }
 0x190   : > { %v5793_v36 = vpop.f32.mrf.mxu3 }
 0x191   : > { %v5782_v2 = vpop.f32.mrf.mxu0  ;;  %7526 = vst [vmem:[#allocation80_spill] sm:$0xff] %v5793_v36 }
 0x192   : > { %7523 = vst [vmem:[#allocation77_spill] sm:$0xff] %v5782_v2  ;;  %v5789_v32 = vpop.f32.mrf.mxu2 }
 0x193   : > { %7524 = vst [vmem:[#allocation78_spill] sm:$0xff] %v5789_v32  ;;  %v5791_v49 = vpop.f32.mrf.mxu1 }
 0x194   : > { %7525 = vst [vmem:[#allocation79_spill] sm:$0xff] %v5791_v49  ;;  %3917 = vmatmul.msk.f32.gmra.mxu0 %vm826_vm1, %v5787_v19 }
 0x195   : > { %4155 = vmatmul.msk.f32.gmra.mxu3 %vm826_vm1, %v4089_v28  ;;  %v5825_v28 = vld [vmem:[%s7438_s5] ss:$0 sm:$0xff] }
 0x196   : > { %4058 = vmatmul.msk.f32.gmra.mxu1 %vm826_vm1, %v5195_v35  ;;  %v4091_v35 = vld [vmem:[%s7434_s1 + $0x280] sm:$0xff] }
 0x197   : > { %4123 = vmatmul.msk.f32.gmra.mxu2 %vm826_vm1, %v4090_v25 }
 0x198   : > { %v5815_v36 = vpop.f32.mrf.mxu3 }
 0x199   : > { %v5804_v54 = vpop.f32.mrf.mxu0  ;;  %7529 = vst [vmem:[#allocation83_spill] sm:$0xff] %v5815_v36  ;;  %v3414_v36 = vld [vmem:[%s7439_s6 + $0x70] sm:$0xff] }
 0x19a   : > { %7527 = vst [vmem:[#allocation81_spill] sm:$0xff] %v5804_v54  ;;  %v5811_v32 = vpop.f32.mrf.mxu2  ;;  %v5839_v54 = vadd.f32 %v5825_v28, %v5332_v17  ;;  %3546 = vmatpush.msra.mxu3 %v3414_v36  ;;  %v3088_v17 = vld [vmem:[#allocation2 + $0x20] sm:$0xff]  ;;  %v5859_v36 = vadd.f32 %v5825_v28, %v5353_v30 }
 0x19b   : > { %7528 = vst [vmem:[#allocation82_spill] sm:$0xff] %v5811_v32  ;;  %v5813_v49 = vpop.f32.mrf.mxu1  ;;  %v3430_v32 = vld [vmem:[%s7440_s7 + $0x70] sm:$0xff]  ;;  %3109 = vmatpush.msra.mxu1 %v3088_v17  ;;  %v3429_v17 = vld [vmem:[%s7440_s7 + $0x68] sm:$0xff] }
 0x19c   : > { %3918 = vmatmul.msk.f32.gmra.mxu0 %vm826_vm1, %v5809_v22  ;;  %3433 = vmatpush.msra.mxu2 %v3430_v32  ;;  %v4092_v32 = vld [vmem:[%s7434_s1 + $0x288] sm:$0xff] }
 0x19d   : > { %4156 = vmatmul.msk.f32.gmra.mxu3 %vm826_vm1, %v4090_v25 }
 0x19e   : > { %4059 = vmatmul.msk.f32.gmra.mxu1 %vm826_vm1, %v5208_v38  ;;  %3434 = vmatpush.msra.mxu2 %v3429_v17 }
 0x19f   : > { %4124 = vmatmul.msk.f32.gmra.mxu2 %vm826_vm1, %v4091_v35 }
 0x1a0   : > { %v5846_v62 = vpop.f32.mrf.mxu3 }
 0x1a1   : > { %v5841_v2 = vpop.f32.mrf.mxu0  ;;  %7531 = vst [vmem:[#allocation85_spill] sm:$0xff] %v5846_v62 }
 0x1a2   : > { %7530 = vst [vmem:[#allocation84_spill] sm:$0xff] %v5841_v2  ;;  %v2201_v38 = vpop.f32.mrf.mxu2 }
 0x1a3   : > { %v2297_v58 = vsub.f32 %v5839_v54, %v2201_v38  ;;  %v5844_v16 = vpop.f32.mrf.mxu1 }
 0x1a4   : > { %3945 = vmatmul.msk.f32.vlgmr.msra.gmra.mxu0 %vm826_vm1, %v5665_v9 }
 0x1a5   : > { %v2329_v25 = vmul.f32 0.5, %v2297_v58  ;;  %4157 = vmatmul.msk.f32.gmra.mxu3 %vm826_vm1, %v4091_v35 }
 0x1a6   : > { %4060 = vmatmul.msk.f32.gmra.mxu1 %vm826_vm1, %v5221_v41  ;;  %v4093_v41 = vld [vmem:[%s7434_s1 + $0x290] sm:$0xff] }
 0x1a7   : > { %4354 = vtanh.f32 %v2329_v25  ;;  %4125 = vmatmul.msk.f32.gmra.mxu2 %vm826_vm1, %v4092_v32 }
 0x1a8   : > { %v2483_v2 = vpop.f32.mrf.mxu3 }
 0x1a9   : > { %v5861_v9 = vpop.f32.mrf.mxu0 }
 0x1aa   : > { %7532 = vst [vmem:[#allocation86_spill] sm:$0xff] %v5861_v9  ;;  %v2204_v38 = vpop.f32.mrf.mxu2 }
 0x1ab   : > { %v2298_v62 = vsub.f32 %v5859_v36, %v2204_v38  ;;  %v5864_v58 = vpop.f32.mrf.mxu1 }
 0x1ac   : > { %3946 = vmatmul.msk.f32.gmra.mxu0 %vm826_vm1, %v5690_v33  ;;  %v3413_v33 = vld [vmem:[%s7439_s6 + $0x68] sm:$0xff] }
 0x1ad   : > { %v4355_v35 = vpop.eup %4354  ;;  %v2330_v25 = vmul.f32 0.5, %v2298_v62  ;;  %4158 = vmatmul.msk.f32.gmra.mxu3 %vm826_vm1, %v4092_v32 }
 0x1ae   : > { %4061 = vmatmul.msk.f32.gmra.mxu1 %vm826_vm1, %v5234_v44  ;;  %v2393_v30 = vmul.f32 0.5, %v4355_v35  ;;  %v5885_v44 = vadd.f32 %v5825_v28, %v5374_v40  ;;  %3547 = vmatpush.msra.mxu3 %v3413_v33  ;;  %v4094_v40 = vld [vmem:[%s7434_s1 + $0x298] sm:$0xff] }
 0x1af   : > { %4356 = vtanh.f32 %v2330_v25  ;;  %4126 = vmatmul.msk.f32.gmra.mxu2 %vm826_vm1, %v4093_v41 }
 0x1b0   : > { %v5880_v38 = vadd.f32 0.5, %v2393_v30  ;;  %v2486_v30 = vpop.f32.mrf.mxu3 }
 0x1b1   : > { %v5887_v62 = vpop.f32.mrf.mxu0 }
 0x1b2   : > { %7533 = vst [vmem:[#allocation87_spill] sm:$0xff] %v5887_v62  ;;  %v5890_v35 = vmul.f32 %v2483_v2, %v5880_v38  ;;  %v2207_v25 = vpop.f32.mrf.mxu2 }
 0x1b3   : > { %v2299_v9 = vsub.f32 %v5885_v44, %v2207_v25  ;;  %v5893_v34 = vpop.f32.mrf.mxu1 }
 0x1b4   : > { %3947 = vmatmul.msk.f32.gmra.mxu0 %vm826_vm1, %v5715_v63  ;;  %v5908_v63 = vadd.f32 %v5825_v28, %v5395_v55 }
 0x1b5   : > { %v4357_v32 = vpop.eup %4356  ;;  %v2331_v17 = vmul.f32 0.5, %v2299_v9  ;;  %4159 = vmatmul.msk.f32.gmra.mxu3 %vm826_vm1, %v4093_v41  ;;  %v4095_v41 = vld [vmem:[%s7434_s1 + $0x2a0] sm:$0xff] }
 0x1b6   : > { %4062 = vmatmul.msk.f32.gmra.mxu1 %vm826_vm1, %v5247_v48  ;;  %v2394_v2 = vmul.f32 0.5, %v4357_v32 }
 0x1b7   : > { %4358 = vtanh.f32 %v2331_v17  ;;  %4127 = vmatmul.msk.f32.gmra.mxu2 %vm826_vm1, %v4094_v40 }
 0x1b8   : > { %v5903_v33 = vadd.f32 0.5, %v2394_v2  ;;  %v2489_v17 = vpop.f32.mrf.mxu3 }
 0x1b9   : > { %v5910_v25 = vpop.f32.mrf.mxu0 }
 0x1ba   : > { %7534 = vst [vmem:[#allocation88_spill] sm:$0xff] %v5910_v25  ;;  %v5913_v62 = vmul.f32 %v2486_v30, %v5903_v33  ;;  %v2210_v9 = vpop.f32.mrf.mxu2  ;;  %v3428_v25 = vld [vmem:[%s7440_s7 + $0x60] sm:$0xff] }
 0x1bb   : > { %v2300_v48 = vsub.f32 %v5908_v63, %v2210_v9  ;;  %v5916_v32 = vpop.f32.mrf.mxu1  ;;  %v2713_v9 = vld [vmem:[#allocation3 + $0x48] sm:$0xf]  ;;  %3435 = vmatpush.msra.mxu2 %v3428_v25 }
 0x1bc   : > { %7535 = vst [vmem:[#allocation89_spill] sm:$0xff] %v5916_v32  ;;  %3948 = vmatmul.msk.f32.gmra.mxu0 %vm826_vm1, %v5737_v61  ;;  %v3412_v61 = vld [vmem:[%s7439_s6 + $0x60] sm:$0xff] }
 0x1bd   : > { %v4359_v55 = vpop.eup %4358  ;;  %v2332_v2 = vmul.f32 0.5, %v2300_v48  ;;  %4160 = vmatmul.msk.f32.gmra.mxu3 %vm826_vm1, %v4094_v40  ;;  %4205 = vmatpush.msk.msra.mxu0 %vm923_vm0, %v2713_v9 }
 0x1be   : > { %4063 = vmatmul.msk.f32.gmra.mxu1 %vm826_vm1, %v5260_v51  ;;  %v2395_v30 = vmul.f32 0.5, %v4359_v55  ;;  %v5938_v51 = vadd.f32 %v5825_v28, %v5416_v13  ;;  %3548 = vmatpush.msra.mxu3 %v3412_v61  ;;  %v4096_v13 = vld [vmem:[%s7434_s1 + $0x2a8] sm:$0xff]  ;;  %v5965_v61 = vadd.f32 %v5825_v28, %v5486_v47  ;;  %v2712_v47 = vld [vmem:[#allocation3 + $0x98] sm:$0xff] }
 0x1bf   : > { %4360 = vtanh.f32 %v2332_v2  ;;  %4128 = vmatmul.msk.f32.gmra.mxu2 %vm826_vm1, %v4095_v41  ;;  %2825 = vmatpush.msra.mxu0 %v2712_v47 }
 0x1c0   : > { %v5932_v10 = vadd.f32 0.5, %v2395_v30  ;;  %v2492_v32 = vpop.f32.mrf.mxu3  ;;  %7538 = vst [vmem:[#allocation92_spill] sm:$0xff] %v5965_v61 }
 0x1c1   : > { %v5940_v48 = vpop.f32.mrf.mxu0 }
 0x1c2   : > { %7536 = vst [vmem:[#allocation90_spill] sm:$0xff] %v5940_v48  ;;  %v5943_v55 = vmul.f32 %v2489_v17, %v5932_v10  ;;  %v2213_v2 = vpop.f32.mrf.mxu2  ;;  %v1675_v48 = vsub.f32 %v5965_v61, %v5321_v14 }
 0x1c3   : > { %v2301_v4 = vsub.f32 %v5938_v51, %v2213_v2  ;;  %v5946_v30 = vpop.f32.mrf.mxu1 }
 0x1c4   : > { %7537 = vst [vmem:[#allocation91_spill] sm:$0xff] %v5946_v30  ;;  %3949 = vmatmul.msk.f32.gmra.mxu0 %vm826_vm1, %v5759_v6  ;;  %v5961_v6 = vadd.f32 %v5825_v28, %v5438_v50  ;;  %v4097_v50 = vld [vmem:[%s7434_s1 + $0x2b0] sm:$0xff] }
 0x1c5   : > { %v4361_v40 = vpop.eup %4360  ;;  %v2333_v9 = vmul.f32 0.5, %v2301_v4  ;;  %4161 = vmatmul.msk.f32.gmra.mxu3 %vm826_vm1, %v4095_v41 }
 0x1c6   : > { %4064 = vmatmul.msk.f32.gmra.mxu1 %vm826_vm1, %v5275_v57  ;;  %v2396_v25 = vmul.f32 0.5, %v4361_v40 }
 0x1c7   : > { %4362 = vtanh.f32 %v2333_v9  ;;  %4129 = vmatmul.msk.f32.gmra.mxu2 %vm826_vm1, %v4096_v13 }
 0x1c8   : > { %v5956_v17 = vadd.f32 0.5, %v2396_v25  ;;  %v2495_v25 = vpop.f32.mrf.mxu3 }
 0x1c9   : > { %v5967_v4 = vpop.f32.mrf.mxu0 }
 0x1ca   : > { %7539 = vst [vmem:[#allocation93_spill] sm:$0xff] %v5967_v4  ;;  %v5970_v57 = vmul.f32 %v2492_v32, %v5956_v17  ;;  %v2216_v2 = vpop.f32.mrf.mxu2  ;;  %v1047_v4 = vsub.f32 %v5965_v61, %v5282_v60  ;;  %v3411_v60 = vld [vmem:[%s7439_s6 + $0x58] sm:$0xff] }
 0x1cb   : > { %v2302_v40 = vsub.f32 %v5961_v6, %v2216_v2  ;;  %v5973_v9 = vpop.f32.mrf.mxu1  ;;  %3549 = vmatpush.msra.mxu3 %v3411_v60 }
 0x1cc   : > { %7540 = vst [vmem:[#allocation94_spill] sm:$0xff] %v5970_v57  ;;  %3950 = vmatmul.msk.f32.gmra.mxu0 %vm826_vm1, %v5787_v19  ;;  %v3427_v19 = vld [vmem:[%s7440_s7 + $0x58] sm:$0xff]  ;;  %v1079_v14 = vmul.f32 0.5, %v1047_v4 }
 0x1cd   : > { %7541 = vst [vmem:[#allocation95_spill] sm:$0xff] %v5973_v9  ;;  %v4363_v41 = vpop.eup %4362  ;;  %v2334_v32 = vmul.f32 0.5, %v2302_v40  ;;  %4162 = vmatmul.msk.f32.gmra.mxu3 %vm826_vm1, %v4096_v13  ;;  %3436 = vmatpush.msra.mxu2 %v3427_v19  ;;  %v1707_v9 = vmul.f32 0.5, %v1675_v48  ;;  %v2711_v48 = vld [vmem:[#allocation3 + $0x58] sm:$0xff]  ;;  %v3087_v19 = vld [vmem:[#allocation2 + $0x60] sm:$0xff] }
 0x1ce   : > { %4065 = vmatmul.msk.f32.gmra.mxu1 %vm826_vm1, %v5290_v0  ;;  %v2397_v2 = vmul.f32 0.5, %v4363_v41  ;;  %v5998_v0 = vadd.f32 %v5825_v28, %v5459_v31  ;;  %v4098_v31 = vld [vmem:[%s7434_s1 + $0x2b8] sm:$0xff]  ;;  %2826 = vmatpush.msra.mxu0 %v2711_v48 }
 0x1cf   : > { %4364 = vtanh.f32 %v2334_v32  ;;  %4130 = vmatmul.msk.f32.gmra.mxu2 %vm826_vm1, %v4097_v50  ;;  %3110 = vmatpush.msra.mxu1 %v3087_v19  ;;  %v2710_v19 = vld [vmem:[#allocation3 + $0x60] sm:$0xff] }
 0x1d0   : > { %v5993_v40 = vadd.f32 0.5, %v2397_v2  ;;  %v2498_v57 = vpop.f32.mrf.mxu3  ;;  %4366 = vtanh.f32 %v1079_v14  ;;  %2827 = vmatpush.msra.mxu0 %v2710_v19 }
 0x1d1   : > { %v6000_v47 = vpop.f32.mrf.mxu0  ;;  %4368 = vtanh.f32 %v1707_v9 }
 0x1d2   : > { %7542 = vst [vmem:[#allocation96_spill] sm:$0xff] %v6000_v47  ;;  %v6003_v41 = vmul.f32 %v2495_v25, %v5993_v40  ;;  %v2219_v32 = vpop.f32.mrf.mxu2 }
 0x1d3   : > { %v2303_v30 = vsub.f32 %v5998_v0, %v2219_v32  ;;  %v1875_v2 = vpop.f32.mrf.mxu1 }
 0x1d4   : > { %3951 = vmatmul.msk.f32.gmra.mxu0 %vm826_vm1, %v5809_v22 }
 0x1d5   : > { %v4365_v13 = vpop.eup %4364  ;;  %v2335_v4 = vmul.f32 0.5, %v2303_v30  ;;  %4163 = vmatmul.msk.f32.gmra.mxu3 %vm826_vm1, %v4097_v50  ;;  %v4099_v50 = vld [vmem:[%s7434_s1 + $0x2c0] sm:$0xff] }
 0x1d6   : > { %4066 = vmatmul.msk.f32.gmra.mxu1 %vm826_vm1, %v5307_v7  ;;  %v2398_v25 = vmul.f32 0.5, %v4365_v13  ;;  %v4367_v14 = vpop.eup %4366 }
 0x1d7   : > { %4370 = vtanh.f32 %v2335_v4  ;;  %4131 = vmatmul.msk.f32.gmra.mxu2 %vm826_vm1, %v4098_v31  ;;  %v4369_v13 = vpop.eup %4368 }
 0x1d8   : > { %v6014_v60 = vadd.f32 0.5, %v2398_v25  ;;  %v2501_v48 = vpop.f32.mrf.mxu3  ;;  %v1771_v47 = vmul.f32 0.5, %v4369_v13 }
 0x1d9   : > { %v6017_v22 = vpop.f32.mrf.mxu0 }
 0x1da   : > { %7543 = vst [vmem:[#allocation97_spill] sm:$0xff] %v6017_v22  ;;  %v6020_v30 = vmul.f32 %v2498_v57, %v6014_v60  ;;  %v2222_v9 = vpop.f32.mrf.mxu2  ;;  %v1143_v22 = vmul.f32 0.5, %v4367_v14  ;;  %v4100_v14 = vld [vmem:[%s7434_s1 + $0x2c8] sm:$0xff] }
 0x1db   : > { %v2304_v7 = vsub.f32 %v5965_v61, %v2222_v9  ;;  %v6023_v32 = vpop.f32.mrf.mxu1  ;;  %v3426_v9 = vld [vmem:[%s7440_s7 + $0x50] sm:$0xff] }
 0x1dc   : > { %7544 = vst [vmem:[#allocation98_spill] sm:$0xff] %v6020_v30  ;;  %4010 = vmatmul.msk.f32.vlgmr.msrb.gmra.mxu0 %vm826_vm1, %v5469_v52  ;;  %v3410_v52 = vld [vmem:[%s7439_s6 + $0x50] sm:$0xff]  ;;  %3437 = vmatpush.msra.mxu2 %v3426_v9  ;;  %v1803_v30 = vadd.f32 0.5, %v1771_v47 }
 0x1dd   : > { %7545 = vst [vmem:[#allocation99_spill] sm:$0xff] %v6023_v32  ;;  %v4371_v4 = vpop.eup %4370  ;;  %v2336_v25 = vmul.f32 0.5, %v2304_v7  ;;  %4164 = vmatmul.msk.f32.gmra.mxu3 %vm826_vm1, %v4098_v31  ;;  %v1175_v32 = vadd.f32 0.5, %v1143_v22 }
 0x1de   : > { %4067 = vmatmul.msk.f32.gmra.mxu1 %vm826_vm1, %v5326_v15  ;;  %v2399_v57 = vmul.f32 0.5, %v4371_v4  ;;  %3550 = vmatpush.msra.mxu3 %v3410_v52  ;;  %v1957_v13 = vmul.f32 %v1875_v2, %v1803_v30 }
 0x1df   : > { %4372 = vtanh.f32 %v2336_v25  ;;  %4132 = vmatmul.msk.f32.gmra.mxu2 %vm826_vm1, %v4099_v50  ;;  %v1328_v19 = vmul.f32 %v5297_v3, %v1175_v32  ;;  %v2021_v22 = vadd.f32 %v1803_v30, %v1175_v32  ;;  %v4101_v3 = vld [vmem:[%s7434_s1 + $0x2d0] sm:$0xff]  ;;  %v3425_v30 = vld [vmem:[%s7440_s7 + $0x48] sm:$0xff] }
 0x1e0   : > { %v6039_v7 = vadd.f32 0.5, %v2399_v57  ;;  %v3409_v32 = vld [vmem:[%s7439_s6 + $0x48] sm:$0xff]  ;;  %3438 = vmatpush.msra.mxu2 %v3425_v30  ;;  %v3406_v30 = vld [vmem:[%s7439_s6 + $0x30] sm:$0xff] }
 0x1e1   : > { %v6042_v15 = vpop.f32.mrf.mxu0  ;;  %v1989_v9 = vadd.f32 %v1957_v13, %v1328_v19  ;;  %3551 = vmatpush.msra.mxu3 %v3409_v32  ;;  %v3408_v13 = vld [vmem:[%s7439_s6 + $0x40] sm:$0xff] }
 0x1e2   : > { %7546 = vst [vmem:[#allocation100_spill] sm:$0xff] %v6039_v7  ;;  %v6045_v4 = vmul.f32 %v2501_v48, %v6039_v7  ;;  %v2504_v48 = vpop.f32.mrf.mxu3 }
 0x1e3   : > { %7547 = vst [vmem:[#allocation101_spill] sm:$0xff] %v6042_v15  ;;  %v6047_v25 = vpop.f32.mrf.mxu1  ;;  %3552 = vmatpush.msra.mxu3 %v3408_v13 }
 0x1e4   : > { %7548 = vst [vmem:[#allocation102_spill] sm:$0xff] %v6045_v4  ;;  %4011 = vmatmul.msk.f32.gmra.mxu0 %vm826_vm1, %v5496_v1 }
 0x1e5   : > { %7549 = vst [vmem:[#allocation103_spill] sm:$0xff] %v6047_v25  ;;  %v4373_v31 = vpop.eup %4372  ;;  %4165 = vmatmul.msk.f32.gmra.mxu3 %vm826_vm1, %v4099_v50 }
 0x1e6   : > { %4068 = vmatmul.msk.f32.gmra.mxu1 %vm826_vm1, %v5347_v26  ;;  %v2400_v57 = vmul.f32 0.5, %v4373_v31  ;;  %v2709_v26 = vld [vmem:[#allocation3 + $0x10] sm:$0xff] }
 0x1e7   : > { %4133 = vmatmul.msk.f32.gmra.mxu2 %vm826_vm1, %v4100_v14  ;;  %2828 = vmatpush.msra.mxu0 %v2709_v26 }
 0x1e8   : > { %v2432_v47 = vadd.f32 0.5, %v2400_v57 }
 0x1e9   : > { %v6059_v1 = vpop.f32.mrf.mxu0 }
 0x1ea   : > { %v2586_v52 = vmul.f32 %v2504_v48, %v2432_v47  ;;  %v6061_v15 = vadd.f32 %v2432_v47, %v2021_v22  ;;  %v3407_v22 = vld [vmem:[%s7439_s6 + $0x38] sm:$0xff]  ;;  %v4173_v47 = vld [vmem:[%s7434_s1 + $0x300] sm:$0xff] }
 0x1eb   : > { %v6063_v2 = vpop.f32.mrf.mxu1  ;;  %3553 = vmatpush.msra.mxu3 %v3407_v22  ;;  %v3421_v22 = vld [vmem:[%s7440_s7 + $0x28] sm:$0xff] }
 0x1ec   : > { %7550 = vst [vmem:[#allocation104_spill] sm:$0xff] %v6061_v15  ;;  %v6065_v25 = vadd.f32 %v2586_v52, %v1989_v9  ;;  %4012 = vmatmul.msk.f32.gmra.mxu0 %vm826_vm1, %v5517_v42  ;;  %v4106_v9 = vld [vmem:[%s7434_s1 + $0x2f8] sm:$0xff] }
 0x1ed   : > { %7551 = vst [vmem:[#allocation105_spill] sm:$0xff] %v6063_v2  ;;  %4166 = vmatmul.msk.f32.gmra.mxu3 %vm826_vm1, %v4100_v14 }
 0x1ee   : > { %7552 = vst [vmem:[#allocation106_spill] sm:$0xff] %v6065_v25  ;;  %4069 = vmatmul.msk.f32.gmra.mxu1 %vm826_vm1, %v5368_v39  ;;  %v4102_v39 = vld [vmem:[%s7434_s1 + $0x2d8] sm:$0xff]  ;;  %3554 = vmatpush.msra.mxu3 %v3406_v30 }
 0x1ef   : > { %4134 = vmatmul.msk.f32.gmra.mxu2 %vm826_vm1, %v4101_v3 }
 0x1f1   : > { %v6082_v42 = vpop.f32.mrf.mxu0 }
 0x1f3   : > { %v6084_v50 = vpop.f32.mrf.mxu1 }
 0x1f4   : > { %7553 = vst [vmem:[#allocation107_spill] sm:$0xff] %v6084_v50  ;;  %4013 = vmatmul.msk.f32.gmra.mxu0 %vm826_vm1, %v5538_v45  ;;  %v4103_v45 = vld [vmem:[%s7434_s1 + $0x2e0] sm:$0xff] }
 0x1f5   : > { %4167 = vmatmul.msk.f32.gmra.mxu3 %vm826_vm1, %v4101_v3  ;;  %v4174_v3 = vld [vmem:[%s7434_s1 + $0x308] sm:$0xff]  ;;  %v4181_v50 = vld [vmem:[%s7434_s1 + $0x340] sm:$0xff] }
 0x1f6   : > { %4070 = vmatmul.msk.f32.gmra.mxu1 %vm826_vm1, %v5389_v53  ;;  %v3424_v53 = vld [vmem:[%s7440_s7 + $0x40] sm:$0xff] }
 0x1f7   : > { %4135 = vmatmul.msk.f32.gmra.mxu2 %vm826_vm1, %v4102_v39 }
 0x1f8   : > { %3439 = vmatpush.msra.mxu2 %v3424_v53  ;;  %v6184_v53 = vpop.f32.mrf.mxu2 }
 0x1f9   : > { %v6095_v14 = vpop.f32.mrf.mxu0 }
 0x1fb   : > { %v6097_v31 = vpop.f32.mrf.mxu1 }
 0x1fc   : > { %7554 = vst [vmem:[#allocation108_spill] sm:$0xff] %v6097_v31  ;;  %4014 = vmatmul.msk.f32.gmra.mxu0 %vm826_vm1, %v5559_v18 }
 0x1fd   : > { %4168 = vmatmul.msk.f32.gmra.mxu3 %vm826_vm1, %v4102_v39  ;;  %v4175_v39 = vld [vmem:[%s7434_s1 + $0x310] sm:$0xff] }
 0x1fe   : > { %4071 = vmatmul.msk.f32.gmra.mxu1 %vm826_vm1, %v5410_v8  ;;  %v4104_v8 = vld [vmem:[%s7434_s1 + $0x2e8] sm:$0xff] }
 0x1ff   : > { %4136 = vmatmul.msk.f32.gmra.mxu2 %vm826_vm1, %v4103_v45 }
 0x201   : > { %v6114_v18 = vpop.f32.mrf.mxu0 }
 0x203   : > { %v6116_v57 = vpop.f32.mrf.mxu1 }
 0x204   : > { %7555 = vst [vmem:[#allocation109_spill] sm:$0xff] %v6116_v57  ;;  %4015 = vmatmul.msk.f32.gmra.mxu0 %vm826_vm1, %v5580_v23  ;;  %v4105_v23 = vld [vmem:[%s7434_s1 + $0x2f0] sm:$0xff] }
 0x205   : > { %4169 = vmatmul.msk.f32.gmra.mxu3 %vm826_vm1, %v4103_v45 }
 0x206   : > { %4072 = vmatmul.msk.f32.gmra.mxu1 %vm826_vm1, %v5431_v43  ;;  %v3423_v43 = vld [vmem:[%s7440_s7 + $0x38] sm:$0xff] }
 0x207   : > { %4137 = vmatmul.msk.f32.gmra.mxu2 %vm826_vm1, %v4104_v8 }
 0x208   : > { %3440 = vmatpush.msra.mxu2 %v3423_v43  ;;  %v6196_v43 = vpop.f32.mrf.mxu2 }
 0x209   : > { %v6127_v48 = vpop.f32.mrf.mxu0  ;;  %7561 = vst [vmem:[#allocation115_spill] sm:$0xff] %v6196_v43 }
 0x20b   : > { %v6129_v19 = vpop.f32.mrf.mxu1 }
 0x20c   : > { %7556 = vst [vmem:[#allocation110_spill] sm:$0xff] %v6129_v19  ;;  %4016 = vmatmul.msk.f32.gmra.mxu0 %vm826_vm1, %v5601_v20  ;;  %v3404_v19 = vld [vmem:[%s7439_s6 + $0x20] sm:$0xff] }
 0x20d   : > { %4170 = vmatmul.msk.f32.gmra.mxu3 %vm826_vm1, %v4104_v8  ;;  %v4176_v8 = vld [vmem:[%s7434_s1 + $0x318] sm:$0xff] }
 0x20e   : > { %4073 = vmatmul.msk.f32.gmra.mxu1 %vm826_vm1, %v5453_v27 }
 0x20f   : > { %4138 = vmatmul.msk.f32.gmra.mxu2 %vm826_vm1, %v4105_v23 }
 0x210   : > { %v6214_v30 = vpop.f32.mrf.mxu2 }
 0x211   : > { %v6146_v20 = vpop.f32.mrf.mxu0  ;;  %7563 = vst [vmem:[#allocation117_spill] sm:$0xff] %v6214_v30 }
 0x213   : > { %v6151_v27 = vpop.f32.mrf.mxu1 }
 0x214   : > { %7557 = vst [vmem:[#allocation111_spill] sm:$0xff] %v6151_v27  ;;  %4206 = vmatmul.msk.f32.vlgmr.msra.gmra.mxu0 %vm826_vm1, %v4173_v47  ;;  %v3420_v27 = vld [vmem:[%s7440_s7 + $0x20] sm:$0xff] }
 0x215   : > { %4171 = vmatmul.msk.f32.gmra.mxu3 %vm826_vm1, %v4105_v23 }
 0x216   : > { %4074 = vmatmul.msk.f32.gmra.mxu1 %vm826_vm1, %v5479_v59  ;;  %v3422_v59 = vld [vmem:[%s7440_s7 + $0x30] sm:$0xff] }
 0x217   : > { %4139 = vmatmul.msk.f32.gmra.mxu2 %vm826_vm1, %v4106_v9 }
 0x218   : > { %3441 = vmatpush.msra.mxu2 %v3422_v59 }
 0x219   : > { %v6161_v52 = vpop.f32.mrf.mxu0 }
 0x21a   : > { %3442 = vmatpush.msra.mxu2 %v3421_v22  ;;  %v4178_v22 = vld [vmem:[%s7434_s1 + $0x328] sm:$0xff] }
 0x21b   : > { %v6166_v26 = vpop.f32.mrf.mxu1 }
 0x21c   : > { %7558 = vst [vmem:[#allocation112_spill] sm:$0xff] %v6166_v26  ;;  %4207 = vmatmul.msk.f32.gmra.mxu0 %vm826_vm1, %v4174_v3  ;;  %3443 = vmatpush.msra.mxu2 %v3420_v27 }
 0x21d   : > { %4172 = vmatmul.msk.f32.gmra.mxu3 %vm826_vm1, %v4106_v9 }
 0x21e   : > { %4239 = vmatmul.msk.f32.vlgmr.msra.gmra.mxu1 %vm826_vm1, %v4173_v47  ;;  %v3405_v47 = vld [vmem:[%s7439_s6 + $0x28] sm:$0xff] }
 0x21f   : > { %3555 = vmatpush.msra.mxu3 %v3405_v47 }
 0x221   : > { %v6177_v32 = vpop.f32.mrf.mxu0  ;;  %3556 = vmatpush.msra.mxu3 %v3404_v19 }
 0x223   : > { %v6182_v45 = vpop.f32.mrf.mxu1 }
 0x224   : > { %7559 = vst [vmem:[#allocation113_spill] sm:$0xff] %v6182_v45  ;;  %4208 = vmatmul.msk.f32.gmra.mxu0 %vm826_vm1, %v4175_v39  ;;  %v6232_v45 = vpop.f32.mrf.mxu3 }
 0x225   : > { %7566 = vst [vmem:[#allocation120_spill] sm:$0xff] %v6232_v45  ;;  %v4183_v45 = vld [vmem:[%s7434_s1 + $0x350] sm:$0xff] }
 0x226   : > { %4240 = vmatmul.msk.f32.gmra.mxu1 %vm826_vm1, %v4174_v3  ;;  %v4177_v3 = vld [vmem:[%s7434_s1 + $0x320] sm:$0xff] }
 0x229   : > { %v6188_v13 = vpop.f32.mrf.mxu0 }
 0x22b   : > { %v6193_v23 = vpop.f32.mrf.mxu1 }
 0x22c   : > { %7560 = vst [vmem:[#allocation114_spill] sm:$0xff] %v6193_v23  ;;  %4209 = vmatmul.msk.f32.gmra.mxu0 %vm826_vm1, %v4176_v8 }
 0x22e   : > { %4241 = vmatmul.msk.f32.gmra.mxu1 %vm826_vm1, %v4175_v39 }
 0x231   : > { %v6205_v9 = vpop.f32.mrf.mxu0 }
 0x233   : > { %v6210_v59 = vpop.f32.mrf.mxu1 }
 0x234   : > { %7562 = vst [vmem:[#allocation116_spill] sm:$0xff] %v6210_v59  ;;  %4210 = vmatmul.msk.f32.gmra.mxu0 %vm826_vm1, %v4177_v3  ;;  %v6230_v59 = vpop.f32.mrf.mxu2 }
 0x235   : > { %7565 = vst [vmem:[#allocation119_spill] sm:$0xff] %v6230_v59  ;;  %v4185_v59 = vld [vmem:[%s7434_s1 + $0x360] sm:$0xff] }
 0x236   : > { %4242 = vmatmul.msk.f32.gmra.mxu1 %vm826_vm1, %v4176_v8  ;;  %v4179_v8 = vld [vmem:[%s7434_s1 + $0x330] sm:$0xff] }
 0x239   : > { %v6216_v39 = vpop.f32.mrf.mxu0 }
 0x23b   : > { %v6221_v47 = vpop.f32.mrf.mxu1 }
 0x23c   : > { %7564 = vst [vmem:[#allocation118_spill] sm:$0xff] %v6221_v47  ;;  %4211 = vmatmul.msk.f32.gmra.mxu0 %vm826_vm1, %v4178_v22  ;;  %v6251_v57 = vpop.f32.mrf.mxu2 }
 0x23d   : > { %7570 = vst [vmem:[#allocation124_spill] sm:$0xff] %v6251_v57 }
 0x23e   : > { %4243 = vmatmul.msk.f32.gmra.mxu1 %vm826_vm1, %v4177_v3  ;;  %v4180_v3 = vld [vmem:[%s7434_s1 + $0x338] sm:$0xff] }
 0x241   : > { %v6225_v23 = vpop.f32.mrf.mxu0 }
 0x243   : > { %v6234_v26 = vpop.f32.mrf.mxu1 }
 0x244   : > { %7567 = vst [vmem:[#allocation121_spill] sm:$0xff] %v6234_v26  ;;  %4212 = vmatmul.msk.f32.gmra.mxu0 %vm826_vm1, %v4179_v8  ;;  %v6265_v19 = vpop.f32.mrf.mxu2 }
 0x245   : > { %7574 = vst [vmem:[#allocation128_spill] sm:$0xff] %v6265_v19 }
 0x246   : > { %4244 = vmatmul.msk.f32.gmra.mxu1 %vm826_vm1, %v4178_v22  ;;  %v6254_v22 = vpop.f32.mrf.mxu3 }
 0x247   : > { %7571 = vst [vmem:[#allocation125_spill] sm:$0xff] %v6254_v22  ;;  %v3419_v22 = vld [vmem:[%s7440_s7 + $0x18] sm:$0xff] }
 0x248   : > { %3444 = vmatpush.msra.mxu2 %v3419_v22  ;;  %v3418_v22 = vld [vmem:[%s7440_s7 + $0x10] sm:$0xff] }
 0x249   : > { %v6238_v47 = vpop.f32.mrf.mxu0 }
 0x24a   : > { %7568 = vst [vmem:[#allocation122_spill] sm:$0xff] %v6238_v47  ;;  %3445 = vmatpush.msra.mxu2 %v3418_v22 }
 0x24b   : > { %v6249_v26 = vpop.f32.mrf.mxu1 }
 0x24c   : > { %7569 = vst [vmem:[#allocation123_spill] sm:$0xff] %v6249_v26  ;;  %4213 = vmatmul.msk.f32.gmra.mxu0 %vm826_vm1, %v4180_v3 }
 0x24e   : > { %4245 = vmatmul.msk.f32.gmra.mxu1 %vm826_vm1, %v4179_v8  ;;  %v6268_v27 = vpop.f32.mrf.mxu3  ;;  %v4182_v8 = vld [vmem:[%s7434_s1 + $0x348] sm:$0xff] }
 0x24f   : > { %7575 = vst [vmem:[#allocation129_spill] sm:$0xff] %v6268_v27 }
 0x251   : > { %v6257_v31 = vpop.f32.mrf.mxu0 }
 0x252   : > { %7572 = vst [vmem:[#allocation126_spill] sm:$0xff] %v6257_v31 }
 0x253   : > { %v6262_v2 = vpop.f32.mrf.mxu1 }
 0x254   : > { %7573 = vst [vmem:[#allocation127_spill] sm:$0xff] %v6262_v2  ;;  %4214 = vmatmul.msk.f32.gmra.mxu0 %vm826_vm1, %v4181_v50  ;;  %v3403_v2 = vld [vmem:[%s7439_s6 + $0x18] sm:$0xff] }
 0x255   : > { %3557 = vmatpush.msra.mxu3 %v3403_v2 }
 0x256   : > { %4246 = vmatmul.msk.f32.gmra.mxu1 %vm826_vm1, %v4180_v3  ;;  %v6283_v3 = vpop.f32.mrf.mxu2  ;;  %v6285_v27 = vpop.f32.mrf.mxu3 }
 0x257   : > { %7577 = vst [vmem:[#allocation131_spill] sm:$0xff] %v6283_v3 }
 0x258   : > { %7578 = vst [vmem:[#allocation132_spill] sm:$0xff] %v6285_v27 }
 0x259   : > { %v1572_v26 = vpop.f32.mrf.mxu0 }
 0x25b   : > { %v6279_v19 = vpop.f32.mrf.mxu1 }
 0x25c   : > { %7576 = vst [vmem:[#allocation130_spill] sm:$0xff] %v6279_v19  ;;  %4215 = vmatmul.msk.f32.gmra.mxu0 %vm826_vm1, %v4182_v8  ;;  %v3402_v19 = vld [vmem:[%s7439_s6 + $0x10] sm:$0xff] }
 0x25d   : > { %3558 = vmatpush.msra.mxu3 %v3402_v19 }
 0x25e   : > { %4247 = vmatmul.msk.f32.gmra.mxu1 %vm826_vm1, %v4181_v50  ;;  %v4184_v50 = vld [vmem:[%s7434_s1 + $0x358] sm:$0xff]  ;;  %v6307_v27 = vpop.f32.mrf.mxu2 }
 0x25f   : > { %7580 = vst [vmem:[#allocation134_spill] sm:$0xff] %v6307_v27  ;;  %v3416_v27 = vld [vmem:[%s7440_s7] sm:$0xff] }
 0x261   : > { %v6287_v57 = vpop.f32.mrf.mxu0 }
 0x263   : > { %v6292_v25 = vpop.f32.mrf.mxu1 }
 0x264   : > { %7579 = vst [vmem:[#allocation133_spill] sm:$0xff] %v6292_v25  ;;  %4216 = vmatmul.msk.f32.gmra.mxu0 %vm826_vm1, %v4183_v45  ;;  %v6309_v25 = vpop.f32.mrf.mxu3 }
 0x265   : > { %7581 = vst [vmem:[#allocation135_spill] sm:$0xff] %v6309_v25 }
 0x266   : > { %4248 = vmatmul.msk.f32.gmra.mxu1 %vm826_vm1, %v4182_v8  ;;  %v6322_v4 = vpop.f32.mrf.mxu2 }
 0x267   : > { %7584 = vst [vmem:[#allocation138_spill] sm:$0xff] %v6322_v4  ;;  %v6347_v4 = vadd.f32 %v5825_v28, %v5507_v56  ;;  %v4674_v56 = vld [vmem:[%s5090_s28] sm:$0xff] }
 0x269   : > { %v6296_v2 = vpop.f32.mrf.mxu0 }
 0x26b   : > { %v6311_v8 = vpop.f32.mrf.mxu1 }
 0x26c   : > { %7582 = vst [vmem:[#allocation136_spill] sm:$0xff] %v6311_v8  ;;  %4217 = vmatmul.msk.f32.gmra.mxu0 %vm826_vm1, %v4184_v50  ;;  %v6325_v19 = vpop.f32.mrf.mxu3  ;;  %v3417_v8 = vld [vmem:[%s7440_s7 + $0x8] sm:$0xff] }
 0x26d   : > { %7585 = vst [vmem:[#allocation139_spill] sm:$0xff] %v6325_v19  ;;  %3446 = vmatpush.msra.mxu2 %v3417_v8 }
 0x26e   : > { %4249 = vmatmul.msk.f32.gmra.mxu1 %vm826_vm1, %v4183_v45  ;;  %v4186_v45 = vld [vmem:[%s7434_s1 + $0x368] sm:$0xff] }
 0x26f   : > { %3447 = vmatpush.msra.mxu2 %v3416_v27  ;;  %v1040_v27 = vsub.f32 %v5839_v54, %v6059_v1 }
 0x270   : > { %3448 = vmatmul.f32.vlgmr.msra.gmra.mxu2 %v4674_v56  ;;  %v1676_v56 = vsub.f32 %v6347_v4, %v5342_v24  ;;  %v4675_v24 = vld [vmem:[%s5090_s28 + $0x8] sm:$0xff] }
 0x271   : > { %v6315_v3 = vpop.f32.mrf.mxu0 }
 0x272   : > { %v1708_v1 = vmul.f32 0.5, %v1676_v56 }
 0x273   : > { %v6320_v15 = vpop.f32.mrf.mxu1 }
 0x274   : > { %7583 = vst [vmem:[#allocation137_spill] sm:$0xff] %v6320_v15  ;;  %4218 = vmatmul.msk.f32.gmra.mxu0 %vm826_vm1, %v4185_v59  ;;  %v3401_v15 = vld [vmem:[%s7439_s6 + $0x8] sm:$0xff]  ;;  %v6349_v25 = vpop.f32.mrf.mxu3 }
 0x275   : > { %3559 = vmatpush.msra.mxu3 %v3401_v15  ;;  %7588 = vst [vmem:[#allocation142_spill] sm:$0xff] %v6349_v25  ;;  %v3400_v15 = vld [vmem:[%s7439_s6] sm:$0xff]  ;;  %v1048_v25 = vsub.f32 %v6347_v4, %v5299_v5  ;;  %v1072_v5 = vmul.f32 0.5, %v1040_v27 }
 0x276   : > { %4250 = vmatmul.msk.f32.gmra.mxu1 %vm826_vm1, %v4184_v50  ;;  %v6342_v50 = vpop.f32.mrf.mxu2 }
 0x277   : > { %7587 = vst [vmem:[#allocation141_spill] sm:$0xff] %v6342_v50  ;;  %3560 = vmatpush.msra.mxu3 %v3400_v15  ;;  %v6373_v15 = vadd.f32 %v5825_v28, %v5528_v11  ;;  %v4188_v11 = vld [vmem:[%s7434_s1 + $0x378] sm:$0xff] }
 0x278   : > { %3451 = vmatmul.f32.gmra.mxu2 %v4675_v24 }
 0x279   : > { %v6328_v22 = vpop.f32.mrf.mxu0  ;;  %7590 = vst [vmem:[#allocation144_spill] sm:$0xff] %v6373_v15 }
 0x27b   : > { %v6339_v19 = vpop.f32.mrf.mxu1 }
 0x27c   : > { %7586 = vst [vmem:[#allocation140_spill] sm:$0xff] %v6339_v19  ;;  %4219 = vmatmul.msk.f32.gmra.mxu0 %vm826_vm1, %v4186_v45  ;;  %v1668_v19 = vsub.f32 %v5839_v54, %v1572_v26  ;;  %v1080_v26 = vmul.f32 0.5, %v1048_v25  ;;  %v6382_v7 = vpop.f32.mrf.mxu3  ;;  %v1669_v25 = vsub.f32 %v5859_v36, %v6287_v57 }
 0x27d   : > { %7592 = vst [vmem:[#allocation146_spill] sm:$0xff] %v6382_v7 }
 0x27e   : > { %4251 = vmatmul.msk.f32.gmra.mxu1 %vm826_vm1, %v4185_v59  ;;  %v4187_v59 = vld [vmem:[%s7434_s1 + $0x370] sm:$0xff]  ;;  %v1700_v30 = vmul.f32 0.5, %v1668_v19  ;;  %v6378_v31 = vpop.f32.mrf.mxu2  ;;  %v1677_v19 = vsub.f32 %v6373_v15, %v5363_v37  ;;  %v1701_v56 = vmul.f32 0.5, %v1669_v25  ;;  %v6413_v25 = vadd.f32 %v5825_v28, %v5549_v29 }
 0x27f   : > { %7591 = vst [vmem:[#allocation145_spill] sm:$0xff] %v6378_v31 }
 0x280   : > { %4374 = vtanh.f32 %v1700_v30  ;;  %v1709_v30 = vmul.f32 0.5, %v1677_v19  ;;  %7595 = vst [vmem:[#allocation149_spill] sm:$0xff] %v6413_v25 }
 0x281   : > { %v6357_v8 = vpop.f32.mrf.mxu0  ;;  %4376 = vtanh.f32 %v1080_v26 }
 0x282   : > { %4378 = vtanh.f32 %v1072_v5  ;;  %v6403_v5 = vld [vmem:[%s7434_s1 + $0x380] sm:$0xff] }
 0x283   : > { %v6366_v50 = vpop.f32.mrf.mxu1  ;;  %4380 = vtanh.f32 %v1708_v1 }
 0x284   : > { %7589 = vst [vmem:[#allocation143_spill] sm:$0xff] %v6366_v50  ;;  %4220 = vmatmul.msk.f32.gmra.mxu0 %vm826_vm1, %v4187_v59  ;;  %v1049_v50 = vsub.f32 %v6373_v15, %v5316_v12  ;;  %v6415_v19 = vpop.f32.mrf.mxu3 }
 0x285   : > { %7596 = vst [vmem:[#allocation150_spill] sm:$0xff] %v6415_v19 }
 0x286   : > { %4252 = vmatmul.msk.f32.gmra.mxu1 %vm826_vm1, %v4186_v45  ;;  %v1041_v45 = vsub.f32 %v5859_v36, %v6082_v42  ;;  %v1081_v27 = vmul.f32 0.5, %v1049_v50  ;;  %v4375_v57 = vpop.eup %4374  ;;  %v6406_v7 = vpop.f32.mrf.mxu2  ;;  %v1670_v50 = vsub.f32 %v5885_v44, %v6296_v2 }
 0x287   : > { %v4377_v24 = vpop.eup %4376  ;;  %7594 = vst [vmem:[#allocation148_spill] sm:$0xff] %v6406_v7 }
 0x288   : > { %v1073_v26 = vmul.f32 0.5, %v1041_v45  ;;  %4382 = vtanh.f32 %v1081_v27  ;;  %v4379_v42 = vpop.eup %4378  ;;  %v1764_v45 = vmul.f32 0.5, %v4375_v57  ;;  %v1702_v29 = vmul.f32 0.5, %v1670_v50  ;;  %v6431_v50 = vld [vmem:[%s7434_s1 + $0x388] sm:$0xff] }
 0x289   : > { %v6384_v43 = vpop.f32.mrf.mxu0  ;;  %4384 = vtanh.f32 %v1701_v56  ;;  %v4381_v1 = vpop.eup %4380  ;;  %v1136_v2 = vmul.f32 0.5, %v4379_v42  ;;  %v1050_v57 = vsub.f32 %v6413_v25, %v5337_v21  ;;  %v1671_v21 = vsub.f32 %v5908_v63, %v6315_v3  ;;  %v7600_v3 = vld [vmem:[#allocation38_spill] sm:$0xff] }
 0x28a   : > { %4386 = vtanh.f32 %v1709_v30 }
 0x28b   : > { %v6394_v12 = vpop.f32.mrf.mxu1  ;;  %4388 = vtanh.f32 %v1073_v26  ;;  %v7598_v26 = vld [vmem:[#allocation13_spill] sm:$0xff] }
 0x28c   : > { %7593 = vst [vmem:[#allocation147_spill] sm:$0xff] %v6394_v12  ;;  %4221 = vmatmul.msk.f32.gmra.mxu0 %vm826_vm1, %v4188_v11  ;;  %v4676_v12 = vld [vmem:[%s5090_s28 + $0x10] sm:$0xff] }
 0x28d   : > { %3454 = vmatmul.f32.gmra.mxu2 %v4676_v12  ;;  %v1042_v12 = vsub.f32 %v5885_v44, %v6095_v14  ;;  %v1796_v14 = vadd.f32 0.5, %v1764_v45 }
 0x28e   : > { %4253 = vmatmul.msk.f32.gmra.mxu1 %vm826_vm1, %v4187_v59  ;;  %v4383_v30 = vpop.eup %4382  ;;  %v6441_v47 = vpop.f32.mrf.mxu2 }
 0x28f   : > { %v1074_v19 = vmul.f32 0.5, %v1042_v12  ;;  %v1082_v12 = vmul.f32 0.5, %v1050_v57  ;;  %v1145_v61 = vmul.f32 0.5, %v4383_v30  ;;  %7599 = vst [vmem:[#allocation13_spill] sm:$0xff] %v6441_v47  ;;  %v6449_v57 = vpop.f32.mrf.mxu3  ;;  %v7602_v30 = vld [vmem:[#allocation7_spill] sm:$0xff] }
 0x290   : > { %7601 = vst [vmem:[#allocation38_spill] sm:$0xff] %v6449_v57  ;;  %v7604_v57 = vld [vmem:[#allocation10_spill] sm:$0xff] }
 0x291   : > { %v2830_v37 = vpop.f32.mrf.mxu0 }
 0x292   : > { %v2926_v59 = vsub.f32 %v5839_v54, %v2830_v37  ;;  %v1144_v54 = vmul.f32 0.5, %v4377_v24  ;;  %v1772_v37 = vmul.f32 0.5, %v4381_v1  ;;  %v1168_v24 = vadd.f32 0.5, %v1136_v2 }
 0x293   : > { %v6417_v27 = vpop.f32.mrf.mxu1 }
 0x294   : > { %7597 = vst [vmem:[#allocation151_spill] sm:$0xff] %v6417_v27  ;;  %v2958_v56 = vmul.f32 0.5, %v2926_v59  ;;  %4222 = vmatmul.msk.f32.gmra.mxu0 %vm826_vm1, %v6403_v5  ;;  %v1678_v27 = vsub.f32 %v6413_v25, %v7598_v26  ;;  %v4385_v59 = vpop.eup %4384  ;;  %v1176_v31 = vadd.f32 0.5, %v1144_v54  ;;  %v2014_v2 = vadd.f32 %v1796_v14, %v1168_v24 }
 0x295   : > { %v4387_v7 = vpop.eup %4386  ;;  %v1765_v26 = vmul.f32 0.5, %v4385_v59 }
 0x296   : > { %4390 = vtanh.f32 %v2958_v56  ;;  %4254 = vmatmul.msk.f32.gmra.mxu1 %vm826_vm1, %v4188_v11  ;;  %v4677_v11 = vld [vmem:[%s5090_s28 + $0x18] sm:$0xff]  ;;  %v4389_v1 = vpop.eup %4388  ;;  %v6434_v56 = vadd.f32 0.5, %v1772_v37  ;;  %v1710_v54 = vmul.f32 0.5, %v1678_v27  ;;  %v1773_v27 = vmul.f32 0.5, %v4387_v7 }
 0x297   : > { %3457 = vmatmul.f32.gmra.mxu2 %v4677_v11  ;;  %4392 = vtanh.f32 %v1702_v29  ;;  %v1043_v11 = vsub.f32 %v5908_v63, %v6114_v18  ;;  %v1137_v29 = vmul.f32 0.5, %v4389_v1  ;;  %v2643_v7 = vadd.f32 %v5880_v38, %v2014_v2  ;;  %v4678_v38 = vld [vmem:[%s5090_s28 + $0x20] sm:$0xff]  ;;  %v7605_v2 = vld [vmem:[#allocation16_spill] sm:$0xff] }
 0x298   : > { %4394 = vtanh.f32 %v1074_v19  ;;  %v6452_v19 = vmul.f32 %v7602_v30, %v1176_v31  ;;  %v6455_v18 = vadd.f32 %v6434_v56, %v1176_v31  ;;  %v1950_v30 = vmul.f32 %v5813_v49, %v1796_v14 }
 0x299   : > { %v2833_v42 = vpop.f32.mrf.mxu0  ;;  %v1672_v49 = vsub.f32 %v5938_v51, %v6328_v22 }
 0x29a   : > { %v2927_v45 = vsub.f32 %v5859_v36, %v2833_v42  ;;  %v6447_v36 = vadd.f32 %v5825_v28, %v7600_v3  ;;  %7603 = vst [vmem:[#allocation7_spill] sm:$0xff] %v6452_v19  ;;  %v1703_v42 = vmul.f32 0.5, %v1671_v21  ;;  %v1797_v28 = vadd.f32 0.5, %v1765_v26 }
 0x29b   : > { %v3112_v25 = vpop.f32.mrf.mxu1  ;;  %v1177_v3 = vadd.f32 0.5, %v1145_v61  ;;  %v6463_v21 = vadd.f32 0.5, %v1773_v27 }
 0x29c   : > { %v4391_v15 = vpop.eup %4390  ;;  %v2959_v37 = vmul.f32 0.5, %v2927_v45  ;;  %4223 = vmatmul.msk.f32.gmra.mxu0 %vm826_vm1, %v6431_v50  ;;  %v1051_v31 = vsub.f32 %v6447_v36, %v7604_v57  ;;  %v1679_v26 = vsub.f32 %v6447_v36, %v7605_v2  ;;  %v7606_v2 = vld [vmem:[#allocation8_spill] sm:$0xff] }
 0x29d   : > { %v3022_v59 = vmul.f32 0.5, %v4391_v15  ;;  %v4393_v45 = vpop.eup %4392  ;;  %v1075_v15 = vmul.f32 0.5, %v1043_v11 }
 0x29e   : > { %4396 = vtanh.f32 %v2959_v37  ;;  %4255 = vmatmul.msk.f32.gmra.mxu1 %vm826_vm1, %v6403_v5  ;;  %v1169_v37 = vadd.f32 0.5, %v1137_v29  ;;  %v4395_v61 = vpop.eup %4394  ;;  %v1766_v27 = vmul.f32 0.5, %v4393_v45  ;;  %v6482_v45 = vmul.f32 %v7606_v2, %v1177_v3 }
 0x29f   : > { %4398 = vtanh.f32 %v1082_v12  ;;  %v3054_v1 = vadd.f32 0.5, %v3022_v59  ;;  %v6468_v12 = vld [vmem:[%s7434_s1 + $0x390] sm:$0xff]  ;;  %3460 = vmatmul.f32.gmra.mxu2 %v4678_v38 }
 0x2a0   : > { %4400 = vtanh.f32 %v1710_v54  ;;  %v1321_v54 = vmul.f32 %v6177_v32, %v1168_v24  ;;  %v2015_v11 = vadd.f32 %v1797_v28, %v1169_v37  ;;  %v1083_v24 = vmul.f32 0.5, %v1051_v31 }
 0x2a1   : > { %v3272_v47 = vadd.f32 %v3054_v1, %v2643_v7  ;;  %v2836_v5 = vpop.f32.mrf.mxu0  ;;  %4402 = vtanh.f32 %v1703_v42  ;;  %v1044_v7 = vsub.f32 %v5938_v51, %v6127_v48  ;;  %v3208_v19 = vmul.f32 %v3112_v25, %v3054_v1 }
 0x2a2   : > { %v2928_v14 = vsub.f32 %v5885_v44, %v2836_v5  ;;  %4404 = vtanh.f32 %v1075_v15  ;;  %v1982_v38 = vadd.f32 %v1950_v30, %v1321_v54  ;;  %v1138_v44 = vmul.f32 0.5, %v4395_v61  ;;  %v6491_v30 = vpop.f32.mrf.mxu3 }
 0x2a3   : > { %v3304_v29 = vmax.f32 %v3272_v47, 1e-20  ;;  %v3115_v57 = vpop.f32.mrf.mxu1  ;;  %v6484_v47 = vpop.f32.mrf.mxu2  ;;  %v1704_v15 = vmul.f32 0.5, %v1672_v49  ;;  %v6489_v48 = vadd.f32 %v6463_v21, %v1177_v3  ;;  %v1798_v31 = vadd.f32 0.5, %v1766_v27  ;;  %v6500_v27 = vld [vmem:[%s7434_s1 + $0x398] sm:$0xff] }
 0x2a4   : > { %v4397_v59 = vpop.eup %4396  ;;  %v2960_v32 = vmul.f32 0.5, %v2928_v14  ;;  %4224 = vmatmul.msk.f32.gmra.mxu0 %vm826_vm1, %v6468_v12  ;;  %v2644_v61 = vadd.f32 %v5903_v33, %v2015_v11  ;;  %v1951_v49 = vmul.f32 %v5844_v16, %v1797_v28  ;;  %v2611_v25 = vadd.f32 %v5890_v35, %v1982_v38  ;;  %v4679_v33 = vld [vmem:[%s5090_s28 + $0x28] sm:$0xff] }
 0x2a5   : > { %v4399_v22 = vpop.eup %4398  ;;  %4406 = vrcp.f32 %v3304_v29  ;;  %v3023_v42 = vmul.f32 0.5, %v4397_v59  ;;  %v1711_v29 = vmul.f32 0.5, %v1679_v26  ;;  %v1076_v59 = vmul.f32 0.5, %v1044_v7 }
 0x2a6   : > { %v4401_v5 = vpop.eup %4400  ;;  %4408 = vtanh.f32 %v2960_v32  ;;  %4256 = vmatmul.msk.f32.gmra.mxu1 %vm826_vm1, %v6431_v50  ;;  %v1322_v50 = vmul.f32 %v6188_v13, %v1169_v37  ;;  %v1170_v1 = vadd.f32 0.5, %v1138_v44  ;;  %v1673_v16 = vsub.f32 %v5961_v6, %v6357_v8  ;;  %v7607_v8 = vld [vmem:[#allocation42_spill] sm:$0xff] }
 0x2a7   : > { %v3055_v54 = vadd.f32 0.5, %v3023_v42  ;;  %v4403_v14 = vpop.eup %4402  ;;  %4410 = vtanh.f32 %v1083_v24  ;;  %3463 = vmatmul.f32.gmra.mxu2 %v4679_v33  ;;  %v3240_v28 = vadd.f32 %v3208_v19, %v2611_v25  ;;  %v1045_v13 = vsub.f32 %v5961_v6, %v6146_v20 }
 0x2a8   : > { %v4405_v11 = vpop.eup %4404  ;;  %4412 = vtanh.f32 %v1704_v15  ;;  %v2016_v37 = vadd.f32 %v1798_v31, %v1170_v1  ;;  %v1767_v7 = vmul.f32 0.5, %v4403_v14  ;;  %v1983_v2 = vadd.f32 %v1951_v49, %v1322_v50 }
 0x2a9   : > { %v3273_v3 = vadd.f32 %v3055_v54, %v2644_v61  ;;  %v2839_v32 = vpop.f32.mrf.mxu0  ;;  %4414 = vtanh.f32 %v1076_v59  ;;  %v1139_v19 = vmul.f32 0.5, %v4405_v11  ;;  %v1146_v14 = vmul.f32 0.5, %v4399_v22 }
 0x2aa   : > { %v2929_v35 = vsub.f32 %v5908_v63, %v2839_v32  ;;  %v6513_v63 = vld [vmem:[%s7438_s5] ss:$0 sm:$0xff]  ;;  %v1705_v59 = vmul.f32 0.5, %v1673_v16  ;;  %v3209_v25 = vmul.f32 %v3115_v57, %v3055_v54  ;;  %v1077_v50 = vmul.f32 0.5, %v1045_v13  ;;  %v7609_v54 = vld [vmem:[#allocation12_spill] sm:$0xff]  ;;  %v6529_v13 = vpop.f32.mrf.mxu3 }
 0x2ab   : > { %v4407_v26 = vpop.eup %4406  ;;  %v3305_v38 = vmax.f32 %v3273_v3, 1e-20  ;;  %v3118_v24 = vpop.f32.mrf.mxu1  ;;  %v6517_v20 = vadd.f32 %v6513_v63, %v7607_v8  ;;  %v1799_v3 = vadd.f32 0.5, %v1767_v7  ;;  %v2645_v32 = vadd.f32 %v5932_v10, %v2016_v37  ;;  %7610 = vst [vmem:[#allocation16_spill] sm:$0xff] %v6529_v13 }
 0x2ac   : > { %v4409_v44 = vpop.eup %4408  ;;  %v3368_v42 = vmul.f32 %v4407_v26, %v3240_v28  ;;  %v2961_v61 = vmul.f32 0.5, %v2929_v35  ;;  %4225 = vmatmul.msk.f32.gmra.mxu0 %vm826_vm1, %v6500_v27  ;;  %v1774_v35 = vmul.f32 0.5, %v4401_v5  ;;  %v6522_v11 = vpop.f32.mrf.mxu2  ;;  %v1952_v22 = vmul.f32 %v5864_v58, %v1798_v31  ;;  %v6534_v5 = vld [vmem:[%s7434_s1 + $0x3a0] sm:$0xff] }
 0x2ad   : > { %4416 = vrcp.f32 %v3305_v38  ;;  %v3024_v15 = vmul.f32 0.5, %v4409_v44  ;;  %v4411_v49 = vpop.eup %4410  ;;  %7608 = vst [vmem:[#allocation10_spill] sm:$0xff] %v6522_v11  ;;  %v2612_v57 = vadd.f32 %v5913_v62, %v1983_v2  ;;  %v1052_v16 = vsub.f32 %v6517_v20, %v7609_v54 }
 0x2ae   : > { %4418 = vtanh.f32 %v2961_v61  ;;  %3561 = vmatmul.f32.vlgmr.msra.gmra.mxu3 %v3368_v42  ;;  %4257 = vmatmul.msk.f32.gmra.mxu1 %vm826_vm1, %v6468_v12  ;;  %v4413_v28 = vpop.eup %4412  ;;  %v1323_v12 = vmul.f32 %v6205_v9, %v1170_v1  ;;  %v1171_v26 = vadd.f32 0.5, %v1139_v19  ;;  %v1674_v62 = vsub.f32 %v5998_v0, %v6384_v43 }
 0x2af   : > { %v3056_v33 = vadd.f32 0.5, %v3024_v15  ;;  %4420 = vtanh.f32 %v1711_v29  ;;  %v4681_v29 = vld [vmem:[%s5090_s28 + $0x30] sm:$0xff]  ;;  %v4415_v58 = vpop.eup %4414  ;;  %v3241_v31 = vadd.f32 %v3209_v25, %v2612_v57  ;;  %v1768_v38 = vmul.f32 0.5, %v4413_v28 }
 0x2b0   : > { %3466 = vmatmul.f32.gmra.mxu2 %v4681_v29  ;;  %4422 = vtanh.f32 %v1705_v59  ;;  %v2017_v37 = vadd.f32 %v1799_v3, %v1171_v26  ;;  %v1046_v61 = vsub.f32 %v5998_v0, %v6161_v52  ;;  %v1984_v8 = vadd.f32 %v1952_v22, %v1323_v12  ;;  %v7611_v12 = vld [vmem:[#allocation19_spill] sm:$0xff]  ;;  %v7612_v29 = vld [vmem:[#allocation46_spill] sm:$0xff] }
 0x2b1   : > { %v3274_v7 = vadd.f32 %v3056_v33, %v2645_v32  ;;  %v2842_v10 = vpop.f32.mrf.mxu0  ;;  %4424 = vtanh.f32 %v1077_v50  ;;  %v6544_v43 = vadd.f32 0.5, %v1146_v14  ;;  %v1140_v59 = vmul.f32 0.5, %v4415_v58 }
 0x2b2   : > { %v2930_v9 = vsub.f32 %v5938_v51, %v2842_v10  ;;  %v6546_v50 = vadd.f32 0.5, %v1774_v35  ;;  %v1706_v32 = vmul.f32 0.5, %v1674_v62  ;;  %v3210_v28 = vmul.f32 %v3118_v24, %v3056_v33 }
 0x2b3   : > { %v4417_v1 = vpop.eup %4416  ;;  %v3306_v44 = vmax.f32 %v3274_v7, 1e-20  ;;  %v3121_v42 = vpop.f32.mrf.mxu1  ;;  %v1084_v52 = vmul.f32 0.5, %v1052_v16  ;;  %v1800_v22 = vadd.f32 0.5, %v1768_v38  ;;  %v2646_v57 = vadd.f32 %v5956_v17, %v2017_v37  ;;  %v6562_v17 = vld [vmem:[%s7434_s1 + $0x3a8] sm:$0xff] }
 0x2b4   : > { %v4419_v2 = vpop.eup %4418  ;;  %v2962_v19 = vmul.f32 0.5, %v2930_v9  ;;  %4226 = vmatmul.msk.f32.gmra.mxu0 %vm826_vm1, %v6534_v5  ;;  %v3369_v15 = vmul.f32 %v4417_v1, %v3241_v31  ;;  %v1680_v7 = vsub.f32 %v6517_v20, %v7611_v12  ;;  %v1078_v10 = vmul.f32 0.5, %v1046_v61  ;;  %v4682_v9 = vld [vmem:[%s5090_s28 + $0x38] sm:$0xff] }
 0x2b5   : > { %4426 = vrcp.f32 %v3306_v44  ;;  %v3025_v51 = vmul.f32 0.5, %v4419_v2  ;;  %v4421_v25 = vpop.eup %4420  ;;  %v1953_v35 = vmul.f32 %v5893_v34, %v1799_v3  ;;  %v2613_v24 = vadd.f32 %v5943_v55, %v1984_v8  ;;  %v6566_v3 = vpop.f32.mrf.mxu2 }
 0x2b6   : > { %4428 = vtanh.f32 %v2962_v19  ;;  %3564 = vmatmul.f32.gmra.mxu3 %v3369_v15  ;;  %4258 = vmatmul.msk.f32.gmra.mxu1 %vm826_vm1, %v6500_v27  ;;  %v4423_v54 = vpop.eup %4422  ;;  %v6557_v58 = vadd.f32 %v6513_v63, %v7612_v29  ;;  %v1147_v27 = vmul.f32 0.5, %v4411_v49  ;;  %v1172_v16 = vadd.f32 0.5, %v1140_v59  ;;  %7613 = vst [vmem:[#allocation8_spill] sm:$0xff] %v6566_v3  ;;  %v6569_v49 = vpop.f32.mrf.mxu3  ;;  %v7617_v29 = vld [vmem:[#allocation89_spill] sm:$0xff]  ;;  %v7668_v3 = vld [vmem:[#allocation128_spill] sm:$0xff] }
 0x2b7   : > { %v3057_v14 = vadd.f32 0.5, %v3025_v51  ;;  %v4425_v33 = vpop.eup %4424  ;;  %v1324_v34 = vmul.f32 %v6216_v39, %v1171_v26  ;;  %4430 = vtanh.f32 %v1706_v32  ;;  %v3242_v55 = vadd.f32 %v3210_v28, %v2613_v24  ;;  %7614 = vst [vmem:[#allocation42_spill] sm:$0xff] %v6569_v49  ;;  %v7615_v51 = vld [vmem:[#allocation15_spill] sm:$0xff]  ;;  %v7616_v28 = vld [vmem:[#allocation9_spill] sm:$0xff] }
 0x2b8   : > { %3469 = vmatmul.f32.gmra.mxu2 %v4682_v9  ;;  %4432 = vtanh.f32 %v1084_v52  ;;  %v2018_v38 = vadd.f32 %v1800_v22, %v1172_v16  ;;  %v1769_v44 = vmul.f32 0.5, %v4423_v54  ;;  %v1712_v26 = vmul.f32 0.5, %v1680_v7 }
 0x2b9   : > { %v3275_v62 = vadd.f32 %v3057_v14, %v2646_v57  ;;  %v2845_v31 = vpop.f32.mrf.mxu0  ;;  %4434 = vtanh.f32 %v1078_v10  ;;  %v1985_v19 = vadd.f32 %v1953_v35, %v1324_v34  ;;  %v1141_v59 = vmul.f32 0.5, %v4425_v33 }
 0x2ba   : > { %v2931_v1 = vsub.f32 %v5961_v6, %v2845_v31  ;;  %v1053_v32 = vsub.f32 %v6557_v58, %v7615_v51  ;;  %v6577_v52 = vmul.f32 %v7616_v28, %v6544_v43  ;;  %v3211_v57 = vmul.f32 %v3121_v42, %v3057_v14  ;;  %v7618_v14 = vld [vmem:[#allocation94_spill] sm:$0xff] }
 0x2bb   : > { %v4427_v37 = vpop.eup %4426  ;;  %v3307_v2 = vmax.f32 %v3275_v62, 1e-20  ;;  %v3124_v61 = vpop.f32.mrf.mxu1  ;;  %v6583_v54 = vadd.f32 %v6513_v63, %v5628_v46  ;;  %v1801_v12 = vadd.f32 0.5, %v1769_v44  ;;  %v2647_v7 = vadd.f32 %v5993_v40, %v2018_v38  ;;  %v6595_v40 = vld [vmem:[%s7434_s1 + $0x3b0] sm:$0xff] }
 0x2bc   : > { %v4429_v8 = vpop.eup %4428  ;;  %v2963_v15 = vmul.f32 0.5, %v2931_v1  ;;  %4227 = vmatmul.msk.f32.gmra.mxu0 %vm826_vm1, %v6562_v17  ;;  %v3370_v39 = vmul.f32 %v4427_v37, %v3242_v55  ;;  %v6586_v24 = vadd.f32 0.5, %v1147_v27  ;;  %v1775_v33 = vmul.f32 0.5, %v4421_v25  ;;  %v4683_v27 = vld [vmem:[%s5090_s28 + $0x40] sm:$0xff] }
 0x2bd   : > { %4436 = vrcp.f32 %v3307_v2  ;;  %v3026_v6 = vmul.f32 0.5, %v4429_v8  ;;  %v4431_v35 = vpop.eup %4430  ;;  %v1954_v42 = vmul.f32 %v7617_v29, %v1800_v22  ;;  %v2614_v62 = vadd.f32 %v7618_v14, %v1985_v19  ;;  %v7620_v2 = vld [vmem:[#allocation18_spill] sm:$0xff]  ;;  %v6604_v51 = vpop.f32.mrf.mxu2 }
 0x2be   : > { %4438 = vtanh.f32 %v2963_v15  ;;  %3567 = vmatmul.f32.gmra.mxu3 %v3370_v39  ;;  %4259 = vmatmul.msk.f32.gmra.mxu1 %vm826_vm1, %v6534_v5  ;;  %v4433_v31 = vpop.eup %4432  ;;  %v7619_v5 = vld [vmem:[#allocation22_spill] sm:$0xff]  ;;  %v1173_v46 = vadd.f32 0.5, %v1141_v59  ;;  %v1085_v1 = vmul.f32 0.5, %v1053_v32  ;;  %v1325_v22 = vmul.f32 %v6225_v23, %v1172_v16  ;;  %7621 = vst [vmem:[#allocation12_spill] sm:$0xff] %v6604_v51 }
 0x2bf   : > { %v3058_v10 = vadd.f32 0.5, %v3026_v6  ;;  %4440 = vtanh.f32 %v1712_v26  ;;  %v1681_v9 = vsub.f32 %v6557_v58, %v7619_v5  ;;  %v4435_v25 = vpop.eup %4434  ;;  %v3243_v37 = vadd.f32 %v3211_v57, %v2614_v62  ;;  %v6608_v57 = vpop.f32.mrf.mxu3 }
 0x2c0   : > { %3472 = vmatmul.f32.gmra.mxu2 %v4683_v27  ;;  %v1054_v8 = vsub.f32 %v6583_v54, %v7620_v2  ;;  %v2019_v19 = vadd.f32 %v1801_v12, %v1173_v46  ;;  %v1770_v15 = vmul.f32 0.5, %v4431_v35  ;;  %v2305_v6 = vsub.f32 %v6347_v4, %v6184_v53  ;;  %7622 = vst [vmem:[#allocation19_spill] sm:$0xff] %v6608_v57 }
 0x2c1   : > { %v3276_v34 = vadd.f32 %v3058_v10, %v2647_v7  ;;  %v2848_v55 = vpop.f32.mrf.mxu0  ;;  %v1986_v32 = vadd.f32 %v1954_v42, %v1325_v22  ;;  %v1713_v23 = vmul.f32 0.5, %v1681_v9  ;;  %v1142_v16 = vmul.f32 0.5, %v4435_v25  ;;  %v6622_v22 = vld [vmem:[%s7434_s1 + $0x3b8] sm:$0xff] }
 0x2c2   : > { %v2932_v38 = vsub.f32 %v5998_v0, %v2848_v55  ;;  %v6610_v35 = vadd.f32 0.5, %v1775_v33  ;;  %v1148_v29 = vmul.f32 0.5, %v4433_v31  ;;  %v3212_v14 = vmul.f32 %v3124_v61, %v3058_v10  ;;  %v7623_v55 = vld [vmem:[#allocation91_spill] sm:$0xff]  ;;  %v7624_v61 = vld [vmem:[#allocation25_spill] sm:$0xff] }
 0x2c3   : > { %v4437_v44 = vpop.eup %4436  ;;  %v3308_v39 = vmax.f32 %v3276_v34, 1e-20  ;;  %v3127_v26 = vpop.f32.mrf.mxu1  ;;  %v1086_v42 = vmul.f32 0.5, %v1054_v8  ;;  %v1802_v62 = vadd.f32 0.5, %v1770_v15  ;;  %v2648_v5 = vadd.f32 %v6014_v60, %v2019_v19  ;;  %v4684_v60 = vld [vmem:[%s5090_s28 + $0x48] sm:$0xff]  ;;  %v7628_v19 = vld [vmem:[#allocation115_spill] sm:$0xff] }
 0x2c4   : > { %v4439_v59 = vpop.eup %4438  ;;  %v2964_v28 = vmul.f32 0.5, %v2932_v38  ;;  %4228 = vmatmul.msk.f32.gmra.mxu0 %vm826_vm1, %v6595_v40  ;;  %v3371_v0 = vmul.f32 %v4437_v44, %v3243_v37  ;;  %v2337_v34 = vmul.f32 0.5, %v2305_v6  ;;  %v1955_v27 = vmul.f32 %v7623_v55, %v1801_v12  ;;  %v7625_v37 = vld [vmem:[#allocation53_spill] sm:$0xff]  ;;  %v7626_v12 = vld [vmem:[#allocation122_spill] sm:$0xff]  ;;  %v7627_v44 = vld [vmem:[#allocation92_spill] sm:$0xff] }
 0x2c5   : > { %4442 = vrcp.f32 %v3308_v39  ;;  %v3027_v7 = vmul.f32 0.5, %v4439_v59  ;;  %v4441_v53 = vpop.eup %4440  ;;  %v2615_v33 = vadd.f32 %v6003_v41, %v1986_v32  ;;  %v1682_v10 = vsub.f32 %v6583_v54, %v7624_v61  ;;  %v7629_v15 = vld [vmem:[#allocation144_spill] sm:$0xff]  ;;  %v7630_v55 = vld [vmem:[#allocation21_spill] sm:$0xff]  ;;  %v6641_v61 = vpop.f32.mrf.mxu2 }
 0x2c6   : > { %4444 = vtanh.f32 %v2964_v28  ;;  %3570 = vmatmul.f32.gmra.mxu3 %v3371_v0  ;;  %4260 = vmatmul.msk.f32.gmra.mxu1 %vm826_vm1, %v6562_v17  ;;  %v1174_v31 = vadd.f32 0.5, %v1142_v16  ;;  %v1326_v41 = vmul.f32 %v7626_v12, %v1173_v46  ;;  %v2306_v39 = vsub.f32 %v7629_v15, %v7628_v19  ;;  %7631 = vst [vmem:[#allocation46_spill] sm:$0xff] %v6641_v61  ;;  %v7635_v12 = vld [vmem:[#allocation11_spill] sm:$0xff] }
 0x2c7   : > { %v3059_v9 = vadd.f32 0.5, %v3027_v7  ;;  %4446 = vtanh.f32 %v1085_v1  ;;  %v6627_v1 = vadd.f32 %v6513_v63, %v7625_v37  ;;  %v3244_v38 = vadd.f32 %v3212_v14, %v2615_v33 }
 0x2c8   : > { %4448 = vtanh.f32 %v1713_v23  ;;  %3475 = vmatmul.f32.gmra.mxu2 %v4684_v60  ;;  %v2020_v59 = vadd.f32 %v1802_v62, %v1174_v31  ;;  %v1987_v0 = vadd.f32 %v1955_v27, %v1326_v41  ;;  %v1776_v46 = vmul.f32 0.5, %v4441_v53  ;;  %v7634_v60 = vld [vmem:[#allocation100_spill] sm:$0xff] }
 0x2c9   : > { %v3277_v25 = vadd.f32 %v3059_v9, %v2648_v5  ;;  %v2851_v17 = vpop.f32.mrf.mxu0  ;;  %4450 = vtanh.f32 %v1086_v42  ;;  %v1714_v7 = vmul.f32 0.5, %v1682_v10  ;;  %v1055_v33 = vsub.f32 %v6627_v1, %v7630_v55  ;;  %v7632_v10 = vld [vmem:[#allocation28_spill] sm:$0xff] }
 0x2ca   : > { %v2933_v2 = vsub.f32 %v7627_v44, %v2851_v17  ;;  %4452 = vtanh.f32 %v2337_v34  ;;  %v6639_v42 = vadd.f32 %v6546_v50, %v6544_v43  ;;  %v3213_v34 = vmul.f32 %v3127_v26, %v3059_v9  ;;  %v6647_v17 = vpop.f32.mrf.mxu3 }
 0x2cb   : > { %v4443_v8 = vpop.eup %4442  ;;  %v3309_v6 = vmax.f32 %v3277_v25, 1e-20  ;;  %v3130_v32 = vpop.f32.mrf.mxu1  ;;  %v2338_v27 = vmul.f32 0.5, %v2306_v39  ;;  %v1683_v25 = vsub.f32 %v6627_v1, %v7632_v10  ;;  %7633 = vst [vmem:[#allocation15_spill] sm:$0xff] %v6647_v17  ;;  %v2649_v37 = vadd.f32 %v7634_v60, %v2020_v59 }
 0x2cc   : > { %v4445_v28 = vpop.eup %4444  ;;  %v2965_v23 = vmul.f32 0.5, %v2933_v2  ;;  %4229 = vmatmul.msk.f32.gmra.mxu0 %vm826_vm1, %v6622_v22  ;;  %v3372_v16 = vmul.f32 %v4443_v8, %v3244_v38  ;;  %v6652_v41 = vmul.f32 %v7635_v12, %v6586_v24  ;;  %v6656_v26 = vadd.f32 %v6610_v35, %v6586_v24  ;;  %v7637_v38 = vld [vmem:[#allocation98_spill] sm:$0xff]  ;;  %v7640_v12 = vld [vmem:[#allocation117_spill] sm:$0xff] }
 0x2cd   : > { %4454 = vrcp.f32 %v3309_v6  ;;  %v3028_v14 = vmul.f32 0.5, %v4445_v28  ;;  %v4447_v5 = vpop.eup %4446  ;;  %v2616_v44 = vadd.f32 %v7637_v38, %v1987_v0  ;;  %v1180_v8 = vadd.f32 0.5, %v1148_v29  ;;  %v6665_v6 = vld [vmem:[%s7434_s1 + $0x3c0] sm:$0xff]  ;;  %v4685_v28 = vld [vmem:[%s5090_s28 + $0x50] sm:$0xff] }
 0x2ce   : > { %4456 = vtanh.f32 %v2965_v23  ;;  %3573 = vmatmul.f32.gmra.mxu3 %v3372_v16  ;;  %4261 = vmatmul.msk.f32.gmra.mxu1 %vm826_vm1, %v6595_v40  ;;  %v4449_v53 = vpop.eup %4448  ;;  %v7636_v40 = vld [vmem:[#allocation95_spill] sm:$0xff]  ;;  %v6660_v19 = vadd.f32 0.5, %v1776_v46  ;;  %v1087_v23 = vmul.f32 0.5, %v1055_v33  ;;  %v7638_v16 = vld [vmem:[#allocation126_spill] sm:$0xff]  ;;  %v7639_v46 = vld [vmem:[#allocation57_spill] sm:$0xff]  ;;  %v1715_v55 = vmul.f32 0.5, %v1683_v25 }
 0x2cf   : > { %v3060_v43 = vadd.f32 0.5, %v3028_v14  ;;  %v1956_v9 = vmul.f32 %v7636_v40, %v1802_v62  ;;  %v4451_v2 = vpop.eup %4450  ;;  %4458 = vtanh.f32 %v1714_v7  ;;  %v1327_v62 = vmul.f32 %v7638_v16, %v1174_v31  ;;  %v7641_v40 = vld [vmem:[#allocation149_spill] sm:$0xff] }
 0x2d0   : > { %3478 = vmatmul.f32.gmra.mxu2 %v4685_v28  ;;  %v4453_v24 = vpop.eup %4452  ;;  %v3245_v14 = vadd.f32 %v3213_v34, %v2616_v44  ;;  %v6672_v7 = vadd.f32 %v6513_v63, %v7639_v46  ;;  %4460 = vtanh.f32 %v2338_v27  ;;  %v2307_v38 = vsub.f32 %v7641_v40, %v7640_v12 }
 0x2d1   : > { %v3278_v39 = vadd.f32 %v3060_v43, %v2649_v37  ;;  %v2854_v59 = vpop.f32.mrf.mxu0  ;;  %v1988_v28 = vadd.f32 %v1956_v9, %v1327_v62  ;;  %v1777_v34 = vmul.f32 0.5, %v4449_v53  ;;  %v1150_v27 = vmul.f32 0.5, %v4451_v2  ;;  %v6688_v2 = vpop.f32.mrf.mxu2 }
 0x2d2   : > { %v2934_v0 = vsub.f32 %v6347_v4, %v2854_v59  ;;  %v1149_v4 = vmul.f32 0.5, %v4447_v5  ;;  %v7642_v59 = vld [vmem:[#allocation14_spill] sm:$0xff]  ;;  %v3214_v25 = vmul.f32 %v3130_v32, %v3060_v43  ;;  %v2339_v53 = vmul.f32 0.5, %v2307_v38  ;;  %7644 = vst [vmem:[#allocation9_spill] sm:$0xff] %v6688_v2  ;;  %v7650_v2 = vld [vmem:[#allocation119_spill] sm:$0xff] }
 0x2d3   : > { %v4455_v29 = vpop.eup %4454  ;;  %v3310_v10 = vmax.f32 %v3278_v39, 1e-20  ;;  %v3133_v60 = vpop.f32.mrf.mxu1  ;;  %v6679_v16 = vmul.f32 %v7642_v59, %v1180_v8  ;;  %v7643_v39 = vld [vmem:[#allocation24_spill] sm:$0xff]  ;;  %v7645_v32 = vld [vmem:[#allocation102_spill] sm:$0xff]  ;;  %v2308_v17 = vsub.f32 %v6447_v36, %v7650_v2 }
 0x2d4   : > { %v4457_v37 = vpop.eup %4456  ;;  %v2966_v33 = vmul.f32 0.5, %v2934_v0  ;;  %4230 = vmatmul.msk.f32.gmra.mxu0 %vm826_vm1, %v6665_v6  ;;  %v3373_v31 = vmul.f32 %v4455_v29, %v3245_v14  ;;  %v1056_v62 = vsub.f32 %v6672_v7, %v7643_v39  ;;  %v2401_v0 = vmul.f32 0.5, %v4453_v24  ;;  %v6695_v24 = vpop.f32.mrf.mxu3 }
 0x2d5   : > { %4462 = vrcp.f32 %v3310_v10  ;;  %v3029_v44 = vmul.f32 0.5, %v4457_v37  ;;  %v4459_v9 = vpop.eup %4458  ;;  %v6686_v14 = vadd.f32 %v6660_v19, %v1180_v8  ;;  %v2617_v43 = vadd.f32 %v7645_v32, %v1988_v28  ;;  %v7646_v10 = vld [vmem:[#allocation31_spill] sm:$0xff]  ;;  %7647 = vst [vmem:[#allocation89_spill] sm:$0xff] %v6695_v24  ;;  %v6701_v8 = vld [vmem:[%s7434_s1 + $0x3c8] sm:$0xff]  ;;  %v7649_v28 = vld [vmem:[#allocation61_spill] sm:$0xff] }
 0x2d6   : > { %4464 = vtanh.f32 %v2966_v33  ;;  %3576 = vmatmul.f32.gmra.mxu3 %v3373_v31  ;;  %4262 = vmatmul.msk.f32.gmra.mxu1 %vm826_vm1, %v6622_v22  ;;  %v4461_v29 = vpop.eup %4460  ;;  %v1181_v46 = vadd.f32 0.5, %v1149_v4  ;;  %v6691_v22 = vadd.f32 0.5, %v1777_v34  ;;  %v1684_v37 = vsub.f32 %v6672_v7, %v7646_v10 }
 0x2d7   : > { %4466 = vtanh.f32 %v1087_v23  ;;  %v3061_v5 = vadd.f32 0.5, %v3029_v44  ;;  %v7648_v23 = vld [vmem:[#allocation104_spill] sm:$0xff]  ;;  %v6706_v33 = vadd.f32 %v6513_v63, %v7649_v28  ;;  %v1778_v31 = vmul.f32 0.5, %v4459_v9 }
 0x2d8   : > { %4468 = vtanh.f32 %v1715_v55  ;;  %v4686_v55 = vld [vmem:[%s5090_s28 + $0x58] sm:$0xff]  ;;  %v3246_v4 = vadd.f32 %v3214_v25, %v2617_v43  ;;  %v1088_v59 = vmul.f32 0.5, %v1056_v62  ;;  %v2433_v39 = vadd.f32 0.5, %v2401_v0  ;;  %v7651_v25 = vld [vmem:[#allocation17_spill] sm:$0xff]  ;;  %v7652_v0 = vld [vmem:[#allocation27_spill] sm:$0xff] }
 0x2d9   : > { %v3279_v12 = vadd.f32 %v3061_v5, %v7648_v23  ;;  %v2857_v38 = vpop.f32.mrf.mxu0  ;;  %3481 = vmatmul.f32.gmra.mxu2 %v4686_v55  ;;  %v1182_v32 = vadd.f32 0.5, %v1150_v27  ;;  %4470 = vtanh.f32 %v2339_v53  ;;  %v6714_v43 = vmul.f32 %v7651_v25, %v1181_v46 }
 0x2da   : > { %v2935_v34 = vsub.f32 %v7629_v15, %v2857_v38  ;;  %v1716_v15 = vmul.f32 0.5, %v1684_v37  ;;  %v6719_v53 = vadd.f32 %v6691_v22, %v1181_v46  ;;  %v3215_v2 = vmul.f32 %v3133_v60, %v3061_v5  ;;  %v7654_v60 = vld [vmem:[#allocation34_spill] sm:$0xff] }
 0x2db   : > { %v4463_v44 = vpop.eup %4462  ;;  %v3311_v10 = vmax.f32 %v3279_v12, 1e-20  ;;  %v3136_v23 = vpop.f32.mrf.mxu1  ;;  %v1057_v12 = vsub.f32 %v6706_v33, %v7652_v0  ;;  %v2651_v38 = vadd.f32 %v2433_v39, %v6455_v18  ;;  %v6724_v37 = vadd.f32 0.5, %v1778_v31  ;;  %v6734_v18 = vld [vmem:[%s7434_s1 + $0x3d0] sm:$0xff]  ;;  %v7655_v31 = vld [vmem:[#allocation99_spill] sm:$0xff] }
 0x2dc   : > { %v4465_v24 = vpop.eup %4464  ;;  %v2967_v55 = vmul.f32 0.5, %v2935_v34  ;;  %4231 = vmatmul.msk.f32.gmra.mxu0 %vm826_vm1, %v6701_v8  ;;  %v3374_v28 = vmul.f32 %v4463_v44, %v3246_v4  ;;  %v2402_v4 = vmul.f32 0.5, %v4461_v29  ;;  %v2340_v34 = vmul.f32 0.5, %v2308_v17  ;;  %v7653_v44 = vld [vmem:[#allocation20_spill] sm:$0xff] }
 0x2dd   : > { %v4467_v9 = vpop.eup %4466  ;;  %4472 = vrcp.f32 %v3311_v10  ;;  %v3030_v62 = vmul.f32 0.5, %v4465_v24  ;;  %v6727_v10 = vmul.f32 %v7653_v44, %v1182_v32  ;;  %v1685_v5 = vsub.f32 %v6706_v33, %v7654_v60  ;;  %v7659_v60 = vld [vmem:[#allocation120_spill] sm:$0xff] }
 0x2de   : > { %v4469_v27 = vpop.eup %4468  ;;  %4474 = vtanh.f32 %v2967_v55  ;;  %3579 = vmatmul.f32.gmra.mxu3 %v3374_v28  ;;  %4263 = vmatmul.msk.f32.gmra.mxu1 %vm826_vm1, %v6665_v6  ;;  %v1151_v25 = vmul.f32 0.5, %v4467_v9  ;;  %v4687_v6 = vld [vmem:[%s5090_s28 + $0x60] sm:$0xff]  ;;  %v1089_v29 = vmul.f32 0.5, %v1057_v12  ;;  %v1958_v9 = vmul.f32 %v7655_v31, %v6434_v56  ;;  %v7661_v56 = vld [vmem:[#allocation124_spill] sm:$0xff] }
 0x2df   : > { %v3062_v24 = vadd.f32 0.5, %v3030_v62  ;;  %4476 = vtanh.f32 %v1088_v59  ;;  %v1779_v46 = vmul.f32 0.5, %v4469_v27  ;;  %v4471_v17 = vpop.eup %4470  ;;  %v6739_v59 = vpop.f32.mrf.mxu2  ;;  %v2587_v61 = vmul.f32 %v7659_v60, %v2433_v39 }
 0x2e0   : > { %4478 = vtanh.f32 %v1716_v15  ;;  %7656 = vst [vmem:[#allocation94_spill] sm:$0xff] %v6739_v59  ;;  %v7657_v15 = vld [vmem:[#allocation106_spill] sm:$0xff]  ;;  %v2434_v57 = vadd.f32 0.5, %v2402_v4  ;;  %v2309_v31 = vsub.f32 %v6517_v20, %v7661_v56  ;;  %v7662_v4 = vld [vmem:[#allocation7_spill] sm:$0xff] }
 0x2e1   : > { %v3280_v55 = vadd.f32 %v3062_v24, %v2651_v38  ;;  %v2860_v28 = vpop.f32.mrf.mxu0  ;;  %3484 = vmatmul.f32.gmra.mxu2 %v4687_v6  ;;  %v3247_v62 = vadd.f32 %v3215_v2, %v7657_v15  ;;  %v7658_v38 = vld [vmem:[#allocation65_spill] sm:$0xff]  ;;  %v6748_v6 = vpop.f32.mrf.mxu3  ;;  %4480 = vtanh.f32 %v2340_v34  ;;  %v1717_v15 = vmul.f32 0.5, %v1685_v5 }
 0x2e2   : > { %v2936_v27 = vsub.f32 %v7641_v40, %v2860_v28  ;;  %v6745_v44 = vadd.f32 %v6513_v63, %v7658_v38  ;;  %7660 = vst [vmem:[#allocation22_spill] sm:$0xff] %v6748_v6  ;;  %v1183_v28 = vadd.f32 0.5, %v1151_v25  ;;  %v1990_v60 = vadd.f32 %v1958_v9, %v7662_v4 }
 0x2e3   : > { %v4473_v0 = vpop.eup %4472  ;;  %v3312_v12 = vmax.f32 %v3280_v55, 1e-20  ;;  %v3139_v51 = vpop.f32.mrf.mxu1  ;;  %v6756_v55 = vadd.f32 %v6724_v37, %v1182_v32  ;;  %v3216_v6 = vmul.f32 %v3136_v23, %v3062_v24  ;;  %v2652_v5 = vadd.f32 %v2434_v57, %v6489_v48  ;;  %v7664_v32 = vld [vmem:[#allocation23_spill] sm:$0xff]  ;;  %v7665_v24 = vld [vmem:[#allocation37_spill] sm:$0xff]  ;;  %v6773_v48 = vld [vmem:[%s7434_s1 + $0x3d8] sm:$0xff] }
 0x2e4   : > { %v4475_v49 = vpop.eup %4474  ;;  %v2968_v2 = vmul.f32 0.5, %v2936_v27  ;;  %4232 = vmatmul.msk.f32.gmra.mxu0 %vm826_vm1, %v6734_v18  ;;  %v3375_v40 = vmul.f32 %v4473_v0, %v3247_v62  ;;  %v7663_v27 = vld [vmem:[#allocation30_spill] sm:$0xff]  ;;  %v2619_v0 = vadd.f32 %v2587_v61, %v1990_v60  ;;  %v2341_v9 = vmul.f32 0.5, %v2309_v31  ;;  %v7667_v60 = vld [vmem:[#allocation125_spill] sm:$0xff] }
 0x2e5   : > { %4482 = vrcp.f32 %v3312_v12  ;;  %v3031_v38 = vmul.f32 0.5, %v4475_v49  ;;  %v4477_v39 = vpop.eup %4476  ;;  %v1058_v25 = vsub.f32 %v6745_v44, %v7663_v27  ;;  %v2403_v49 = vmul.f32 0.5, %v4471_v17  ;;  %v4688_v17 = vld [vmem:[%s5090_s28 + $0x68] sm:$0xff] }
 0x2e6   : > { %4484 = vtanh.f32 %v2968_v2  ;;  %3582 = vmatmul.f32.gmra.mxu3 %v3375_v40  ;;  %4264 = vmatmul.msk.f32.gmra.mxu1 %vm826_vm1, %v6701_v8  ;;  %v4479_v34 = vpop.eup %4478  ;;  %v6763_v12 = vadd.f32 0.5, %v1779_v46  ;;  %v6766_v23 = vmul.f32 %v7664_v32, %v1183_v28  ;;  %v1686_v8 = vsub.f32 %v6745_v44, %v7665_v24  ;;  %v7666_v46 = vld [vmem:[#allocation103_spill] sm:$0xff] }
 0x2e7   : > { %v3063_v62 = vadd.f32 0.5, %v3031_v38  ;;  %4486 = vtanh.f32 %v1089_v29  ;;  %v4481_v61 = vpop.eup %4480  ;;  %v1959_v29 = vmul.f32 %v7666_v46, %v6463_v21  ;;  %v1152_v31 = vmul.f32 0.5, %v4477_v39  ;;  %v6782_v13 = vpop.f32.mrf.mxu2 }
 0x2e8   : > { %4488 = vtanh.f32 %v1717_v15  ;;  %v3248_v40 = vadd.f32 %v3216_v6, %v2619_v0  ;;  %v1090_v4 = vmul.f32 0.5, %v1058_v25  ;;  %v2588_v27 = vmul.f32 %v7667_v60, %v2434_v57 }
 0x2e9   : > { %v3281_v56 = vadd.f32 %v3063_v62, %v2652_v5  ;;  %v2863_v2 = vpop.f32.mrf.mxu0  ;;  %3487 = vmatmul.f32.gmra.mxu2 %v4688_v17  ;;  %v2435_v5 = vadd.f32 0.5, %v2403_v49  ;;  %4490 = vtanh.f32 %v2341_v9  ;;  %v2310_v17 = vsub.f32 %v6557_v58, %v7668_v3  ;;  %v6790_v39 = vpop.f32.mrf.mxu3 }
 0x2ea   : > { %v2937_v15 = vsub.f32 %v6447_v36, %v2863_v2  ;;  %v7669_v36 = vld [vmem:[#allocation69_spill] sm:$0xff]  ;;  %v1718_v57 = vmul.f32 0.5, %v1686_v8  ;;  %v1991_v0 = vadd.f32 %v1959_v29, %v6482_v45  ;;  %v6794_v3 = vadd.f32 %v6763_v12, %v1183_v28 }
 0x2eb   : > { %v4483_v38 = vpop.eup %4482  ;;  %v3313_v32 = vmax.f32 %v3281_v56, 1e-20  ;;  %v3142_v24 = vpop.f32.mrf.mxu1  ;;  %v6788_v6 = vadd.f32 %v6513_v63, %v7669_v36  ;;  %v3217_v9 = vmul.f32 %v3139_v51, %v3063_v62  ;;  %v2653_v8 = vadd.f32 %v2435_v5, %v6639_v42  ;;  %v7670_v45 = vld [vmem:[#allocation33_spill] sm:$0xff] }
 0x2ec   : > { %v4485_v59 = vpop.eup %4484  ;;  %v2969_v11 = vmul.f32 0.5, %v2937_v15  ;;  %4233 = vmatmul.msk.f32.gmra.mxu0 %vm826_vm1, %v6773_v48  ;;  %v3376_v21 = vmul.f32 %v4483_v38, %v3248_v40  ;;  %v2404_v2 = vmul.f32 0.5, %v4481_v61  ;;  %v1780_v46 = vmul.f32 0.5, %v4479_v34  ;;  %v4689_v42 = vld [vmem:[%s5090_s28 + $0x70] sm:$0xff] }
 0x2ed   : > { %4492 = vrcp.f32 %v3313_v32  ;;  %v3032_v25 = vmul.f32 0.5, %v4485_v59  ;;  %v4487_v49 = vpop.eup %4486  ;;  %v2620_v59 = vadd.f32 %v2588_v27, %v1991_v0  ;;  %v2342_v15 = vmul.f32 0.5, %v2310_v17  ;;  %v7671_v61 = vld [vmem:[#allocation105_spill] sm:$0xff] }
 0x2ee   : > { %4494 = vtanh.f32 %v2969_v11  ;;  %3585 = vmatmul.f32.gmra.mxu3 %v3376_v21  ;;  %4265 = vmatmul.msk.f32.gmra.mxu1 %vm826_vm1, %v6734_v18  ;;  %v4489_v56 = vpop.eup %4488  ;;  %v6799_v38 = vadd.f32 0.5, %v1152_v31  ;;  %v1059_v51 = vsub.f32 %v6788_v6, %v7670_v45  ;;  %v1153_v11 = vmul.f32 0.5, %v4487_v49  ;;  %v6806_v18 = vld [vmem:[%s7434_s1 + $0x3e0] sm:$0xff]  ;;  %v7672_v32 = vld [vmem:[#allocation129_spill] sm:$0xff] }
 0x2ef   : > { %v3064_v40 = vadd.f32 0.5, %v3032_v25  ;;  %4496 = vtanh.f32 %v1090_v4  ;;  %v4491_v34 = vpop.eup %4490  ;;  %v1960_v29 = vmul.f32 %v7671_v61, %v6546_v50  ;;  %v1781_v31 = vmul.f32 0.5, %v4489_v56  ;;  %v7673_v36 = vld [vmem:[#allocation41_spill] sm:$0xff] }
 0x2f0   : > { %4498 = vtanh.f32 %v1718_v57  ;;  %v3249_v4 = vadd.f32 %v3217_v9, %v2620_v59  ;;  %v2589_v17 = vmul.f32 %v7672_v32, %v2435_v5  ;;  %v2436_v21 = vadd.f32 0.5, %v2404_v2  ;;  %v7675_v59 = vld [vmem:[#allocation26_spill] sm:$0xff] }
 0x2f1   : > { %v3282_v28 = vadd.f32 %v3064_v40, %v2653_v8  ;;  %v2866_v62 = vpop.f32.mrf.mxu0  ;;  %3490 = vmatmul.f32.gmra.mxu2 %v4689_v42  ;;  %v1687_v57 = vsub.f32 %v6788_v6, %v7673_v36  ;;  %4500 = vtanh.f32 %v2342_v15  ;;  %v7674_v8 = vld [vmem:[#allocation131_spill] sm:$0xff]  ;;  %v6819_v9 = vadd.f32 0.5, %v1780_v46  ;;  %v6826_v15 = vpop.f32.mrf.mxu2 }
 0x2f2   : > { %v2938_v60 = vsub.f32 %v6517_v20, %v2866_v62  ;;  %v2311_v45 = vsub.f32 %v6583_v54, %v7674_v8  ;;  %v1091_v20 = vmul.f32 0.5, %v1059_v51  ;;  %v1992_v2 = vadd.f32 %v1960_v29, %v6577_v52  ;;  %7676 = vst [vmem:[#allocation18_spill] sm:$0xff] %v6826_v15 }
 0x2f3   : > { %v4493_v27 = vpop.eup %4492  ;;  %v3314_v25 = vmax.f32 %v3282_v28, 1e-20  ;;  %v3145_v49 = vpop.f32.mrf.mxu1  ;;  %v6824_v28 = vmul.f32 %v7675_v59, %v6799_v38  ;;  %v3218_v62 = vmul.f32 %v3142_v24, %v3064_v40  ;;  %v2654_v46 = vadd.f32 %v2436_v21, %v6656_v26  ;;  %v7678_v24 = vld [vmem:[#allocation73_spill] sm:$0xff]  ;;  %v6842_v26 = vld [vmem:[%s7434_s1 + $0x3e8] sm:$0xff] }
 0x2f4   : > { %v4495_v0 = vpop.eup %4494  ;;  %v2970_v42 = vmul.f32 0.5, %v2938_v60  ;;  %4234 = vmatmul.msk.f32.gmra.mxu0 %vm826_vm1, %v6806_v18  ;;  %v3377_v50 = vmul.f32 %v4493_v27, %v3249_v4  ;;  %v2405_v61 = vmul.f32 0.5, %v4491_v34  ;;  %v1719_v4 = vmul.f32 0.5, %v1687_v57  ;;  %v6831_v60 = vpop.f32.mrf.mxu3  ;;  %v4690_v34 = vld [vmem:[%s5090_s28 + $0x78] sm:$0xff] }
 0x2f5   : > { %4502 = vrcp.f32 %v3314_v25  ;;  %v3033_v5 = vmul.f32 0.5, %v4495_v0  ;;  %v4497_v56 = vpop.eup %4496  ;;  %7677 = vst [vmem:[#allocation91_spill] sm:$0xff] %v6831_v60  ;;  %v2621_v29 = vadd.f32 %v2589_v17, %v1992_v2  ;;  %v2343_v27 = vmul.f32 0.5, %v2311_v45 }
 0x2f6   : > { %4504 = vtanh.f32 %v2970_v42  ;;  %3588 = vmatmul.f32.gmra.mxu3 %v3377_v50  ;;  %4266 = vmatmul.msk.f32.gmra.mxu1 %vm826_vm1, %v6773_v48  ;;  %v4499_v51 = vpop.eup %4498  ;;  %v1185_v32 = vadd.f32 0.5, %v1153_v11  ;;  %v6833_v36 = vadd.f32 0.5, %v1781_v31  ;;  %v6837_v40 = vadd.f32 %v6513_v63, %v7678_v24  ;;  %v7679_v11 = vld [vmem:[#allocation107_spill] sm:$0xff]  ;;  %v7680_v50 = vld [vmem:[#allocation132_spill] sm:$0xff] }
 0x2f7   : > { %v3065_v52 = vadd.f32 0.5, %v3033_v5  ;;  %v1154_v25 = vmul.f32 0.5, %v4497_v56  ;;  %4506 = vtanh.f32 %v1091_v20  ;;  %v4501_v17 = vpop.eup %4500  ;;  %v1961_v31 = vmul.f32 %v7679_v11, %v6610_v35  ;;  %v7683_v11 = vld [vmem:[#allocation29_spill] sm:$0xff] }
 0x2f8   : > { %v1782_v57 = vmul.f32 0.5, %v4499_v51  ;;  %v3250_v8 = vadd.f32 %v3218_v62, %v2621_v29  ;;  %v2590_v20 = vmul.f32 %v7680_v50, %v2436_v21  ;;  %v2437_v5 = vadd.f32 0.5, %v2405_v61  ;;  %v7682_v62 = vld [vmem:[#allocation36_spill] sm:$0xff] }
 0x2f9   : > { %v3283_v48 = vadd.f32 %v3065_v52, %v2654_v46  ;;  %v2869_v0 = vpop.f32.mrf.mxu0  ;;  %3493 = vmatmul.f32.gmra.mxu2 %v4690_v34  ;;  %4508 = vtanh.f32 %v1719_v4  ;;  %v7681_v46 = vld [vmem:[#allocation134_spill] sm:$0xff]  ;;  %v1186_v51 = vadd.f32 0.5, %v1154_v25  ;;  %v1993_v61 = vadd.f32 %v1961_v31, %v6652_v41 }
 0x2fa   : > { %v2939_v45 = vsub.f32 %v6557_v58, %v2869_v0  ;;  %4510 = vtanh.f32 %v2343_v27  ;;  %v2312_v24 = vsub.f32 %v6627_v1, %v7681_v46  ;;  %v1060_v58 = vsub.f32 %v6837_v40, %v7682_v62 }
 0x2fb   : > { %v4503_v42 = vpop.eup %4502  ;;  %v3315_v56 = vmax.f32 %v3283_v48, 1e-20  ;;  %v3148_v2 = vpop.f32.mrf.mxu1  ;;  %v6858_v4 = vadd.f32 %v6819_v9, %v6799_v38  ;;  %v3219_v29 = vmul.f32 %v3145_v49, %v3065_v52  ;;  %v2655_v48 = vadd.f32 %v2437_v5, %v6686_v14  ;;  %v7686_v14 = vld [vmem:[#allocation45_spill] sm:$0xff] }
 0x2fc   : > { %v4505_v59 = vpop.eup %4504  ;;  %v2971_v34 = vmul.f32 0.5, %v2939_v45  ;;  %4235 = vmatmul.msk.f32.gmra.mxu0 %vm826_vm1, %v6842_v26  ;;  %v3378_v35 = vmul.f32 %v4503_v42, %v3250_v8  ;;  %v2406_v0 = vmul.f32 0.5, %v4501_v17  ;;  %v6864_v25 = vmul.f32 %v7683_v11, %v1185_v32  ;;  %v6871_v52 = vpop.f32.mrf.mxu2  ;;  %v7685_v42 = vld [vmem:[#allocation32_spill] sm:$0xff]  ;;  %v7690_v11 = vld [vmem:[#allocation135_spill] sm:$0xff] }
 0x2fd   : > { %4512 = vrcp.f32 %v3315_v56  ;;  %v3034_v21 = vmul.f32 0.5, %v4505_v59  ;;  %v4507_v27 = vpop.eup %4506  ;;  %v2622_v41 = vadd.f32 %v2590_v20, %v1993_v61  ;;  %v2344_v31 = vmul.f32 0.5, %v2312_v24  ;;  %7684 = vst [vmem:[#allocation25_spill] sm:$0xff] %v6871_v52  ;;  %v6878_v56 = vpop.f32.mrf.mxu3  ;;  %v7688_v24 = vld [vmem:[#allocation108_spill] sm:$0xff]  ;;  %v7689_v61 = vld [vmem:[#allocation77_spill] sm:$0xff] }
 0x2fe   : > { %4514 = vtanh.f32 %v2971_v34  ;;  %3591 = vmatmul.f32.gmra.mxu3 %v3378_v35  ;;  %4267 = vmatmul.msk.f32.gmra.mxu1 %vm826_vm1, %v6806_v18  ;;  %v6867_v38 = vadd.f32 %v6833_v36, %v1185_v32  ;;  %v6869_v49 = vadd.f32 0.5, %v1782_v57  ;;  %v1092_v18 = vmul.f32 0.5, %v1060_v58  ;;  %7687 = vst [vmem:[#allocation53_spill] sm:$0xff] %v6878_v56  ;;  %v6883_v32 = vld [vmem:[%s7434_s1 + $0x3f0] sm:$0xff]  ;;  %v4691_v57 = vld [vmem:[%s5090_s28 + $0x80] sm:$0xff] }
 0x2ff   : > { %v3066_v8 = vadd.f32 0.5, %v3034_v21  ;;  %v4509_v45 = vpop.eup %4508  ;;  %v6874_v50 = vmul.f32 %v7685_v42, %v1186_v51  ;;  %v1688_v17 = vsub.f32 %v6837_v40, %v7686_v14  ;;  %v1962_v34 = vmul.f32 %v7688_v24, %v6660_v19 }
 0x300   : > { %v4511_v46 = vpop.eup %4510  ;;  %v1155_v35 = vmul.f32 0.5, %v4507_v27  ;;  %v3251_v62 = vadd.f32 %v3219_v29, %v2622_v41  ;;  %v2591_v42 = vmul.f32 %v7690_v11, %v2437_v5  ;;  %v2438_v14 = vadd.f32 0.5, %v2406_v0 }
 0x301   : > { %v3284_v59 = vadd.f32 %v3066_v8, %v2655_v48  ;;  %v2872_v20 = vpop.f32.mrf.mxu0  ;;  %3496 = vmatmul.f32.gmra.mxu2 %v4691_v57  ;;  %v6891_v48 = vadd.f32 %v6513_v63, %v7689_v61  ;;  %4516 = vtanh.f32 %v2344_v31  ;;  %v7691_v57 = vld [vmem:[#allocation138_spill] sm:$0xff]  ;;  %v1783_v29 = vmul.f32 0.5, %v4509_v45  ;;  %v7692_v31 = vld [vmem:[#allocation40_spill] sm:$0xff] }
 0x302   : > { %v2940_v58 = vsub.f32 %v6583_v54, %v2872_v20  ;;  %v2313_v15 = vsub.f32 %v6672_v7, %v7691_v57  ;;  %v1720_v27 = vmul.f32 0.5, %v1688_v17  ;;  %v1994_v41 = vadd.f32 %v1962_v34, %v6679_v16 }
 0x303   : > { %v4513_v21 = vpop.eup %4512  ;;  %v3316_v56 = vmax.f32 %v3284_v59, 1e-20  ;;  %v3151_v52 = vpop.f32.mrf.mxu1  ;;  %v6900_v5 = vadd.f32 %v6869_v49, %v1186_v51  ;;  %v3220_v0 = vmul.f32 %v3148_v2, %v3066_v8  ;;  %v1061_v59 = vsub.f32 %v6891_v48, %v7692_v31  ;;  %v7693_v2 = vld [vmem:[#allocation49_spill] sm:$0xff] }
 0x304   : > { %v4515_v60 = vpop.eup %4514  ;;  %v2972_v19 = vmul.f32 0.5, %v2940_v58  ;;  %4236 = vmatmul.msk.f32.gmra.mxu0 %vm826_vm1, %v6883_v32  ;;  %v3379_v54 = vmul.f32 %v4513_v21, %v3251_v62  ;;  %v2656_v45 = vadd.f32 %v2438_v14, %v6719_v53  ;;  %v2407_v17 = vmul.f32 0.5, %v4511_v46  ;;  %v4692_v53 = vld [vmem:[%s5090_s28 + $0x88] sm:$0xff]  ;;  %v7695_v62 = vld [vmem:[#allocation109_spill] sm:$0xff]  ;;  %v6928_v21 = vpop.f32.mrf.mxu2 }
 0x305   : > { %4518 = vrcp.f32 %v3316_v56  ;;  %v3035_v63 = vmul.f32 0.5, %v4515_v60  ;;  %v2623_v60 = vadd.f32 %v2591_v42, %v1994_v41  ;;  %v2345_v20 = vmul.f32 0.5, %v2313_v15  ;;  %v6920_v15 = vld [vmem:[%s7438_s5] ss:$0 sm:$0xff] }
 0x306   : > { %4520 = vtanh.f32 %v2972_v19  ;;  %3594 = vmatmul.f32.gmra.mxu3 %v3379_v54  ;;  %4268 = vmatmul.msk.f32.gmra.mxu1 %vm826_vm1, %v6842_v26  ;;  %v1187_v16 = vadd.f32 0.5, %v1155_v35  ;;  %v6907_v51 = vadd.f32 0.5, %v1783_v29  ;;  %v1689_v8 = vsub.f32 %v6891_v48, %v7693_v2  ;;  %v6914_v26 = vld [vmem:[%s7434_s1 + $0x3f8] sm:$0xff]  ;;  %v7696_v19 = vld [vmem:[#allocation139_spill] sm:$0xff] }
 0x307   : > { %v3067_v56 = vadd.f32 0.5, %v3035_v63  ;;  %4522 = vtanh.f32 %v1092_v18  ;;  %v4517_v46 = vpop.eup %4516  ;;  %v7694_v18 = vld [vmem:[#allocation81_spill] sm:$0xff]  ;;  %v1963_v58 = vmul.f32 %v7695_v62, %v6691_v22  ;;  %v3252_v61 = vadd.f32 %v3220_v0, %v2623_v60  ;;  %v7700_v62 = vld [vmem:[#allocation84_spill] sm:$0xff] }
 0x308   : > { %4524 = vtanh.f32 %v1720_v27  ;;  %v6924_v35 = vadd.f32 %v6920_v15, %v7694_v18  ;;  %v1093_v57 = vmul.f32 0.5, %v1061_v59  ;;  %v2592_v54 = vmul.f32 %v7696_v19, %v2438_v14  ;;  %v6932_v27 = vpop.f32.mrf.mxu3 }
 0x309   : > { %v3285_v24 = vadd.f32 %v3067_v56, %v2656_v45  ;;  %v2875_v34 = vpop.f32.mrf.mxu0  ;;  %3499 = vmatmul.f32.gmra.mxu2 %v4692_v53  ;;  %v2439_v29 = vadd.f32 0.5, %v2407_v17  ;;  %4526 = vtanh.f32 %v2345_v20  ;;  %v7697_v45 = vld [vmem:[#allocation141_spill] sm:$0xff]  ;;  %v1721_v59 = vmul.f32 0.5, %v1689_v8 }
 0x30a   : > { %v2941_v11 = vsub.f32 %v6627_v1, %v2875_v34  ;;  %v2314_v2 = vsub.f32 %v6706_v33, %v7697_v45  ;;  %v7698_v1 = vld [vmem:[#allocation35_spill] sm:$0xff]  ;;  %v7699_v34 = vld [vmem:[#allocation44_spill] sm:$0xff]  ;;  %v1995_v20 = vadd.f32 %v1963_v58, %v6714_v43  ;;  %v3221_v53 = vmul.f32 %v3151_v52, %v3067_v56  ;;  %v4694_v45 = vld [vmem:[%s5090_s28 + $0x90] sm:$0xff] }
 0x30b   : > { %v4519_v42 = vpop.eup %4518  ;;  %v3317_v63 = vmax.f32 %v3285_v24, 1e-20  ;;  %v3154_v41 = vpop.f32.mrf.mxu1  ;;  %v6939_v60 = vmul.f32 %v7698_v1, %v1187_v16  ;;  %v1062_v24 = vsub.f32 %v6924_v35, %v7699_v34  ;;  %v2657_v8 = vadd.f32 %v2439_v29, %v6756_v55  ;;  %v7701_v56 = vld [vmem:[#allocation52_spill] sm:$0xff]  ;;  %v7702_v55 = vld [vmem:[#allocation110_spill] sm:$0xff] }
 0x30c   : > { %v4521_v31 = vpop.eup %4520  ;;  %v2973_v22 = vmul.f32 0.5, %v2941_v11  ;;  %4237 = vmatmul.msk.f32.gmra.mxu0 %vm826_vm1, %v6914_v26  ;;  %v3380_v0 = vmul.f32 %v4519_v42, %v3252_v61  ;;  %v6948_v61 = vadd.f32 %v6920_v15, %v7700_v62  ;;  %v2408_v11 = vmul.f32 0.5, %v4517_v46  ;;  %v7703_v1 = vld [vmem:[#allocation48_spill] sm:$0xff] }
 0x30d   : > { %4528 = vrcp.f32 %v3317_v63  ;;  %v3036_v14 = vmul.f32 0.5, %v4521_v31  ;;  %v4523_v17 = vpop.eup %4522  ;;  %v2624_v19 = vadd.f32 %v2592_v54, %v1995_v20  ;;  %v2346_v63 = vmul.f32 0.5, %v2314_v2 }
 0x30e   : > { %4530 = vtanh.f32 %v2973_v22  ;;  %3597 = vmatmul.f32.gmra.mxu3 %v3380_v0  ;;  %4269 = vmatmul.msk.f32.gmra.mxu1 %vm826_vm1, %v6883_v32  ;;  %v4525_v18 = vpop.eup %4524  ;;  %v6952_v43 = vadd.f32 %v6907_v51, %v1187_v16  ;;  %v1156_v52 = vmul.f32 0.5, %v4523_v17  ;;  %v1690_v32 = vsub.f32 %v6924_v35, %v7701_v56  ;;  %v6960_v16 = vpop.f32.mrf.mxu2 }
 0x30f   : > { %v3068_v42 = vadd.f32 0.5, %v3036_v14  ;;  %4532 = vtanh.f32 %v1093_v57  ;;  %v4527_v22 = vpop.eup %4526  ;;  %v1094_v0 = vmul.f32 0.5, %v1062_v24  ;;  %v1964_v46 = vmul.f32 %v7702_v55, %v6724_v37  ;;  %v7704_v14 = vld [vmem:[#allocation142_spill] sm:$0xff]  ;;  %v7705_v24 = vld [vmem:[#allocation145_spill] sm:$0xff] }
 0x310   : > { %4534 = vtanh.f32 %v1721_v59  ;;  %v3253_v54 = vadd.f32 %v3221_v53, %v2624_v19  ;;  %v1063_v59 = vsub.f32 %v6948_v61, %v7703_v1  ;;  %v2593_v17 = vmul.f32 %v7704_v14, %v2439_v29  ;;  %v7707_v29 = vld [vmem:[#allocation56_spill] sm:$0xff] }
 0x311   : > { %v3286_v58 = vadd.f32 %v3068_v42, %v2657_v8  ;;  %v2878_v31 = vpop.f32.mrf.mxu0  ;;  %3502 = vmatmul.f32.gmra.mxu2 %v4694_v45  ;;  %v2440_v34 = vadd.f32 0.5, %v2408_v11  ;;  %4536 = vtanh.f32 %v2346_v63  ;;  %v2315_v56 = vsub.f32 %v6745_v44, %v7705_v24 }
 0x312   : > { %v2942_v2 = vsub.f32 %v6672_v7, %v2878_v31  ;;  %v1784_v19 = vmul.f32 0.5, %v4525_v18  ;;  %v1722_v7 = vmul.f32 0.5, %v1690_v32  ;;  %v6967_v31 = vpop.f32.mrf.mxu3  ;;  %v1996_v1 = vadd.f32 %v1964_v46, %v6727_v10 }
 0x313   : > { %v4529_v57 = vpop.eup %4528  ;;  %v3318_v20 = vmax.f32 %v3286_v58, 1e-20  ;;  %v3157_v62 = vpop.f32.mrf.mxu1  ;;  %7706 = vst [vmem:[#allocation122_spill] sm:$0xff] %v6967_v31  ;;  %v1691_v11 = vsub.f32 %v6948_v61, %v7707_v29  ;;  %v3222_v58 = vmul.f32 %v3154_v41, %v3068_v42  ;;  %v1095_v18 = vmul.f32 0.5, %v1063_v59 }
 0x314   : > { %v4531_v8 = vpop.eup %4530  ;;  %v2974_v37 = vmul.f32 0.5, %v2942_v2  ;;  %v3381_v53 = vmul.f32 %v4529_v57, %v3253_v54  ;;  %v2658_v32 = vadd.f32 %v2440_v34, %v6794_v3  ;;  %v2409_v54 = vmul.f32 0.5, %v4527_v22 }
 0x315   : > { %4538 = vrcp.f32 %v3318_v20  ;;  %v3037_v45 = vmul.f32 0.5, %v4531_v8  ;;  %v4533_v55 = vpop.eup %4532  ;;  %v2625_v57 = vadd.f32 %v2593_v17, %v1996_v1  ;;  %v2347_v14 = vmul.f32 0.5, %v2315_v56  ;;  %v4695_v8 = vld [vmem:[%s5090_s28 + $0x98] sm:$0xff] }
 0x316   : > { %4540 = vtanh.f32 %v2974_v37  ;;  %3600 = vmatmul.f32.gmra.mxu3 %v3381_v53  ;;  %4270 = vmatmul.msk.f32.gmra.mxu1 %vm826_vm1, %v6914_v26  ;;  %v4535_v63 = vpop.eup %4534  ;;  %v1188_v20 = vadd.f32 0.5, %v1156_v52  ;;  %v6975_v10 = vadd.f32 0.5, %v1784_v19  ;;  %v1157_v46 = vmul.f32 0.5, %v4533_v55  ;;  %v7708_v26 = vld [vmem:[#allocation111_spill] sm:$0xff]  ;;  %v6981_v17 = vpop.f32.mrf.mxu2  ;;  %v7710_v55 = vld [vmem:[#allocation148_spill] sm:$0xff] }
 0x317   : > { %v3069_v2 = vadd.f32 0.5, %v3037_v45  ;;  %4542 = vtanh.f32 %v1094_v0  ;;  %v4537_v24 = vpop.eup %4536  ;;  %v1965_v59 = vmul.f32 %v7708_v26, %v6763_v12  ;;  %v1723_v37 = vmul.f32 0.5, %v1691_v11  ;;  %v7709_v0 = vld [vmem:[#allocation146_spill] sm:$0xff] }
 0x318   : > { %4544 = vtanh.f32 %v1722_v7  ;;  %v3254_v3 = vadd.f32 %v3222_v58, %v2625_v57  ;;  %v2594_v56 = vmul.f32 %v7709_v0, %v2440_v34  ;;  %v2441_v53 = vadd.f32 0.5, %v2409_v54  ;;  %v7711_v57 = vld [vmem:[#allocation86_spill] sm:$0xff] }
 0x319   : > { %v3287_v41 = vadd.f32 %v3069_v2, %v2658_v32  ;;  %v2881_v42 = vpop.f32.mrf.mxu0  ;;  %3505 = vmatmul.f32.gmra.mxu2 %v4695_v8  ;;  %4546 = vtanh.f32 %v1095_v18  ;;  %v2316_v1 = vsub.f32 %v6788_v6, %v7710_v55  ;;  %v1189_v11 = vadd.f32 0.5, %v1157_v46  ;;  %v7712_v8 = vld [vmem:[#allocation39_spill] sm:$0xff] }
 0x31a   : > { %v2943_v22 = vsub.f32 %v6706_v33, %v2881_v42  ;;  %4548 = vtanh.f32 %v2347_v14  ;;  %v1785_v58 = vmul.f32 0.5, %v4535_v63  ;;  %v6988_v42 = vadd.f32 %v6920_v15, %v7711_v57  ;;  %v6995_v63 = vpop.f32.mrf.mxu3  ;;  %v7715_v55 = vld [vmem:[#allocation51_spill] sm:$0xff] }
 0x31b   : > { %v4539_v52 = vpop.eup %4538  ;;  %v3319_v19 = vmax.f32 %v3287_v41, 1e-20  ;;  %v3160_v7 = vpop.f32.mrf.mxu1  ;;  %v1997_v34 = vadd.f32 %v1965_v59, %v6766_v23  ;;  %v3223_v18 = vmul.f32 %v3157_v62, %v3069_v2  ;;  %v2659_v14 = vadd.f32 %v2441_v53, %v6858_v4  ;;  %7713 = vst [vmem:[#allocation92_spill] sm:$0xff] %v6995_v63  ;;  %v7714_v62 = vld [vmem:[#allocation43_spill] sm:$0xff] }
 0x31c   : > { %v4541_v45 = vpop.eup %4540  ;;  %v2975_v29 = vmul.f32 0.5, %v2943_v22  ;;  %v3382_v12 = vmul.f32 %v4539_v52, %v3254_v3  ;;  %v2410_v41 = vmul.f32 0.5, %v4537_v24  ;;  %v6993_v46 = vmul.f32 %v7712_v8, %v1188_v20 }
 0x31d   : > { %4550 = vrcp.f32 %v3319_v19  ;;  %v3038_v33 = vmul.f32 0.5, %v4541_v45  ;;  %v4543_v32 = vpop.eup %4542  ;;  %v2626_v3 = vadd.f32 %v2594_v56, %v1997_v34  ;;  %v2348_v22 = vmul.f32 0.5, %v2316_v1  ;;  %v4696_v19 = vld [vmem:[%s5090_s28 + $0xa0] sm:$0xff]  ;;  %v7716_v1 = vld [vmem:[#allocation112_spill] sm:$0xff] }
 0x31e   : > { %4552 = vtanh.f32 %v2975_v29  ;;  %3603 = vmatmul.f32.gmra.mxu3 %v3382_v12  ;;  %v4545_v54 = vpop.eup %4544  ;;  %v6998_v52 = vadd.f32 %v6975_v10, %v1188_v20  ;;  %v7001_v2 = vmul.f32 %v7714_v62, %v1189_v11  ;;  %v7003_v59 = vadd.f32 0.5, %v1785_v58  ;;  %v7011_v12 = vpop.f32.mrf.mxu2  ;;  %v7717_v58 = vld [vmem:[#allocation150_spill] sm:$0xff] }
 0x31f   : > { %v3070_v26 = vadd.f32 0.5, %v3038_v33  ;;  %4554 = vtanh.f32 %v1723_v37  ;;  %v4547_v23 = vpop.eup %4546  ;;  %v1158_v4 = vmul.f32 0.5, %v4543_v32  ;;  %v1064_v56 = vsub.f32 %v6988_v42, %v7715_v55 }
 0x320   : > { %v4549_v45 = vpop.eup %4548  ;;  %v1966_v20 = vmul.f32 %v7716_v1, %v6819_v9  ;;  %v3255_v29 = vadd.f32 %v3223_v18, %v2626_v3  ;;  %v2595_v57 = vmul.f32 %v7717_v58, %v2441_v53  ;;  %v2442_v32 = vadd.f32 0.5, %v2410_v41 }
 0x321   : > { %v3288_v24 = vadd.f32 %v3070_v26, %v2659_v14  ;;  %v2884_v0 = vpop.f32.mrf.mxu0  ;;  %3508 = vmatmul.f32.gmra.mxu2 %v4696_v19  ;;  %v1786_v34 = vmul.f32 0.5, %v4545_v54  ;;  %4556 = vtanh.f32 %v2348_v22  ;;  %v7718_v19 = vld [vmem:[#allocation13_spill] sm:$0xff]  ;;  %v7017_v9 = vadd.f32 %v7003_v59, %v1189_v11 }
 0x322   : > { %v2944_v37 = vsub.f32 %v6745_v44, %v2884_v0  ;;  %v2317_v55 = vsub.f32 %v6837_v40, %v7718_v19  ;;  %v7719_v44 = vld [vmem:[#allocation60_spill] sm:$0xff]  ;;  %v1096_v41 = vmul.f32 0.5, %v1064_v56  ;;  %v1998_v54 = vadd.f32 %v1966_v20, %v6824_v28  ;;  %v7722_v19 = vld [vmem:[#allocation38_spill] sm:$0xff] }
 0x323   : > { %v4551_v33 = vpop.eup %4550  ;;  %v3320_v14 = vmax.f32 %v3288_v24, 1e-20  ;;  %v3163_v8 = vpop.f32.mrf.mxu1  ;;  %v1692_v18 = vsub.f32 %v6988_v42, %v7719_v44  ;;  %v3224_v24 = vmul.f32 %v3160_v7, %v3070_v26  ;;  %v2660_v22 = vadd.f32 %v2442_v32, %v6867_v38  ;;  %v4697_v26 = vld [vmem:[%s5090_s28 + $0xa8] sm:$0xff] }
 0x324   : > { %v4553_v62 = vpop.eup %4552  ;;  %v2976_v63 = vmul.f32 0.5, %v2944_v37  ;;  %v3383_v31 = vmul.f32 %v4551_v33, %v3255_v29  ;;  %v2411_v0 = vmul.f32 0.5, %v4549_v45  ;;  %v1159_v1 = vmul.f32 0.5, %v4547_v23  ;;  %v7029_v7 = vpop.f32.mrf.mxu3  ;;  %v7721_v23 = vld [vmem:[#allocation113_spill] sm:$0xff] }
 0x325   : > { %4558 = vrcp.f32 %v3320_v14  ;;  %v3039_v3 = vmul.f32 0.5, %v4553_v62  ;;  %v4555_v53 = vpop.eup %4554  ;;  %v2627_v11 = vadd.f32 %v2595_v57, %v1998_v54  ;;  %v2349_v37 = vmul.f32 0.5, %v2317_v55  ;;  %v7720_v14 = vld [vmem:[#allocation87_spill] sm:$0xff] }
 0x326   : > { %4560 = vtanh.f32 %v2976_v63  ;;  %3606 = vmatmul.f32.gmra.mxu3 %v3383_v31  ;;  %v1190_v33 = vadd.f32 0.5, %v1158_v4  ;;  %v7023_v58 = vadd.f32 0.5, %v1786_v34  ;;  %v7027_v62 = vadd.f32 %v6920_v15, %v7720_v14  ;;  %v7035_v57 = vpop.f32.mrf.mxu2 }
 0x327   : > { %v3071_v29 = vadd.f32 0.5, %v3039_v3  ;;  %v1787_v56 = vmul.f32 0.5, %v4555_v53  ;;  %v1724_v28 = vmul.f32 0.5, %v1692_v18  ;;  %v4557_v38 = vpop.eup %4556  ;;  %v1967_v45 = vmul.f32 %v7721_v23, %v6833_v36 }
 0x328   : > { %4562 = vtanh.f32 %v1096_v41  ;;  %v3256_v4 = vadd.f32 %v3224_v24, %v2627_v11  ;;  %v2596_v55 = vmul.f32 %v7722_v19, %v2442_v32  ;;  %v2443_v44 = vadd.f32 0.5, %v2411_v0  ;;  %v7723_v24 = vld [vmem:[#allocation55_spill] sm:$0xff] }
 0x329   : > { %v3289_v63 = vadd.f32 %v3071_v29, %v2660_v22  ;;  %v2887_v31 = vpop.f32.mrf.mxu0  ;;  %3511 = vmatmul.f32.gmra.mxu2 %v4697_v26  ;;  %v7038_v18 = vadd.f32 0.5, %v1159_v1  ;;  %4564 = vtanh.f32 %v2349_v37  ;;  %v2318_v22 = vsub.f32 %v6891_v48, %v6484_v47  ;;  %v7724_v11 = vld [vmem:[#allocation47_spill] sm:$0xff] }
 0x32a   : > { %v2945_v20 = vsub.f32 %v6788_v6, %v2887_v31  ;;  %v1065_v6 = vsub.f32 %v7027_v62, %v7723_v24  ;;  %v7045_v14 = vmul.f32 %v7724_v11, %v1190_v33  ;;  %v1999_v0 = vadd.f32 %v1967_v45, %v6864_v25 }
 0x32b   : > { %v4559_v34 = vpop.eup %4558  ;;  %v3321_v3 = vmax.f32 %v3289_v63, 1e-20  ;;  %v3166_v53 = vpop.f32.mrf.mxu1  ;;  %v7049_v1 = vadd.f32 %v7023_v58, %v1190_v33  ;;  %v3225_v37 = vmul.f32 %v3163_v8, %v3071_v29  ;;  %v2661_v47 = vadd.f32 %v2443_v44, %v6900_v5  ;;  %v7062_v8 = vld [vmem:[%s7441_s8] ss:$0 sm:$0xff]  ;;  %v7726_v29 = vld [vmem:[#allocation88_spill] sm:$0xff] }
 0x32c   : > { %v4561_v54 = vpop.eup %4560  ;;  %v2977_v36 = vmul.f32 0.5, %v2945_v20  ;;  %v3384_v41 = vmul.f32 %v4559_v34, %v3256_v4  ;;  %v2412_v63 = vmul.f32 0.5, %v4557_v38  ;;  %v2628_v23 = vadd.f32 %v2596_v55, %v1999_v0  ;;  %v7725_v20 = vld [vmem:[#allocation50_spill] sm:$0xff]  ;;  %v7727_v38 = vld [vmem:[#allocation64_spill] sm:$0xff] }
 0x32d   : > { %4566 = vrcp.f32 %v3321_v3  ;;  %v3040_v32 = vmul.f32 0.5, %v4561_v54  ;;  %v2350_v4 = vmul.f32 0.5, %v2318_v22  ;;  %v7055_v25 = vmul.f32 %v7725_v20, %v7038_v18  ;;  %v4698_v3 = vld [vmem:[%s5090_s28 + $0xb0] sm:$0xff]  ;;  %v7728_v54 = vld [vmem:[#allocation114_spill] sm:$0xff] }
 0x32e   : > { %4568 = vtanh.f32 %v2977_v36  ;;  %3609 = vmatmul.f32.gmra.mxu3 %v3384_v41  ;;  %v4563_v26 = vpop.eup %4562  ;;  %v7057_v33 = vadd.f32 0.5, %v1787_v56  ;;  %v1097_v5 = vmul.f32 0.5, %v1065_v6  ;;  %v1693_v45 = vsub.f32 %v7027_v62, %v7727_v38  ;;  %v7079_v6 = vpop.f32.mrf.mxu2 }
 0x32f   : > { %4570 = vtanh.f32 %v1724_v28  ;;  %v3072_v31 = vadd.f32 0.5, %v3040_v32  ;;  %v7066_v28 = vadd.f32 %v6920_v15, %v7726_v29  ;;  %v4565_v56 = vpop.eup %4564  ;;  %v1968_v22 = vmul.f32 %v7728_v54, %v6869_v49 }
 0x330   : > { %v3257_v36 = vadd.f32 %v3225_v37, %v2628_v23  ;;  %v2597_v32 = vmul.f32 %v6491_v30, %v2443_v44  ;;  %v2444_v0 = vadd.f32 0.5, %v2412_v63  ;;  %4572 = vtanh.f32 %v2350_v4 }
 0x331   : > { %v3290_v34 = vadd.f32 %v3072_v31, %v2661_v47  ;;  %v2890_v19 = vpop.f32.mrf.mxu0  ;;  %v3562_v55 = vpop.f32.mrf.mxu3  ;;  %3514 = vmatmul.f32.gmra.mxu2 %v4698_v3  ;;  %v7729_v47 = vld [vmem:[#allocation10_spill] sm:$0xff]  ;;  %v7730_v3 = vld [vmem:[#allocation59_spill] sm:$0xff]  ;;  %v2000_v44 = vadd.f32 %v1968_v22, %v6874_v50  ;;  %v3226_v63 = vmul.f32 %v3166_v53, %v3072_v31  ;;  %v2413_v54 = vmul.f32 0.5, %v4565_v56  ;;  %v7731_v50 = vld [vmem:[#allocation68_spill] sm:$0xff] }
 0x332   : > { %v2946_v41 = vsub.f32 %v6837_v40, %v2890_v19  ;;  %v3563_v24 = vadd.f32 %v3562_v55, %v6960_v16  ;;  %v2319_v20 = vsub.f32 %v6924_v35, %v7729_v47  ;;  %v1066_v16 = vsub.f32 %v7066_v28, %v7730_v3 }
 0x333   : > { %v4567_v11 = vpop.eup %4566  ;;  %v3322_v29 = vmax.f32 %v3290_v34, 1e-20  ;;  %v3169_v38 = vpop.f32.mrf.mxu1  ;;  %v1725_v55 = vmul.f32 0.5, %v1693_v45  ;;  %v2662_v4 = vadd.f32 %v2444_v0, %v6952_v43  ;;  %v1694_v53 = vsub.f32 %v7066_v28, %v7731_v50 }
 0x334   : > { %v4569_v49 = vpop.eup %4568  ;;  %v2978_v37 = vmul.f32 0.5, %v2946_v41  ;;  %v3662_v40 = vadd.f32 %v7062_v8, %v3563_v24  ;;  %v3385_v23 = vmul.f32 %v4567_v11, %v3257_v36  ;;  %v2351_v41 = vmul.f32 0.5, %v2319_v20 }
 0x335   : > { %v4571_v19 = vpop.eup %4570  ;;  %4574 = vrcp.f32 %v3322_v29  ;;  %v3041_v30 = vmul.f32 0.5, %v4569_v49  ;;  %v2629_v24 = vadd.f32 %v2597_v32, %v2000_v44  ;;  %v1160_v11 = vmul.f32 0.5, %v4563_v26  ;;  %v4699_v29 = vld [vmem:[%s5090_s28 + $0xb8] sm:$0xff]  ;;  %v7732_v32 = vld [vmem:[#allocation116_spill] sm:$0xff] }
 0x336   : > { %4576 = vtanh.f32 %v2978_v37  ;;  %v3694_v34 = vmax.f32 %v3662_v40, 0.0  ;;  %3612 = vmatmul.f32.gmra.mxu3 %v3385_v23  ;;  %v1788_v47 = vmul.f32 0.5, %v4571_v19  ;;  %v1098_v45 = vmul.f32 0.5, %v1066_v16  ;;  %v4573_v56 = vpop.eup %4572  ;;  %v7100_v37 = vpop.f32.mrf.mxu2  ;;  %v7733_v23 = vld [vmem:[#allocation16_spill] sm:$0xff] }
 0x337   : > { %v3073_v36 = vadd.f32 0.5, %v3041_v30  ;;  %4578 = vtanh.f32 %v1097_v5  ;;  %v1969_v26 = vmul.f32 %v7732_v32, %v6907_v51  ;;  %v3258_v20 = vadd.f32 %v3226_v63, %v2629_v24  ;;  %v7734_v44 = vld [vmem:[#allocation8_spill] sm:$0xff] }
 0x338   : > { %3726 = vst [vmem:[%s7090_s24] sm:$0xff] %v3694_v34  ;;  %4580 = vtanh.f32 %v1725_v55  ;;  %v2598_v19 = vmul.f32 %v7733_v23, %v2444_v0  ;;  %v2445_v3 = vadd.f32 0.5, %v2413_v54  ;;  %v2320_v34 = vsub.f32 %v6948_v61, %v7734_v44 }
 0x339   : > { %v3291_v31 = vadd.f32 %v3073_v36, %v2662_v4  ;;  %v2893_v22 = vpop.f32.mrf.mxu0  ;;  %v3565_v43 = vpop.f32.mrf.mxu3  ;;  %3517 = vmatmul.f32.gmra.mxu2 %v4699_v29  ;;  %4582 = vtanh.f32 %v2351_v41  ;;  %v2001_v54 = vadd.f32 %v1969_v26, %v6939_v60  ;;  %v3227_v41 = vmul.f32 %v3169_v38, %v3073_v36 }
 0x33a   : > { %v2947_v5 = vsub.f32 %v6891_v48, %v2893_v22  ;;  %v3566_v49 = vadd.f32 %v3565_v43, %v6981_v17  ;;  %v7108_v48 = vadd.f32 %v7057_v33, %v7038_v18  ;;  %v1726_v17 = vmul.f32 0.5, %v1694_v53 }
 0x33b   : > { %v4575_v40 = vpop.eup %4574  ;;  %v3323_v16 = vmax.f32 %v3291_v31, 1e-20  ;;  %v3172_v55 = vpop.f32.mrf.mxu1  ;;  %v2663_v22 = vadd.f32 %v2445_v3, %v6998_v52  ;;  %v2414_v43 = vmul.f32 0.5, %v4573_v56  ;;  %v1192_v29 = vadd.f32 0.5, %v1160_v11  ;;  %v7736_v11 = vld [vmem:[#allocation118_spill] sm:$0xff] }
 0x33c   : > { %v4577_v30 = vpop.eup %4576  ;;  %v2979_v4 = vmul.f32 0.5, %v2947_v5  ;;  %v3663_v51 = vadd.f32 %v7062_v8, %v3566_v49  ;;  %v3386_v63 = vmul.f32 %v4575_v40, %v3258_v20  ;;  %v2630_v18 = vadd.f32 %v2598_v19, %v2001_v54  ;;  %v7735_v49 = vld [vmem:[#allocation90_spill] sm:$0xff]  ;;  %v4700_v40 = vld [vmem:[%s5090_s28 + $0xc0] sm:$0xff] }
 0x33d   : > { %4584 = vrcp.f32 %v3323_v16  ;;  %v3042_v24 = vmul.f32 0.5, %v4577_v30  ;;  %v4579_v0 = vpop.eup %4578  ;;  %v2352_v20 = vmul.f32 0.5, %v2320_v34  ;;  %v7112_v53 = vadd.f32 0.5, %v1788_v47  ;;  %v7737_v30 = vld [vmem:[#allocation42_spill] sm:$0xff] }
 0x33e   : > { %4586 = vtanh.f32 %v2979_v4  ;;  %v3695_v50 = vmax.f32 %v3663_v51, 0.0  ;;  %3615 = vmatmul.f32.gmra.mxu3 %v3386_v63  ;;  %v4581_v31 = vpop.eup %4580  ;;  %v7117_v60 = vadd.f32 %v6920_v15, %v7735_v49  ;;  %v1161_v38 = vmul.f32 0.5, %v4579_v0  ;;  %v7124_v19 = vpop.f32.mrf.mxu2  ;;  %v7738_v4 = vld [vmem:[#allocation12_spill] sm:$0xff] }
 0x33f   : > { %v3074_v32 = vadd.f32 0.5, %v3042_v24  ;;  %4588 = vtanh.f32 %v1098_v45  ;;  %v4583_v5 = vpop.eup %4582  ;;  %v1970_v56 = vmul.f32 %v7736_v11, %v6975_v10  ;;  %v3259_v23 = vadd.f32 %v3227_v41, %v2630_v18  ;;  %v7740_v11 = vld [vmem:[#allocation54_spill] sm:$0xff] }
 0x340   : > { %3727 = vst [vmem:[%s7090_s24 + $0x8] sm:$0xff] %v3695_v50  ;;  %4590 = vtanh.f32 %v1726_v17  ;;  %v2599_v44 = vmul.f32 %v7737_v30, %v2445_v3  ;;  %v2446_v34 = vadd.f32 0.5, %v2414_v43  ;;  %v2321_v51 = vsub.f32 %v6988_v42, %v7738_v4 }
 0x341   : > { %v3292_v36 = vadd.f32 %v3074_v32, %v2663_v22  ;;  %v2896_v26 = vpop.f32.mrf.mxu0  ;;  %v3568_v52 = vpop.f32.mrf.mxu3  ;;  %3520 = vmatmul.f32.gmra.mxu2 %v4700_v40  ;;  %4592 = vtanh.f32 %v2352_v20  ;;  %v1789_v41 = vmul.f32 0.5, %v4581_v31  ;;  %v2002_v22 = vadd.f32 %v1970_v56, %v6993_v46 }
 0x342   : > { %v2948_v47 = vsub.f32 %v6924_v35, %v2896_v26  ;;  %v3569_v45 = vadd.f32 %v3568_v52, %v7011_v12  ;;  %v7739_v35 = vld [vmem:[#allocation63_spill] sm:$0xff]  ;;  %v3228_v43 = vmul.f32 %v3172_v55, %v3074_v32  ;;  %v2664_v20 = vadd.f32 %v2446_v34, %v7017_v9  ;;  %v7741_v32 = vld [vmem:[#allocation72_spill] sm:$0xff] }
 0x343   : > { %v4585_v16 = vpop.eup %4584  ;;  %v3324_v63 = vmax.f32 %v3292_v36, 1e-20  ;;  %v3175_v17 = vpop.f32.mrf.mxu1  ;;  %v1067_v12 = vsub.f32 %v7117_v60, %v7739_v35  ;;  %v2415_v36 = vmul.f32 0.5, %v4583_v5  ;;  %v2353_v26 = vmul.f32 0.5, %v2321_v51 }
 0x344   : > { %v4587_v24 = vpop.eup %4586  ;;  %v2980_v0 = vmul.f32 0.5, %v2948_v47  ;;  %v3664_v10 = vadd.f32 %v7062_v8, %v3569_v45  ;;  %v3387_v54 = vmul.f32 %v4585_v16, %v3259_v23  ;;  %v2631_v40 = vadd.f32 %v2599_v44, %v2002_v22  ;;  %v4701_v16 = vld [vmem:[%s5090_s28 + $0xc8] sm:$0xff]  ;;  %v7742_v44 = vld [vmem:[#allocation121_spill] sm:$0xff] }
 0x345   : > { %4594 = vrcp.f32 %v3324_v63  ;;  %v3043_v50 = vmul.f32 0.5, %v4587_v24  ;;  %v4589_v3 = vpop.eup %4588  ;;  %v7135_v31 = vmul.f32 %v7740_v11, %v1192_v29  ;;  %v7138_v23 = vadd.f32 %v7112_v53, %v1192_v29  ;;  %v7745_v11 = vld [vmem:[#allocation58_spill] sm:$0xff] }
 0x346   : > { %4596 = vtanh.f32 %v2980_v0  ;;  %v3696_v18 = vmax.f32 %v3664_v10, 0.0  ;;  %3618 = vmatmul.f32.gmra.mxu3 %v3387_v54  ;;  %v4591_v49 = vpop.eup %4590  ;;  %v7140_v47 = vadd.f32 0.5, %v1161_v38  ;;  %v1099_v46 = vmul.f32 0.5, %v1067_v12  ;;  %v7152_v63 = vpop.f32.mrf.mxu2  ;;  %v7743_v0 = vld [vmem:[#allocation19_spill] sm:$0xff] }
 0x347   : > { %v3075_v52 = vadd.f32 0.5, %v3043_v50  ;;  %v7143_v55 = vadd.f32 0.5, %v1789_v41  ;;  %v1695_v56 = vsub.f32 %v7117_v60, %v7741_v32  ;;  %v4593_v30 = vpop.eup %4592  ;;  %v1971_v4 = vmul.f32 %v7742_v44, %v7003_v59  ;;  %v7744_v50 = vld [vmem:[#allocation46_spill] sm:$0xff] }
 0x348   : > { %3728 = vst [vmem:[%s7090_s24 + $0x10] sm:$0xff] %v3696_v18  ;;  %v3260_v29 = vadd.f32 %v3228_v43, %v2631_v40  ;;  %v2600_v10 = vmul.f32 %v7743_v0, %v2446_v34  ;;  %v2447_v54 = vadd.f32 0.5, %v2415_v36  ;;  %4598 = vtanh.f32 %v2353_v26 }
 0x349   : > { %v3293_v9 = vadd.f32 %v3075_v52, %v2664_v20  ;;  %v2899_v5 = vpop.f32.mrf.mxu0  ;;  %v3571_v45 = vpop.f32.mrf.mxu3  ;;  %3523 = vmatmul.f32.gmra.mxu2 %v4701_v16  ;;  %v2322_v22 = vsub.f32 %v7027_v62, %v7744_v50  ;;  %v1727_v20 = vmul.f32 0.5, %v1695_v56  ;;  %v2003_v40 = vadd.f32 %v1971_v4, %v7001_v2  ;;  %v7746_v2 = vld [vmem:[#allocation93_spill] sm:$0xff] }
 0x34a   : > { %v2949_v38 = vsub.f32 %v6948_v61, %v2899_v5  ;;  %v3572_v51 = vadd.f32 %v3571_v45, %v7035_v57  ;;  %v1162_v61 = vmul.f32 0.5, %v4589_v3  ;;  %v3229_v34 = vmul.f32 %v3175_v17, %v3075_v52  ;;  %v7749_v50 = vld [vmem:[#allocation9_spill] sm:$0xff] }
 0x34b   : > { %v4595_v24 = vpop.eup %4594  ;;  %v3325_v35 = vmax.f32 %v3293_v9, 1e-20  ;;  %v3178_v12 = vpop.f32.mrf.mxu1  ;;  %v2665_v26 = vadd.f32 %v2447_v54, %v7049_v1  ;;  %v7162_v32 = vmul.f32 %v7745_v11, %v7140_v47  ;;  %v2416_v9 = vmul.f32 0.5, %v4593_v30  ;;  %v7747_v30 = vld [vmem:[#allocation123_spill] sm:$0xff] }
 0x34c   : > { %v4597_v41 = vpop.eup %4596  ;;  %v2981_v18 = vmul.f32 0.5, %v2949_v38  ;;  %v3665_v59 = vadd.f32 %v7062_v8, %v3572_v51  ;;  %v3388_v43 = vmul.f32 %v4595_v24, %v3260_v29  ;;  %v2632_v3 = vadd.f32 %v2600_v10, %v2003_v40  ;;  %v4702_v29 = vld [vmem:[%s5090_s28 + $0xd0] sm:$0xff]  ;;  %v7748_v10 = vld [vmem:[#allocation15_spill] sm:$0xff] }
 0x34d   : > { %4600 = vrcp.f32 %v3325_v35  ;;  %v3044_v57 = vmul.f32 0.5, %v4597_v41  ;;  %v2354_v56 = vmul.f32 0.5, %v2322_v22  ;;  %v1790_v45 = vmul.f32 0.5, %v4591_v49 }
 0x34e   : > { %4602 = vtanh.f32 %v2981_v18  ;;  %v3697_v36 = vmax.f32 %v3665_v59, 0.0  ;;  %3621 = vmatmul.f32.gmra.mxu3 %v3388_v43  ;;  %v4599_v16 = vpop.eup %4598  ;;  %v7167_v17 = vadd.f32 %v6920_v15, %v7746_v2  ;;  %v7169_v52 = vadd.f32 0.5, %v1162_v61  ;;  %v7176_v24 = vpop.f32.mrf.mxu2 }
 0x34f   : > { %v3076_v5 = vadd.f32 0.5, %v3044_v57  ;;  %4604 = vtanh.f32 %v1099_v46  ;;  %v1972_v38 = vmul.f32 %v7747_v30, %v7023_v58  ;;  %v3261_v51 = vadd.f32 %v3229_v34, %v2632_v3  ;;  %v7751_v57 = vld [vmem:[#allocation76_spill] sm:$0xff] }
 0x350   : > { %3729 = vst [vmem:[%s7090_s24 + $0x18] sm:$0xff] %v3697_v36  ;;  %4606 = vtanh.f32 %v1727_v20  ;;  %v2601_v35 = vmul.f32 %v7748_v10, %v2447_v54  ;;  %v2448_v41 = vadd.f32 0.5, %v2416_v9  ;;  %v2323_v22 = vsub.f32 %v7066_v28, %v7749_v50 }
 0x351   : > { %v3294_v1 = vadd.f32 %v3076_v5, %v2665_v26  ;;  %v2902_v44 = vpop.f32.mrf.mxu0  ;;  %v3574_v4 = vpop.f32.mrf.mxu3  ;;  %3526 = vmatmul.f32.gmra.mxu2 %v4702_v29  ;;  %4608 = vtanh.f32 %v2354_v56  ;;  %v1696_v40 = vsub.f32 %v7167_v17, %v7751_v57  ;;  %v2004_v36 = vadd.f32 %v1972_v38, %v7045_v14  ;;  %v7752_v29 = vld [vmem:[#allocation62_spill] sm:$0xff] }
 0x352   : > { %v2950_v49 = vsub.f32 %v6988_v42, %v2902_v44  ;;  %v3575_v46 = vadd.f32 %v3574_v4, %v7079_v6  ;;  %v7750_v42 = vld [vmem:[#allocation67_spill] sm:$0xff]  ;;  %v3230_v26 = vmul.f32 %v3178_v12, %v3076_v5  ;;  %v2666_v3 = vadd.f32 %v2448_v41, %v7108_v48 }
 0x353   : > { %v4601_v0 = vpop.eup %4600  ;;  %v3326_v18 = vmax.f32 %v3294_v1, 1e-20  ;;  %v3181_v59 = vpop.f32.mrf.mxu1  ;;  %v1068_v6 = vsub.f32 %v7167_v17, %v7750_v42  ;;  %v2417_v56 = vmul.f32 0.5, %v4599_v16  ;;  %v2355_v2 = vmul.f32 0.5, %v2323_v22 }
 0x354   : > { %v4603_v43 = vpop.eup %4602  ;;  %v2982_v61 = vmul.f32 0.5, %v2950_v49  ;;  %v3666_v58 = vadd.f32 %v7062_v8, %v3575_v46  ;;  %v3389_v20 = vmul.f32 %v4601_v0, %v3261_v51  ;;  %v2633_v44 = vadd.f32 %v2601_v35, %v2004_v36  ;;  %v4703_v49 = vld [vmem:[%s5090_s28 + $0xd8] sm:$0xff]  ;;  %v7753_v0 = vld [vmem:[#allocation127_spill] sm:$0xff] }
 0x355   : > { %4610 = vrcp.f32 %v3326_v18  ;;  %v3045_v54 = vmul.f32 0.5, %v4603_v43  ;;  %v4605_v34 = vpop.eup %4604  ;;  %v7190_v4 = vadd.f32 %v7143_v55, %v7140_v47  ;;  %v7194_v30 = vmul.f32 %v7752_v29, %v7169_v52  ;;  %v7754_v18 = vld [vmem:[#allocation89_spill] sm:$0xff] }
 0x356   : > { %4612 = vtanh.f32 %v2982_v61  ;;  %v3698_v11 = vmax.f32 %v3666_v58, 0.0  ;;  %3624 = vmatmul.f32.gmra.mxu3 %v3389_v20  ;;  %v4607_v9 = vpop.eup %4606  ;;  %v7196_v14 = vadd.f32 0.5, %v1790_v45  ;;  %v1100_v12 = vmul.f32 0.5, %v1068_v6  ;;  %v7204_v45 = vpop.f32.mrf.mxu2  ;;  %v7755_v6 = vld [vmem:[#allocation94_spill] sm:$0xff] }
 0x357   : > { %v3077_v1 = vadd.f32 0.5, %v3045_v54  ;;  %v1163_v5 = vmul.f32 0.5, %v4605_v34  ;;  %v1728_v38 = vmul.f32 0.5, %v1696_v40  ;;  %v4609_v46 = vpop.eup %4608  ;;  %v1973_v47 = vmul.f32 %v7753_v0, %v7057_v33  ;;  %v4704_v0 = vld [vmem:[%s5090_s28 + $0xe0] sm:$0xff] }
 0x358   : > { %3730 = vst [vmem:[%s7090_s24 + $0x20] sm:$0xff] %v3698_v11  ;;  %v3262_v10 = vadd.f32 %v3230_v26, %v2633_v44  ;;  %v2602_v43 = vmul.f32 %v7754_v18, %v2448_v41  ;;  %v2449_v61 = vadd.f32 0.5, %v2417_v56  ;;  %4614 = vtanh.f32 %v2355_v2 }
 0x359   : > { %v3295_v51 = vadd.f32 %v3077_v1, %v2666_v3  ;;  %v2905_v48 = vpop.f32.mrf.mxu0  ;;  %v3577_v16 = vpop.f32.mrf.mxu3  ;;  %3529 = vmatmul.f32.gmra.mxu2 %v4703_v49  ;;  %v2324_v57 = vsub.f32 %v7117_v60, %v7755_v6  ;;  %v1791_v34 = vmul.f32 0.5, %v4607_v9  ;;  %v2005_v36 = vadd.f32 %v1973_v47, %v7055_v25  ;;  %v7757_v25 = vld [vmem:[#allocation71_spill] sm:$0xff] }
 0x35a   : > { %v2951_v35 = vsub.f32 %v7027_v62, %v2905_v48  ;;  %v3578_v50 = vadd.f32 %v3577_v16, %v7100_v37  ;;  %v7756_v62 = vld [vmem:[#allocation96_spill] sm:$0xff]  ;;  %v3231_v26 = vmul.f32 %v3181_v59, %v3077_v1  ;;  %v7217_v3 = vadd.f32 %v7196_v14, %v7169_v52 }
 0x35b   : > { %v4611_v22 = vpop.eup %4610  ;;  %v3327_v58 = vmax.f32 %v3295_v51, 1e-20  ;;  %v3184_v20 = vpop.f32.mrf.mxu1  ;;  %v7212_v37 = vadd.f32 %v6920_v15, %v7756_v62  ;;  %v2667_v56 = vadd.f32 %v2449_v61, %v7138_v23  ;;  %v2418_v2 = vmul.f32 0.5, %v4609_v46  ;;  %v7758_v23 = vld [vmem:[#allocation130_spill] sm:$0xff] }
 0x35c   : > { %v4613_v42 = vpop.eup %4612  ;;  %v2983_v40 = vmul.f32 0.5, %v2951_v35  ;;  %v3667_v33 = vadd.f32 %v7062_v8, %v3578_v50  ;;  %v3390_v54 = vmul.f32 %v4611_v22, %v3262_v10  ;;  %v2634_v29 = vadd.f32 %v2602_v43, %v2005_v36  ;;  %v7759_v50 = vld [vmem:[#allocation22_spill] sm:$0xff] }
 0x35d   : > { %4616 = vrcp.f32 %v3327_v58  ;;  %v3046_v41 = vmul.f32 0.5, %v4613_v42  ;;  %v1195_v9 = vadd.f32 0.5, %v1163_v5  ;;  %v2356_v51 = vmul.f32 0.5, %v2324_v57 }
 0x35e   : > { %4618 = vtanh.f32 %v2983_v40  ;;  %v3699_v11 = vmax.f32 %v3667_v33, 0.0  ;;  %3627 = vmatmul.f32.gmra.mxu3 %v3390_v54  ;;  %v4615_v48 = vpop.eup %4614  ;;  %v1069_v59 = vsub.f32 %v7212_v37, %v7757_v25  ;;  %v7223_v1 = vadd.f32 0.5, %v1791_v34  ;;  %v7230_v10 = vpop.f32.mrf.mxu2  ;;  %v7761_v40 = vld [vmem:[#allocation80_spill] sm:$0xff] }
 0x35f   : > { %v3078_v44 = vadd.f32 0.5, %v3046_v41  ;;  %4620 = vtanh.f32 %v1100_v12  ;;  %v1974_v46 = vmul.f32 %v7758_v23, %v7112_v53  ;;  %v3263_v47 = vadd.f32 %v3231_v26, %v2634_v29  ;;  %v7762_v29 = vld [vmem:[#allocation66_spill] sm:$0xff] }
 0x360   : > { %3731 = vst [vmem:[%s7090_s24 + $0x28] sm:$0xff] %v3699_v11  ;;  %4622 = vtanh.f32 %v1728_v38  ;;  %v2603_v22 = vmul.f32 %v7759_v50, %v2449_v61  ;;  %v2450_v18 = vadd.f32 0.5, %v2418_v2  ;;  %v2325_v38 = vsub.f32 %v7167_v17, %v6782_v13 }
 0x361   : > { %v3296_v16 = vadd.f32 %v3078_v44, %v2667_v56  ;;  %v2908_v52 = vpop.f32.mrf.mxu0  ;;  %v3580_v49 = vpop.f32.mrf.mxu3  ;;  %3532 = vmatmul.f32.gmra.mxu2 %v4704_v0  ;;  %4624 = vtanh.f32 %v2356_v51  ;;  %v1697_v33 = vsub.f32 %v7212_v37, %v7761_v40  ;;  %v2006_v13 = vadd.f32 %v1974_v46, %v7135_v31  ;;  %v7763_v31 = vld [vmem:[#allocation75_spill] sm:$0xff] }
 0x362   : > { %v2952_v5 = vsub.f32 %v7066_v28, %v2908_v52  ;;  %v3581_v12 = vadd.f32 %v3580_v49, %v7124_v19  ;;  %v7760_v28 = vld [vmem:[#allocation97_spill] sm:$0xff]  ;;  %v3232_v62 = vmul.f32 %v3184_v20, %v3078_v44  ;;  %v2668_v36 = vadd.f32 %v2450_v18, %v7190_v4 }
 0x363   : > { %v4617_v35 = vpop.eup %4616  ;;  %v3328_v43 = vmax.f32 %v3296_v16, 1e-20  ;;  %v3187_v58 = vpop.f32.mrf.mxu1  ;;  %v7238_v19 = vadd.f32 %v6920_v15, %v7760_v28  ;;  %v2419_v26 = vmul.f32 0.5, %v4615_v48  ;;  %v2357_v15 = vmul.f32 0.5, %v2325_v38  ;;  %v4705_v48 = vld [vmem:[%s5090_s28 + $0xe8] sm:$0xff]  ;;  %v7766_v28 = vld [vmem:[#allocation83_spill] sm:$0xff] }
 0x364   : > { %v4619_v42 = vpop.eup %4618  ;;  %v2984_v6 = vmul.f32 0.5, %v2952_v5  ;;  %v3668_v53 = vadd.f32 %v7062_v8, %v3581_v12  ;;  %v3391_v57 = vmul.f32 %v4617_v35, %v3263_v47  ;;  %v1101_v56 = vmul.f32 0.5, %v1069_v59  ;;  %v7764_v59 = vld [vmem:[#allocation133_spill] sm:$0xff] }
 0x365   : > { %4626 = vrcp.f32 %v3328_v43  ;;  %v3047_v61 = vmul.f32 0.5, %v4619_v42  ;;  %v4621_v54 = vpop.eup %4620  ;;  %v2635_v2 = vadd.f32 %v2603_v22, %v2006_v13  ;;  %v7245_v51 = vmul.f32 %v7762_v29, %v1195_v9  ;;  %v7765_v42 = vld [vmem:[#allocation18_spill] sm:$0xff]  ;;  %v4706_v29 = vld [vmem:[%s5090_s28 + $0xf0] sm:$0xff] }
 0x366   : > { %4628 = vtanh.f32 %v2984_v6  ;;  %v3700_v34 = vmax.f32 %v3668_v53, 0.0  ;;  %3630 = vmatmul.f32.gmra.mxu3 %v3391_v57  ;;  %v4623_v41 = vpop.eup %4622  ;;  %v7248_v25 = vadd.f32 %v7223_v1, %v1195_v9  ;;  %v1070_v20 = vsub.f32 %v7238_v19, %v7763_v31  ;;  %v7258_v5 = vpop.f32.mrf.mxu2 }
 0x367   : > { %v3079_v11 = vadd.f32 0.5, %v3047_v61  ;;  %v1164_v44 = vmul.f32 0.5, %v4621_v54  ;;  %v1729_v16 = vmul.f32 0.5, %v1697_v33  ;;  %v4625_v0 = vpop.eup %4624  ;;  %v1975_v23 = vmul.f32 %v7764_v59, %v7143_v55 }
 0x368   : > { %3732 = vst [vmem:[%s7090_s24 + $0x30] sm:$0xff] %v3700_v34  ;;  %v3264_v46 = vadd.f32 %v3232_v62, %v2635_v2  ;;  %v2604_v35 = vmul.f32 %v6790_v39, %v2450_v18  ;;  %v2451_v50 = vadd.f32 0.5, %v2419_v26  ;;  %4630 = vtanh.f32 %v2357_v15 }
 0x369   : > { %v3297_v52 = vadd.f32 %v3079_v11, %v2668_v36  ;;  %v2911_v49 = vpop.f32.mrf.mxu0  ;;  %v3583_v4 = vpop.f32.mrf.mxu3  ;;  %3535 = vmatmul.f32.gmra.mxu2 %v4705_v48  ;;  %v2326_v6 = vsub.f32 %v7212_v37, %v7765_v42  ;;  %v2007_v39 = vadd.f32 %v1975_v23, %v7162_v32  ;;  %v3233_v18 = vmul.f32 %v3187_v58, %v3079_v11  ;;  %v7769_v48 = vld [vmem:[#allocation25_spill] sm:$0xff] }
 0x36a   : > { %v2953_v47 = vsub.f32 %v7117_v60, %v2911_v49  ;;  %v3584_v9 = vadd.f32 %v3583_v4, %v7152_v63  ;;  %v1102_v60 = vmul.f32 0.5, %v1070_v20  ;;  %v1698_v63 = vsub.f32 %v7238_v19, %v7766_v28 }
 0x36b   : > { %v4627_v12 = vpop.eup %4626  ;;  %v3329_v22 = vmax.f32 %v3297_v52, 1e-20  ;;  %v3190_v38 = vpop.f32.mrf.mxu1  ;;  %v2669_v61 = vadd.f32 %v2451_v50, %v7217_v3  ;;  %v2420_v54 = vmul.f32 0.5, %v4625_v0  ;;  %v2636_v62 = vadd.f32 %v2604_v35, %v2007_v39  ;;  %v7767_v3 = vld [vmem:[#allocation136_spill] sm:$0xff] }
 0x36c   : > { %v4629_v43 = vpop.eup %4628  ;;  %v2985_v53 = vmul.f32 0.5, %v2953_v47  ;;  %v3669_v55 = vadd.f32 %v7062_v8, %v3584_v9  ;;  %v3392_v57 = vmul.f32 %v4627_v12, %v3264_v46  ;;  %v1792_v34 = vmul.f32 0.5, %v4623_v41  ;;  %v7770_v12 = vld [vmem:[#allocation101_spill] sm:$0xff] }
 0x36d   : > { %4632 = vrcp.f32 %v3329_v22  ;;  %v3048_v40 = vmul.f32 0.5, %v4629_v43  ;;  %v2358_v36 = vmul.f32 0.5, %v2326_v6  ;;  %v7269_v15 = vadd.f32 0.5, %v1164_v44  ;;  %v7768_v44 = vld [vmem:[#allocation91_spill] sm:$0xff] }
 0x36e   : > { %4634 = vtanh.f32 %v2985_v53  ;;  %v3701_v33 = vmax.f32 %v3669_v55, 0.0  ;;  %3633 = vmatmul.f32.gmra.mxu3 %v3392_v57  ;;  %v4631_v26 = vpop.eup %4630  ;;  %v1730_v32 = vmul.f32 0.5, %v1698_v63  ;;  %v3265_v31 = vadd.f32 %v3233_v18, %v2636_v62 }
 0x36f   : > { %4636 = vtanh.f32 %v1101_v56  ;;  %v3080_v13 = vadd.f32 0.5, %v3048_v40  ;;  %v1976_v56 = vmul.f32 %v7767_v3, %v7196_v14  ;;  %v2605_v49 = vmul.f32 %v7768_v44, %v2451_v50  ;;  %v7771_v40 = vld [vmem:[#allocation70_spill] sm:$0xff] }
 0x370   : > { %4638 = vtanh.f32 %v1729_v16  ;;  %3733 = vst [vmem:[%s7090_s24 + $0x38] sm:$0xff] %v3701_v33  ;;  %v7276_v16 = vpop.f32.mrf.mxu2  ;;  %v2452_v4 = vadd.f32 0.5, %v2420_v54  ;;  %v2327_v0 = vsub.f32 %v7238_v19, %v7769_v48  ;;  %v7288_v50 = vadd.f32 0.5, %v1792_v34  ;;  %v7773_v54 = vld [vmem:[#allocation85_spill] sm:$0xff] }
 0x371   : > { %4640 = vtanh.f32 %v1102_v60  ;;  %v3298_v58 = vadd.f32 %v3080_v13, %v2669_v61  ;;  %v2914_v11 = vpop.f32.mrf.mxu0  ;;  %v3586_v2 = vpop.f32.mrf.mxu3  ;;  %3538 = vmatmul.f32.gmra.mxu2 %v4706_v29  ;;  %v2008_v42 = vadd.f32 %v1976_v56, %v7194_v30  ;;  %v3234_v6 = vmul.f32 %v3190_v38, %v3080_v13  ;;  %v7772_v30 = vld [vmem:[#allocation79_spill] sm:$0xff] }
 0x372   : > { %v2954_v20 = vsub.f32 %v7167_v17, %v2914_v11  ;;  %v3587_v41 = vadd.f32 %v3586_v2, %v7176_v24  ;;  %4642 = vtanh.f32 %v2358_v36  ;;  %v4707_v24 = vld [vmem:[%s7438_s5] ss:$0 sm:$0xff]  ;;  %v2670_v57 = vadd.f32 %v2452_v4, %v7248_v25  ;;  %v4708_v36 = vld [vmem:[%s5090_s28 + $0xf8] sm:$0xff]  ;;  %s4726_s28 = scalar_lea.hbm %s4725_s27, 256 }
 0x373   : > { %v4633_v52 = vpop.eup %4632  ;;  %v3330_v59 = vmax.f32 %v3298_v58, 1e-20  ;;  %v3193_v23 = vpop.f32.mrf.mxu1  ;;  %v7286_v35 = vadd.f32 %v4707_v24, %v7770_v12  ;;  %v2421_v60 = vmul.f32 0.5, %v4631_v26  ;;  %v2359_v28 = vmul.f32 0.5, %v2327_v0  ;;  %v7774_v58 = vld [vmem:[#allocation137_spill] sm:$0xff]  ;;  %p4727_p0 = scmp.ne.s32.totalorder %s4725_s27, %s4726_s28  ;;  %p4732_p4 = scmp.lt.s32.totalorder %s4730_s16, %s4726_s28 }
 0x374   : > { %v4635_v46 = vpop.eup %4634  ;;  %v2986_v47 = vmul.f32 0.5, %v2954_v20  ;;  %v3670_v14 = vadd.f32 %v7062_v8, %v3587_v41  ;;  %v3393_v9 = vmul.f32 %v4633_v52, %v3265_v31  ;;  %v7294_v39 = vmul.f32 %v7771_v40, %v7269_v15  ;;  %v7775_v31 = vld [vmem:[#allocation53_spill] sm:$0xff] }
 0x375   : > { %v4637_v17 = vpop.eup %4636  ;;  %4644 = vrcp.f32 %v3330_v59  ;;  %v3049_v22 = vmul.f32 0.5, %v4635_v46  ;;  %v2637_v18 = vadd.f32 %v2605_v49, %v2008_v42  ;;  %v1071_v38 = vsub.f32 %v7286_v35, %v7772_v30  ;;  %p4728_p1 = pnand %p4727_p0, %p4888_p8  ;;  %p4733_p5 = por %p4732_p4, %p4731_p3 }
 0x376   : > { %v4639_v43 = vpop.eup %4638  ;;  %4646 = vtanh.f32 %v2986_v47  ;;  %v3702_v53 = vmax.f32 %v3670_v14, 0.0  ;;  %3636 = vmatmul.f32.gmra.mxu3 %v3393_v9  ;;  %v1165_v33 = vmul.f32 0.5, %v4637_v17  ;;  %v1699_v13 = vsub.f32 %v7286_v35, %v7773_v54 }
 0x377   : > { %v4641_v55 = vpop.eup %4640  ;;  %v3081_v63 = vadd.f32 0.5, %v3049_v22  ;;  %4648 = vtanh.f32 %v1730_v32  ;;  %v1793_v61 = vmul.f32 0.5, %v4639_v43  ;;  %v1977_v11 = vmul.f32 %v7774_v58, %v7223_v1  ;;  %p4729_p2 = pneg %p4728_p1 }
 0x378   : > { %3734 = vst [vmem:[%s7090_s24 + $0x40] sm:$0xff] %v3702_v53  ;;  %v4643_v26 = vpop.eup %4642  ;;  %v3266_v2 = vadd.f32 %v3234_v6, %v2637_v18  ;;  %v7306_v3 = vpop.f32.mrf.mxu2  ;;  %v2606_v20 = vmul.f32 %v7775_v31, %v2452_v4  ;;  %v2453_v41 = vadd.f32 0.5, %v2421_v60  ;;  %4650 = vtanh.f32 %v2359_v28 }
 0x379   : > { %v3299_v62 = vadd.f32 %v3081_v63, %v2670_v57  ;;  %v2917_v25 = vpop.f32.mrf.mxu0  ;;  %v3589_v34 = vpop.f32.mrf.mxu3  ;;  %3541 = vmatmul.f32.gmra.mxu2 %v4708_v36  ;;  %v2328_v49 = vsub.f32 %v7286_v35, %v6928_v21  ;;  %v1103_v59 = vmul.f32 0.5, %v1071_v38  ;;  %v2009_v47 = vadd.f32 %v1977_v11, %v7245_v51  ;;  %p4734_p6 = pnand %p4733_p5, %p4729_p2 }
 0x37a   : > { %v2955_v32 = vsub.f32 %v7212_v37, %v2917_v25  ;;  %v3590_v29 = vadd.f32 %v3589_v34, %v7204_v45  ;;  %v2042_v45 = vadd.f32 %v7288_v50, %v7269_v15  ;;  %v3235_v14 = vmul.f32 %v3193_v23, %v3081_v63  ;;  %v7776_v23 = vld [vmem:[#allocation140_spill] sm:$0xff] }
 0x37b   : > { %v4645_v56 = vpop.eup %4644  ;;  %v3331_v52 = vmax.f32 %v3299_v62, 1e-20  ;;  %v3196_v46 = vpop.f32.mrf.mxu1  ;;  %v1731_v17 = vmul.f32 0.5, %v1699_v13  ;;  %v2422_v24 = vmul.f32 0.5, %v4643_v26  ;;  %v1197_v22 = vadd.f32 0.5, %v1165_v33 }
 0x37c   : > { %v4647_v44 = vpop.eup %4646  ;;  %v2987_v48 = vmul.f32 0.5, %v2955_v32  ;;  %v3671_v1 = vadd.f32 %v7062_v8, %v3590_v29  ;;  %v3394_v0 = vmul.f32 %v4645_v56, %v3266_v2  ;;  %v2671_v21 = vadd.f32 %v2453_v41, %v2042_v45 }
 0x37d   : > { %4652 = vrcp.f32 %v3331_v52  ;;  %v3050_v37 = vmul.f32 0.5, %v4647_v44  ;;  %v4649_v4 = vpop.eup %4648  ;;  %v1825_v43 = vadd.f32 0.5, %v1793_v61  ;;  %v2638_v42 = vadd.f32 %v2606_v20, %v2009_v47 }
 0x37e   : > { %4654 = vtanh.f32 %v2987_v48  ;;  %v3703_v9 = vmax.f32 %v3671_v1, 0.0  ;;  %3639 = vmatmul.f32.gmra.mxu3 %v3394_v0  ;;  %v2360_v6 = vmul.f32 0.5, %v2328_v49  ;;  %v4651_v15 = vpop.eup %4650  ;;  %v1166_v53 = vmul.f32 0.5, %v4641_v55  ;;  %v7777_v48 = vld [vmem:[#allocation143_spill] sm:$0xff] }
 0x37f   : > { %v3082_v12 = vadd.f32 0.5, %v3050_v37  ;;  %v1794_v57 = vmul.f32 0.5, %v4649_v4  ;;  %4656 = vtanh.f32 %v1103_v59  ;;  %v1978_v63 = vmul.f32 %v7776_v23, %v7288_v50 }
 0x380   : > { %3735 = vst [vmem:[%s7090_s24 + $0x48] sm:$0xff] %v3703_v9  ;;  %v3267_v40 = vadd.f32 %v3235_v14, %v2638_v42  ;;  %v7320_v33 = vpop.f32.mrf.mxu2  ;;  %v2607_v61 = vmul.f32 %v6932_v27, %v2453_v41  ;;  %4658 = vtanh.f32 %v1731_v17  ;;  %v2454_v55 = vadd.f32 0.5, %v2422_v24  ;;  %v7779_v17 = vld [vmem:[#allocation122_spill] sm:$0xff] }
 0x381   : > { %v3300_v60 = vadd.f32 %v3082_v12, %v2671_v21  ;;  %v2920_v28 = vpop.f32.mrf.mxu0  ;;  %v3592_v51 = vpop.f32.mrf.mxu3  ;;  %4660 = vtanh.f32 %v2360_v6  ;;  %v2043_v50 = vadd.f32 %v1825_v43, %v1197_v22  ;;  %v7324_v36 = vadd.f32 0.5, %v1166_v53 }
 0x382   : > { %v2956_v18 = vsub.f32 %v7238_v19, %v2920_v28  ;;  %v3593_v30 = vadd.f32 %v3592_v51, %v7230_v10  ;;  %v2010_v19 = vadd.f32 %v1978_v63, %v7294_v39  ;;  %v3236_v26 = vmul.f32 %v3196_v46, %v3082_v12  ;;  %v7778_v46 = vld [vmem:[#allocation74_spill] sm:$0xff] }
 0x383   : > { %v4653_v38 = vpop.eup %4652  ;;  %v3332_v54 = vmax.f32 %v3300_v60, 1e-20  ;;  %v1826_v11 = vadd.f32 0.5, %v1794_v57  ;;  %v2672_v2 = vadd.f32 %v2454_v55, %v2043_v50  ;;  %v2423_v32 = vmul.f32 0.5, %v4651_v15  ;;  %v3199_v56 = vpop.f32.mrf.mxu1  ;;  %v7781_v50 = vld [vmem:[#allocation78_spill] sm:$0xff] }
 0x384   : > { %v4655_v13 = vpop.eup %4654  ;;  %v2988_v62 = vmul.f32 0.5, %v2956_v18  ;;  %v3672_v25 = vadd.f32 %v7062_v8, %v3593_v30  ;;  %v3395_v34 = vmul.f32 %v4653_v38, %v3267_v40  ;;  %v2639_v31 = vadd.f32 %v2607_v61, %v2010_v19  ;;  %v7780_v30 = vld [vmem:[#allocation147_spill] sm:$0xff]  ;;  %v7782_v19 = vld [vmem:[#allocation92_spill] sm:$0xff] }
 0x385   : > { %4662 = vrcp.f32 %v3332_v54  ;;  %v3051_v10 = vmul.f32 0.5, %v4655_v13  ;;  %v4657_v58 = vpop.eup %4656  ;;  %v1979_v1 = vmul.f32 %v7777_v48, %v1825_v43  ;;  %v1350_v4 = vmul.f32 %v7778_v46, %v1197_v22  ;;  %v7784_v46 = vld [vmem:[#allocation82_spill] sm:$0xff] }
 0x386   : > { %4664 = vtanh.f32 %v2988_v62  ;;  %v3704_v27 = vmax.f32 %v3672_v25, 0.0  ;;  %3642 = vmatmul.f32.gmra.mxu3 %v3395_v34  ;;  %v4659_v20 = vpop.eup %4658  ;;  %v3268_v39 = vadd.f32 %v3236_v26, %v2639_v31  ;;  %v2044_v47 = vadd.f32 %v1826_v11, %v7324_v36 }
 0x387   : > { %v3083_v29 = vadd.f32 0.5, %v3051_v10  ;;  %v4661_v49 = vpop.eup %4660  ;;  %v2455_v14 = vadd.f32 0.5, %v2423_v32  ;;  %v2608_v24 = vmul.f32 %v7779_v17, %v2454_v55  ;;  %v1795_v6 = vmul.f32 0.5, %v4659_v20 }
 0x388   : > { %3736 = vst [vmem:[%s7090_s24 + $0x50] sm:$0xff] %v3704_v27  ;;  %v7331_v45 = vpop.f32.mrf.mxu2  ;;  %v2011_v15 = vadd.f32 %v1979_v1, %v1350_v4  ;;  %v2424_v60 = vmul.f32 0.5, %v4661_v49  ;;  %v1980_v38 = vmul.f32 %v7780_v30, %v1826_v11  ;;  %v1351_v10 = vmul.f32 %v7781_v50, %v7324_v36  ;;  %v7346_v27 = vld [vmem:[%s7441_s8] ss:$0 sm:$0xff] }
 0x389   : > { %v3301_v41 = vadd.f32 %v3083_v29, %v2672_v2  ;;  %v2923_v52 = vpop.f32.mrf.mxu0  ;;  %v3595_v44 = vpop.f32.mrf.mxu3  ;;  %v3237_v53 = vmul.f32 %v3199_v56, %v3083_v29  ;;  %v2673_v57 = vadd.f32 %v2455_v14, %v2044_v47  ;;  %v1827_v63 = vadd.f32 0.5, %v1795_v6 }
 0x38a   : > { %v2957_v0 = vsub.f32 %v7286_v35, %v2923_v52  ;;  %v3596_v59 = vadd.f32 %v3595_v44, %v7258_v5  ;;  %v1167_v35 = vmul.f32 0.5, %v4657_v58  ;;  %v2640_v51 = vadd.f32 %v2608_v24, %v2011_v15  ;;  %v7783_v44 = vld [vmem:[#allocation151_spill] sm:$0xff] }
 0x38b   : > { %v4663_v37 = vpop.eup %4662  ;;  %v3333_v9 = vmax.f32 %v3301_v41, 1e-20  ;;  %v3202_v40 = vpop.f32.mrf.mxu1  ;;  %v2456_v62 = vadd.f32 0.5, %v2424_v60  ;;  %v2609_v26 = vmul.f32 %v7782_v19, %v2455_v14  ;;  %v2012_v32 = vadd.f32 %v1980_v38, %v1351_v10 }
 0x38c   : > { %v4665_v21 = vpop.eup %4664  ;;  %v2989_v12 = vmul.f32 0.5, %v2957_v0  ;;  %v3673_v43 = vadd.f32 %v7062_v8, %v3596_v59  ;;  %v3396_v42 = vmul.f32 %v4663_v37, %v3268_v39  ;;  %v1199_v23 = vadd.f32 0.5, %v1167_v35 }
 0x38d   : > { %4666 = vrcp.f32 %v3333_v9  ;;  %v3052_v5 = vmul.f32 0.5, %v4665_v21  ;;  %v3269_v61 = vadd.f32 %v3237_v53, %v2640_v51  ;;  %v2641_v36 = vadd.f32 %v2609_v26, %v2012_v32 }
 0x38e   : > { %4668 = vtanh.f32 %v2989_v12  ;;  %v3705_v22 = vmax.f32 %v3673_v43, 0.0  ;;  %3645 = vmatmul.f32.gmra.mxu3 %v3396_v42  ;;  %v1981_v49 = vmul.f32 %v7783_v44, %v1827_v63  ;;  %v1352_v4 = vmul.f32 %v7784_v46, %v1199_v23 }
 0x38f   : > { %v3084_v28 = vadd.f32 0.5, %v3052_v5  ;;  %v2610_v47 = vmul.f32 %v7029_v7, %v2456_v62 }
 0x390   : > { %3737 = vst [vmem:[%s7090_s24 + $0x58] sm:$0xff] %v3705_v22  ;;  %v3497_v54 = vpop.f32.mrf.mxu2  ;;  %v2013_v21 = vadd.f32 %v1981_v49, %v1352_v4 }
 0x391   : > { %v3302_v18 = vadd.f32 %v3084_v28, %v2673_v57  ;;  %v3598_v8 = vpop.f32.mrf.mxu3  ;;  %v3238_v29 = vmul.f32 %v3202_v40, %v3084_v28 }
 0x392   : > { %v3599_v55 = vadd.f32 %v3598_v8, %v7276_v16  ;;  %v2045_v16 = vadd.f32 %v1827_v63, %v1199_v23  ;;  %v2642_v12 = vadd.f32 %v2610_v47, %v2013_v21 }
 0x393   : > { %v4667_v13 = vpop.eup %4666  ;;  %v3334_v25 = vmax.f32 %v3302_v18, 1e-20  ;;  %v3270_v48 = vadd.f32 %v3238_v29, %v2641_v36  ;;  %v3205_v0 = vpop.f32.mrf.mxu1 }
 0x394   : > { %v4669_v34 = vpop.eup %4668  ;;  %v3674_v58 = vadd.f32 %v7346_v27, %v3599_v55  ;;  %v3397_v11 = vmul.f32 %v4667_v13, %v3269_v61  ;;  %v2674_v31 = vadd.f32 %v2456_v62, %v2045_v16 }
 0x395   : > { %4670 = vrcp.f32 %v3334_v25  ;;  %v3053_v2 = vmul.f32 0.5, %v4669_v34 }
 0x396   : > { %v3706_v56 = vmax.f32 %v3674_v58, 0.0  ;;  %3648 = vmatmul.f32.gmra.mxu3 %v3397_v11 }
 0x397   : > { %v3085_v20 = vadd.f32 0.5, %v3053_v2 }
 0x398   : > { %3738 = vst [vmem:[%s7090_s24 + $0x60] sm:$0xff] %v3706_v56  ;;  %v3500_v37 = vpop.f32.mrf.mxu2 }
 0x399   : > { %v3303_v41 = vadd.f32 %v3085_v20, %v2674_v31  ;;  %v3601_v52 = vpop.f32.mrf.mxu3  ;;  %v3239_v17 = vmul.f32 %v3205_v0, %v3085_v20 }
 0x39a   : > { %v3602_v1 = vadd.f32 %v3601_v52, %v7306_v3 }
 0x39b   : > { %v4671_v39 = vpop.eup %4670  ;;  %v3335_v59 = vmax.f32 %v3303_v41, 1e-20  ;;  %v3271_v43 = vadd.f32 %v3239_v17, %v2642_v12 }
 0x39c   : > { %v3675_v14 = vadd.f32 %v7346_v27, %v3602_v1  ;;  %v3398_v9 = vmul.f32 %v4671_v39, %v3270_v48 }
 0x39d   : > { %4672 = vrcp.f32 %v3335_v59 }
 0x39e   : > { %v3707_v24 = vmax.f32 %v3675_v14, 0.0  ;;  %3651 = vmatmul.f32.gmra.mxu3 %v3398_v9 }
 0x3a0   : > { %3739 = vst [vmem:[%s7090_s24 + $0x68] sm:$0xff] %v3707_v24  ;;  %v3503_v5 = vpop.f32.mrf.mxu2 }
 0x3a1   : > { %v3604_v3 = vpop.f32.mrf.mxu3 }
 0x3a2   : > { %v3605_v42 = vadd.f32 %v3604_v3, %v7320_v33 }
 0x3a3   : > { %v4673_v35 = vpop.eup %4672 }
 0x3a4   : > { %v3676_v6 = vadd.f32 %v7346_v27, %v3605_v42  ;;  %v3399_v7 = vmul.f32 %v4673_v35, %v3271_v43 }
 0x3a6   : > { %v3708_v15 = vmax.f32 %v3676_v6, 0.0  ;;  %3654 = vmatmul.f32.gmra.mxu3 %v3399_v7 }
 0x3a8   : > { %3740 = vst [vmem:[%s7090_s24 + $0x70] sm:$0xff] %v3708_v15  ;;  %v3506_v28 = vpop.f32.mrf.mxu2 }
 0x3a9   : > { %v3607_v53 = vpop.f32.mrf.mxu3 }
 0x3aa   : > { %v3608_v22 = vadd.f32 %v3607_v53, %v7331_v45 }
 0x3ac   : > { %v3677_v57 = vadd.f32 %v7346_v27, %v3608_v22 }
 0x3ae   : > { %v3709_v60 = vmax.f32 %v3677_v57, 0.0 }
 0x3b0   : > { %3741 = vst [vmem:[%s7090_s24 + $0x78] sm:$0xff] %v3709_v60  ;;  %v3509_v18 = vpop.f32.mrf.mxu2 }
 0x3b1   : > { %v3610_v51 = vpop.f32.mrf.mxu3 }
 0x3b2   : > { %v3611_v33 = vadd.f32 %v3610_v51, %v3497_v54 }
 0x3b4   : > { %v3678_v23 = vadd.f32 %v7346_v27, %v3611_v33 }
 0x3b6   : > { %v3710_v63 = vmax.f32 %v3678_v23, 0.0 }
 0x3b8   : > { %3742 = vst [vmem:[%s7090_s24 + $0x80] sm:$0xff] %v3710_v63  ;;  %v3512_v55 = vpop.f32.mrf.mxu2 }
 0x3b9   : > { %v3613_v40 = vpop.f32.mrf.mxu3 }
 0x3ba   : > { %v3614_v8 = vadd.f32 %v3613_v40, %v3500_v37 }
 0x3bc   : > { %v3679_v30 = vadd.f32 %v7346_v27, %v3614_v8 }
 0x3be   : > { %v3711_v38 = vmax.f32 %v3679_v30, 0.0 }
 0x3c0   : > { %3743 = vst [vmem:[%s7090_s24 + $0x88] sm:$0xff] %v3711_v38  ;;  %v3515_v50 = vpop.f32.mrf.mxu2 }
 0x3c1   : > { %v3616_v45 = vpop.f32.mrf.mxu3 }
 0x3c2   : > { %v3617_v61 = vadd.f32 %v3616_v45, %v3503_v5 }
 0x3c4   : > { %v3680_v13 = vadd.f32 %v7346_v27, %v3617_v61 }
 0x3c6   : > { %v3712_v62 = vmax.f32 %v3680_v13, 0.0 }
 0x3c8   : > { %3744 = vst [vmem:[%s7090_s24 + $0x90] sm:$0xff] %v3712_v62  ;;  %v3518_v16 = vpop.f32.mrf.mxu2 }
 0x3c9   : > { %v3619_v54 = vpop.f32.mrf.mxu3 }
 0x3ca   : > { %v3620_v25 = vadd.f32 %v3619_v54, %v3506_v28 }
 0x3cc   : > { %v3681_v34 = vadd.f32 %v7346_v27, %v3620_v25 }
 0x3ce   : > { %v3713_v10 = vmax.f32 %v3681_v34, 0.0 }
 0x3d0   : > { %3745 = vst [vmem:[%s7090_s24 + $0x98] sm:$0xff] %v3713_v10  ;;  %v3521_v20 = vpop.f32.mrf.mxu2 }
 0x3d1   : > { %v3622_v19 = vpop.f32.mrf.mxu3 }
 0x3d2   : > { %v3623_v26 = vadd.f32 %v3622_v19, %v3509_v18 }
 0x3d4   : > { %v3682_v58 = vadd.f32 %v7346_v27, %v3623_v26 }
 0x3d6   : > { %v3714_v11 = vmax.f32 %v3682_v58, 0.0 }
 0x3d8   : > { %3746 = vst [vmem:[%s7090_s24 + $0xa0] sm:$0xff] %v3714_v11  ;;  %v3524_v48 = vpop.f32.mrf.mxu2 }
 0x3d9   : > { %v3625_v2 = vpop.f32.mrf.mxu3 }
 0x3da   : > { %v3626_v32 = vadd.f32 %v3625_v2, %v3512_v55 }
 0x3dc   : > { %v3683_v29 = vadd.f32 %v7346_v27, %v3626_v32 }
 0x3de   : > { %v3715_v56 = vmax.f32 %v3683_v29, 0.0 }
 0x3e0   : > { %3747 = vst [vmem:[%s7090_s24 + $0xa8] sm:$0xff] %v3715_v56  ;;  %v3527_v46 = vpop.f32.mrf.mxu2 }
 0x3e1   : > { %v3628_v31 = vpop.f32.mrf.mxu3 }
 0x3e2   : > { %v3629_v36 = vadd.f32 %v3628_v31, %v3515_v50 }
 0x3e4   : > { %v3684_v41 = vadd.f32 %v7346_v27, %v3629_v36 }
 0x3e6   : > { %v3716_v52 = vmax.f32 %v3684_v41, 0.0 }
 0x3e8   : > { %3748 = vst [vmem:[%s7090_s24 + $0xb0] sm:$0xff] %v3716_v52  ;;  %v3530_v17 = vpop.f32.mrf.mxu2 }
 0x3e9   : > { %v3631_v44 = vpop.f32.mrf.mxu3 }
 0x3ea   : > { %v3632_v49 = vadd.f32 %v3631_v44, %v3518_v16 }
 0x3ec   : > { %v3685_v1 = vadd.f32 %v7346_v27, %v3632_v49 }
 0x3ee   : > { %v3717_v39 = vmax.f32 %v3685_v1, 0.0 }
 0x3f0   : > { %3749 = vst [vmem:[%s7090_s24 + $0xb8] sm:$0xff] %v3717_v39  ;;  %v3533_v35 = vpop.f32.mrf.mxu2 }
 0x3f1   : > { %v3634_v0 = vpop.f32.mrf.mxu3 }
 0x3f2   : > { %v3635_v59 = vadd.f32 %v3634_v0, %v3521_v20 }
 0x3f4   : > { %v3686_v37 = vadd.f32 %v7346_v27, %v3635_v59 }
 0x3f6   : > { %v3718_v4 = vmax.f32 %v3686_v37, 0.0 }
 0x3f8   : > { %3750 = vst [vmem:[%s7090_s24 + $0xc0] sm:$0xff] %v3718_v4  ;;  %v3536_v22 = vpop.f32.mrf.mxu2 }
 0x3f9   : > { %v3637_v47 = vpop.f32.mrf.mxu3 }
 0x3fa   : > { %v3638_v14 = vadd.f32 %v3637_v47, %v3524_v48 }
 0x3fc   : > { %v3687_v9 = vadd.f32 %v7346_v27, %v3638_v14 }
 0x3fe   : > { %v3719_v21 = vmax.f32 %v3687_v9, 0.0 }
 0x400   : > { %3751 = vst [vmem:[%s7090_s24 + $0xc8] sm:$0xff] %v3719_v21  ;;  %v3539_v23 = vpop.f32.mrf.mxu2 }
 0x401   : > { %v3640_v24 = vpop.f32.mrf.mxu3 }
 0x402   : > { %v3641_v12 = vadd.f32 %v3640_v24, %v3527_v46 }
 0x404   : > { %v3688_v3 = vadd.f32 %v7346_v27, %v3641_v12 }
 0x406   : > { %v3720_v43 = vmax.f32 %v3688_v3, 0.0 }
 0x408   : > { %3752 = vst [vmem:[%s7090_s24 + $0xd0] sm:$0xff] %v3720_v43  ;;  %v3542_v38 = vpop.f32.mrf.mxu2 }
 0x409   : > { %v3643_v42 = vpop.f32.mrf.mxu3 }
 0x40a   : > { %v3644_v6 = vadd.f32 %v3643_v42, %v3530_v17 }
 0x40c   : > { %v3689_v7 = vadd.f32 %v7346_v27, %v3644_v6 }
 0x40e   : > { %v3721_v5 = vmax.f32 %v3689_v7, 0.0 }
 0x410   : > { %3753 = vst [vmem:[%s7090_s24 + $0xd8] sm:$0xff] %v3721_v5 }
 0x411   : > { %v3646_v15 = vpop.f32.mrf.mxu3 }
 0x412   : > { %v3647_v53 = vadd.f32 %v3646_v15, %v3533_v35 }
 0x414   : > { %v3690_v57 = vadd.f32 %v7346_v27, %v3647_v53 }
 0x416   : > { %v3722_v60 = vmax.f32 %v3690_v57, 0.0 }
 0x418   : > { %3754 = vst [vmem:[%s7090_s24 + $0xe0] sm:$0xff] %v3722_v60 }
 0x419   : > { %v3649_v28 = vpop.f32.mrf.mxu3 }
 0x41a   : > { %v3650_v51 = vadd.f32 %v3649_v28, %v3536_v22 }
 0x41c   : > { %v3691_v33 = vadd.f32 %v7346_v27, %v3650_v51 }
 0x41e   : > { %v3723_v63 = vmax.f32 %v3691_v33, 0.0 }
 0x420   : > { %3755 = vst [vmem:[%s7090_s24 + $0xe8] sm:$0xff] %v3723_v63 }
 0x421   : > { %v3652_v40 = vpop.f32.mrf.mxu3 }
 0x422   : > { %v3653_v18 = vadd.f32 %v3652_v40, %v3539_v23 }
 0x424   : > { %v3692_v8 = vadd.f32 %v7346_v27, %v3653_v18 }
 0x426   : > { %v3724_v30 = vmax.f32 %v3692_v8, 0.0 }
 0x428   : > { %3756 = vst [vmem:[%s7090_s24 + $0xf0] sm:$0xff] %v3724_v30 }
 0x429   : > { %v3655_v45 = vpop.f32.mrf.mxu3 }
 0x42a   : > { %v3656_v61 = vadd.f32 %v3655_v45, %v3542_v38 }
 0x42c   : > { %v3693_v55 = vadd.f32 %v7346_v27, %v3656_v61 }
 0x42e   : > { %v3725_v13 = vmax.f32 %v3693_v55, 0.0 }
 0x430   : > { %3757 = vst [vmem:[%s7090_s24 + $0xf8] sm:$0xff] %v3725_v13 }
 0x431   : > { %4737 = shalt.err (!%p4734_p6)
}
 0x432   : > { %s4790_s18 = smov 128   ;;  %s4791_s24 = smov 8  }
 0x433   : > { %4295 = dma.vmem_to_hbm [thread:$0]  (%p4888_p8), %s3774_s26, 4096, %s3776_s25, %s3759_s12, %s4790_s18, %s4790_s18, %s4791_s24  }
 0x434 PF: > { %p4301_p7 = scmp.ge.s32.totalorder %s4788_s14, 2  ;;  %s3790_s29 = sand.u32 1, %s4768_s30  }
 0x435   : > { %s3791_s15 = scalar_lea.sflag [#allocation5], %s3790_s29 }
 0x436   : > { %p4298_p10 = pnand %p4301_p7, %p4892_p9 }
 0x438   : > { %p4299_p11 = pneg %p4298_p10 }
 0x43a   : > { %4763 = dma.done.wait (%p4299_p11), %s3791_s15, 4096  }
 0x43b   : > { %4765 = vsyncadd (%p4299_p11), %s3791_s15, 4294963200  ;;  %s22_s14 = sadd.s32 1, %s4788_s14   ;;  %s7785_s30 = smov %s4772_s10 }
 0x43c   : > { %p19_p12 = scmp.ge.s32.totalorder %s22_s14, 4   ;;  %s7786_s10 = smov %s4776_s11 }
 0x43d   : > { %s7787_s11 = smov %s4898_s23  ;;  %s7788_s12 = smov %s4784_s13 }
 0x43e   : > { %s7789_s13 = smov %s7791_s17  ;;  %21 = sbr.rel (!%p19_p12) target bundleno = 4 (0x4), region = 189 }
 0x443   :  { %3797 = vsyncpa [#allocation5], 1 }
 0x444   :  { %3799 = vsyncpa [#allocation5 + $0x1], 1 }

// kernel: tpu_custom_call.1
= control target key start
LH: loop header
LB: loop body
LE: loop exit
PB: predicated region body
PF: predicated region fallthrough
CT: control target
= control target key end

     0   :  { %s7587_s0 = inlined_call_operand.vmem [shape: f32[2,256,128], index: 0, kind: input, shape index: {}]   ;;  %s7588_s1 = inlined_call_operand.vmem [shape: f32[4,256,36], index: 1, kind: input, shape index: {}]   ;;  %s7589_s2 = inlined_call_operand.vmem [shape: f32[4,2,36,128], index: 2, kind: input, shape index: {}]   ;;  %s7590_s3 = inlined_call_operand.vmem [shape: f32[4,2,36,128], index: 3, kind: input, shape index: {}]   ;;  %s7591_s4 = inlined_call_operand.vmem [shape: f32[128,128], index: 4, kind: input, shape index: {}]   ;;  %s7592_s5 = inlined_call_operand.vmem [shape: f32[1,128], index: 5, kind: input, shape index: {}]   ;;  %s7593_s6 = inlined_call_operand.vmem [shape: f32[128,128], index: 6, kind: input, shape index: {}]   ;;  %s7594_s7 = inlined_call_operand.vmem [shape: f32[128,128], index: 7, kind: input, shape index: {}]   ;;  %s7595_s8 = inlined_call_operand.vmem [shape: f32[1,128], index: 8, kind: input, shape index: {}]   ;;  %s7596_s9 = inlined_call_operand.hbm [shape: f32[2,256,128], index: 9, kind: output, shape index: {}]  }
   0x1   :  { %7604 = sst [smem:[#allocation153_spill]] %s7589_s2 }
   0x2   :  { %7605 = sst [smem:[#allocation154_spill]] %s7590_s3 }
   0x3   :  { %14 = vsyncpa [#allocation5], 0 }
   0x4   :  { %16 = vsyncpa [#allocation5 + $0x1], 0  ;;  %s4905_s30 = smov 0   ;;  %s4907_s10 = smov 0  }
   0x5   :  { %s4909_s11 = smov 0   ;;  %s4911_s12 = smov 0  }
   0x6   :  { %s4913_s13 = smov 0   ;;  %s4915_s14 = smov 0  }
   0x7 LB: > { %s3930_s15 = sadd.s32 4294967295, %s4851_s14   ;;  %s3931_s16 = sadd.s32 4294967294, %s4851_s14   ;;  %s4851_s14 = sphi %s4915_s14, %s22_s14   ;;  %s4847_s13 = sphi %s4913_s13, %s7949_s13   ;;  %s4843_s12 = sphi %s4911_s12, %s7948_s12   ;;  %s4839_s11 = sphi %s4909_s11, %s7947_s11   ;;  %s4835_s10 = sphi %s4907_s10, %s7946_s10   ;;  %s4831_s30 = sphi %s4905_s30, %s7945_s30  }
   0x8   : > { %s34_s17 = sadd.s32 1, %s4847_s13  ;;  %s95_s18 = sadd.s32 1, %s4839_s11 }
   0x9   : > { %p36_p0 = scmp.ge.s32.totalorder %s34_s17, 2  ;;  %p102_p1 = scmp.ne.s32.totalorder %s4839_s11, %s4835_s10 }
   0xa   : > { %p103_p2 = scmp.eq.s32.totalorder %s4851_s14, 0  ;;  %p265_p3 = scmp.eq.s32.totalorder %s3930_s15, 1 }
   0xb   : > { %s7951_s17 = smov (%p36_p0, %s34_s17), 0  ;;  %p270_p6 = scmp.ne.s32.totalorder %s4835_s10, %s4831_s30 }
   0xc   : > { %7606 = sst [smem:[#allocation7_spill]] %s7951_s17  ;;  %p4944_p4 = por %p103_p2, %p102_p1 }
   0xd   : > { %p4948_p5 = por %p265_p3, %p102_p1  ;;  %s92_s21 = ssub.s32 %s4847_s13, %s7951_s17 }
   0xe   : > { %p93_p7 = scmp.eq.s32.totalorder %s92_s21, 0  ;;  %p271_p8 = scmp.eq.s32.totalorder %s3931_s16, 1 }
   0xf   : > { %p3934_p10 = scmp.ge.s32.totalorder %s4851_s14, 2 }
  0x10   : > { %s4957_s22 = scalar_select %p93_p7, %s4839_s11, %s95_s18  }
  0x11   : > { %p4959_p9 = por %p271_p8, %p270_p6  ;;  %311 = sbr.rel (%p3934_p10) target bundleno = 80 (0x50), region = 40 }
  0x16   : > { %327 = sbr.rel (!%p4944_p4) target bundleno = 51 (0x33), region = 48  ;;  %s329_s24 = sand.u32 (%p4944_p4), 1, %s4839_s11  }
  0x17   : > { %s4354_s25 = smul.u32 (%p4944_p4), 40, %s4847_s13  ;;  %s7610_s2 = sld [smem:[#allocation153_spill]] (%p4944_p4) }
  0x18   : > { %s4353_s26 = smul.u32 (%p4944_p4), 160, %s329_s24 }
  0x1a   : > { %s4978_s15 = scalar_lea.vmem (%p4944_p4), [#allocation2], %s4353_s26 }
  0x1d   : > { %s4973_s29 = scalar_lea.vmem %s7610_s2, %s4354_s25 }
  0x1e   : > { %v401_v0 = vld [vmem:[%s4973_s29] sm:$0xff]  ;;  %v403_v1 = vld [vmem:[%s4973_s29 + $0x8] sm:$0xff]  ;;  %v405_v2 = vld [vmem:[%s4973_s29 + $0x10] sm:$0xff] }
  0x1f   : > { %402 = vst [vmem:[%s4978_s15] sm:$0xff] %v401_v0  ;;  %v407_v3 = vld [vmem:[%s4973_s29 + $0x18] sm:$0xff]  ;;  %v409_v4 = vld [vmem:[%s4973_s29 + $0x20] sm:$0xff]  ;;  %v411_v5 = vld [vmem:[%s4973_s29 + $0x50] sm:$0xff] }
  0x20   : > { %404 = vst [vmem:[%s4978_s15 + $0x8] sm:$0xff] %v403_v1  ;;  %v413_v6 = vld [vmem:[%s4973_s29 + $0x58] sm:$0xff]  ;;  %v415_v7 = vld [vmem:[%s4973_s29 + $0x60] sm:$0xff]  ;;  %v417_v8 = vld [vmem:[%s4973_s29 + $0x68] sm:$0xff] }
  0x21   : > { %406 = vst [vmem:[%s4978_s15 + $0x10] sm:$0xff] %v405_v2  ;;  %v419_v9 = vld [vmem:[%s4973_s29 + $0x70] sm:$0xff]  ;;  %v421_v10 = vld [vmem:[%s4973_s29 + $0xa0] sm:$0xff]  ;;  %v423_v11 = vld [vmem:[%s4973_s29 + $0xa8] sm:$0xff] }
  0x22   : > { %408 = vst [vmem:[%s4978_s15 + $0x18] sm:$0xff] %v407_v3  ;;  %v425_v12 = vld [vmem:[%s4973_s29 + $0xb0] sm:$0xff]  ;;  %v427_v13 = vld [vmem:[%s4973_s29 + $0xb8] sm:$0xff]  ;;  %v429_v14 = vld [vmem:[%s4973_s29 + $0xc0] sm:$0xff] }
  0x23   : > { %410 = vst [vmem:[%s4978_s15 + $0x20] sm:$0xff] %v409_v4  ;;  %v431_v15 = vld [vmem:[%s4973_s29 + $0xf0] sm:$0xff]  ;;  %v433_v16 = vld [vmem:[%s4973_s29 + $0xf8] sm:$0xff]  ;;  %v435_v17 = vld [vmem:[%s4973_s29 + $0x100] sm:$0xff] }
  0x24   : > { %412 = vst [vmem:[%s4978_s15 + $0x28] sm:$0xff] %v411_v5  ;;  %v437_v18 = vld [vmem:[%s4973_s29 + $0x108] sm:$0xff]  ;;  %v439_v19 = vld [vmem:[%s4973_s29 + $0x110] sm:$0xff] }
  0x25   : > { %414 = vst [vmem:[%s4978_s15 + $0x30] sm:$0xff] %v413_v6 }
  0x26   : > { %416 = vst [vmem:[%s4978_s15 + $0x38] sm:$0xff] %v415_v7 }
  0x27   : > { %418 = vst [vmem:[%s4978_s15 + $0x40] sm:$0xff] %v417_v8 }
  0x28   : > { %420 = vst [vmem:[%s4978_s15 + $0x48] sm:$0xff] %v419_v9 }
  0x29   : > { %422 = vst [vmem:[%s4978_s15 + $0x50] sm:$0xff] %v421_v10 }
  0x2a   : > { %424 = vst [vmem:[%s4978_s15 + $0x58] sm:$0xff] %v423_v11 }
  0x2b   : > { %426 = vst [vmem:[%s4978_s15 + $0x60] sm:$0xff] %v425_v12 }
  0x2c   : > { %428 = vst [vmem:[%s4978_s15 + $0x68] sm:$0xff] %v427_v13 }
  0x2d   : > { %430 = vst [vmem:[%s4978_s15 + $0x70] sm:$0xff] %v429_v14 }
  0x2e   : > { %432 = vst [vmem:[%s4978_s15 + $0x78] sm:$0xff] %v431_v15 }
  0x2f   : > { %434 = vst [vmem:[%s4978_s15 + $0x80] sm:$0xff] %v433_v16 }
  0x30   : > { %436 = vst [vmem:[%s4978_s15 + $0x88] sm:$0xff] %v435_v17 }
  0x31   : > { %438 = vst [vmem:[%s4978_s15 + $0x90] sm:$0xff] %v437_v18 }
  0x32   : > { %440 = vst [vmem:[%s4978_s15 + $0x98] sm:$0xff] %v439_v19 }
  0x33 PF: > { %446 = sbr.rel (!%p4944_p4) target bundleno = 80 (0x50), region = 86  ;;  %s448_s16 = sand.u32 (%p4944_p4), 1, %s4839_s11  }
  0x34   : > { %s4356_s18 = smul.u32 (%p4944_p4), 40, %s4847_s13  ;;  %s7611_s3 = sld [smem:[#allocation154_spill]] (%p4944_p4) }
  0x35   : > { %s4355_s21 = smul.u32 (%p4944_p4), 160, %s448_s16 }
  0x37   : > { %s5029_s19 = scalar_lea.vmem (%p4944_p4), [#allocation3], %s4355_s21 }
  0x3a   : > { %s5024_s26 = scalar_lea.vmem %s7611_s3, %s4356_s18 }
  0x3b   : > { %v520_v20 = vld [vmem:[%s5024_s26] sm:$0xff]  ;;  %v522_v21 = vld [vmem:[%s5024_s26 + $0x8] sm:$0xff]  ;;  %v524_v22 = vld [vmem:[%s5024_s26 + $0x10] sm:$0xff] }
  0x3c   : > { %521 = vst [vmem:[%s5029_s19] sm:$0xff] %v520_v20  ;;  %v526_v23 = vld [vmem:[%s5024_s26 + $0x18] sm:$0xff]  ;;  %v528_v24 = vld [vmem:[%s5024_s26 + $0x20] sm:$0xff]  ;;  %v530_v25 = vld [vmem:[%s5024_s26 + $0x50] sm:$0xff] }
  0x3d   : > { %523 = vst [vmem:[%s5029_s19 + $0x8] sm:$0xff] %v522_v21  ;;  %v532_v26 = vld [vmem:[%s5024_s26 + $0x58] sm:$0xff]  ;;  %v534_v27 = vld [vmem:[%s5024_s26 + $0x60] sm:$0xff]  ;;  %v536_v28 = vld [vmem:[%s5024_s26 + $0x68] sm:$0xff] }
  0x3e   : > { %525 = vst [vmem:[%s5029_s19 + $0x10] sm:$0xff] %v524_v22  ;;  %v538_v29 = vld [vmem:[%s5024_s26 + $0x70] sm:$0xff]  ;;  %v540_v30 = vld [vmem:[%s5024_s26 + $0xa0] sm:$0xff]  ;;  %v542_v31 = vld [vmem:[%s5024_s26 + $0xa8] sm:$0xff] }
  0x3f   : > { %527 = vst [vmem:[%s5029_s19 + $0x18] sm:$0xff] %v526_v23  ;;  %v544_v32 = vld [vmem:[%s5024_s26 + $0xb0] sm:$0xff]  ;;  %v546_v33 = vld [vmem:[%s5024_s26 + $0xb8] sm:$0xff]  ;;  %v548_v34 = vld [vmem:[%s5024_s26 + $0xc0] sm:$0xff] }
  0x40   : > { %529 = vst [vmem:[%s5029_s19 + $0x20] sm:$0xff] %v528_v24  ;;  %v550_v35 = vld [vmem:[%s5024_s26 + $0xf0] sm:$0xff]  ;;  %v552_v36 = vld [vmem:[%s5024_s26 + $0xf8] sm:$0xff]  ;;  %v554_v37 = vld [vmem:[%s5024_s26 + $0x100] sm:$0xff] }
  0x41   : > { %531 = vst [vmem:[%s5029_s19 + $0x28] sm:$0xff] %v530_v25  ;;  %v556_v38 = vld [vmem:[%s5024_s26 + $0x108] sm:$0xff]  ;;  %v558_v39 = vld [vmem:[%s5024_s26 + $0x110] sm:$0xff] }
  0x42   : > { %533 = vst [vmem:[%s5029_s19 + $0x30] sm:$0xff] %v532_v26 }
  0x43   : > { %535 = vst [vmem:[%s5029_s19 + $0x38] sm:$0xff] %v534_v27 }
  0x44   : > { %537 = vst [vmem:[%s5029_s19 + $0x40] sm:$0xff] %v536_v28 }
  0x45   : > { %539 = vst [vmem:[%s5029_s19 + $0x48] sm:$0xff] %v538_v29 }
  0x46   : > { %541 = vst [vmem:[%s5029_s19 + $0x50] sm:$0xff] %v540_v30 }
  0x47   : > { %543 = vst [vmem:[%s5029_s19 + $0x58] sm:$0xff] %v542_v31 }
  0x48   : > { %545 = vst [vmem:[%s5029_s19 + $0x60] sm:$0xff] %v544_v32 }
  0x49   : > { %547 = vst [vmem:[%s5029_s19 + $0x68] sm:$0xff] %v546_v33 }
  0x4a   : > { %549 = vst [vmem:[%s5029_s19 + $0x70] sm:$0xff] %v548_v34 }
  0x4b   : > { %551 = vst [vmem:[%s5029_s19 + $0x78] sm:$0xff] %v550_v35 }
  0x4c   : > { %553 = vst [vmem:[%s5029_s19 + $0x80] sm:$0xff] %v552_v36 }
  0x4d   : > { %555 = vst [vmem:[%s5029_s19 + $0x88] sm:$0xff] %v554_v37 }
  0x4e   : > { %557 = vst [vmem:[%s5029_s19 + $0x90] sm:$0xff] %v556_v38 }
  0x4f   : > { %559 = vst [vmem:[%s5029_s19 + $0x98] sm:$0xff] %v558_v39 }
  0x50 PF: > { %p3937_p11 = scmp.ge.s32.totalorder %s4851_s14, 1  ;;  %p564_p12 = scmp.lt.s32.totalorder %s4851_s14, 3 }
  0x52   : > { %p565_p13 = pnand %p3937_p11, %p564_p12 }
  0x54   : > { %568 = sbr.rel (%p565_p13) target bundleno = 1089 (0x441), region = 124 }
  0x59   : > { %v695_v40 = vld [vmem:[%s7591_s4 + $0x78] sm:$0xff]  ;;  %v694_v41 = vld [vmem:[%s7591_s4 + $0x70] sm:$0xff]  ;;  %s5077_s16 = sand.u32 1, %s4835_s10   ;;  %v693_v42 = vld [vmem:[%s7591_s4 + $0x68] sm:$0xff]  ;;  %vm947_vm0 = vcmask 1043456   ;;  %vm850_vm1 = vcmask 293888  }
  0x5a   : > { %700 = vmatpush.msra.mxu0 %v695_v40  ;;  %s4357_s18 = smul.u32 160, %s5077_s16  ;;  %v692_v43 = vld [vmem:[%s7591_s4 + $0x60] sm:$0xff]  ;;  %v691_v48 = vld [vmem:[%s7591_s4 + $0x58] sm:$0xff]  ;;  %v690_v52 = vld [vmem:[%s7591_s4 + $0x50] sm:$0xff]  ;;  %p632_p0 = scmp.lt.s32.totalorder %s4843_s12, 1 }
  0x5b   : > { %v689_v57 = vld [vmem:[%s7591_s4 + $0x48] sm:$0xff]  ;;  %v820_v60 = vld [vmem:[%s7588_s1 + $0x38] sm:$0xff]  ;;  %v688_v61 = vld [vmem:[%s7591_s4 + $0x40] sm:$0xff]  ;;  %s3938_s15 = sshll.u32 %s5077_s16, 8 }
  0x5c   : > { %701 = vmatpush.msra.mxu0 %v694_v41  ;;  %s5086_s19 = scalar_lea.vmem [#allocation3], %s4357_s18  ;;  %s5091_s27 = scalar_lea.vmem [#allocation2], %s4357_s18  ;;  %v687_v0 = vld [vmem:[%s7591_s4 + $0x38] sm:$0xff]  ;;  %v686_v2 = vld [vmem:[%s7591_s4 + $0x30] sm:$0xff]  ;;  %v685_v4 = vld [vmem:[%s7591_s4 + $0x28] sm:$0xff] }
  0x5d   : > { %v5089_v44 = vld [vmem:[%s5086_s19 + $0x20] sm:$0xf]  ;;  %v5097_v46 = vld [vmem:[%s5086_s19 + $0x18] sm:$0xff]  ;;  %v5110_v49 = vld [vmem:[%s5086_s19 + $0x10] sm:$0xff]  ;;  %s633_s21 = scalar_select %p632_p0, %s4843_s12, 1 }
  0x5e   : > { %v5094_v45 = vld [vmem:[%s5091_s27 + $0x20] sm:$0xf]  ;;  %702 = vmatpush.msra.mxu0 %v693_v42  ;;  %4338 = vmatpush.msk.msra.mxu1 %vm947_vm0, %v5089_v44  ;;  %v5102_v47 = vld [vmem:[%s5091_s27 + $0x18] sm:$0xff]  ;;  %v5114_v50 = vld [vmem:[%s5091_s27 + $0x10] sm:$0xff] }
  0x5f   : > { %4343 = vmatpush.msk.msra.mxu2 %vm947_vm0, %v5094_v45  ;;  %v5117_v51 = vld [vmem:[%s5086_s19 + $0x48] sm:$0xf]  ;;  %v5129_v54 = vld [vmem:[%s5086_s19 + $0x40] sm:$0xff]  ;;  %v5136_v56 = vld [vmem:[%s5086_s19 + $0x38] sm:$0xff]  ;;  %s4336_s29 = sshll.u32 %s633_s21, 8  ;;  %s3783_s21 = scalar_lea.sflag [#allocation5], %s5077_s16 }
  0x60   : > { %703 = vmatpush.msra.mxu0 %v692_v43  ;;  %4339 = vmatpush.msra.mxu1 %v5097_v46  ;;  %v5124_v53 = vld [vmem:[%s5086_s19 + $0x8] sm:$0xff]  ;;  %v5143_v58 = vld [vmem:[%s5086_s19] sm:$0xff]  ;;  %v5161_v63 = vld [vmem:[%s5086_s19 + $0x30] sm:$0xff]  ;;  %s5215_s17 = scalar_lea.vmem %s7587_s0, %s4336_s29  ;;  %s4337_s29 = sshll.u32 %s4843_s12, 8 }
  0x61   : > { %4344 = vmatpush.msra.mxu2 %v5102_v47  ;;  %4348 = vmatpush.msk.msra.mxu3 %vm947_vm0, %v5117_v51  ;;  %v5133_v55 = vld [vmem:[%s5091_s27 + $0x8] sm:$0xff]  ;;  %v5148_v59 = vld [vmem:[%s5091_s27] sm:$0xff]  ;;  %v5181_v3 = vld [vmem:[%s7588_s1 + $0x138] sm:$0xff]  ;;  %s3796_s25 = scalar_lea.hbm %s7596_s9, %s4337_s29 }
  0x62   : > { %704 = vmatpush.msra.mxu0 %v691_v48  ;;  %4340 = vmatpush.msra.mxu1 %v5110_v49  ;;  %v4081_v62 = vld [vmem:[%s5091_s27 + $0x48] sm:$0xf]  ;;  %v821_v5 = vld [vmem:[%s7588_s1 + $0x40] sm:$0xff]  ;;  %v683_v7 = vld [vmem:[%s7591_s4 + $0x18] sm:$0xff]  ;;  %s3799_s28 = sshll.u32 %s3796_s25, 4  ;;  %s3800_s28 = int_to_ptr.hbm [resolvable:$true] %s3799_s28 }
  0x63   : > { %4345 = vmatpush.msra.mxu2 %v5114_v50  ;;  %4349 = vmatpush.msra.mxu3 %v5129_v54  ;;  %v5170_v1 = vld [vmem:[%s5086_s19 + $0x28] sm:$0xff]  ;;  %v684_v6 = vld [vmem:[%s7591_s4 + $0x20] sm:$0xff]  ;;  %v682_v8 = vld [vmem:[%s7591_s4 + $0x10] sm:$0xff]  ;;  %s4787_s12 = sshra.s32 %s3800_s28, 4  ;;  %s4788_s12 = int_to_ptr.hbm [resolvable:$true] %s4787_s12 }
  0x64   : > { %705 = vmatpush.msra.mxu0 %v690_v52  ;;  %4341 = vmatpush.msra.mxu1 %v5124_v53  ;;  %v5207_v9 = vld [vmem:[%s7588_s1 + $0x140] sm:$0xff]  ;;  %v681_v10 = vld [vmem:[%s7591_s4 + $0x8] sm:$0xff]  ;;  %v823_v16 = vld [vmem:[%s7588_s1 + $0x50] sm:$0xff]  ;;  %p4794_p4 = scmp.lt.s32.totalorder %s4788_s12, %s7596_s9 }
  0x65   : > { %4346 = vmatpush.msra.mxu2 %v5133_v55  ;;  %4350 = vmatpush.msra.mxu3 %v5136_v56  ;;  %v822_v11 = vld [vmem:[%s7588_s1 + $0x48] sm:$0xff]  ;;  %v680_v12 = vld [vmem:[%s7591_s4] sm:$0xff]  ;;  %v5250_v18 = vld [vmem:[%s7588_s1 + $0x150] sm:$0xff] }
  0x66   : > { %706 = vmatpush.msra.mxu0 %v689_v57  ;;  %4342 = vmatpush.msra.mxu1 %v5143_v58  ;;  %v648_v13 = vld [vmem:[%s5215_s17] sm:$0xff]  ;;  %v5232_v15 = vld [vmem:[%s7588_s1 + $0x148] sm:$0xff]  ;;  %v824_v19 = vld [vmem:[%s7588_s1 + $0x58] sm:$0xff] }
  0x67   : > { %4347 = vmatpush.msra.mxu2 %v5148_v59  ;;  %3949 = vmatmul.msk.f32.vlgmr.msra.gmra.mxu1 %vm850_vm1, %v820_v60  ;;  %v4080_v14 = vld [vmem:[%s5091_s27 + $0x40] sm:$0xff]  ;;  %v649_v17 = vld [vmem:[%s5215_s17 + $0x8] sm:$0xff]  ;;  %v650_v20 = vld [vmem:[%s5215_s17 + $0x10] sm:$0xff] }
  0x68   : > { %3982 = vmatmul.msk.f32.vlgmr.msra.gmra.mxu2 %vm850_vm1, %v820_v60  ;;  %707 = vmatpush.msra.mxu0 %v688_v61  ;;  %v5268_v21 = vld [vmem:[%s7588_s1 + $0x158] sm:$0xff]  ;;  %v825_v22 = vld [vmem:[%s7588_s1 + $0x60] sm:$0xff]  ;;  %v826_v25 = vld [vmem:[%s7588_s1 + $0x68] sm:$0xff] }
  0x69   : > { %4082 = vmatpush.msk.msrb.mxu1 %vm947_vm0, %v4081_v62  ;;  %4351 = vmatpush.msra.mxu3 %v5161_v63  ;;  %v651_v23 = vld [vmem:[%s5215_s17 + $0x18] sm:$0xff]  ;;  %v5283_v24 = vld [vmem:[%s7588_s1 + $0x160] sm:$0xff]  ;;  %v5296_v27 = vld [vmem:[%s7588_s1 + $0x168] sm:$0xff] }
  0x6a   : > { %708 = vmatpush.msra.mxu0 %v687_v0  ;;  %v652_v26 = vld [vmem:[%s5215_s17 + $0x20] sm:$0xff]  ;;  %v827_v28 = vld [vmem:[%s7588_s1 + $0x70] sm:$0xff]  ;;  %v653_v29 = vld [vmem:[%s5215_s17 + $0x28] sm:$0xff] }
  0x6b   : > { %4352 = vmatpush.msra.mxu3 %v5170_v1  ;;  %1873 = vmatpush.msrb.mxu1 %v4080_v14  ;;  %v4079_v30 = vld [vmem:[%s5091_s27 + $0x38] sm:$0xff]  ;;  %v5310_v31 = vld [vmem:[%s7588_s1 + $0x170] sm:$0xff]  ;;  %v829_v35 = vld [vmem:[%s7588_s1 + $0x80] sm:$0xff] }
  0x6c   : > { %709 = vmatpush.msra.mxu0 %v686_v2  ;;  %4052 = vmatmul.msk.f32.vlgmr.msra.gmra.mxu3 %vm850_vm1, %v5181_v3  ;;  %v828_v32 = vld [vmem:[%s7588_s1 + $0x78] sm:$0xff]  ;;  %v654_v33 = vld [vmem:[%s5215_s17 + $0x30] sm:$0xff]  ;;  %v5336_v37 = vld [vmem:[%s7588_s1 + $0x180] sm:$0xff] }
  0x6d   : > { %1874 = vmatpush.msrb.mxu1 %v4079_v30  ;;  %v5323_v34 = vld [vmem:[%s7588_s1 + $0x178] sm:$0xff]  ;;  %v830_v38 = vld [vmem:[%s7588_s1 + $0x88] sm:$0xff]  ;;  %v656_v39 = vld [vmem:[%s5215_s17 + $0x40] sm:$0xff] }
  0x6e   : > { %710 = vmatpush.msra.mxu0 %v685_v4  ;;  %v655_v36 = vld [vmem:[%s5215_s17 + $0x38] sm:$0xff]  ;;  %v5349_v40 = vld [vmem:[%s7588_s1 + $0x188] sm:$0xff]  ;;  %v831_v41 = vld [vmem:[%s7588_s1 + $0x90] sm:$0xff] }
  0x6f   : > { %3950 = vmatmul.msk.f32.gmra.mxu1 %vm850_vm1, %v821_v5  ;;  %v657_v42 = vld [vmem:[%s5215_s17 + $0x48] sm:$0xff]  ;;  %v5362_v43 = vld [vmem:[%s7588_s1 + $0x190] sm:$0xff]  ;;  %v833_v48 = vld [vmem:[%s7588_s1 + $0xa0] sm:$0xff] }
  0x70   : > { %3983 = vmatmul.msk.f32.gmra.mxu2 %vm850_vm1, %v821_v5  ;;  %711 = vmatpush.msra.mxu0 %v684_v6  ;;  %v4151_v52 = vld [vmem:[%s5086_s19 + $0x70] sm:$0xf]  ;;  %v660_v57 = vld [vmem:[%s5215_s17 + $0x60] sm:$0xff]  ;;  %v661_v60 = vld [vmem:[%s5215_s17 + $0x68] sm:$0xff] }
  0x71   : > { %4152 = vmatpush.msk.msrb.mxu2 %vm947_vm0, %v4151_v52  ;;  %v5419_v61 = vld [vmem:[%s7588_s1 + $0x1b0] sm:$0xff]  ;;  %v836_v0 = vld [vmem:[%s7588_s1 + $0xb8] sm:$0xff]  ;;  %v841_v52 = vld [vmem:[%s7588_s1 + $0xe0] sm:$0xff] }
  0x72   : > { %712 = vmatpush.msra.mxu0 %v683_v7  ;;  %v662_v2 = vld [vmem:[%s5215_s17 + $0x70] sm:$0xff]  ;;  %v5434_v4 = vld [vmem:[%s7588_s1 + $0x1b8] sm:$0xff]  ;;  %v837_v7 = vld [vmem:[%s7588_s1 + $0xc0] sm:$0xff] }
  0x74   : > { %713 = vmatpush.msra.mxu0 %v682_v8  ;;  %4053 = vmatmul.msk.f32.gmra.mxu3 %vm850_vm1, %v5207_v9  ;;  %v663_v8 = vld [vmem:[%s5215_s17 + $0x78] sm:$0xff] }
  0x76   : > { %714 = vmatpush.msra.mxu0 %v681_v10 }
  0x77   : > { %3951 = vmatmul.msk.f32.gmra.mxu1 %vm850_vm1, %v822_v11 }
  0x78   : > { %3984 = vmatmul.msk.f32.gmra.mxu2 %vm850_vm1, %v822_v11  ;;  %715 = vmatpush.msra.mxu0 %v680_v12  ;;  %v4077_v11 = vld [vmem:[%s5091_s27 + $0x28] sm:$0xff]  ;;  %v5454_v12 = vld [vmem:[%s7588_s1 + $0x1c0] sm:$0xff] }
  0x79   : > { %716 = vmatmul.f32.vlgmr.msra.gmra.mxu0 %v648_v13 }
  0x7a   : > { %3941 = vmatpush.msk.msrb.mxu0 %vm947_vm0, %v5089_v44  ;;  %v832_v44 = vld [vmem:[%s7588_s1 + $0x98] sm:$0xff] }
  0x7c   : > { %4054 = vmatmul.msk.f32.gmra.mxu3 %vm850_vm1, %v5232_v15  ;;  %963 = vmatpush.msrb.mxu0 %v5097_v46  ;;  %v4078_v46 = vld [vmem:[%s5091_s27 + $0x30] sm:$0xff] }
  0x7d   : > { %1875 = vmatpush.msrb.mxu1 %v4078_v46  ;;  %v4149_v46 = vld [vmem:[%s5086_s19 + $0x60] sm:$0xff] }
  0x7e   : > { %964 = vmatpush.msrb.mxu0 %v5110_v49  ;;  %v659_v49 = vld [vmem:[%s5215_s17 + $0x58] sm:$0xff] }
  0x7f   : > { %3952 = vmatmul.msk.f32.gmra.mxu1 %vm850_vm1, %v823_v16 }
  0x80   : > { %3985 = vmatmul.msk.f32.gmra.mxu2 %vm850_vm1, %v823_v16  ;;  %965 = vmatpush.msrb.mxu0 %v5124_v53  ;;  %v4189_v53 = vld [vmem:[%s5091_s27 + $0x70] sm:$0xf]  ;;  %v838_v16 = vld [vmem:[%s7588_s1 + $0xc8] sm:$0xff] }
  0x81   : > { %719 = vmatmul.f32.gmra.mxu0 %v649_v17  ;;  %4190 = vmatpush.msk.msrb.mxu3 %vm947_vm0, %v4189_v53  ;;  %v4148_v53 = vld [vmem:[%s5086_s19 + $0x58] sm:$0xff] }
  0x82   : > { %966 = vmatpush.msrb.mxu0 %v5143_v58  ;;  %v5406_v58 = vld [vmem:[%s7588_s1 + $0x1a8] sm:$0xff]  ;;  %1876 = vmatpush.msrb.mxu1 %v4077_v11 }
  0x84   : > { %3974 = vmatpush.msk.msra.mxu0 %vm947_vm0, %v5094_v45  ;;  %4055 = vmatmul.msk.f32.gmra.mxu3 %vm850_vm1, %v5250_v18  ;;  %v658_v45 = vld [vmem:[%s5215_s17 + $0x50] sm:$0xff] }
  0x86   : > { %1244 = vmatpush.msra.mxu0 %v5102_v47  ;;  %v5376_v47 = vld [vmem:[%s7588_s1 + $0x198] sm:$0xff] }
  0x87   : > { %3953 = vmatmul.msk.f32.gmra.mxu1 %vm850_vm1, %v824_v19 }
  0x88   : > { %1245 = vmatpush.msra.mxu0 %v5114_v50  ;;  %3986 = vmatmul.msk.f32.gmra.mxu2 %vm850_vm1, %v824_v19  ;;  %v5389_v50 = vld [vmem:[%s7588_s1 + $0x1a0] sm:$0xff] }
  0x89   : > { %722 = vmatmul.f32.gmra.mxu0 %v650_v20  ;;  %v664_v19 = vld [vmem:[%s5215_s17 + $0x80] sm:$0xff] }
  0x8a   : > { %1246 = vmatpush.msra.mxu0 %v5133_v55  ;;  %v834_v55 = vld [vmem:[%s7588_s1 + $0xa8] sm:$0xff] }
  0x8c   : > { %4056 = vmatmul.msk.f32.gmra.mxu3 %vm850_vm1, %v5268_v21  ;;  %1247 = vmatpush.msra.mxu0 %v5148_v59  ;;  %v835_v59 = vld [vmem:[%s7588_s1 + $0xb0] sm:$0xff] }
  0x8f   : > { %3954 = vmatmul.msk.f32.gmra.mxu1 %vm850_vm1, %v825_v22 }
  0x90   : > { %3987 = vmatmul.msk.f32.gmra.mxu2 %vm850_vm1, %v825_v22  ;;  %v5475_v22 = vld [vmem:[%s7588_s1 + $0x1c8] sm:$0xff] }
  0x91   : > { %725 = vmatmul.f32.gmra.mxu0 %v651_v23 }
  0x94   : > { %4057 = vmatmul.msk.f32.gmra.mxu3 %vm850_vm1, %v5283_v24 }
  0x97   : > { %3955 = vmatmul.msk.f32.gmra.mxu1 %vm850_vm1, %v826_v25 }
  0x98   : > { %3988 = vmatmul.msk.f32.gmra.mxu2 %vm850_vm1, %v826_v25  ;;  %v4150_v25 = vld [vmem:[%s5086_s19 + $0x68] sm:$0xff] }
  0x99   : > { %728 = vmatmul.f32.gmra.mxu0 %v652_v26  ;;  %v4188_v26 = vld [vmem:[%s5091_s27 + $0x68] sm:$0xff]  ;;  %2220 = vmatpush.msrb.mxu2 %v4150_v25 }
  0x9a   : > { %2502 = vmatpush.msrb.mxu3 %v4188_v26  ;;  %v5564_v25 = vld [vmem:[%s7588_s1 + $0x1e8] sm:$0xff]  ;;  %v4187_v26 = vld [vmem:[%s5091_s27 + $0x60] sm:$0xff] }
  0x9b   : > { %2221 = vmatpush.msrb.mxu2 %v4149_v46  ;;  %v843_v46 = vld [vmem:[%s7588_s1 + $0xf0] sm:$0xff] }
  0x9c   : > { %4058 = vmatmul.msk.f32.gmra.mxu3 %vm850_vm1, %v5296_v27 }
  0x9d   : > { %2222 = vmatpush.msrb.mxu2 %v4148_v53  ;;  %2503 = vmatpush.msrb.mxu3 %v4187_v26 }
  0x9f   : > { %3956 = vmatmul.msk.f32.gmra.mxu1 %vm850_vm1, %v827_v28 }
  0xa0   : > { %3989 = vmatmul.msk.f32.gmra.mxu2 %vm850_vm1, %v827_v28 }
  0xa1   : > { %731 = vmatmul.f32.gmra.mxu0 %v653_v29  ;;  %v839_v29 = vld [vmem:[%s7588_s1 + $0xd0] sm:$0xff] }
  0xa4   : > { %4059 = vmatmul.msk.f32.gmra.mxu3 %vm850_vm1, %v5310_v31 }
  0xa7   : > { %3957 = vmatmul.msk.f32.gmra.mxu1 %vm850_vm1, %v828_v32 }
  0xa8   : > { %3990 = vmatmul.msk.f32.gmra.mxu2 %vm850_vm1, %v828_v32  ;;  %v665_v32 = vld [vmem:[%s5215_s17 + $0x88] sm:$0xff] }
  0xa9   : > { %734 = vmatmul.f32.gmra.mxu0 %v654_v33 }
  0xac   : > { %4060 = vmatmul.msk.f32.gmra.mxu3 %vm850_vm1, %v5323_v34 }
  0xaf   : > { %3958 = vmatmul.msk.f32.gmra.mxu1 %vm850_vm1, %v829_v35 }
  0xb0   : > { %3991 = vmatmul.msk.f32.gmra.mxu2 %vm850_vm1, %v829_v35  ;;  %v5498_v35 = vld [vmem:[%s7588_s1 + $0x1d0] sm:$0xff] }
  0xb1   : > { %737 = vmatmul.f32.gmra.mxu0 %v655_v36 }
  0xb4   : > { %4061 = vmatmul.msk.f32.gmra.mxu3 %vm850_vm1, %v5336_v37 }
  0xb7   : > { %3959 = vmatmul.msk.f32.gmra.mxu1 %vm850_vm1, %v830_v38 }
  0xb8   : > { %3992 = vmatmul.msk.f32.gmra.mxu2 %vm850_vm1, %v830_v38 }
  0xb9   : > { %740 = vmatmul.f32.gmra.mxu0 %v656_v39  ;;  %v840_v39 = vld [vmem:[%s7588_s1 + $0xd8] sm:$0xff] }
  0xbc   : > { %4062 = vmatmul.msk.f32.gmra.mxu3 %vm850_vm1, %v5349_v40 }
  0xbf   : > { %3960 = vmatmul.msk.f32.gmra.mxu1 %vm850_vm1, %v831_v41 }
  0xc0   : > { %3993 = vmatmul.msk.f32.gmra.mxu2 %vm850_vm1, %v831_v41 }
  0xc1   : > { %743 = vmatmul.f32.gmra.mxu0 %v657_v42  ;;  %v666_v42 = vld [vmem:[%s5215_s17 + $0x90] sm:$0xff] }
  0xc4   : > { %4063 = vmatmul.msk.f32.gmra.mxu3 %vm850_vm1, %v5362_v43 }
  0xc7   : > { %3961 = vmatmul.msk.f32.gmra.mxu1 %vm850_vm1, %v832_v44 }
  0xc8   : > { %3994 = vmatmul.msk.f32.gmra.mxu2 %vm850_vm1, %v832_v44 }
  0xc9   : > { %746 = vmatmul.f32.gmra.mxu0 %v658_v45  ;;  %v5519_v45 = vld [vmem:[%s7588_s1 + $0x1d8] sm:$0xff] }
  0xcc   : > { %4064 = vmatmul.msk.f32.gmra.mxu3 %vm850_vm1, %v5376_v47 }
  0xcf   : > { %3962 = vmatmul.msk.f32.gmra.mxu1 %vm850_vm1, %v833_v48 }
  0xd0   : > { %3995 = vmatmul.msk.f32.gmra.mxu2 %vm850_vm1, %v833_v48 }
  0xd1   : > { %749 = vmatmul.f32.gmra.mxu0 %v659_v49 }
  0xd4   : > { %4065 = vmatmul.msk.f32.gmra.mxu3 %vm850_vm1, %v5389_v50 }
  0xd7   : > { %3963 = vmatmul.msk.f32.gmra.mxu1 %vm850_vm1, %v834_v55 }
  0xd8   : > { %3996 = vmatmul.msk.f32.gmra.mxu2 %vm850_vm1, %v834_v55 }
  0xd9   : > { %752 = vmatmul.f32.gmra.mxu0 %v660_v57  ;;  %v667_v57 = vld [vmem:[%s5215_s17 + $0x98] sm:$0xff] }
  0xdc   : > { %4066 = vmatmul.msk.f32.gmra.mxu3 %vm850_vm1, %v5406_v58 }
  0xdf   : > { %3964 = vmatmul.msk.f32.gmra.mxu1 %vm850_vm1, %v835_v59 }
  0xe0   : > { %3997 = vmatmul.msk.f32.gmra.mxu2 %vm850_vm1, %v835_v59  ;;  %v4147_v59 = vld [vmem:[%s5086_s19 + $0x50] sm:$0xff] }
  0xe1   : > { %755 = vmatmul.f32.gmra.mxu0 %v661_v60  ;;  %2223 = vmatpush.msrb.mxu2 %v4147_v59 }
  0xe4   : > { %v5421_v62 = vpop.f32.mrf.mxu1  ;;  %4067 = vmatmul.msk.f32.gmra.mxu3 %vm850_vm1, %v5419_v61 }
  0xe7   : > { %3965 = vmatmul.msk.f32.gmra.mxu1 %vm850_vm1, %v836_v0 }
  0xe8   : > { %3998 = vmatmul.msk.f32.gmra.mxu2 %vm850_vm1, %v836_v0  ;;  %v5543_v0 = vld [vmem:[%s7588_s1 + $0x1e0] sm:$0xff] }
  0xe9   : > { %758 = vmatmul.f32.gmra.mxu0 %v662_v2 }
  0xeb   : > { %v5436_v5 = vpop.f32.mrf.mxu2 }
  0xec   : > { %v5438_v6 = vpop.f32.mrf.mxu1  ;;  %4068 = vmatmul.msk.f32.gmra.mxu3 %vm850_vm1, %v5434_v4 }
  0xef   : > { %3966 = vmatmul.msk.f32.gmra.mxu1 %vm850_vm1, %v837_v7  ;;  %v5447_v10 = vpop.f32.mrf.mxu3 }
  0xf0   : > { %3999 = vmatmul.msk.f32.gmra.mxu2 %vm850_vm1, %v837_v7 }
  0xf1   : > { %761 = vmatmul.f32.gmra.mxu0 %v663_v8  ;;  %v842_v8 = vld [vmem:[%s7588_s1 + $0xe8] sm:$0xff] }
  0xf3   : > { %v5456_v13 = vpop.f32.mrf.mxu2 }
  0xf4   : > { %7612 = vst [vmem:[#allocation8_spill] sm:$0xff] %v5456_v13  ;;  %v5458_v14 = vpop.f32.mrf.mxu1  ;;  %4069 = vmatmul.msk.f32.gmra.mxu3 %vm850_vm1, %v5454_v12  ;;  %v676_v13 = vld [vmem:[%s5215_s17 + $0xe0] sm:$0xff] }
  0xf6   : > { %v5465_v17 = vpop.f32.mrf.mxu0 }
  0xf7   : > { %3967 = vmatmul.msk.f32.gmra.mxu1 %vm850_vm1, %v838_v16  ;;  %v5469_v20 = vpop.f32.mrf.mxu3 }
  0xf8   : > { %4000 = vmatmul.msk.f32.gmra.mxu2 %vm850_vm1, %v838_v16  ;;  %v668_v16 = vld [vmem:[%s5215_s17 + $0xa0] sm:$0xff] }
  0xf9   : > { %764 = vmatmul.f32.gmra.mxu0 %v664_v19 }
  0xfb   : > { %v5477_v23 = vpop.f32.mrf.mxu2 }
  0xfc   : > { %7613 = vst [vmem:[#allocation9_spill] sm:$0xff] %v5477_v23  ;;  %v5481_v28 = vpop.f32.mrf.mxu1  ;;  %4070 = vmatmul.msk.f32.gmra.mxu3 %vm850_vm1, %v5475_v22  ;;  %v5706_v23 = vld [vmem:[%s7588_s1 + $0x120] sm:$0xff] }
  0xfe   : > { %v5488_v30 = vpop.f32.mrf.mxu0 }
  0xff   : > { %3968 = vmatmul.msk.f32.gmra.mxu1 %vm850_vm1, %v839_v29  ;;  %v5492_v33 = vpop.f32.mrf.mxu3 }
 0x100   : > { %4001 = vmatmul.msk.f32.gmra.mxu2 %vm850_vm1, %v839_v29 }
 0x101   : > { %767 = vmatmul.f32.gmra.mxu0 %v665_v32  ;;  %v4297_v32 = vld [vmem:[%s5091_s27 + $0x98] sm:$0xf] }
 0x102   : > { %4298 = vmatpush.msk.msra.mxu1 %vm947_vm0, %v4297_v32  ;;  %v844_v32 = vld [vmem:[%s7588_s1 + $0xf8] sm:$0xff] }
 0x103   : > { %v5500_v36 = vpop.f32.mrf.mxu2 }
 0x104   : > { %7614 = vst [vmem:[#allocation10_spill] sm:$0xff] %v5500_v36  ;;  %v5502_v38 = vpop.f32.mrf.mxu1  ;;  %4071 = vmatmul.msk.f32.gmra.mxu3 %vm850_vm1, %v5498_v35  ;;  %v4117_v36 = vld [vmem:[%s7588_s1 + $0x210] sm:$0xff] }
 0x105   : > { %7615 = vst [vmem:[#allocation11_spill] sm:$0xff] %v5502_v38 }
 0x106   : > { %v5509_v41 = vpop.f32.mrf.mxu0 }
 0x107   : > { %3969 = vmatmul.msk.f32.gmra.mxu1 %vm850_vm1, %v840_v39  ;;  %v5513_v44 = vpop.f32.mrf.mxu3 }
 0x108   : > { %7616 = vst [vmem:[#allocation12_spill] sm:$0xff] %v5513_v44  ;;  %4002 = vmatmul.msk.f32.gmra.mxu2 %vm850_vm1, %v840_v39  ;;  %v4186_v39 = vld [vmem:[%s5091_s27 + $0x58] sm:$0xff]  ;;  %v678_v44 = vld [vmem:[%s5215_s17 + $0xf0] sm:$0xff] }
 0x109   : > { %770 = vmatmul.f32.gmra.mxu0 %v666_v42  ;;  %2504 = vmatpush.msrb.mxu3 %v4186_v39 }
 0x10b   : > { %v5522_v48 = vpop.f32.mrf.mxu2 }
 0x10c   : > { %7617 = vst [vmem:[#allocation13_spill] sm:$0xff] %v5522_v48  ;;  %v5524_v49 = vpop.f32.mrf.mxu1  ;;  %4072 = vmatmul.msk.f32.gmra.mxu3 %vm850_vm1, %v5519_v45  ;;  %v671_v48 = vld [vmem:[%s5215_s17 + $0xb8] sm:$0xff] }
 0x10d   : > { %7618 = vst [vmem:[#allocation14_spill] sm:$0xff] %v5524_v49  ;;  %v674_v49 = vld [vmem:[%s5215_s17 + $0xd0] sm:$0xff] }
 0x10e   : > { %v5532_v55 = vpop.f32.mrf.mxu0 }
 0x10f   : > { %3970 = vmatmul.msk.f32.gmra.mxu1 %vm850_vm1, %v841_v52  ;;  %v5537_v60 = vpop.f32.mrf.mxu3 }
 0x110   : > { %7619 = vst [vmem:[#allocation15_spill] sm:$0xff] %v5537_v60  ;;  %4003 = vmatmul.msk.f32.gmra.mxu2 %vm850_vm1, %v841_v52  ;;  %v4185_v52 = vld [vmem:[%s5091_s27 + $0x50] sm:$0xff] }
 0x111   : > { %773 = vmatmul.f32.gmra.mxu0 %v667_v57  ;;  %v669_v57 = vld [vmem:[%s5215_s17 + $0xa8] sm:$0xff]  ;;  %2505 = vmatpush.msrb.mxu3 %v4185_v52 }
 0x113   : > { %v5545_v2 = vpop.f32.mrf.mxu2 }
 0x114   : > { %7620 = vst [vmem:[#allocation16_spill] sm:$0xff] %v5545_v2  ;;  %v5547_v7 = vpop.f32.mrf.mxu1  ;;  %4073 = vmatmul.msk.f32.gmra.mxu3 %vm850_vm1, %v5543_v0  ;;  %v5620_v2 = vld [vmem:[%s7588_s1 + $0x100] sm:$0xff] }
 0x115   : > { %7621 = vst [vmem:[#allocation17_spill] sm:$0xff] %v5547_v7  ;;  %v673_v7 = vld [vmem:[%s5215_s17 + $0xc8] sm:$0xff] }
 0x116   : > { %v5554_v11 = vpop.f32.mrf.mxu0 }
 0x117   : > { %3971 = vmatmul.msk.f32.gmra.mxu1 %vm850_vm1, %v842_v8  ;;  %v5558_v19 = vpop.f32.mrf.mxu3 }
 0x118   : > { %7622 = vst [vmem:[#allocation18_spill] sm:$0xff] %v5558_v19  ;;  %4004 = vmatmul.msk.f32.gmra.mxu2 %vm850_vm1, %v842_v8  ;;  %v5590_v8 = vld [vmem:[%s7588_s1 + $0x1f0] sm:$0xff]  ;;  %v4118_v19 = vld [vmem:[%s7588_s1 + $0x218] sm:$0xff] }
 0x119   : > { %776 = vmatmul.f32.gmra.mxu0 %v668_v16 }
 0x11b   : > { %v5567_v29 = vpop.f32.mrf.mxu2 }
 0x11c   : > { %7623 = vst [vmem:[#allocation19_spill] sm:$0xff] %v5567_v29  ;;  %v5571_v42 = vpop.f32.mrf.mxu1  ;;  %4074 = vmatmul.msk.f32.gmra.mxu3 %vm850_vm1, %v5564_v25 }
 0x11d   : > { %7624 = vst [vmem:[#allocation20_spill] sm:$0xff] %v5571_v42  ;;  %v4116_v42 = vld [vmem:[%s7588_s1 + $0x208] sm:$0xff] }
 0x11e   : > { %v5580_v53 = vpop.f32.mrf.mxu0 }
 0x11f   : > { %3972 = vmatmul.msk.f32.gmra.mxu1 %vm850_vm1, %v843_v46  ;;  %v5584_v59 = vpop.f32.mrf.mxu3 }
 0x120   : > { %7625 = vst [vmem:[#allocation21_spill] sm:$0xff] %v5584_v59  ;;  %4005 = vmatmul.msk.f32.gmra.mxu2 %vm850_vm1, %v843_v46  ;;  %v670_v46 = vld [vmem:[%s5215_s17 + $0xb0] sm:$0xff]  ;;  %v672_v59 = vld [vmem:[%s5215_s17 + $0xc0] sm:$0xff] }
 0x121   : > { %779 = vmatmul.f32.gmra.mxu0 %v669_v57  ;;  %v5611_v57 = vld [vmem:[%s7588_s1 + $0x1f8] sm:$0xff] }
 0x123   : > { %v5592_v16 = vpop.f32.mrf.mxu2 }
 0x124   : > { %7626 = vst [vmem:[#allocation22_spill] sm:$0xff] %v5592_v16  ;;  %v5594_v26 = vpop.f32.mrf.mxu1  ;;  %4075 = vmatmul.msk.f32.gmra.mxu3 %vm850_vm1, %v5590_v8 }
 0x125   : > { %7627 = vst [vmem:[#allocation23_spill] sm:$0xff] %v5594_v26 }
 0x126   : > { %v5601_v39 = vpop.f32.mrf.mxu0 }
 0x127   : > { %3973 = vmatmul.msk.f32.gmra.mxu1 %vm850_vm1, %v844_v32  ;;  %v5605_v52 = vpop.f32.mrf.mxu3 }
 0x128   : > { %7628 = vst [vmem:[#allocation24_spill] sm:$0xff] %v5605_v52  ;;  %4006 = vmatmul.msk.f32.gmra.mxu2 %vm850_vm1, %v844_v32  ;;  %v4115_v32 = vld [vmem:[%s7588_s1 + $0x200] sm:$0xff]  ;;  %v5642_v52 = vld [vmem:[%s7588_s1 + $0x108] sm:$0xff] }
 0x129   : > { %782 = vmatmul.f32.gmra.mxu0 %v670_v46 }
 0x12b   : > { %v5613_v16 = vpop.f32.mrf.mxu2 }
 0x12c   : > { %7629 = vst [vmem:[#allocation25_spill] sm:$0xff] %v5613_v16  ;;  %v5615_v29 = vpop.f32.mrf.mxu1  ;;  %4076 = vmatmul.msk.f32.gmra.mxu3 %vm850_vm1, %v5611_v57 }
 0x12d   : > { %7630 = vst [vmem:[#allocation26_spill] sm:$0xff] %v5615_v29 }
 0x12e   : > { %v5627_v46 = vpop.f32.mrf.mxu0 }
 0x12f   : > { %4083 = vmatmul.msk.f32.vlgmr.msrb.gmra.mxu1 %vm850_vm1, %v5620_v2  ;;  %v5632_v16 = vpop.f32.mrf.mxu3 }
 0x130   : > { %7631 = vst [vmem:[#allocation27_spill] sm:$0xff] %v5632_v16  ;;  %4153 = vmatmul.msk.f32.vlgmr.msrb.gmra.mxu2 %vm850_vm1, %v4115_v32 }
 0x131   : > { %785 = vmatmul.f32.gmra.mxu0 %v671_v48 }
 0x133   : > { %v5635_v29 = vpop.f32.mrf.mxu2 }
 0x134   : > { %7632 = vst [vmem:[#allocation28_spill] sm:$0xff] %v5635_v29  ;;  %v5637_v26 = vpop.f32.mrf.mxu1  ;;  %4191 = vmatmul.msk.f32.vlgmr.msrb.gmra.mxu3 %vm850_vm1, %v4115_v32  ;;  %v5663_v32 = vld [vmem:[%s7588_s1 + $0x110] sm:$0xff] }
 0x135   : > { %7633 = vst [vmem:[#allocation29_spill] sm:$0xff] %v5637_v26 }
 0x136   : > { %v5648_v16 = vpop.f32.mrf.mxu0 }
 0x137   : > { %4084 = vmatmul.msk.f32.gmra.mxu1 %vm850_vm1, %v5642_v52  ;;  %v5653_v48 = vpop.f32.mrf.mxu3 }
 0x138   : > { %7634 = vst [vmem:[#allocation30_spill] sm:$0xff] %v5653_v48  ;;  %4154 = vmatmul.msk.f32.gmra.mxu2 %vm850_vm1, %v4116_v42 }
 0x139   : > { %788 = vmatmul.f32.gmra.mxu0 %v672_v59 }
 0x13b   : > { %v5656_v29 = vpop.f32.mrf.mxu2 }
 0x13c   : > { %7635 = vst [vmem:[#allocation31_spill] sm:$0xff] %v5656_v29  ;;  %v5658_v26 = vpop.f32.mrf.mxu1  ;;  %4192 = vmatmul.msk.f32.gmra.mxu3 %vm850_vm1, %v4116_v42  ;;  %v5684_v42 = vld [vmem:[%s7588_s1 + $0x118] sm:$0xff] }
 0x13d   : > { %7636 = vst [vmem:[#allocation32_spill] sm:$0xff] %v5658_v26 }
 0x13e   : > { %v5669_v48 = vpop.f32.mrf.mxu0 }
 0x13f   : > { %4085 = vmatmul.msk.f32.gmra.mxu1 %vm850_vm1, %v5663_v32  ;;  %v5674_v59 = vpop.f32.mrf.mxu3 }
 0x140   : > { %7637 = vst [vmem:[#allocation33_spill] sm:$0xff] %v5674_v59  ;;  %4155 = vmatmul.msk.f32.gmra.mxu2 %vm850_vm1, %v4117_v36 }
 0x141   : > { %791 = vmatmul.f32.gmra.mxu0 %v673_v7 }
 0x143   : > { %v5677_v29 = vpop.f32.mrf.mxu2 }
 0x144   : > { %7638 = vst [vmem:[#allocation34_spill] sm:$0xff] %v5677_v29  ;;  %v5679_v26 = vpop.f32.mrf.mxu1  ;;  %4193 = vmatmul.msk.f32.gmra.mxu3 %vm850_vm1, %v4117_v36 }
 0x145   : > { %7639 = vst [vmem:[#allocation35_spill] sm:$0xff] %v5679_v26  ;;  %v4296_v26 = vld [vmem:[%s5091_s27 + $0x90] sm:$0xff] }
 0x146   : > { %v5690_v59 = vpop.f32.mrf.mxu0  ;;  %3131 = vmatpush.msra.mxu1 %v4296_v26  ;;  %v4120_v26 = vld [vmem:[%s7588_s1 + $0x228] sm:$0xff] }
 0x147   : > { %4086 = vmatmul.msk.f32.gmra.mxu1 %vm850_vm1, %v5684_v42  ;;  %v5695_v7 = vpop.f32.mrf.mxu3 }
 0x148   : > { %7640 = vst [vmem:[#allocation36_spill] sm:$0xff] %v5695_v7  ;;  %4156 = vmatmul.msk.f32.gmra.mxu2 %vm850_vm1, %v4118_v19  ;;  %v4119_v7 = vld [vmem:[%s7588_s1 + $0x220] sm:$0xff] }
 0x149   : > { %794 = vmatmul.f32.gmra.mxu0 %v674_v49  ;;  %v675_v49 = vld [vmem:[%s5215_s17 + $0xd8] sm:$0xff] }
 0x14b   : > { %v5698_v29 = vpop.f32.mrf.mxu2 }
 0x14c   : > { %7641 = vst [vmem:[#allocation37_spill] sm:$0xff] %v5698_v29  ;;  %v5701_v36 = vpop.f32.mrf.mxu1  ;;  %4194 = vmatmul.msk.f32.gmra.mxu3 %vm850_vm1, %v4118_v19  ;;  %v5727_v19 = vld [vmem:[%s7588_s1 + $0x128] sm:$0xff] }
 0x14d   : > { %7642 = vst [vmem:[#allocation38_spill] sm:$0xff] %v5701_v36 }
 0x14e   : > { %v5712_v60 = vpop.f32.mrf.mxu0 }
 0x14f   : > { %7643 = vst [vmem:[#allocation39_spill] sm:$0xff] %v5712_v60  ;;  %4087 = vmatmul.msk.f32.gmra.mxu1 %vm850_vm1, %v5706_v23  ;;  %v5717_v29 = vpop.f32.mrf.mxu3  ;;  %v677_v60 = vld [vmem:[%s5215_s17 + $0xe8] sm:$0xff] }
 0x150   : > { %7644 = vst [vmem:[#allocation40_spill] sm:$0xff] %v5717_v29  ;;  %4157 = vmatmul.msk.f32.gmra.mxu2 %vm850_vm1, %v4119_v7 }
 0x151   : > { %797 = vmatmul.f32.gmra.mxu0 %v675_v49 }
 0x153   : > { %v5720_v36 = vpop.f32.mrf.mxu2 }
 0x154   : > { %7645 = vst [vmem:[#allocation41_spill] sm:$0xff] %v5720_v36  ;;  %v5722_v38 = vpop.f32.mrf.mxu1  ;;  %4195 = vmatmul.msk.f32.gmra.mxu3 %vm850_vm1, %v4119_v7  ;;  %v5748_v7 = vld [vmem:[%s7588_s1 + $0x130] sm:$0xff] }
 0x155   : > { %7646 = vst [vmem:[#allocation42_spill] sm:$0xff] %v5722_v38 }
 0x156   : > { %v5733_v29 = vpop.f32.mrf.mxu0 }
 0x157   : > { %7647 = vst [vmem:[#allocation43_spill] sm:$0xff] %v5733_v29  ;;  %4088 = vmatmul.msk.f32.gmra.mxu1 %vm850_vm1, %v5727_v19  ;;  %v5738_v49 = vpop.f32.mrf.mxu3  ;;  %v4121_v29 = vld [vmem:[%s7588_s1 + $0x230] sm:$0xff] }
 0x158   : > { %7648 = vst [vmem:[#allocation44_spill] sm:$0xff] %v5738_v49  ;;  %4158 = vmatmul.msk.f32.gmra.mxu2 %vm850_vm1, %v4120_v26 }
 0x159   : > { %800 = vmatmul.f32.gmra.mxu0 %v676_v13 }
 0x15b   : > { %v5741_v36 = vpop.f32.mrf.mxu2 }
 0x15c   : > { %7649 = vst [vmem:[#allocation45_spill] sm:$0xff] %v5741_v36  ;;  %v5743_v38 = vpop.f32.mrf.mxu1  ;;  %4196 = vmatmul.msk.f32.gmra.mxu3 %vm850_vm1, %v4120_v26  ;;  %v4122_v26 = vld [vmem:[%s7588_s1 + $0x238] sm:$0xff] }
 0x15d   : > { %7650 = vst [vmem:[#allocation46_spill] sm:$0xff] %v5743_v38 }
 0x15e   : > { %v5754_v49 = vpop.f32.mrf.mxu0 }
 0x15f   : > { %7651 = vst [vmem:[#allocation47_spill] sm:$0xff] %v5754_v49  ;;  %4089 = vmatmul.msk.f32.gmra.mxu1 %vm850_vm1, %v5748_v7  ;;  %v5759_v13 = vpop.f32.mrf.mxu3 }
 0x160   : > { %7652 = vst [vmem:[#allocation48_spill] sm:$0xff] %v5759_v13  ;;  %4159 = vmatmul.msk.f32.gmra.mxu2 %vm850_vm1, %v4121_v29 }
 0x161   : > { %803 = vmatmul.f32.gmra.mxu0 %v677_v60 }
 0x163   : > { %v5762_v36 = vpop.f32.mrf.mxu2 }
 0x164   : > { %7653 = vst [vmem:[#allocation49_spill] sm:$0xff] %v5762_v36  ;;  %v5764_v38 = vpop.f32.mrf.mxu1  ;;  %4197 = vmatmul.msk.f32.gmra.mxu3 %vm850_vm1, %v4121_v29  ;;  %v4123_v29 = vld [vmem:[%s7588_s1 + $0x240] sm:$0xff] }
 0x165   : > { %7654 = vst [vmem:[#allocation50_spill] sm:$0xff] %v5764_v38 }
 0x166   : > { %v5770_v49 = vpop.f32.mrf.mxu0 }
 0x167   : > { %7655 = vst [vmem:[#allocation51_spill] sm:$0xff] %v5770_v49  ;;  %4090 = vmatmul.msk.f32.gmra.mxu1 %vm850_vm1, %v5181_v3  ;;  %v5775_v13 = vpop.f32.mrf.mxu3  ;;  %v679_v49 = vld [vmem:[%s5215_s17 + $0xf8] sm:$0xff] }
 0x168   : > { %7656 = vst [vmem:[#allocation52_spill] sm:$0xff] %v5775_v13  ;;  %4160 = vmatmul.msk.f32.gmra.mxu2 %vm850_vm1, %v4122_v26  ;;  %v5952_v13 = vld [vmem:[%s7588_s1 + $0x30] sm:$0xff] }
 0x169   : > { %806 = vmatmul.f32.gmra.mxu0 %v678_v44 }
 0x16b   : > { %v5778_v60 = vpop.f32.mrf.mxu2 }
 0x16c   : > { %7657 = vst [vmem:[#allocation53_spill] sm:$0xff] %v5778_v60  ;;  %v5780_v36 = vpop.f32.mrf.mxu1  ;;  %4198 = vmatmul.msk.f32.gmra.mxu3 %vm850_vm1, %v4122_v26  ;;  %v4124_v26 = vld [vmem:[%s7588_s1 + $0x248] sm:$0xff] }
 0x16d   : > { %7658 = vst [vmem:[#allocation54_spill] sm:$0xff] %v5780_v36 }
 0x16e   : > { %v5786_v38 = vpop.f32.mrf.mxu0 }
 0x16f   : > { %7659 = vst [vmem:[#allocation55_spill] sm:$0xff] %v5786_v38  ;;  %4091 = vmatmul.msk.f32.gmra.mxu1 %vm850_vm1, %v5207_v9  ;;  %v5791_v3 = vpop.f32.mrf.mxu3  ;;  %v5807_v9 = vld [vmem:[%s7588_s1] sm:$0xff] }
 0x170   : > { %7660 = vst [vmem:[#allocation56_spill] sm:$0xff] %v5791_v3  ;;  %4161 = vmatmul.msk.f32.gmra.mxu2 %vm850_vm1, %v4123_v29 }
 0x171   : > { %809 = vmatmul.f32.gmra.mxu0 %v679_v49 }
 0x173   : > { %v5794_v44 = vpop.f32.mrf.mxu2 }
 0x174   : > { %7661 = vst [vmem:[#allocation57_spill] sm:$0xff] %v5794_v44  ;;  %v5796_v60 = vpop.f32.mrf.mxu1  ;;  %4199 = vmatmul.msk.f32.gmra.mxu3 %vm850_vm1, %v4123_v29 }
 0x175   : > { %7662 = vst [vmem:[#allocation58_spill] sm:$0xff] %v5796_v60 }
 0x176   : > { %v5802_v36 = vpop.f32.mrf.mxu0 }
 0x177   : > { %7663 = vst [vmem:[#allocation59_spill] sm:$0xff] %v5802_v36  ;;  %4092 = vmatmul.msk.f32.gmra.mxu1 %vm850_vm1, %v5232_v15  ;;  %v5811_v49 = vpop.f32.mrf.mxu3  ;;  %v4125_v15 = vld [vmem:[%s7588_s1 + $0x250] sm:$0xff] }
 0x178   : > { %7664 = vst [vmem:[#allocation60_spill] sm:$0xff] %v5811_v49  ;;  %4162 = vmatmul.msk.f32.gmra.mxu2 %vm850_vm1, %v4124_v26  ;;  %v5832_v49 = vld [vmem:[%s7588_s1 + $0x8] sm:$0xff] }
 0x179   : > { %3942 = vmatmul.msk.f32.vlgmr.msrb.gmra.mxu0 %vm850_vm1, %v5807_v9 }
 0x17a   : > { %4044 = vmatpush.msk.msrb.mxu0 %vm947_vm0, %v5117_v51 }
 0x17b   : > { %v5818_v29 = vpop.f32.mrf.mxu2 }
 0x17c   : > { %7665 = vst [vmem:[#allocation61_spill] sm:$0xff] %v5818_v29  ;;  %v5820_v44 = vpop.f32.mrf.mxu1  ;;  %4200 = vmatmul.msk.f32.gmra.mxu3 %vm850_vm1, %v4124_v26  ;;  %1591 = vmatpush.msrb.mxu0 %v5129_v54  ;;  %v4295_v26 = vld [vmem:[%s5091_s27 + $0x88] sm:$0xff] }
 0x17d   : > { %7666 = vst [vmem:[#allocation62_spill] sm:$0xff] %v5820_v44  ;;  %3132 = vmatpush.msra.mxu1 %v4295_v26 }
 0x17e   : > { %v5827_v60 = vpop.f32.mrf.mxu0  ;;  %1592 = vmatpush.msrb.mxu0 %v5136_v56  ;;  %v4126_v56 = vld [vmem:[%s7588_s1 + $0x258] sm:$0xff] }
 0x17f   : > { %7667 = vst [vmem:[#allocation63_spill] sm:$0xff] %v5827_v60  ;;  %4093 = vmatmul.msk.f32.gmra.mxu1 %vm850_vm1, %v5250_v18  ;;  %v5837_v51 = vpop.f32.mrf.mxu3 }
 0x180   : > { %7668 = vst [vmem:[#allocation64_spill] sm:$0xff] %v5837_v51  ;;  %4163 = vmatmul.msk.f32.gmra.mxu2 %vm850_vm1, %v4125_v15  ;;  %1593 = vmatpush.msrb.mxu0 %v5161_v63  ;;  %v5858_v63 = vld [vmem:[%s7588_s1 + $0x10] sm:$0xff] }
 0x181   : > { %3943 = vmatmul.msk.f32.gmra.mxu0 %vm850_vm1, %v5832_v49 }
 0x182   : > { %1594 = vmatpush.msrb.mxu0 %v5170_v1 }
 0x183   : > { %v5844_v54 = vpop.f32.mrf.mxu2 }
 0x184   : > { %7669 = vst [vmem:[#allocation65_spill] sm:$0xff] %v5844_v54  ;;  %v5847_v29 = vpop.f32.mrf.mxu1  ;;  %4201 = vmatmul.msk.f32.gmra.mxu3 %vm850_vm1, %v4125_v15  ;;  %v4127_v54 = vld [vmem:[%s7588_s1 + $0x260] sm:$0xff] }
 0x185   : > { %7670 = vst [vmem:[#allocation66_spill] sm:$0xff] %v5847_v29 }
 0x186   : > { %v5853_v18 = vpop.f32.mrf.mxu0 }
 0x187   : > { %7671 = vst [vmem:[#allocation67_spill] sm:$0xff] %v5853_v18  ;;  %4094 = vmatmul.msk.f32.gmra.mxu1 %vm850_vm1, %v5268_v21  ;;  %v5862_v1 = vpop.f32.mrf.mxu3  ;;  %v5880_v21 = vld [vmem:[%s7588_s1 + $0x18] sm:$0xff] }
 0x188   : > { %7672 = vst [vmem:[#allocation68_spill] sm:$0xff] %v5862_v1  ;;  %4164 = vmatmul.msk.f32.gmra.mxu2 %vm850_vm1, %v4126_v56  ;;  %v4259_v18 = vld [vmem:[%s5086_s19 + $0x98] sm:$0xf] }
 0x189   : > { %3944 = vmatmul.msk.f32.gmra.mxu0 %vm850_vm1, %v5858_v63 }
 0x18b   : > { %v5867_v15 = vpop.f32.mrf.mxu2 }
 0x18c   : > { %7673 = vst [vmem:[#allocation69_spill] sm:$0xff] %v5867_v15  ;;  %v5869_v26 = vpop.f32.mrf.mxu1  ;;  %4202 = vmatmul.msk.f32.gmra.mxu3 %vm850_vm1, %v4126_v56 }
 0x18d   : > { %7674 = vst [vmem:[#allocation70_spill] sm:$0xff] %v5869_v26  ;;  %v4128_v26 = vld [vmem:[%s7588_s1 + $0x268] sm:$0xff] }
 0x18e   : > { %v5875_v29 = vpop.f32.mrf.mxu0 }
 0x18f   : > { %7675 = vst [vmem:[#allocation71_spill] sm:$0xff] %v5875_v29  ;;  %4095 = vmatmul.msk.f32.gmra.mxu1 %vm850_vm1, %v5283_v24  ;;  %v5884_v1 = vpop.f32.mrf.mxu3  ;;  %v5902_v24 = vld [vmem:[%s7588_s1 + $0x20] sm:$0xff] }
 0x190   : > { %7676 = vst [vmem:[#allocation72_spill] sm:$0xff] %v5884_v1  ;;  %4165 = vmatmul.msk.f32.gmra.mxu2 %vm850_vm1, %v4127_v54 }
 0x191   : > { %3945 = vmatmul.msk.f32.gmra.mxu0 %vm850_vm1, %v5880_v21 }
 0x193   : > { %v5889_v56 = vpop.f32.mrf.mxu2 }
 0x194   : > { %7677 = vst [vmem:[#allocation73_spill] sm:$0xff] %v5889_v56  ;;  %v5891_v15 = vpop.f32.mrf.mxu1  ;;  %4203 = vmatmul.msk.f32.gmra.mxu3 %vm850_vm1, %v4127_v54 }
 0x195   : > { %7678 = vst [vmem:[#allocation74_spill] sm:$0xff] %v5891_v15  ;;  %v4129_v15 = vld [vmem:[%s7588_s1 + $0x270] sm:$0xff] }
 0x196   : > { %v5897_v44 = vpop.f32.mrf.mxu0 }
 0x197   : > { %7679 = vst [vmem:[#allocation75_spill] sm:$0xff] %v5897_v44  ;;  %4096 = vmatmul.msk.f32.gmra.mxu1 %vm850_vm1, %v5296_v27  ;;  %v5906_v1 = vpop.f32.mrf.mxu3  ;;  %v5924_v27 = vld [vmem:[%s7588_s1 + $0x28] sm:$0xff] }
 0x198   : > { %7680 = vst [vmem:[#allocation76_spill] sm:$0xff] %v5906_v1  ;;  %4166 = vmatmul.msk.f32.gmra.mxu2 %vm850_vm1, %v4128_v26  ;;  %v4132_v44 = vld [vmem:[%s7588_s1 + $0x288] sm:$0xff] }
 0x199   : > { %3946 = vmatmul.msk.f32.gmra.mxu0 %vm850_vm1, %v5902_v24 }
 0x19b   : > { %v5911_v54 = vpop.f32.mrf.mxu2 }
 0x19c   : > { %7681 = vst [vmem:[#allocation77_spill] sm:$0xff] %v5911_v54  ;;  %v5913_v56 = vpop.f32.mrf.mxu1  ;;  %4204 = vmatmul.msk.f32.gmra.mxu3 %vm850_vm1, %v4128_v26  ;;  %v3455_v26 = vld [vmem:[%s7594_s7 + $0x78] sm:$0xff] }
 0x19d   : > { %7682 = vst [vmem:[#allocation78_spill] sm:$0xff] %v5913_v56  ;;  %v3439_v54 = vld [vmem:[%s7593_s6 + $0x78] sm:$0xff]  ;;  %3456 = vmatpush.msra.mxu2 %v3455_v26 }
 0x19e   : > { %v5919_v51 = vpop.f32.mrf.mxu0  ;;  %3569 = vmatpush.msra.mxu3 %v3439_v54 }
 0x19f   : > { %7683 = vst [vmem:[#allocation79_spill] sm:$0xff] %v5919_v51  ;;  %4097 = vmatmul.msk.f32.gmra.mxu1 %vm850_vm1, %v5310_v31  ;;  %v5928_v1 = vpop.f32.mrf.mxu3 }
 0x1a0   : > { %7684 = vst [vmem:[#allocation80_spill] sm:$0xff] %v5928_v1  ;;  %4167 = vmatmul.msk.f32.gmra.mxu2 %vm850_vm1, %v4129_v15  ;;  %v4130_v1 = vld [vmem:[%s7588_s1 + $0x278] sm:$0xff] }
 0x1a1   : > { %3947 = vmatmul.msk.f32.gmra.mxu0 %vm850_vm1, %v5924_v27 }
 0x1a3   : > { %v5939_v56 = vpop.f32.mrf.mxu2 }
 0x1a4   : > { %7685 = vst [vmem:[#allocation81_spill] sm:$0xff] %v5939_v56  ;;  %v5941_v31 = vpop.f32.mrf.mxu1  ;;  %4205 = vmatmul.msk.f32.gmra.mxu3 %vm850_vm1, %v4129_v15  ;;  %v4131_v56 = vld [vmem:[%s7588_s1 + $0x280] sm:$0xff] }
 0x1a5   : > { %7686 = vst [vmem:[#allocation82_spill] sm:$0xff] %v5941_v31 }
 0x1a6   : > { %v5947_v3 = vpop.f32.mrf.mxu0 }
 0x1a7   : > { %7687 = vst [vmem:[#allocation83_spill] sm:$0xff] %v5947_v3  ;;  %4098 = vmatmul.msk.f32.gmra.mxu1 %vm850_vm1, %v5323_v34  ;;  %v5956_v54 = vpop.f32.mrf.mxu3  ;;  %v5972_v34 = vld [vmem:[%s7592_s5] ss:$0 sm:$0xff] }
 0x1a8   : > { %7688 = vst [vmem:[#allocation84_spill] sm:$0xff] %v5956_v54  ;;  %4168 = vmatmul.msk.f32.gmra.mxu2 %vm850_vm1, %v4130_v1  ;;  %v3438_v54 = vld [vmem:[%s7593_s6 + $0x70] sm:$0xff] }
 0x1a9   : > { %3948 = vmatmul.msk.f32.gmra.mxu0 %vm850_vm1, %v5952_v13  ;;  %3570 = vmatpush.msra.mxu3 %v3438_v54 }
 0x1ab   : > { %v5961_v15 = vpop.f32.mrf.mxu2 }
 0x1ac   : > { %7689 = vst [vmem:[#allocation85_spill] sm:$0xff] %v5961_v15  ;;  %v5963_v26 = vpop.f32.mrf.mxu1  ;;  %4206 = vmatmul.msk.f32.gmra.mxu3 %vm850_vm1, %v4130_v1  ;;  %v3454_v1 = vld [vmem:[%s7594_s7 + $0x70] sm:$0xff] }
 0x1ad   : > { %3457 = vmatpush.msra.mxu2 %v3454_v1 }
 0x1ae   : > { %v5974_v31 = vpop.f32.mrf.mxu0 }
 0x1af   : > { %7690 = vst [vmem:[#allocation86_spill] sm:$0xff] %v5974_v31  ;;  %4099 = vmatmul.msk.f32.gmra.mxu1 %vm850_vm1, %v5336_v37  ;;  %v5978_v15 = vpop.f32.mrf.mxu3  ;;  %v5991_v31 = vadd.f32 %v5972_v34, %v5465_v17 }
 0x1b0   : > { %7691 = vst [vmem:[#allocation87_spill] sm:$0xff] %v5978_v15  ;;  %4169 = vmatmul.msk.f32.gmra.mxu2 %vm850_vm1, %v4131_v56  ;;  %v4294_v15 = vld [vmem:[%s5091_s27 + $0x80] sm:$0xff] }
 0x1b1   : > { %3975 = vmatmul.msk.f32.vlgmr.msra.gmra.mxu0 %vm850_vm1, %v5807_v9  ;;  %3133 = vmatpush.msra.mxu1 %v4294_v15 }
 0x1b2   : > { %4260 = vmatpush.msk.msra.mxu0 %vm947_vm0, %v4259_v18  ;;  %v3452_v18 = vld [vmem:[%s7594_s7 + $0x60] sm:$0xff] }
 0x1b3   : > { %v2225_v37 = vpop.f32.mrf.mxu2 }
 0x1b4   : > { %v2321_v3 = vsub.f32 %v5991_v31, %v2225_v37  ;;  %v5995_v51 = vpop.f32.mrf.mxu1  ;;  %4207 = vmatmul.msk.f32.gmra.mxu3 %vm850_vm1, %v4131_v56  ;;  %v6010_v56 = vadd.f32 %v5972_v34, %v5488_v30 }
 0x1b6   : > { %v2353_v9 = vmul.f32 0.5, %v2321_v3  ;;  %v6001_v1 = vpop.f32.mrf.mxu0 }
 0x1b7   : > { %7692 = vst [vmem:[#allocation88_spill] sm:$0xff] %v6001_v1  ;;  %4100 = vmatmul.msk.f32.gmra.mxu1 %vm850_vm1, %v5349_v40  ;;  %v2507_v17 = vpop.f32.mrf.mxu3  ;;  %v4133_v40 = vld [vmem:[%s7588_s1 + $0x290] sm:$0xff] }
 0x1b8   : > { %4417 = vtanh.f32 %v2353_v9  ;;  %4170 = vmatmul.msk.f32.gmra.mxu2 %vm850_vm1, %v4132_v44 }
 0x1b9   : > { %3976 = vmatmul.msk.f32.gmra.mxu0 %vm850_vm1, %v5832_v49 }
 0x1bb   : > { %v2228_v54 = vpop.f32.mrf.mxu2 }
 0x1bc   : > { %v2322_v15 = vsub.f32 %v6010_v56, %v2228_v54  ;;  %v6013_v3 = vpop.f32.mrf.mxu1  ;;  %4208 = vmatmul.msk.f32.gmra.mxu3 %vm850_vm1, %v4132_v44  ;;  %v3453_v44 = vld [vmem:[%s7594_s7 + $0x68] sm:$0xff] }
 0x1bd   : > { %v3437_v54 = vld [vmem:[%s7593_s6 + $0x68] sm:$0xff]  ;;  %3458 = vmatpush.msra.mxu2 %v3453_v44 }
 0x1be   : > { %v4418_v37 = vpop.eup %4417  ;;  %v2354_v9 = vmul.f32 0.5, %v2322_v15  ;;  %v6019_v1 = vpop.f32.mrf.mxu0  ;;  %3571 = vmatpush.msra.mxu3 %v3437_v54 }
 0x1bf   : > { %7693 = vst [vmem:[#allocation89_spill] sm:$0xff] %v6019_v1  ;;  %4101 = vmatmul.msk.f32.gmra.mxu1 %vm850_vm1, %v5362_v43  ;;  %v2417_v30 = vmul.f32 0.5, %v4418_v37  ;;  %v2510_v49 = vpop.f32.mrf.mxu3  ;;  %v6036_v43 = vadd.f32 %v5972_v34, %v5509_v41  ;;  %3459 = vmatpush.msra.mxu2 %v3452_v18 }
 0x1c0   : > { %4419 = vtanh.f32 %v2354_v9  ;;  %4171 = vmatmul.msk.f32.gmra.mxu2 %vm850_vm1, %v4133_v40 }
 0x1c1   : > { %3977 = vmatmul.msk.f32.gmra.mxu0 %vm850_vm1, %v5858_v63  ;;  %v6032_v15 = vadd.f32 0.5, %v2417_v30  ;;  %v4134_v63 = vld [vmem:[%s7588_s1 + $0x298] sm:$0xff] }
 0x1c3   : > { %v6039_v37 = vmul.f32 %v2507_v17, %v6032_v15  ;;  %v2231_v9 = vpop.f32.mrf.mxu2 }
 0x1c4   : > { %v2323_v1 = vsub.f32 %v6036_v43, %v2231_v9  ;;  %v6042_v29 = vpop.f32.mrf.mxu1  ;;  %4209 = vmatmul.msk.f32.gmra.mxu3 %vm850_vm1, %v4133_v40  ;;  %v6059_v9 = vadd.f32 %v5972_v34, %v5532_v55 }
 0x1c6   : > { %v4420_v30 = vpop.eup %4419  ;;  %v2355_v44 = vmul.f32 0.5, %v2323_v1  ;;  %v6048_v41 = vpop.f32.mrf.mxu0 }
 0x1c7   : > { %7694 = vst [vmem:[#allocation90_spill] sm:$0xff] %v6048_v41  ;;  %4102 = vmatmul.msk.f32.gmra.mxu1 %vm850_vm1, %v5376_v47  ;;  %v2418_v17 = vmul.f32 0.5, %v4420_v30  ;;  %v2513_v54 = vpop.f32.mrf.mxu3 }
 0x1c8   : > { %4421 = vtanh.f32 %v2355_v44  ;;  %4172 = vmatmul.msk.f32.gmra.mxu2 %vm850_vm1, %v4134_v63 }
 0x1c9   : > { %3978 = vmatmul.msk.f32.gmra.mxu0 %vm850_vm1, %v5880_v21  ;;  %v6055_v40 = vadd.f32 0.5, %v2418_v17  ;;  %v4135_v21 = vld [vmem:[%s7588_s1 + $0x2a0] sm:$0xff] }
 0x1cb   : > { %v6062_v1 = vmul.f32 %v2510_v49, %v6055_v40  ;;  %v2234_v41 = vpop.f32.mrf.mxu2 }
 0x1cc   : > { %v2324_v47 = vsub.f32 %v6059_v9, %v2234_v41  ;;  %v6066_v30 = vpop.f32.mrf.mxu1  ;;  %4210 = vmatmul.msk.f32.gmra.mxu3 %vm850_vm1, %v4134_v63  ;;  %v3436_v63 = vld [vmem:[%s7593_s6 + $0x60] sm:$0xff] }
 0x1cd   : > { %3572 = vmatpush.msra.mxu3 %v3436_v63  ;;  %v6114_v63 = vadd.f32 %v5972_v34, %v5580_v53  ;;  %v4137_v53 = vld [vmem:[%s7588_s1 + $0x2b0] sm:$0xff] }
 0x1ce   : > { %v4422_v44 = vpop.eup %4421  ;;  %v2356_v55 = vmul.f32 0.5, %v2324_v47  ;;  %v6073_v17 = vpop.f32.mrf.mxu0 }
 0x1cf   : > { %7695 = vst [vmem:[#allocation91_spill] sm:$0xff] %v6073_v17  ;;  %4103 = vmatmul.msk.f32.gmra.mxu1 %vm850_vm1, %v5389_v50  ;;  %v2419_v49 = vmul.f32 0.5, %v4422_v44  ;;  %v2516_v41 = vpop.f32.mrf.mxu3  ;;  %v6090_v50 = vadd.f32 %v5972_v34, %v5554_v11 }
 0x1d0   : > { %4423 = vtanh.f32 %v2356_v55  ;;  %4173 = vmatmul.msk.f32.gmra.mxu2 %vm850_vm1, %v4135_v21 }
 0x1d1   : > { %3979 = vmatmul.msk.f32.gmra.mxu0 %vm850_vm1, %v5902_v24  ;;  %v6086_v47 = vadd.f32 0.5, %v2419_v49  ;;  %v4136_v24 = vld [vmem:[%s7588_s1 + $0x2a8] sm:$0xff] }
 0x1d3   : > { %v6093_v44 = vmul.f32 %v2513_v54, %v6086_v47  ;;  %v2237_v55 = vpop.f32.mrf.mxu2  ;;  %v4258_v54 = vld [vmem:[%s5086_s19 + $0x90] sm:$0xff] }
 0x1d4   : > { %v2325_v17 = vsub.f32 %v6090_v50, %v2237_v55  ;;  %v6096_v60 = vpop.f32.mrf.mxu1  ;;  %4211 = vmatmul.msk.f32.gmra.mxu3 %vm850_vm1, %v4135_v21  ;;  %2849 = vmatpush.msra.mxu0 %v4258_v54 }
 0x1d5   : > { %7696 = vst [vmem:[#allocation92_spill] sm:$0xff] %v6096_v60 }
 0x1d6   : > { %v4424_v49 = vpop.eup %4423  ;;  %v2357_v18 = vmul.f32 0.5, %v2325_v17  ;;  %v6102_v36 = vpop.f32.mrf.mxu0  ;;  %v6118_v17 = vadd.f32 %v5972_v34, %v5627_v46 }
 0x1d7   : > { %7697 = vst [vmem:[#allocation93_spill] sm:$0xff] %v6102_v36  ;;  %4104 = vmatmul.msk.f32.gmra.mxu1 %vm850_vm1, %v5406_v58  ;;  %v2420_v11 = vmul.f32 0.5, %v4424_v49  ;;  %v2519_v55 = vpop.f32.mrf.mxu3 }
 0x1d8   : > { %4425 = vtanh.f32 %v2357_v18  ;;  %4174 = vmatmul.msk.f32.gmra.mxu2 %vm850_vm1, %v4136_v24  ;;  %7698 = vst [vmem:[#allocation94_spill] sm:$0xff] %v6118_v17  ;;  %v1071_v46 = vsub.f32 %v6118_v17, %v5421_v62  ;;  %v3435_v62 = vld [vmem:[%s7593_s6 + $0x58] sm:$0xff] }
 0x1d9   : > { %3980 = vmatmul.msk.f32.gmra.mxu0 %vm850_vm1, %v5924_v27  ;;  %v6110_v21 = vadd.f32 0.5, %v2420_v11  ;;  %3573 = vmatpush.msra.mxu3 %v3435_v62 }
 0x1db   : > { %v6121_v58 = vmul.f32 %v2516_v41, %v6110_v21  ;;  %v2240_v49 = vpop.f32.mrf.mxu2 }
 0x1dc   : > { %v2326_v18 = vsub.f32 %v6114_v63, %v2240_v49  ;;  %v6124_v36 = vpop.f32.mrf.mxu1  ;;  %4212 = vmatmul.msk.f32.gmra.mxu3 %vm850_vm1, %v4136_v24  ;;  %v1699_v49 = vsub.f32 %v6118_v17, %v5447_v10  ;;  %v3451_v24 = vld [vmem:[%s7594_s7 + $0x58] sm:$0xff]  ;;  %v6151_v10 = vadd.f32 %v5972_v34, %v5601_v39 }
 0x1dd   : > { %7699 = vst [vmem:[#allocation95_spill] sm:$0xff] %v6124_v36  ;;  %3460 = vmatpush.msra.mxu2 %v3451_v24  ;;  %v4257_v36 = vld [vmem:[%s5086_s19 + $0x88] sm:$0xff]  ;;  %v4138_v39 = vld [vmem:[%s7588_s1 + $0x2b8] sm:$0xff] }
 0x1de   : > { %v4426_v27 = vpop.eup %4425  ;;  %v2358_v11 = vmul.f32 0.5, %v2326_v18  ;;  %v6132_v54 = vpop.f32.mrf.mxu0  ;;  %v1103_v18 = vmul.f32 0.5, %v1071_v46  ;;  %2850 = vmatpush.msra.mxu0 %v4257_v36  ;;  %v4293_v24 = vld [vmem:[%s5091_s27 + $0x78] sm:$0xff] }
 0x1df   : > { %7700 = vst [vmem:[#allocation96_spill] sm:$0xff] %v6132_v54  ;;  %4105 = vmatmul.msk.f32.gmra.mxu1 %vm850_vm1, %v5419_v61  ;;  %v2421_v41 = vmul.f32 0.5, %v4426_v27  ;;  %v1731_v54 = vmul.f32 0.5, %v1699_v49 }
 0x1e0   : > { %4427 = vtanh.f32 %v2358_v11  ;;  %4175 = vmatmul.msk.f32.gmra.mxu2 %vm850_vm1, %v4137_v53  ;;  %3134 = vmatpush.msra.mxu1 %v4293_v24  ;;  %v4256_v24 = vld [vmem:[%s5086_s19 + $0x80] sm:$0xff] }
 0x1e1   : > { %3981 = vmatmul.msk.f32.gmra.mxu0 %vm850_vm1, %v5952_v13  ;;  %v6147_v61 = vadd.f32 0.5, %v2421_v41  ;;  %v2522_v13 = vpop.f32.mrf.mxu3  ;;  %4429 = vtanh.f32 %v1103_v18 }
 0x1e2   : > { %4431 = vtanh.f32 %v1731_v54  ;;  %2851 = vmatpush.msra.mxu0 %v4256_v24 }
 0x1e3   : > { %v6154_v27 = vmul.f32 %v2519_v55, %v6147_v61  ;;  %v2243_v11 = vpop.f32.mrf.mxu2 }
 0x1e4   : > { %v2327_v38 = vsub.f32 %v6151_v10, %v2243_v11  ;;  %v1899_v60 = vpop.f32.mrf.mxu1  ;;  %4213 = vmatmul.msk.f32.gmra.mxu3 %vm850_vm1, %v4137_v53 }
 0x1e5   : > { %7701 = vst [vmem:[#allocation97_spill] sm:$0xff] %v6154_v27 }
 0x1e6   : > { %v4428_v46 = vpop.eup %4427  ;;  %v2359_v41 = vmul.f32 0.5, %v2327_v38  ;;  %v6162_v55 = vpop.f32.mrf.mxu0 }
 0x1e7   : > { %7702 = vst [vmem:[#allocation98_spill] sm:$0xff] %v6162_v55  ;;  %4106 = vmatmul.msk.f32.gmra.mxu1 %vm850_vm1, %v5434_v4  ;;  %v2422_v49 = vmul.f32 0.5, %v4428_v46  ;;  %v4430_v54 = vpop.eup %4429 }
 0x1e8   : > { %4433 = vtanh.f32 %v2359_v41  ;;  %4176 = vmatmul.msk.f32.gmra.mxu2 %vm850_vm1, %v4138_v39  ;;  %v4432_v18 = vpop.eup %4431 }
 0x1e9   : > { %4045 = vmatmul.msk.f32.vlgmr.msrb.gmra.mxu0 %vm850_vm1, %v5620_v2  ;;  %v6170_v36 = vadd.f32 0.5, %v2422_v49  ;;  %v4139_v2 = vld [vmem:[%s7588_s1 + $0x2c0] sm:$0xff]  ;;  %v1795_v55 = vmul.f32 0.5, %v4432_v18 }
 0x1eb   : > { %v6173_v38 = vmul.f32 %v2522_v13, %v6170_v36  ;;  %v2246_v53 = vpop.f32.mrf.mxu2  ;;  %v2525_v13 = vpop.f32.mrf.mxu3 }
 0x1ec   : > { %v2328_v62 = vsub.f32 %v6118_v17, %v2246_v53  ;;  %v6176_v4 = vpop.f32.mrf.mxu1  ;;  %4214 = vmatmul.msk.f32.gmra.mxu3 %vm850_vm1, %v4138_v39  ;;  %v3450_v39 = vld [vmem:[%s7594_s7 + $0x50] sm:$0xff] }
 0x1ed   : > { %7703 = vst [vmem:[#allocation99_spill] sm:$0xff] %v6173_v38  ;;  %v3434_v53 = vld [vmem:[%s7593_s6 + $0x50] sm:$0xff]  ;;  %3461 = vmatpush.msra.mxu2 %v3450_v39 }
 0x1ee   : > { %7704 = vst [vmem:[#allocation100_spill] sm:$0xff] %v6176_v4  ;;  %v4434_v11 = vpop.eup %4433  ;;  %v2360_v46 = vmul.f32 0.5, %v2328_v62  ;;  %v6182_v41 = vpop.f32.mrf.mxu0  ;;  %v1167_v62 = vmul.f32 0.5, %v4430_v54  ;;  %3574 = vmatpush.msra.mxu3 %v3434_v53  ;;  %v1827_v4 = vadd.f32 0.5, %v1795_v55  ;;  %v4140_v54 = vld [vmem:[%s7588_s1 + $0x2c8] sm:$0xff] }
 0x1ef   : > { %7705 = vst [vmem:[#allocation101_spill] sm:$0xff] %v6182_v41  ;;  %4107 = vmatmul.msk.f32.gmra.mxu1 %vm850_vm1, %v5454_v12  ;;  %v2423_v49 = vmul.f32 0.5, %v4434_v11 }
 0x1f0   : > { %4435 = vtanh.f32 %v2360_v46  ;;  %4177 = vmatmul.msk.f32.gmra.mxu2 %vm850_vm1, %v4139_v2  ;;  %v1199_v46 = vadd.f32 0.5, %v1167_v62 }
 0x1f1   : > { %4046 = vmatmul.msk.f32.gmra.mxu0 %vm850_vm1, %v5642_v52  ;;  %v6196_v41 = vadd.f32 0.5, %v2423_v49  ;;  %v1981_v49 = vmul.f32 %v1899_v60, %v1827_v4 }
 0x1f2   : > { %v2045_v39 = vadd.f32 %v1827_v4, %v1199_v46 }
 0x1f3   : > { %7706 = vst [vmem:[#allocation102_spill] sm:$0xff] %v6196_v41  ;;  %v6199_v12 = vmul.f32 %v2525_v13, %v6196_v41  ;;  %v2528_v24 = vpop.f32.mrf.mxu3 }
 0x1f4   : > { %v6201_v11 = vpop.f32.mrf.mxu1  ;;  %4215 = vmatmul.msk.f32.gmra.mxu3 %vm850_vm1, %v4139_v2  ;;  %v1352_v2 = vmul.f32 %v5436_v5, %v1199_v46  ;;  %v4141_v5 = vld [vmem:[%s7588_s1 + $0x2d0] sm:$0xff] }
 0x1f5   : > { %7707 = vst [vmem:[#allocation103_spill] sm:$0xff] %v6199_v12  ;;  %v4255_v12 = vld [vmem:[%s5086_s19 + $0x78] sm:$0xff]  ;;  %s7244_s19 = scalar_lea.vmem [#allocation4], %s3938_s15  ;;  %s4789_s15 = scalar_lea.hbm %s4788_s12, 256 }
 0x1f6   : > { %7708 = vst [vmem:[#allocation104_spill] sm:$0xff] %v6201_v11  ;;  %v4436_v52 = vpop.eup %4435  ;;  %v6207_v18 = vpop.f32.mrf.mxu0  ;;  %v2013_v53 = vadd.f32 %v1981_v49, %v1352_v2  ;;  %2852 = vmatpush.msra.mxu0 %v4255_v12  ;;  %v3433_v12 = vld [vmem:[%s7593_s6 + $0x48] sm:$0xff]  ;;  %v4145_v2 = vld [vmem:[%s7588_s1 + $0x2f0] sm:$0xff]  ;;  %s3797_s26 = sshll.u32 %s7244_s19, 4  ;;  %p4790_p1 = scmp.ne.s32.totalorder %s4788_s12, %s4789_s15  ;;  %s3798_s26 = int_to_ptr.vmem [resolvable:$true] %s3797_s26 }
 0x1f7   : > { %4108 = vmatmul.msk.f32.gmra.mxu1 %vm850_vm1, %v5475_v22  ;;  %v2424_v13 = vmul.f32 0.5, %v4436_v52  ;;  %3575 = vmatpush.msra.mxu3 %v3433_v12  ;;  %v4143_v52 = vld [vmem:[%s7588_s1 + $0x2e0] sm:$0xff] }
 0x1f8   : > { %4178 = vmatmul.msk.f32.gmra.mxu2 %vm850_vm1, %v4140_v54  ;;  %p4791_p2 = pnand %p4790_p1, %p4948_p5 }
 0x1f9   : > { %4047 = vmatmul.msk.f32.gmra.mxu0 %vm850_vm1, %v5663_v32  ;;  %v2456_v55 = vadd.f32 0.5, %v2424_v13  ;;  %v3449_v32 = vld [vmem:[%s7594_s7 + $0x48] sm:$0xff] }
 0x1fa   : > { %3462 = vmatpush.msra.mxu2 %v3449_v32  ;;  %p4792_p3 = pneg %p4791_p2 }
 0x1fb   : > { %v2610_v62 = vmul.f32 %v2528_v24, %v2456_v55  ;;  %v6215_v11 = vadd.f32 %v2456_v55, %v2045_v39  ;;  %v4223_v55 = vld [vmem:[%s7588_s1 + $0x300] sm:$0xff] }
 0x1fc   : > { %v6218_v60 = vpop.f32.mrf.mxu1  ;;  %4216 = vmatmul.msk.f32.gmra.mxu3 %vm850_vm1, %v4140_v54 }
 0x1fd   : > { %7709 = vst [vmem:[#allocation105_spill] sm:$0xff] %v6215_v11  ;;  %v6221_v22 = vadd.f32 %v2610_v62, %v2013_v53 }
 0x1fe   : > { %7710 = vst [vmem:[#allocation106_spill] sm:$0xff] %v6218_v60  ;;  %v6226_v4 = vpop.f32.mrf.mxu0 }
 0x1ff   : > { %7711 = vst [vmem:[#allocation107_spill] sm:$0xff] %v6221_v22  ;;  %4109 = vmatmul.msk.f32.gmra.mxu1 %vm850_vm1, %v5498_v35  ;;  %v4142_v35 = vld [vmem:[%s7588_s1 + $0x2d8] sm:$0xff] }
 0x200   : > { %4179 = vmatmul.msk.f32.gmra.mxu2 %vm850_vm1, %v4141_v5 }
 0x201   : > { %4048 = vmatmul.msk.f32.gmra.mxu0 %vm850_vm1, %v5684_v42 }
 0x204   : > { %v6239_v46 = vpop.f32.mrf.mxu1  ;;  %4217 = vmatmul.msk.f32.gmra.mxu3 %vm850_vm1, %v4141_v5  ;;  %v4224_v5 = vld [vmem:[%s7588_s1 + $0x308] sm:$0xff] }
 0x205   : > { %7712 = vst [vmem:[#allocation108_spill] sm:$0xff] %v6239_v46 }
 0x206   : > { %v6245_v54 = vpop.f32.mrf.mxu0 }
 0x207   : > { %4110 = vmatmul.msk.f32.gmra.mxu1 %vm850_vm1, %v5519_v45  ;;  %v3448_v45 = vld [vmem:[%s7594_s7 + $0x40] sm:$0xff] }
 0x208   : > { %4180 = vmatmul.msk.f32.gmra.mxu2 %vm850_vm1, %v4142_v35 }
 0x209   : > { %4049 = vmatmul.msk.f32.gmra.mxu0 %vm850_vm1, %v5706_v23  ;;  %v3432_v23 = vld [vmem:[%s7593_s6 + $0x40] sm:$0xff]  ;;  %3463 = vmatpush.msra.mxu2 %v3448_v45  ;;  %v6335_v45 = vpop.f32.mrf.mxu2 }
 0x20a   : > { %3576 = vmatpush.msra.mxu3 %v3432_v23 }
 0x20c   : > { %v6252_v42 = vpop.f32.mrf.mxu1  ;;  %4218 = vmatmul.msk.f32.gmra.mxu3 %vm850_vm1, %v4142_v35  ;;  %v4225_v35 = vld [vmem:[%s7588_s1 + $0x310] sm:$0xff] }
 0x20d   : > { %7713 = vst [vmem:[#allocation109_spill] sm:$0xff] %v6252_v42 }
 0x20e   : > { %v6258_v49 = vpop.f32.mrf.mxu0 }
 0x20f   : > { %4111 = vmatmul.msk.f32.gmra.mxu1 %vm850_vm1, %v5543_v0  ;;  %v4144_v0 = vld [vmem:[%s7588_s1 + $0x2e8] sm:$0xff] }
 0x210   : > { %4181 = vmatmul.msk.f32.gmra.mxu2 %vm850_vm1, %v4143_v52 }
 0x211   : > { %4050 = vmatmul.msk.f32.gmra.mxu0 %vm850_vm1, %v5727_v19 }
 0x214   : > { %v6271_v13 = vpop.f32.mrf.mxu1  ;;  %4219 = vmatmul.msk.f32.gmra.mxu3 %vm850_vm1, %v4143_v52  ;;  %v3430_v52 = vld [vmem:[%s7593_s6 + $0x30] sm:$0xff] }
 0x215   : > { %7714 = vst [vmem:[#allocation110_spill] sm:$0xff] %v6271_v13  ;;  %v3444_v13 = vld [vmem:[%s7594_s7 + $0x20] sm:$0xff] }
 0x216   : > { %v6277_v24 = vpop.f32.mrf.mxu0 }
 0x217   : > { %4112 = vmatmul.msk.f32.gmra.mxu1 %vm850_vm1, %v5564_v25  ;;  %v3447_v25 = vld [vmem:[%s7594_s7 + $0x38] sm:$0xff] }
 0x218   : > { %4182 = vmatmul.msk.f32.gmra.mxu2 %vm850_vm1, %v4144_v0 }
 0x219   : > { %4051 = vmatmul.msk.f32.gmra.mxu0 %vm850_vm1, %v5748_v7  ;;  %v3431_v7 = vld [vmem:[%s7593_s6 + $0x38] sm:$0xff]  ;;  %3464 = vmatpush.msra.mxu2 %v3447_v25 }
 0x21a   : > { %3577 = vmatpush.msra.mxu3 %v3431_v7 }
 0x21c   : > { %v6284_v19 = vpop.f32.mrf.mxu1  ;;  %4220 = vmatmul.msk.f32.gmra.mxu3 %vm850_vm1, %v4144_v0 }
 0x21d   : > { %7715 = vst [vmem:[#allocation111_spill] sm:$0xff] %v6284_v19  ;;  %3578 = vmatpush.msra.mxu3 %v3430_v52 }
 0x21e   : > { %v6290_v39 = vpop.f32.mrf.mxu0 }
 0x21f   : > { %4113 = vmatmul.msk.f32.gmra.mxu1 %vm850_vm1, %v5590_v8  ;;  %v4146_v8 = vld [vmem:[%s7588_s1 + $0x2f8] sm:$0xff] }
 0x220   : > { %4183 = vmatmul.msk.f32.gmra.mxu2 %vm850_vm1, %v4145_v2 }
 0x221   : > { %4261 = vmatmul.msk.f32.vlgmr.msra.gmra.mxu0 %vm850_vm1, %v4223_v55 }
 0x224   : > { %v6305_v53 = vpop.f32.mrf.mxu1  ;;  %4221 = vmatmul.msk.f32.gmra.mxu3 %vm850_vm1, %v4145_v2  ;;  %v4226_v2 = vld [vmem:[%s7588_s1 + $0x318] sm:$0xff] }
 0x225   : > { %7716 = vst [vmem:[#allocation112_spill] sm:$0xff] %v6305_v53 }
 0x226   : > { %v6311_v62 = vpop.f32.mrf.mxu0 }
 0x227   : > { %4114 = vmatmul.msk.f32.gmra.mxu1 %vm850_vm1, %v5611_v57  ;;  %v3446_v57 = vld [vmem:[%s7594_s7 + $0x30] sm:$0xff] }
 0x228   : > { %4184 = vmatmul.msk.f32.gmra.mxu2 %vm850_vm1, %v4146_v8 }
 0x229   : > { %4262 = vmatmul.msk.f32.gmra.mxu0 %vm850_vm1, %v4224_v5  ;;  %3465 = vmatpush.msra.mxu2 %v3446_v57  ;;  %v3445_v57 = vld [vmem:[%s7594_s7 + $0x28] sm:$0xff] }
 0x22b   : > { %3466 = vmatpush.msra.mxu2 %v3445_v57  ;;  %v4229_v57 = vld [vmem:[%s7588_s1 + $0x330] sm:$0xff] }
 0x22c   : > { %v6320_v32 = vpop.f32.mrf.mxu1  ;;  %4222 = vmatmul.msk.f32.gmra.mxu3 %vm850_vm1, %v4146_v8  ;;  %v4227_v8 = vld [vmem:[%s7588_s1 + $0x320] sm:$0xff] }
 0x22d   : > { %7717 = vst [vmem:[#allocation113_spill] sm:$0xff] %v6320_v32  ;;  %3467 = vmatpush.msra.mxu2 %v3444_v13 }
 0x22e   : > { %v6323_v12 = vpop.f32.mrf.mxu0 }
 0x22f   : > { %4299 = vmatmul.msk.f32.vlgmr.msra.gmra.mxu1 %vm850_vm1, %v4223_v55  ;;  %v6347_v55 = vpop.f32.mrf.mxu2 }
 0x230   : > { %7719 = vst [vmem:[#allocation115_spill] sm:$0xff] %v6347_v55 }
 0x231   : > { %4263 = vmatmul.msk.f32.gmra.mxu0 %vm850_vm1, %v4225_v35 }
 0x234   : > { %v6338_v23 = vpop.f32.mrf.mxu1 }
 0x235   : > { %7718 = vst [vmem:[#allocation114_spill] sm:$0xff] %v6338_v23 }
 0x236   : > { %v6340_v0 = vpop.f32.mrf.mxu0 }
 0x237   : > { %4300 = vmatmul.msk.f32.gmra.mxu1 %vm850_vm1, %v4224_v5  ;;  %v3429_v5 = vld [vmem:[%s7593_s6 + $0x28] sm:$0xff] }
 0x238   : > { %3579 = vmatpush.msra.mxu3 %v3429_v5 }
 0x239   : > { %4264 = vmatmul.msk.f32.gmra.mxu0 %vm850_vm1, %v4226_v2 }
 0x23c   : > { %v6349_v25 = vpop.f32.mrf.mxu1 }
 0x23d   : > { %7720 = vst [vmem:[#allocation116_spill] sm:$0xff] %v6349_v25  ;;  %v6366_v25 = vpop.f32.mrf.mxu2 }
 0x23e   : > { %v6351_v7 = vpop.f32.mrf.mxu0  ;;  %7722 = vst [vmem:[#allocation118_spill] sm:$0xff] %v6366_v25  ;;  %v4235_v25 = vld [vmem:[%s7588_s1 + $0x360] sm:$0xff] }
 0x23f   : > { %4301 = vmatmul.msk.f32.gmra.mxu1 %vm850_vm1, %v4225_v35  ;;  %v4228_v35 = vld [vmem:[%s7588_s1 + $0x328] sm:$0xff] }
 0x241   : > { %4265 = vmatmul.msk.f32.gmra.mxu0 %vm850_vm1, %v4227_v8 }
 0x244   : > { %v6364_v52 = vpop.f32.mrf.mxu1 }
 0x245   : > { %7721 = vst [vmem:[#allocation117_spill] sm:$0xff] %v6364_v52  ;;  %v6382_v5 = vpop.f32.mrf.mxu2  ;;  %v6385_v52 = vpop.f32.mrf.mxu3 }
 0x246   : > { %v6368_v23 = vpop.f32.mrf.mxu0  ;;  %7724 = vst [vmem:[#allocation120_spill] sm:$0xff] %v6382_v5  ;;  %v4233_v5 = vld [vmem:[%s7588_s1 + $0x350] sm:$0xff] }
 0x247   : > { %4302 = vmatmul.msk.f32.gmra.mxu1 %vm850_vm1, %v4226_v2  ;;  %7725 = vst [vmem:[#allocation121_spill] sm:$0xff] %v6385_v52  ;;  %v4231_v52 = vld [vmem:[%s7588_s1 + $0x340] sm:$0xff] }
 0x249   : > { %4266 = vmatmul.msk.f32.gmra.mxu0 %vm850_vm1, %v4228_v35 }
 0x24c   : > { %v6375_v32 = vpop.f32.mrf.mxu1 }
 0x24d   : > { %7723 = vst [vmem:[#allocation119_spill] sm:$0xff] %v6375_v32  ;;  %v4230_v32 = vld [vmem:[%s7588_s1 + $0x338] sm:$0xff]  ;;  %v6402_v42 = vpop.f32.mrf.mxu2 }
 0x24e   : > { %v6377_v53 = vpop.f32.mrf.mxu0  ;;  %7728 = vst [vmem:[#allocation124_spill] sm:$0xff] %v6402_v42 }
 0x24f   : > { %4303 = vmatmul.msk.f32.gmra.mxu1 %vm850_vm1, %v4227_v8  ;;  %v3428_v8 = vld [vmem:[%s7593_s6 + $0x20] sm:$0xff] }
 0x250   : > { %3580 = vmatpush.msra.mxu3 %v3428_v8 }
 0x251   : > { %4267 = vmatmul.msk.f32.gmra.mxu0 %vm850_vm1, %v4229_v57 }
 0x254   : > { %v6388_v19 = vpop.f32.mrf.mxu1 }
 0x255   : > { %7726 = vst [vmem:[#allocation122_spill] sm:$0xff] %v6388_v19  ;;  %v6405_v19 = vpop.f32.mrf.mxu3  ;;  %v6416_v13 = vpop.f32.mrf.mxu2 }
 0x256   : > { %v6390_v2 = vpop.f32.mrf.mxu0  ;;  %7729 = vst [vmem:[#allocation125_spill] sm:$0xff] %v6405_v19  ;;  %v3443_v19 = vld [vmem:[%s7594_s7 + $0x18] sm:$0xff] }
 0x257   : > { %7727 = vst [vmem:[#allocation123_spill] sm:$0xff] %v6390_v2  ;;  %4304 = vmatmul.msk.f32.gmra.mxu1 %vm850_vm1, %v4228_v35  ;;  %3468 = vmatpush.msra.mxu2 %v3443_v19 }
 0x258   : > { %7732 = vst [vmem:[#allocation128_spill] sm:$0xff] %v6416_v13 }
 0x259   : > { %4268 = vmatmul.msk.f32.gmra.mxu0 %vm850_vm1, %v4230_v32 }
 0x25c   : > { %v6407_v46 = vpop.f32.mrf.mxu1 }
 0x25d   : > { %7730 = vst [vmem:[#allocation126_spill] sm:$0xff] %v6407_v46  ;;  %v6418_v35 = vpop.f32.mrf.mxu3  ;;  %v4232_v46 = vld [vmem:[%s7588_s1 + $0x348] sm:$0xff] }
 0x25e   : > { %v6409_v60 = vpop.f32.mrf.mxu0  ;;  %7733 = vst [vmem:[#allocation129_spill] sm:$0xff] %v6418_v35  ;;  %v6435_v35 = vpop.f32.mrf.mxu2 }
 0x25f   : > { %7731 = vst [vmem:[#allocation127_spill] sm:$0xff] %v6409_v60  ;;  %4305 = vmatmul.msk.f32.gmra.mxu1 %vm850_vm1, %v4229_v57  ;;  %v3427_v57 = vld [vmem:[%s7593_s6 + $0x18] sm:$0xff] }
 0x260   : > { %3581 = vmatpush.msra.mxu3 %v3427_v57  ;;  %7736 = vst [vmem:[#allocation132_spill] sm:$0xff] %v6435_v35  ;;  %v4234_v57 = vld [vmem:[%s7588_s1 + $0x358] sm:$0xff] }
 0x261   : > { %4269 = vmatmul.msk.f32.gmra.mxu0 %vm850_vm1, %v4231_v52 }
 0x264   : > { %v6420_v8 = vpop.f32.mrf.mxu1 }
 0x265   : > { %7734 = vst [vmem:[#allocation130_spill] sm:$0xff] %v6420_v8  ;;  %v6437_v13 = vpop.f32.mrf.mxu3 }
 0x266   : > { %v1596_v42 = vpop.f32.mrf.mxu0  ;;  %7737 = vst [vmem:[#allocation133_spill] sm:$0xff] %v6437_v13  ;;  %v3426_v13 = vld [vmem:[%s7593_s6 + $0x10] sm:$0xff]  ;;  %v6459_v35 = vpop.f32.mrf.mxu2 }
 0x267   : > { %4306 = vmatmul.msk.f32.gmra.mxu1 %vm850_vm1, %v4230_v32  ;;  %7739 = vst [vmem:[#allocation135_spill] sm:$0xff] %v6459_v35  ;;  %3582 = vmatpush.msra.mxu3 %v3426_v13 }
 0x269   : > { %4270 = vmatmul.msk.f32.gmra.mxu0 %vm850_vm1, %v4232_v46 }
 0x26c   : > { %v6433_v8 = vpop.f32.mrf.mxu1 }
 0x26d   : > { %7735 = vst [vmem:[#allocation131_spill] sm:$0xff] %v6433_v8  ;;  %v3442_v8 = vld [vmem:[%s7594_s7 + $0x10] sm:$0xff] }
 0x26e   : > { %v6439_v22 = vpop.f32.mrf.mxu0  ;;  %3469 = vmatpush.msra.mxu2 %v3442_v8  ;;  %v6473_v60 = vpop.f32.mrf.mxu2 }
 0x26f   : > { %4307 = vmatmul.msk.f32.gmra.mxu1 %vm850_vm1, %v4231_v52  ;;  %v6462_v52 = vpop.f32.mrf.mxu3  ;;  %7742 = vst [vmem:[#allocation138_spill] sm:$0xff] %v6473_v60 }
 0x270   : > { %7740 = vst [vmem:[#allocation136_spill] sm:$0xff] %v6462_v52  ;;  %v3441_v52 = vld [vmem:[%s7594_s7 + $0x8] sm:$0xff] }
 0x271   : > { %4271 = vmatmul.msk.f32.gmra.mxu0 %vm850_vm1, %v4233_v5  ;;  %3470 = vmatpush.msra.mxu2 %v3441_v52  ;;  %v1692_v52 = vsub.f32 %v5991_v31, %v1596_v42  ;;  %v6523_v42 = vadd.f32 %v5972_v34, %v5669_v48 }
 0x273   : > { %7748 = vst [vmem:[#allocation144_spill] sm:$0xff] %v6523_v42 }
 0x274   : > { %v6446_v19 = vpop.f32.mrf.mxu1 }
 0x275   : > { %7738 = vst [vmem:[#allocation134_spill] sm:$0xff] %v6446_v19 }
 0x276   : > { %v6448_v32 = vpop.f32.mrf.mxu0 }
 0x277   : > { %4308 = vmatmul.msk.f32.gmra.mxu1 %vm850_vm1, %v4232_v46  ;;  %v6476_v46 = vpop.f32.mrf.mxu3 }
 0x278   : > { %7743 = vst [vmem:[#allocation139_spill] sm:$0xff] %v6476_v46  ;;  %v6497_v46 = vadd.f32 %v5972_v34, %v5648_v16  ;;  %v3440_v16 = vld [vmem:[%s7594_s7] sm:$0xff] }
 0x279   : > { %4272 = vmatmul.msk.f32.gmra.mxu0 %vm850_vm1, %v4234_v57  ;;  %3471 = vmatpush.msra.mxu2 %v3440_v16 }
 0x27c   : > { %v6465_v19 = vpop.f32.mrf.mxu1 }
 0x27d   : > { %7741 = vst [vmem:[#allocation137_spill] sm:$0xff] %v6465_v19  ;;  %v4236_v19 = vld [vmem:[%s7588_s1 + $0x368] sm:$0xff] }
 0x27e   : > { %v6467_v11 = vpop.f32.mrf.mxu0 }
 0x27f   : > { %4309 = vmatmul.msk.f32.gmra.mxu1 %vm850_vm1, %v4233_v5  ;;  %v3425_v5 = vld [vmem:[%s7593_s6 + $0x8] sm:$0xff]  ;;  %v6499_v60 = vpop.f32.mrf.mxu3 }
 0x280   : > { %3583 = vmatpush.msra.mxu3 %v3425_v5  ;;  %7746 = vst [vmem:[#allocation142_spill] sm:$0xff] %v6499_v60  ;;  %v1072_v5 = vsub.f32 %v6497_v46, %v5438_v6  ;;  %v1064_v60 = vsub.f32 %v5991_v31, %v6207_v18  ;;  %v1700_v6 = vsub.f32 %v6497_v46, %v5469_v20  ;;  %v4238_v20 = vld [vmem:[%s7588_s1 + $0x378] sm:$0xff] }
 0x281   : > { %4273 = vmatmul.msk.f32.gmra.mxu0 %vm850_vm1, %v4235_v25  ;;  %v1073_v18 = vsub.f32 %v6523_v42, %v5458_v14  ;;  %v1065_v14 = vsub.f32 %v6010_v56, %v6226_v4 }
 0x282   : > { %v1104_v41 = vmul.f32 0.5, %v1072_v5  ;;  %v1096_v17 = vmul.f32 0.5, %v1064_v60  ;;  %v1732_v16 = vmul.f32 0.5, %v1700_v6  ;;  %v1701_v60 = vsub.f32 %v6523_v42, %v5492_v33  ;;  %v4738_v5 = vld [vmem:[%s5215_s17 + $0x8] sm:$0xff]  ;;  %v6555_v33 = vld [vmem:[%s7588_s1 + $0x380] sm:$0xff] }
 0x284   : > { %v6478_v8 = vpop.f32.mrf.mxu1  ;;  %v1733_v6 = vmul.f32 0.5, %v1701_v60  ;;  %v6565_v60 = vadd.f32 %v5972_v34, %v5690_v59 }
 0x285   : > { %7744 = vst [vmem:[#allocation140_spill] sm:$0xff] %v6478_v8  ;;  %v6493_v8 = vpop.f32.mrf.mxu2 }
 0x286   : > { %v6480_v13 = vpop.f32.mrf.mxu0  ;;  %7745 = vst [vmem:[#allocation141_spill] sm:$0xff] %v6493_v8  ;;  %v1724_v8 = vmul.f32 0.5, %v1692_v52  ;;  %v1105_v52 = vmul.f32 0.5, %v1073_v18  ;;  %v1694_v18 = vsub.f32 %v6036_v43, %v6448_v32  ;;  %v4739_v32 = vld [vmem:[%s5215_s17 + $0x10] sm:$0xff] }
 0x287   : > { %4310 = vmatmul.msk.f32.gmra.mxu1 %vm850_vm1, %v4234_v57  ;;  %v4237_v57 = vld [vmem:[%s7588_s1 + $0x370] sm:$0xff]  ;;  %v6534_v48 = vpop.f32.mrf.mxu3  ;;  %7754 = vst [vmem:[#allocation150_spill] sm:$0xff] %v6565_v60 }
 0x288   : > { %7751 = vst [vmem:[#allocation147_spill] sm:$0xff] %v6534_v48  ;;  %4437 = vtanh.f32 %v1724_v8 }
 0x289   : > { %4274 = vmatmul.msk.f32.gmra.mxu0 %vm850_vm1, %v4236_v19  ;;  %4439 = vtanh.f32 %v1104_v41 }
 0x28a   : > { %4441 = vtanh.f32 %v1096_v17 }
 0x28b   : > { %4443 = vtanh.f32 %v1732_v16 }
 0x28c   : > { %v6501_v35 = vpop.f32.mrf.mxu1  ;;  %4445 = vtanh.f32 %v1105_v52 }
 0x28d   : > { %7747 = vst [vmem:[#allocation143_spill] sm:$0xff] %v6501_v35  ;;  %v3424_v35 = vld [vmem:[%s7593_s6] sm:$0xff]  ;;  %v6530_v2 = vpop.f32.mrf.mxu2 }
 0x28e   : > { %v6503_v38 = vpop.f32.mrf.mxu0  ;;  %3584 = vmatpush.msra.mxu3 %v3424_v35  ;;  %7750 = vst [vmem:[#allocation146_spill] sm:$0xff] %v6530_v2  ;;  %v1693_v35 = vsub.f32 %v6010_v56, %v6439_v22  ;;  %v4438_v22 = vpop.eup %4437 }
 0x28f   : > { %4311 = vmatmul.msk.f32.gmra.mxu1 %vm850_vm1, %v4235_v25  ;;  %v4737_v25 = vld [vmem:[%s5215_s17] sm:$0xff]  ;;  %v4440_v41 = vpop.eup %4439  ;;  %v1788_v52 = vmul.f32 0.5, %v4438_v22 }
 0x290   : > { %3472 = vmatmul.f32.vlgmr.msra.gmra.mxu2 %v4737_v25  ;;  %v1725_v8 = vmul.f32 0.5, %v1693_v35  ;;  %v4442_v17 = vpop.eup %4441  ;;  %v7756_v22 = vld [vmem:[#allocation12_spill] sm:$0xff] }
 0x291   : > { %4275 = vmatmul.msk.f32.gmra.mxu0 %vm850_vm1, %v4237_v57  ;;  %v4444_v35 = vpop.eup %4443 }
 0x292   : > { %4447 = vtanh.f32 %v1725_v8  ;;  %v4446_v59 = vpop.eup %4445 }
 0x293   : > { %4449 = vtanh.f32 %v1733_v6  ;;  %v1074_v6 = vsub.f32 %v6565_v60, %v5481_v28  ;;  %v1695_v28 = vsub.f32 %v6059_v9, %v6467_v11 }
 0x294   : > { %v6528_v55 = vpop.f32.mrf.mxu1 }
 0x295   : > { %7749 = vst [vmem:[#allocation145_spill] sm:$0xff] %v6528_v55  ;;  %v6557_v4 = vpop.f32.mrf.mxu2 }
 0x296   : > { %v6536_v27 = vpop.f32.mrf.mxu0  ;;  %7753 = vst [vmem:[#allocation149_spill] sm:$0xff] %v6557_v4 }
 0x297   : > { %4312 = vmatmul.msk.f32.gmra.mxu1 %vm850_vm1, %v4236_v19  ;;  %v1097_v19 = vmul.f32 0.5, %v1065_v14  ;;  %v6567_v14 = vpop.f32.mrf.mxu3 }
 0x298   : > { %3475 = vmatmul.f32.gmra.mxu2 %v4738_v5  ;;  %7755 = vst [vmem:[#allocation151_spill] sm:$0xff] %v6567_v14  ;;  %v1066_v5 = vsub.f32 %v6036_v43, %v6245_v54  ;;  %v1820_v14 = vadd.f32 0.5, %v1788_v52 }
 0x299   : > { %4276 = vmatmul.msk.f32.gmra.mxu0 %vm850_vm1, %v4238_v20  ;;  %4451 = vtanh.f32 %v1097_v19  ;;  %v1702_v19 = vsub.f32 %v6565_v60, %v7756_v22 }
 0x29a   : > { %v1098_v4 = vmul.f32 0.5, %v1066_v5  ;;  %v1106_v5 = vmul.f32 0.5, %v1074_v6 }
 0x29c   : > { %v6550_v25 = vpop.f32.mrf.mxu1 }
 0x29d   : > { %7752 = vst [vmem:[#allocation148_spill] sm:$0xff] %v6550_v25  ;;  %v1726_v25 = vmul.f32 0.5, %v1694_v18  ;;  %v6583_v18 = vld [vmem:[%s7588_s1 + $0x388] sm:$0xff]  ;;  %v6593_v60 = vpop.f32.mrf.mxu2 }
 0x29e   : > { %v2854_v55 = vpop.f32.mrf.mxu0  ;;  %7758 = vst [vmem:[#allocation152_spill] sm:$0xff] %v6593_v60 }
 0x29f   : > { %v2950_v16 = vsub.f32 %v5991_v31, %v2854_v55  ;;  %4313 = vmatmul.msk.f32.gmra.mxu1 %vm850_vm1, %v4237_v57  ;;  %v1168_v31 = vmul.f32 0.5, %v4440_v41  ;;  %v1160_v55 = vmul.f32 0.5, %v4442_v17  ;;  %v1796_v57 = vmul.f32 0.5, %v4444_v35  ;;  %v6601_v6 = vpop.f32.mrf.mxu3 }
 0x2a0   : > { %3478 = vmatmul.f32.gmra.mxu2 %v4739_v32 }
 0x2a1   : > { %v2982_v8 = vmul.f32 0.5, %v2950_v16  ;;  %4277 = vmatmul.msk.f32.gmra.mxu0 %vm850_vm1, %v6555_v33  ;;  %v4448_v16 = vpop.eup %4447  ;;  %v1200_v41 = vadd.f32 0.5, %v1168_v31  ;;  %v1192_v17 = vadd.f32 0.5, %v1160_v55  ;;  %v1734_v31 = vmul.f32 0.5, %v1702_v19 }
 0x2a2   : > { %v4450_v48 = vpop.eup %4449  ;;  %v1789_v32 = vmul.f32 0.5, %v4448_v16 }
 0x2a3   : > { %4453 = vtanh.f32 %v2982_v8  ;;  %v4452_v35 = vpop.eup %4451  ;;  %v6585_v8 = vadd.f32 0.5, %v1796_v57  ;;  %v2038_v55 = vadd.f32 %v1820_v14, %v1192_v17  ;;  %v1067_v57 = vsub.f32 %v6059_v9, %v6258_v49 }
 0x2a4   : > { %v6578_v54 = vpop.f32.mrf.mxu1  ;;  %4455 = vtanh.f32 %v1726_v25  ;;  %v1821_v60 = vadd.f32 0.5, %v1789_v32 }
 0x2a5   : > { %7757 = vst [vmem:[#allocation12_spill] sm:$0xff] %v6578_v54  ;;  %v1169_v54 = vmul.f32 0.5, %v4446_v59  ;;  %4457 = vtanh.f32 %v1098_v4  ;;  %v4740_v59 = vld [vmem:[%s5215_s17 + $0x18] sm:$0xff]  ;;  %v7761_v4 = vld [vmem:[#allocation8_spill] sm:$0xff]  ;;  %v6608_v49 = vadd.f32 %v6585_v8, %v1200_v41 }
 0x2a6   : > { %v2857_v2 = vpop.f32.mrf.mxu0  ;;  %v6605_v16 = vmul.f32 %v7761_v4, %v1200_v41 }
 0x2a7   : > { %v2951_v52 = vsub.f32 %v6010_v56, %v2857_v2  ;;  %4314 = vmatmul.msk.f32.gmra.mxu1 %vm850_vm1, %v4238_v20  ;;  %v7759_v56 = vld [vmem:[#allocation39_spill] sm:$0xff]  ;;  %v1797_v2 = vmul.f32 0.5, %v4450_v48  ;;  %v1161_v20 = vmul.f32 0.5, %v4452_v35  ;;  %v1201_v42 = vadd.f32 0.5, %v1169_v54 }
 0x2a8   : > { %v6599_v11 = vadd.f32 %v5972_v34, %v7759_v56  ;;  %7760 = vst [vmem:[#allocation39_spill] sm:$0xff] %v6601_v6  ;;  %3481 = vmatmul.f32.gmra.mxu2 %v4740_v59  ;;  %v2667_v34 = vadd.f32 %v6032_v15, %v2038_v55  ;;  %v1974_v59 = vmul.f32 %v5963_v26, %v1820_v14  ;;  %v7763_v6 = vld [vmem:[#allocation11_spill] sm:$0xff]  ;;  %v6619_v15 = vld [vmem:[%s7588_s1 + $0x390] sm:$0xff] }
 0x2a9   : > { %v4454_v22 = vpop.eup %4453  ;;  %v2983_v25 = vmul.f32 0.5, %v2951_v52  ;;  %4278 = vmatmul.msk.f32.gmra.mxu0 %vm850_vm1, %v6583_v18  ;;  %7762 = vst [vmem:[#allocation8_spill] sm:$0xff] %v6605_v16  ;;  %v1727_v52 = vmul.f32 0.5, %v1695_v28  ;;  %v6614_v16 = vadd.f32 0.5, %v1797_v2  ;;  %v1193_v41 = vadd.f32 0.5, %v1161_v20 }
 0x2aa   : > { %v3046_v19 = vmul.f32 0.5, %v4454_v22  ;;  %v4456_v35 = vpop.eup %4455  ;;  %v1099_v22 = vmul.f32 0.5, %v1067_v57  ;;  %v1075_v4 = vsub.f32 %v6599_v11, %v7763_v6  ;;  %v1345_v54 = vmul.f32 %v6323_v12, %v1192_v17 }
 0x2ab   : > { %4459 = vtanh.f32 %v2983_v25  ;;  %v1696_v26 = vsub.f32 %v6090_v50, %v6480_v13  ;;  %v2039_v32 = vadd.f32 %v1821_v60, %v1193_v41  ;;  %v1790_v57 = vmul.f32 0.5, %v4456_v35  ;;  %v7765_v35 = vld [vmem:[#allocation9_spill] sm:$0xff] }
 0x2ac   : > { %4461 = vtanh.f32 %v1106_v5  ;;  %v3078_v56 = vadd.f32 0.5, %v3046_v19  ;;  %v3136_v48 = vpop.f32.mrf.mxu1  ;;  %v4458_v5 = vpop.eup %4457  ;;  %v1068_v12 = vsub.f32 %v6090_v50, %v6277_v24  ;;  %v2006_v17 = vadd.f32 %v1974_v59, %v1345_v54 }
 0x2ad   : > { %4463 = vtanh.f32 %v1734_v31  ;;  %v7764_v31 = vld [vmem:[#allocation15_spill] sm:$0xff]  ;;  %v1107_v13 = vmul.f32 0.5, %v1075_v4  ;;  %v6640_v59 = vadd.f32 %v6614_v16, %v1201_v42  ;;  %v6642_v54 = vpop.f32.mrf.mxu3  ;;  %v1822_v4 = vadd.f32 0.5, %v1790_v57 }
 0x2ae   : > { %v3296_v28 = vadd.f32 %v3078_v56, %v2667_v34  ;;  %v2860_v25 = vpop.f32.mrf.mxu0  ;;  %4465 = vtanh.f32 %v1727_v52  ;;  %v1703_v55 = vsub.f32 %v6599_v11, %v7764_v31  ;;  %v4741_v52 = vld [vmem:[%s5215_s17 + $0x20] sm:$0xff]  ;;  %v3232_v24 = vmul.f32 %v3136_v48, %v3078_v56  ;;  %v6651_v57 = vld [vmem:[%s7588_s1 + $0x398] sm:$0xff] }
 0x2af   : > { %v2952_v14 = vsub.f32 %v6036_v43, %v2860_v25  ;;  %4315 = vmatmul.msk.f32.gmra.mxu1 %vm850_vm1, %v6555_v33  ;;  %4467 = vtanh.f32 %v1099_v22  ;;  %v1162_v33 = vmul.f32 0.5, %v4458_v5  ;;  %v6637_v22 = vpop.f32.mrf.mxu2  ;;  %v1728_v25 = vmul.f32 0.5, %v1696_v26 }
 0x2b0   : > { %v3328_v2 = vmax.f32 %v3296_v28, 1e-20  ;;  %3484 = vmatmul.f32.gmra.mxu2 %v4741_v52  ;;  %v6635_v28 = vmul.f32 %v7765_v35, %v1201_v42  ;;  %7766 = vst [vmem:[#allocation11_spill] sm:$0xff] %v6637_v22  ;;  %v2668_v5 = vadd.f32 %v6055_v40, %v2039_v32  ;;  %v1100_v52 = vmul.f32 0.5, %v1068_v12 }
 0x2b1   : > { %v4460_v20 = vpop.eup %4459  ;;  %v2984_v6 = vmul.f32 0.5, %v2952_v14  ;;  %4279 = vmatmul.msk.f32.gmra.mxu0 %vm850_vm1, %v6619_v15  ;;  %v1975_v35 = vmul.f32 %v5995_v51, %v1821_v60  ;;  %v2635_v22 = vadd.f32 %v6039_v37, %v2006_v17  ;;  %v1346_v56 = vmul.f32 %v6340_v0, %v1193_v41 }
 0x2b2   : > { %v4462_v43 = vpop.eup %4461  ;;  %4469 = vrcp.f32 %v3328_v2  ;;  %v3047_v19 = vmul.f32 0.5, %v4460_v20  ;;  %v1735_v20 = vmul.f32 0.5, %v1703_v55  ;;  %v1194_v48 = vadd.f32 0.5, %v1162_v33 }
 0x2b3   : > { %v4464_v34 = vpop.eup %4463  ;;  %4471 = vtanh.f32 %v2984_v6  ;;  %v1697_v55 = vsub.f32 %v6114_v63, %v6503_v38  ;;  %v3264_v32 = vadd.f32 %v3232_v24, %v2635_v22  ;;  %v1069_v0 = vsub.f32 %v6114_v63, %v6290_v39  ;;  %v7767_v38 = vld [vmem:[#allocation43_spill] sm:$0xff]  ;;  %v4743_v22 = vld [vmem:[%s5215_s17 + $0x28] sm:$0xff] }
 0x2b4   : > { %v3079_v14 = vadd.f32 0.5, %v3047_v19  ;;  %v3139_v31 = vpop.f32.mrf.mxu1  ;;  %v4466_v2 = vpop.eup %4465  ;;  %4473 = vtanh.f32 %v1107_v13  ;;  %v2040_v60 = vadd.f32 %v1822_v4, %v1194_v48  ;;  %v2007_v13 = vadd.f32 %v1975_v35, %v1346_v56 }
 0x2b5   : > { %v4468_v40 = vpop.eup %4467  ;;  %4475 = vtanh.f32 %v1728_v25  ;;  %v1791_v41 = vmul.f32 0.5, %v4466_v2  ;;  %v1170_v25 = vmul.f32 0.5, %v4462_v43  ;;  %v1729_v24 = vmul.f32 0.5, %v1697_v55  ;;  %v7768_v55 = vld [vmem:[#allocation14_spill] sm:$0xff] }
 0x2b6   : > { %v3297_v42 = vadd.f32 %v3079_v14, %v2668_v5  ;;  %v2863_v26 = vpop.f32.mrf.mxu0  ;;  %4477 = vtanh.f32 %v1100_v52  ;;  %v1163_v39 = vmul.f32 0.5, %v4468_v40  ;;  %v3233_v5 = vmul.f32 %v3139_v31, %v3079_v14 }
 0x2b7   : > { %v2953_v51 = vsub.f32 %v6059_v9, %v2863_v26  ;;  %4316 = vmatmul.msk.f32.gmra.mxu1 %vm850_vm1, %v6583_v18  ;;  %v6665_v9 = vld [vmem:[%s7592_s5] ss:$0 sm:$0xff]  ;;  %v1101_v52 = vmul.f32 0.5, %v1069_v0  ;;  %v1823_v35 = vadd.f32 0.5, %v1791_v41  ;;  %v2669_v56 = vadd.f32 %v6086_v47, %v2040_v60  ;;  %v6673_v40 = vpop.f32.mrf.mxu2  ;;  %v6680_v41 = vpop.f32.mrf.mxu3 }
 0x2b8   : > { %v4470_v37 = vpop.eup %4469  ;;  %v3329_v12 = vmax.f32 %v3297_v42, 1e-20  ;;  %v6669_v18 = vadd.f32 %v6665_v9, %v7767_v38  ;;  %3487 = vmatmul.f32.gmra.mxu2 %v4743_v22  ;;  %v2636_v43 = vadd.f32 %v6062_v1, %v2007_v13  ;;  %v1347_v31 = vmul.f32 %v6351_v7, %v1194_v48 }
 0x2b9   : > { %v4472_v17 = vpop.eup %4471  ;;  %v3392_v6 = vmul.f32 %v4470_v37, %v3264_v32  ;;  %v2985_v33 = vmul.f32 0.5, %v2953_v51  ;;  %4280 = vmatmul.msk.f32.gmra.mxu0 %vm850_vm1, %v6651_v57  ;;  %v1798_v51 = vmul.f32 0.5, %v4464_v34  ;;  %v1976_v37 = vmul.f32 %v6013_v3, %v1822_v4  ;;  %v6685_v34 = vld [vmem:[%s7588_s1 + $0x3a0] sm:$0xff] }
 0x2ba   : > { %4479 = vrcp.f32 %v3329_v12  ;;  %v3048_v19 = vmul.f32 0.5, %v4472_v17  ;;  %v4474_v2 = vpop.eup %4473  ;;  %v1076_v14 = vsub.f32 %v6669_v18, %v7768_v55  ;;  %v1195_v0 = vadd.f32 0.5, %v1163_v39  ;;  %v7769_v55 = vld [vmem:[#allocation18_spill] sm:$0xff] }
 0x2bb   : > { %4481 = vtanh.f32 %v2985_v33  ;;  %3585 = vmatmul.f32.vlgmr.msra.gmra.mxu3 %v3392_v6  ;;  %v4476_v32 = vpop.eup %4475  ;;  %v1698_v3 = vsub.f32 %v6151_v10, %v6536_v27  ;;  %v3265_v1 = vadd.f32 %v3233_v5, %v2636_v43  ;;  %v1070_v13 = vsub.f32 %v6151_v10, %v6311_v62 }
 0x2bc   : > { %v3080_v42 = vadd.f32 0.5, %v3048_v19  ;;  %v3142_v26 = vpop.f32.mrf.mxu1  ;;  %4483 = vtanh.f32 %v1735_v20  ;;  %v4478_v20 = vpop.eup %4477  ;;  %v2041_v48 = vadd.f32 %v1823_v35, %v1195_v0  ;;  %v1792_v12 = vmul.f32 0.5, %v4476_v32  ;;  %v4744_v19 = vld [vmem:[%s5215_s17 + $0x30] sm:$0xff] }
 0x2bd   : > { %4485 = vtanh.f32 %v1729_v24  ;;  %v2008_v33 = vadd.f32 %v1976_v37, %v1347_v31  ;;  %v1164_v39 = vmul.f32 0.5, %v4478_v20  ;;  %v6699_v24 = vadd.f32 0.5, %v1798_v51 }
 0x2be   : > { %v3298_v47 = vadd.f32 %v3080_v42, %v2669_v56  ;;  %v2866_v60 = vpop.f32.mrf.mxu0  ;;  %4487 = vtanh.f32 %v1101_v52  ;;  %v1730_v5 = vmul.f32 0.5, %v1698_v3  ;;  %v3234_v52 = vmul.f32 %v3142_v26, %v3080_v42  ;;  %v7770_v3 = vld [vmem:[#allocation47_spill] sm:$0xff] }
 0x2bf   : > { %v2954_v4 = vsub.f32 %v6090_v50, %v2866_v60  ;;  %4317 = vmatmul.msk.f32.gmra.mxu1 %vm850_vm1, %v6619_v15  ;;  %v6696_v50 = vadd.f32 0.5, %v1170_v25  ;;  %v1108_v62 = vmul.f32 0.5, %v1076_v14  ;;  %v1824_v56 = vadd.f32 0.5, %v1792_v12 }
 0x2c0   : > { %v4480_v7 = vpop.eup %4479  ;;  %v3330_v17 = vmax.f32 %v3298_v47, 1e-20  ;;  %3490 = vmatmul.f32.gmra.mxu2 %v4744_v19  ;;  %v2670_v32 = vadd.f32 %v6110_v21, %v2041_v48  ;;  %v1704_v31 = vsub.f32 %v6669_v18, %v7769_v55  ;;  %v1102_v47 = vmul.f32 0.5, %v1070_v13  ;;  %v6716_v48 = vpop.f32.mrf.mxu2  ;;  %v7773_v19 = vld [vmem:[#allocation10_spill] sm:$0xff] }
 0x2c1   : > { %v4482_v6 = vpop.eup %4481  ;;  %v2986_v38 = vmul.f32 0.5, %v2954_v4  ;;  %4281 = vmatmul.msk.f32.gmra.mxu0 %vm850_vm1, %v6685_v34  ;;  %v3393_v27 = vmul.f32 %v4480_v7, %v3265_v1  ;;  %v1977_v60 = vmul.f32 %v6042_v29, %v1823_v35  ;;  %v2637_v51 = vadd.f32 %v6093_v44, %v2008_v33  ;;  %v6713_v4 = vld [vmem:[%s7588_s1 + $0x3a8] sm:$0xff]  ;;  %v6721_v35 = vpop.f32.mrf.mxu3 }
 0x2c2   : > { %4489 = vrcp.f32 %v3330_v17  ;;  %v3049_v15 = vmul.f32 0.5, %v4482_v6  ;;  %v4484_v22 = vpop.eup %4483  ;;  %v6708_v42 = vadd.f32 %v6665_v9, %v7770_v3  ;;  %v1171_v26 = vmul.f32 0.5, %v4474_v2  ;;  %7771 = vst [vmem:[#allocation15_spill] sm:$0xff] %v6721_v35 }
 0x2c3   : > { %4491 = vtanh.f32 %v2986_v38  ;;  %3588 = vmatmul.f32.gmra.mxu3 %v3393_v27  ;;  %v4486_v25 = vpop.eup %4485  ;;  %v1196_v14 = vadd.f32 0.5, %v1164_v39  ;;  %v1348_v7 = vmul.f32 %v6368_v23, %v1195_v0  ;;  %v3266_v29 = vadd.f32 %v3234_v52, %v2637_v51  ;;  %v4745_v27 = vld [vmem:[%s5215_s17 + $0x38] sm:$0xff]  ;;  %v7772_v39 = vld [vmem:[#allocation17_spill] sm:$0xff] }
 0x2c4   : > { %v3081_v37 = vadd.f32 0.5, %v3049_v15  ;;  %v3145_v43 = vpop.f32.mrf.mxu1  ;;  %v4488_v20 = vpop.eup %4487  ;;  %4493 = vtanh.f32 %v1730_v5  ;;  %v1793_v17 = vmul.f32 0.5, %v4486_v25  ;;  %v1077_v15 = vsub.f32 %v6708_v42, %v7772_v39  ;;  %v4746_v39 = vld [vmem:[%s5215_s17 + $0x40] sm:$0xff] }
 0x2c5   : > { %4495 = vtanh.f32 %v1108_v62  ;;  %v2042_v12 = vadd.f32 %v1824_v56, %v1196_v14  ;;  %v2009_v23 = vadd.f32 %v1977_v60, %v1348_v7  ;;  %v1165_v38 = vmul.f32 0.5, %v4488_v20  ;;  %v7774_v62 = vld [vmem:[#allocation51_spill] sm:$0xff] }
 0x2c6   : > { %v3299_v1 = vadd.f32 %v3081_v37, %v2670_v32  ;;  %v2869_v21 = vpop.f32.mrf.mxu0  ;;  %4497 = vtanh.f32 %v1102_v47  ;;  %v6730_v5 = vmul.f32 %v7773_v19, %v6696_v50  ;;  %v3235_v52 = vmul.f32 %v3145_v43, %v3081_v37  ;;  %v7775_v43 = vld [vmem:[#allocation21_spill] sm:$0xff] }
 0x2c7   : > { %v2955_v44 = vsub.f32 %v6114_v63, %v2869_v21  ;;  %4318 = vmatmul.msk.f32.gmra.mxu1 %vm850_vm1, %v6651_v57  ;;  %v1736_v63 = vmul.f32 0.5, %v1704_v31  ;;  %v6734_v32 = vadd.f32 %v6665_v9, %v7774_v62  ;;  %v1825_v25 = vadd.f32 0.5, %v1793_v17 }
 0x2c8   : > { %v4490_v2 = vpop.eup %4489  ;;  %v3331_v6 = vmax.f32 %v3299_v1, 1e-20  ;;  %3493 = vmatmul.f32.gmra.mxu2 %v4745_v27  ;;  %v2671_v55 = vadd.f32 %v6147_v61, %v2042_v12  ;;  %v6737_v51 = vadd.f32 0.5, %v1171_v26  ;;  %v1799_v20 = vmul.f32 0.5, %v4484_v22  ;;  %v6746_v61 = vld [vmem:[%s7588_s1 + $0x3b0] sm:$0xff]  ;;  %v7776_v12 = vld [vmem:[#allocation20_spill] sm:$0xff] }
 0x2c9   : > { %v4492_v13 = vpop.eup %4491  ;;  %v2987_v0 = vmul.f32 0.5, %v2955_v44  ;;  %4282 = vmatmul.msk.f32.gmra.mxu0 %vm850_vm1, %v6713_v4  ;;  %v3394_v33 = vmul.f32 %v4490_v2, %v3266_v29  ;;  %v1978_v3 = vmul.f32 %v6066_v30, %v1824_v56  ;;  %v2638_v1 = vadd.f32 %v6121_v58, %v2009_v23 }
 0x2ca   : > { %4499 = vrcp.f32 %v3331_v6  ;;  %v3050_v57 = vmul.f32 0.5, %v4492_v13  ;;  %v4494_v60 = vpop.eup %4493  ;;  %v1705_v21 = vsub.f32 %v6708_v42, %v7775_v43  ;;  %v1197_v7 = vadd.f32 0.5, %v1165_v38 }
 0x2cb   : > { %4501 = vtanh.f32 %v2987_v0  ;;  %3591 = vmatmul.f32.gmra.mxu3 %v3394_v33  ;;  %v4496_v37 = vpop.eup %4495  ;;  %v1109_v2 = vmul.f32 0.5, %v1077_v15  ;;  %v1349_v22 = vmul.f32 %v6377_v53, %v1196_v14  ;;  %v3267_v30 = vadd.f32 %v3235_v52, %v2638_v1 }
 0x2cc   : > { %v3082_v31 = vadd.f32 0.5, %v3050_v57  ;;  %v3148_v47 = vpop.f32.mrf.mxu1  ;;  %4503 = vtanh.f32 %v1736_v63  ;;  %v4498_v26 = vpop.eup %4497  ;;  %v1078_v17 = vsub.f32 %v6734_v32, %v7776_v12  ;;  %v2043_v6 = vadd.f32 %v1825_v25, %v1197_v7  ;;  %v7784_v12 = vld [vmem:[#allocation94_spill] sm:$0xff] }
 0x2cd   : > { %v1794_v13 = vmul.f32 0.5, %v4494_v60  ;;  %v2329_v33 = vsub.f32 %v6497_v46, %v6335_v45  ;;  %v6756_v63 = vpop.f32.mrf.mxu2  ;;  %v2010_v53 = vadd.f32 %v1978_v3, %v1349_v22  ;;  %v1166_v38 = vmul.f32 0.5, %v4498_v26  ;;  %v6760_v57 = vpop.f32.mrf.mxu3 }
 0x2ce   : > { %v3300_v29 = vadd.f32 %v3082_v31, %v2671_v55  ;;  %v2872_v44 = vpop.f32.mrf.mxu0  ;;  %7777 = vst [vmem:[#allocation9_spill] sm:$0xff] %v6756_v63  ;;  %v6763_v15 = vadd.f32 0.5, %v1799_v20  ;;  %v1172_v19 = vmul.f32 0.5, %v4496_v37  ;;  %v3236_v45 = vmul.f32 %v3148_v47, %v3082_v31  ;;  %v7781_v20 = vld [vmem:[#allocation24_spill] sm:$0xff] }
 0x2cf   : > { %v2956_v58 = vsub.f32 %v6151_v10, %v2872_v44  ;;  %4319 = vmatmul.msk.f32.gmra.mxu1 %vm850_vm1, %v6685_v34  ;;  %v1737_v34 = vmul.f32 0.5, %v1705_v21  ;;  %7778 = vst [vmem:[#allocation43_spill] sm:$0xff] %v6760_v57  ;;  %v1110_v62 = vmul.f32 0.5, %v1078_v17  ;;  %v1826_v55 = vadd.f32 0.5, %v1794_v13  ;;  %v7779_v21 = vld [vmem:[#allocation92_spill] sm:$0xff]  ;;  %v7780_v44 = vld [vmem:[#allocation97_spill] sm:$0xff] }
 0x2d0   : > { %v4500_v56 = vpop.eup %4499  ;;  %v3332_v23 = vmax.f32 %v3300_v29, 1e-20  ;;  %3496 = vmatmul.f32.gmra.mxu2 %v4746_v39  ;;  %v2672_v60 = vadd.f32 %v6170_v36, %v2043_v6  ;;  %v2361_v43 = vmul.f32 0.5, %v2329_v33  ;;  %v1979_v29 = vmul.f32 %v7779_v21, %v1825_v25  ;;  %v7782_v36 = vld [vmem:[#allocation55_spill] sm:$0xff]  ;;  %v4747_v39 = vld [vmem:[%s5215_s17 + $0x48] sm:$0xff]  ;;  %v4750_v57 = vld [vmem:[%s5215_s17 + $0x60] sm:$0xff] }
 0x2d1   : > { %v4502_v0 = vpop.eup %4501  ;;  %v2988_v14 = vmul.f32 0.5, %v2956_v58  ;;  %4283 = vmatmul.msk.f32.gmra.mxu0 %vm850_vm1, %v6746_v61  ;;  %v3395_v10 = vmul.f32 %v4500_v56, %v3267_v30  ;;  %v2639_v26 = vadd.f32 %v7780_v44, %v2010_v53  ;;  %v1706_v37 = vsub.f32 %v6734_v32, %v7781_v20  ;;  %v6773_v30 = vld [vmem:[%s7588_s1 + $0x3b8] sm:$0xff]  ;;  %v7825_v63 = vld [vmem:[#allocation128_spill] sm:$0xff] }
 0x2d2   : > { %4505 = vrcp.f32 %v3332_v23  ;;  %v3051_v27 = vmul.f32 0.5, %v4502_v0  ;;  %v4504_v52 = vpop.eup %4503  ;;  %v1198_v31 = vadd.f32 0.5, %v1166_v38  ;;  %v6777_v58 = vadd.f32 %v6665_v9, %v7782_v36  ;;  %v7785_v13 = vld [vmem:[#allocation115_spill] sm:$0xff]  ;;  %v7786_v23 = vld [vmem:[#allocation144_spill] sm:$0xff] }
 0x2d3   : > { %4507 = vtanh.f32 %v2988_v14  ;;  %3594 = vmatmul.f32.gmra.mxu3 %v3395_v10  ;;  %v3268_v56 = vadd.f32 %v3236_v45, %v2639_v26  ;;  %v2330_v0 = vsub.f32 %v7786_v23, %v7785_v13  ;;  %v1800_v38 = vmul.f32 0.5, %v4504_v52  ;;  %v7789_v26 = vld [vmem:[#allocation27_spill] sm:$0xff] }
 0x2d4   : > { %v3083_v3 = vadd.f32 0.5, %v3051_v27  ;;  %v3151_v1 = vpop.f32.mrf.mxu1  ;;  %4509 = vtanh.f32 %v1109_v2  ;;  %v7783_v2 = vld [vmem:[#allocation123_spill] sm:$0xff]  ;;  %v2044_v33 = vadd.f32 %v1826_v55, %v1198_v31  ;;  %v1738_v27 = vmul.f32 0.5, %v1706_v37 }
 0x2d5   : > { %4511 = vtanh.f32 %v1737_v34  ;;  %v1350_v25 = vmul.f32 %v7783_v2, %v1197_v7  ;;  %v6792_v21 = vadd.f32 %v6699_v24, %v6696_v50  ;;  %v2362_v52 = vmul.f32 0.5, %v2330_v0  ;;  %v6798_v37 = vpop.f32.mrf.mxu3 }
 0x2d6   : > { %v3301_v47 = vadd.f32 %v3083_v3, %v2672_v60  ;;  %v2875_v22 = vpop.f32.mrf.mxu0  ;;  %4513 = vtanh.f32 %v1110_v62  ;;  %v7787_v60 = vld [vmem:[#allocation23_spill] sm:$0xff]  ;;  %v1707_v20 = vsub.f32 %v6777_v58, %v7789_v26  ;;  %7790 = vst [vmem:[#allocation18_spill] sm:$0xff] %v6798_v37  ;;  %v1204_v13 = vadd.f32 0.5, %v1172_v19 }
 0x2d7   : > { %v2957_v17 = vsub.f32 %v7784_v12, %v2875_v22  ;;  %4320 = vmatmul.msk.f32.gmra.mxu1 %vm850_vm1, %v6713_v4  ;;  %4515 = vtanh.f32 %v2361_v43  ;;  %v2011_v10 = vadd.f32 %v1979_v29, %v1350_v25  ;;  %v1079_v62 = vsub.f32 %v6777_v58, %v7787_v60  ;;  %v6794_v43 = vpop.f32.mrf.mxu2  ;;  %v7792_v25 = vld [vmem:[#allocation13_spill] sm:$0xff]  ;;  %v7794_v12 = vld [vmem:[#allocation99_spill] sm:$0xff] }
 0x2d8   : > { %v4506_v6 = vpop.eup %4505  ;;  %v3333_v53 = vmax.f32 %v3301_v47, 1e-20  ;;  %3499 = vmatmul.f32.gmra.mxu2 %v4747_v39  ;;  %7788 = vst [vmem:[#allocation14_spill] sm:$0xff] %v6794_v43  ;;  %v3237_v29 = vmul.f32 %v3151_v1, %v3083_v3  ;;  %v7791_v47 = vld [vmem:[#allocation102_spill] sm:$0xff]  ;;  %v6803_v50 = vmul.f32 %v7792_v25, %v6737_v51  ;;  %v6807_v3 = vadd.f32 %v6763_v15, %v6737_v51  ;;  %v7793_v1 = vld [vmem:[#allocation95_spill] sm:$0xff] }
 0x2d9   : > { %v4508_v14 = vpop.eup %4507  ;;  %v2989_v34 = vmul.f32 0.5, %v2957_v17  ;;  %4284 = vmatmul.msk.f32.gmra.mxu0 %vm850_vm1, %v6773_v30  ;;  %v3396_v7 = vmul.f32 %v4506_v6, %v3268_v56  ;;  %v2673_v22 = vadd.f32 %v7791_v47, %v2044_v33  ;;  %v1980_v56 = vmul.f32 %v7793_v1, %v1826_v55  ;;  %v7795_v51 = vld [vmem:[#allocation127_spill] sm:$0xff]  ;;  %v7797_v47 = vld [vmem:[#allocation118_spill] sm:$0xff] }
 0x2da   : > { %4517 = vrcp.f32 %v3333_v53  ;;  %v3052_v4 = vmul.f32 0.5, %v4508_v14  ;;  %v4510_v45 = vpop.eup %4509  ;;  %v2640_v17 = vadd.f32 %v7794_v12, %v2011_v10  ;;  %v6811_v0 = vadd.f32 0.5, %v1800_v38  ;;  %v6816_v14 = vld [vmem:[%s7588_s1 + $0x3c0] sm:$0xff]  ;;  %v7796_v10 = vld [vmem:[#allocation59_spill] sm:$0xff]  ;;  %v4748_v12 = vld [vmem:[%s5215_s17 + $0x50] sm:$0xff] }
 0x2db   : > { %4519 = vtanh.f32 %v2989_v34  ;;  %3597 = vmatmul.f32.gmra.mxu3 %v3396_v7  ;;  %v4512_v44 = vpop.eup %4511  ;;  %v1111_v7 = vmul.f32 0.5, %v1079_v62  ;;  %v6824_v38 = vadd.f32 %v6665_v9, %v7796_v10  ;;  %v7798_v62 = vld [vmem:[#allocation150_spill] sm:$0xff]  ;;  %v7802_v10 = vld [vmem:[#allocation103_spill] sm:$0xff]  ;;  %v2334_v35 = vsub.f32 %v6708_v42, %v7825_v63 }
 0x2dc   : > { %v3084_v36 = vadd.f32 0.5, %v3052_v4  ;;  %v3154_v2 = vpop.f32.mrf.mxu1  ;;  %v4514_v6 = vpop.eup %4513  ;;  %4521 = vtanh.f32 %v1738_v27  ;;  %v1351_v4 = vmul.f32 %v7795_v51, %v1198_v31  ;;  %v3269_v39 = vadd.f32 %v3237_v29, %v2640_v17  ;;  %v7799_v17 = vld [vmem:[#allocation16_spill] sm:$0xff] }
 0x2dd   : > { %v4516_v34 = vpop.eup %4515  ;;  %4523 = vtanh.f32 %v2362_v52  ;;  %v1739_v27 = vmul.f32 0.5, %v1707_v20  ;;  %v1801_v25 = vmul.f32 0.5, %v4512_v44  ;;  %v6832_v52 = vmul.f32 %v7799_v17, %v1204_v13 }
 0x2de   : > { %v3302_v33 = vadd.f32 %v3084_v36, %v2673_v22  ;;  %v2878_v53 = vpop.f32.mrf.mxu0  ;;  %v2331_v22 = vsub.f32 %v7798_v62, %v7797_v47  ;;  %v2012_v31 = vadd.f32 %v1980_v56, %v1351_v4  ;;  %v1174_v20 = vmul.f32 0.5, %v4514_v6  ;;  %v7800_v56 = vld [vmem:[#allocation26_spill] sm:$0xff] }
 0x2df   : > { %v2958_v55 = vsub.f32 %v6497_v46, %v2878_v53  ;;  %4321 = vmatmul.msk.f32.gmra.mxu1 %vm850_vm1, %v6746_v61  ;;  %v1173_v61 = vmul.f32 0.5, %v4510_v45  ;;  %v1080_v51 = vsub.f32 %v6824_v38, %v7800_v56  ;;  %v2425_v4 = vmul.f32 0.5, %v4516_v34  ;;  %v6846_v34 = vpop.f32.mrf.mxu3 }
 0x2e0   : > { %v4518_v19 = vpop.eup %4517  ;;  %v3334_v60 = vmax.f32 %v3302_v33, 1e-20  ;;  %3502 = vmatmul.f32.gmra.mxu2 %v4748_v12  ;;  %v3238_v33 = vmul.f32 %v3154_v2, %v3084_v36  ;;  %v2363_v44 = vmul.f32 0.5, %v2331_v22  ;;  %v2641_v6 = vadd.f32 %v7802_v10, %v2012_v31  ;;  %7804 = vst [vmem:[#allocation17_spill] sm:$0xff] %v6846_v34 }
 0x2e1   : > { %v4520_v26 = vpop.eup %4519  ;;  %v2990_v29 = vmul.f32 0.5, %v2958_v55  ;;  %4285 = vmatmul.msk.f32.gmra.mxu0 %vm850_vm1, %v6816_v14  ;;  %v3397_v46 = vmul.f32 %v4518_v19, %v3269_v39  ;;  %v6837_v55 = vadd.f32 %v6811_v0, %v1204_v13  ;;  %v6839_v19 = vpop.f32.mrf.mxu2  ;;  %v1205_v2 = vadd.f32 0.5, %v1173_v61  ;;  %v6852_v13 = vld [vmem:[%s7588_s1 + $0x3c8] sm:$0xff] }
 0x2e2   : > { %4525 = vrcp.f32 %v3334_v60  ;;  %v3053_v1 = vmul.f32 0.5, %v4520_v26  ;;  %v4522_v53 = vpop.eup %4521  ;;  %7801 = vst [vmem:[#allocation47_spill] sm:$0xff] %v6839_v19  ;;  %v6842_v60 = vadd.f32 0.5, %v1801_v25  ;;  %v7803_v26 = vld [vmem:[#allocation30_spill] sm:$0xff]  ;;  %v3270_v61 = vadd.f32 %v3238_v33, %v2641_v6 }
 0x2e3   : > { %4527 = vtanh.f32 %v2990_v29  ;;  %3600 = vmatmul.f32.gmra.mxu3 %v3397_v46  ;;  %v4524_v36 = vpop.eup %4523  ;;  %v1708_v47 = vsub.f32 %v6824_v38, %v7803_v26  ;;  %v1802_v46 = vmul.f32 0.5, %v4522_v53  ;;  %v1112_v12 = vmul.f32 0.5, %v1080_v51  ;;  %v7808_v53 = vld [vmem:[#allocation19_spill] sm:$0xff] }
 0x2e4   : > { %4529 = vtanh.f32 %v1111_v7  ;;  %v3085_v39 = vadd.f32 0.5, %v3053_v1  ;;  %v3157_v45 = vpop.f32.mrf.mxu1  ;;  %v7805_v7 = vld [vmem:[#allocation105_spill] sm:$0xff]  ;;  %v2457_v17 = vadd.f32 0.5, %v2425_v4  ;;  %v6861_v56 = vadd.f32 0.5, %v1174_v20  ;;  %v4749_v20 = vld [vmem:[%s5215_s17 + $0x58] sm:$0xff] }
 0x2e5   : > { %4531 = vtanh.f32 %v1739_v27  ;;  %v7806_v27 = vld [vmem:[#allocation63_spill] sm:$0xff]  ;;  %v1740_v6 = vmul.f32 0.5, %v1708_v47 }
 0x2e6   : > { %v3303_v29 = vadd.f32 %v3085_v39, %v7805_v7  ;;  %v2881_v22 = vpop.f32.mrf.mxu0  ;;  %v6856_v31 = vadd.f32 %v6665_v9, %v7806_v27  ;;  %4533 = vtanh.f32 %v2363_v44  ;;  %v7807_v7 = vld [vmem:[#allocation120_spill] sm:$0xff] }
 0x2e7   : > { %v2959_v25 = vsub.f32 %v7786_v23, %v2881_v22  ;;  %4322 = vmatmul.msk.f32.gmra.mxu1 %vm850_vm1, %v6773_v30  ;;  %v2332_v27 = vsub.f32 %v6599_v11, %v7807_v7  ;;  %v6868_v30 = vmul.f32 %v7808_v53, %v1205_v2  ;;  %v6874_v22 = vadd.f32 %v6842_v60, %v1205_v2  ;;  %v7810_v53 = vld [vmem:[#allocation22_spill] sm:$0xff]  ;;  %v7811_v2 = vld [vmem:[#allocation33_spill] sm:$0xff]  ;;  %v6903_v43 = vpop.f32.mrf.mxu3 }
 0x2e8   : > { %v4526_v1 = vpop.eup %4525  ;;  %v3335_v10 = vmax.f32 %v3303_v29, 1e-20  ;;  %3505 = vmatmul.f32.gmra.mxu2 %v4749_v20  ;;  %v7809_v29 = vld [vmem:[#allocation29_spill] sm:$0xff]  ;;  %v6877_v7 = vadd.f32 0.5, %v1802_v46  ;;  %v6881_v20 = vmul.f32 %v7810_v53, %v6861_v56  ;;  %7817 = vst [vmem:[#allocation51_spill] sm:$0xff] %v6903_v43 }
 0x2e9   : > { %v4528_v26 = vpop.eup %4527  ;;  %v2991_v34 = vmul.f32 0.5, %v2959_v25  ;;  %4286 = vmatmul.msk.f32.gmra.mxu0 %vm850_vm1, %v6852_v13  ;;  %v3398_v23 = vmul.f32 %v4526_v1, %v3270_v61  ;;  %v1081_v44 = vsub.f32 %v6856_v31, %v7809_v29  ;;  %v3239_v25 = vmul.f32 %v3157_v45, %v3085_v39 }
 0x2ea   : > { %v4530_v33 = vpop.eup %4529  ;;  %4535 = vrcp.f32 %v3335_v10  ;;  %v3054_v51 = vmul.f32 0.5, %v4528_v26  ;;  %v2675_v61 = vadd.f32 %v2457_v17, %v6608_v49  ;;  %v2426_v1 = vmul.f32 0.5, %v4524_v36  ;;  %v6888_v49 = vld [vmem:[%s7588_s1 + $0x3d0] sm:$0xff] }
 0x2eb   : > { %v4532_v4 = vpop.eup %4531  ;;  %4537 = vtanh.f32 %v2991_v34  ;;  %3603 = vmatmul.f32.gmra.mxu3 %v3398_v23  ;;  %v2364_v26 = vmul.f32 0.5, %v2332_v27  ;;  %v1175_v19 = vmul.f32 0.5, %v4530_v33  ;;  %v1709_v39 = vsub.f32 %v6856_v31, %v7811_v2  ;;  %v7812_v27 = vld [vmem:[#allocation100_spill] sm:$0xff]  ;;  %v7816_v2 = vld [vmem:[#allocation121_spill] sm:$0xff] }
 0x2ec   : > { %v3086_v47 = vadd.f32 0.5, %v3054_v51  ;;  %v3160_v10 = vpop.f32.mrf.mxu1  ;;  %4539 = vtanh.f32 %v1112_v12  ;;  %v1803_v29 = vmul.f32 0.5, %v4532_v4  ;;  %v4534_v36 = vpop.eup %4533  ;;  %v1113_v46 = vmul.f32 0.5, %v1081_v44  ;;  %v7814_v12 = vld [vmem:[#allocation107_spill] sm:$0xff] }
 0x2ed   : > { %4541 = vtanh.f32 %v1740_v6  ;;  %v1982_v23 = vmul.f32 %v7812_v27, %v6585_v8  ;;  %v6892_v51 = vpop.f32.mrf.mxu2  ;;  %v3271_v33 = vadd.f32 %v3239_v25, %v7814_v12  ;;  %v2611_v44 = vmul.f32 %v7816_v2, %v2457_v17  ;;  %v7818_v25 = vld [vmem:[#allocation124_spill] sm:$0xff] }
 0x2ee   : > { %v3304_v45 = vadd.f32 %v3086_v47, %v2675_v61  ;;  %v2884_v34 = vpop.f32.mrf.mxu0  ;;  %7813 = vst [vmem:[#allocation10_spill] sm:$0xff] %v6892_v51  ;;  %v7815_v61 = vld [vmem:[#allocation67_spill] sm:$0xff]  ;;  %v2458_v37 = vadd.f32 0.5, %v2426_v1  ;;  %4543 = vtanh.f32 %v2364_v26  ;;  %v1207_v12 = vadd.f32 0.5, %v1175_v19  ;;  %v7819_v1 = vld [vmem:[#allocation8_spill] sm:$0xff] }
 0x2ef   : > { %v2960_v6 = vsub.f32 %v7798_v62, %v2884_v34  ;;  %4323 = vmatmul.msk.f32.gmra.mxu1 %vm850_vm1, %v6816_v14  ;;  %v6900_v53 = vadd.f32 %v6665_v9, %v7815_v61  ;;  %v2333_v62 = vsub.f32 %v6669_v18, %v7818_v25  ;;  %v1741_v51 = vmul.f32 0.5, %v1709_v39  ;;  %v7820_v25 = vld [vmem:[#allocation32_spill] sm:$0xff] }
 0x2f0   : > { %v4536_v4 = vpop.eup %4535  ;;  %v3336_v8 = vmax.f32 %v3304_v45, 1e-20  ;;  %3508 = vmatmul.f32.gmra.mxu2 %v4750_v57  ;;  %v2014_v2 = vadd.f32 %v1982_v23, %v7819_v1  ;;  %v6913_v26 = vadd.f32 %v6877_v7, %v6861_v56  ;;  %v3240_v45 = vmul.f32 %v3160_v10, %v3086_v47  ;;  %v7821_v23 = vld [vmem:[#allocation25_spill] sm:$0xff]  ;;  %v7822_v47 = vld [vmem:[#allocation36_spill] sm:$0xff] }
 0x2f1   : > { %v4538_v27 = vpop.eup %4537  ;;  %v2992_v34 = vmul.f32 0.5, %v2960_v6  ;;  %4287 = vmatmul.msk.f32.gmra.mxu0 %vm850_vm1, %v6888_v49  ;;  %v3399_v14 = vmul.f32 %v4536_v4, %v3271_v33  ;;  %v1082_v33 = vsub.f32 %v6900_v53, %v7820_v25  ;;  %v2676_v19 = vadd.f32 %v2458_v37, %v6640_v59  ;;  %v6928_v59 = vld [vmem:[%s7588_s1 + $0x3d8] sm:$0xff] }
 0x2f2   : > { %4545 = vrcp.f32 %v3336_v8  ;;  %v3055_v61 = vmul.f32 0.5, %v4538_v27  ;;  %v4540_v17 = vpop.eup %4539  ;;  %v2427_v39 = vmul.f32 0.5, %v4534_v36  ;;  %v2643_v57 = vadd.f32 %v2611_v44, %v2014_v2  ;;  %v7823_v44 = vld [vmem:[#allocation104_spill] sm:$0xff]  ;;  %v7824_v2 = vld [vmem:[#allocation125_spill] sm:$0xff] }
 0x2f3   : > { %4547 = vtanh.f32 %v2992_v34  ;;  %3606 = vmatmul.f32.gmra.mxu3 %v3399_v14  ;;  %v4542_v6 = vpop.eup %4541  ;;  %v2365_v27 = vmul.f32 0.5, %v2333_v62  ;;  %v6918_v43 = vadd.f32 0.5, %v1803_v29  ;;  %v6921_v56 = vmul.f32 %v7821_v23, %v1207_v12 }
 0x2f4   : > { %v3087_v4 = vadd.f32 0.5, %v3055_v61  ;;  %v3163_v8 = vpop.f32.mrf.mxu1  ;;  %4549 = vtanh.f32 %v1113_v46  ;;  %v1710_v10 = vsub.f32 %v6900_v53, %v7822_v47  ;;  %v4544_v36 = vpop.eup %4543  ;;  %v1983_v29 = vmul.f32 %v7823_v44, %v6614_v16 }
 0x2f5   : > { %4551 = vtanh.f32 %v1741_v51  ;;  %v1176_v62 = vmul.f32 0.5, %v4540_v17  ;;  %v3272_v46 = vadd.f32 %v3240_v45, %v2643_v57  ;;  %v1114_v1 = vmul.f32 0.5, %v1082_v33  ;;  %v6938_v16 = vpop.f32.mrf.mxu2  ;;  %v4751_v57 = vld [vmem:[%s5215_s17 + $0x68] sm:$0xff] }
 0x2f6   : > { %v3305_v34 = vadd.f32 %v3087_v4, %v2676_v19  ;;  %v2887_v14 = vpop.f32.mrf.mxu0  ;;  %v2612_v25 = vmul.f32 %v7824_v2, %v2458_v37  ;;  %v2459_v19 = vadd.f32 0.5, %v2427_v39  ;;  %4553 = vtanh.f32 %v2365_v27  ;;  %v6946_v37 = vpop.f32.mrf.mxu3 }
 0x2f7   : > { %v2961_v61 = vsub.f32 %v6599_v11, %v2887_v14  ;;  %4324 = vmatmul.msk.f32.gmra.mxu1 %vm850_vm1, %v6852_v13  ;;  %v7826_v13 = vld [vmem:[#allocation71_spill] sm:$0xff]  ;;  %v1742_v33 = vmul.f32 0.5, %v1710_v10  ;;  %v2015_v63 = vadd.f32 %v1983_v29, %v6635_v28  ;;  %v3241_v14 = vmul.f32 %v3163_v8, %v3087_v4 }
 0x2f8   : > { %v4546_v51 = vpop.eup %4545  ;;  %v3337_v23 = vmax.f32 %v3305_v34, 1e-20  ;;  %v6944_v45 = vadd.f32 %v6665_v9, %v7826_v13  ;;  %3511 = vmatmul.f32.gmra.mxu2 %v4751_v57  ;;  %v6951_v34 = vadd.f32 %v6918_v43, %v1207_v12  ;;  %v1804_v10 = vmul.f32 0.5, %v4542_v6  ;;  %v7827_v57 = vld [vmem:[#allocation35_spill] sm:$0xff] }
 0x2f9   : > { %v4548_v47 = vpop.eup %4547  ;;  %v2993_v17 = vmul.f32 0.5, %v2961_v61  ;;  %4288 = vmatmul.msk.f32.gmra.mxu0 %vm850_vm1, %v6928_v59  ;;  %v3400_v11 = vmul.f32 %v4546_v51, %v3272_v46  ;;  %v2677_v46 = vadd.f32 %v2459_v19, %v6792_v21  ;;  %v2428_v61 = vmul.f32 0.5, %v4544_v36  ;;  %v6961_v21 = vld [vmem:[%s7588_s1 + $0x3e0] sm:$0xff]  ;;  %v7828_v36 = vld [vmem:[#allocation106_spill] sm:$0xff] }
 0x2fa   : > { %4555 = vrcp.f32 %v3337_v23  ;;  %v3056_v39 = vmul.f32 0.5, %v4548_v47  ;;  %v4550_v27 = vpop.eup %4549  ;;  %v2644_v23 = vadd.f32 %v2612_v25, %v2015_v63  ;;  %v2366_v47 = vmul.f32 0.5, %v2334_v35 }
 0x2fb   : > { %4557 = vtanh.f32 %v2993_v17  ;;  %3609 = vmatmul.f32.gmra.mxu3 %v3400_v11  ;;  %v4552_v44 = vpop.eup %4551  ;;  %v6954_v13 = vadd.f32 0.5, %v1176_v62  ;;  %v1083_v28 = vsub.f32 %v6944_v45, %v7827_v57  ;;  %v1177_v12 = vmul.f32 0.5, %v4550_v27  ;;  %v7829_v17 = vld [vmem:[#allocation129_spill] sm:$0xff]  ;;  %v7831_v57 = vld [vmem:[#allocation132_spill] sm:$0xff] }
 0x2fc   : > { %v3088_v51 = vadd.f32 0.5, %v3056_v39  ;;  %v3166_v2 = vpop.f32.mrf.mxu1  ;;  %4559 = vtanh.f32 %v1114_v1  ;;  %v4554_v6 = vpop.eup %4553  ;;  %v1984_v29 = vmul.f32 %v7828_v36, %v6699_v24  ;;  %v1805_v35 = vmul.f32 0.5, %v4552_v44  ;;  %v7830_v39 = vld [vmem:[#allocation40_spill] sm:$0xff] }
 0x2fd   : > { %4561 = vtanh.f32 %v1742_v33  ;;  %v3273_v62 = vadd.f32 %v3241_v14, %v2644_v23  ;;  %v2613_v11 = vmul.f32 %v7829_v17, %v2459_v19  ;;  %v2460_v33 = vadd.f32 0.5, %v2428_v61  ;;  %v4752_v61 = vld [vmem:[%s5215_s17 + $0x70] sm:$0xff]  ;;  %v6983_v36 = vpop.f32.mrf.mxu2 }
 0x2fe   : > { %v3306_v4 = vadd.f32 %v3088_v51, %v2677_v46  ;;  %v2890_v8 = vpop.f32.mrf.mxu0  ;;  %v1711_v27 = vsub.f32 %v6944_v45, %v7830_v39  ;;  %4563 = vtanh.f32 %v2366_v47  ;;  %v2335_v24 = vsub.f32 %v6734_v32, %v7831_v57  ;;  %v7832_v47 = vld [vmem:[#allocation28_spill] sm:$0xff]  ;;  %7833 = vst [vmem:[#allocation21_spill] sm:$0xff] %v6983_v36  ;;  %v6986_v17 = vpop.f32.mrf.mxu3 }
 0x2ff   : > { %v2962_v1 = vsub.f32 %v6669_v18, %v2890_v8  ;;  %4325 = vmatmul.msk.f32.gmra.mxu1 %vm850_vm1, %v6888_v49  ;;  %v1115_v49 = vmul.f32 0.5, %v1083_v28  ;;  %v6975_v44 = vadd.f32 0.5, %v1804_v10  ;;  %v6981_v8 = vmul.f32 %v7832_v47, %v6954_v13  ;;  %7834 = vst [vmem:[#allocation20_spill] sm:$0xff] %v6986_v17 }
 0x300   : > { %v4556_v25 = vpop.eup %4555  ;;  %v3338_v63 = vmax.f32 %v3306_v4, 1e-20  ;;  %3514 = vmatmul.f32.gmra.mxu2 %v4752_v61  ;;  %v2016_v4 = vadd.f32 %v1984_v29, %v6730_v5  ;;  %v2678_v10 = vadd.f32 %v2460_v33, %v6807_v3  ;;  %v2429_v28 = vmul.f32 0.5, %v4554_v6  ;;  %v7835_v61 = vld [vmem:[#allocation75_spill] sm:$0xff]  ;;  %v6997_v3 = vld [vmem:[%s7588_s1 + $0x3e8] sm:$0xff] }
 0x301   : > { %v4558_v46 = vpop.eup %4557  ;;  %v2994_v14 = vmul.f32 0.5, %v2962_v1  ;;  %4289 = vmatmul.msk.f32.gmra.mxu0 %vm850_vm1, %v6961_v21  ;;  %v3401_v18 = vmul.f32 %v4556_v25, %v3273_v62  ;;  %v3242_v1 = vmul.f32 %v3166_v2, %v3088_v51  ;;  %v1743_v25 = vmul.f32 0.5, %v1711_v27 }
 0x302   : > { %4565 = vrcp.f32 %v3338_v63  ;;  %v3057_v19 = vmul.f32 0.5, %v4558_v46  ;;  %v4560_v23 = vpop.eup %4559  ;;  %v2645_v46 = vadd.f32 %v2613_v11, %v2016_v4  ;;  %v2367_v5 = vmul.f32 0.5, %v2335_v24  ;;  %v7836_v11 = vld [vmem:[#allocation108_spill] sm:$0xff] }
 0x303   : > { %4567 = vtanh.f32 %v2994_v14  ;;  %3612 = vmatmul.f32.gmra.mxu3 %v3401_v18  ;;  %v4562_v62 = vpop.eup %4561  ;;  %v1209_v29 = vadd.f32 0.5, %v1177_v12  ;;  %v6988_v57 = vadd.f32 0.5, %v1805_v35  ;;  %v6992_v47 = vadd.f32 %v6665_v9, %v7835_v61  ;;  %v7838_v61 = vld [vmem:[#allocation135_spill] sm:$0xff] }
 0x304   : > { %v3089_v39 = vadd.f32 0.5, %v3057_v19  ;;  %v3169_v63 = vpop.f32.mrf.mxu1  ;;  %v1178_v51 = vmul.f32 0.5, %v4560_v23  ;;  %4569 = vtanh.f32 %v1115_v49  ;;  %v4564_v6 = vpop.eup %4563  ;;  %v1985_v27 = vmul.f32 %v7836_v11, %v6763_v15  ;;  %v7837_v49 = vld [vmem:[#allocation133_spill] sm:$0xff] }
 0x305   : > { %v1806_v12 = vmul.f32 0.5, %v4562_v62  ;;  %v3274_v35 = vadd.f32 %v3242_v1, %v2645_v46  ;;  %v2614_v19 = vmul.f32 %v7837_v49, %v2460_v33  ;;  %v2461_v23 = vadd.f32 0.5, %v2429_v28  ;;  %v7839_v1 = vld [vmem:[#allocation38_spill] sm:$0xff]  ;;  %v4753_v33 = vld [vmem:[%s5215_s17 + $0x78] sm:$0xff] }
 0x306   : > { %v3307_v2 = vadd.f32 %v3089_v39, %v2678_v10  ;;  %v2893_v14 = vpop.f32.mrf.mxu0  ;;  %4571 = vtanh.f32 %v1743_v25  ;;  %v2336_v17 = vsub.f32 %v6777_v58, %v7838_v61  ;;  %v1210_v62 = vadd.f32 0.5, %v1178_v51 }
 0x307   : > { %v2963_v24 = vsub.f32 %v6708_v42, %v2893_v14  ;;  %4326 = vmatmul.msk.f32.gmra.mxu1 %vm850_vm1, %v6928_v59  ;;  %4573 = vtanh.f32 %v2367_v5  ;;  %v1084_v59 = vsub.f32 %v6992_v47, %v7839_v1  ;;  %v2017_v28 = vadd.f32 %v1985_v27, %v6803_v50 }
 0x308   : > { %v4566_v18 = vpop.eup %4565  ;;  %v3339_v4 = vmax.f32 %v3307_v2, 1e-20  ;;  %3517 = vmatmul.f32.gmra.mxu2 %v4753_v33  ;;  %v7015_v25 = vadd.f32 %v6975_v44, %v6954_v13  ;;  %v3243_v5 = vmul.f32 %v3169_v63, %v3089_v39  ;;  %v2679_v14 = vadd.f32 %v2461_v23, %v6837_v55  ;;  %v7026_v13 = vpop.f32.mrf.mxu2  ;;  %v7843_v55 = vld [vmem:[#allocation44_spill] sm:$0xff] }
 0x309   : > { %v4568_v10 = vpop.eup %4567  ;;  %v2995_v15 = vmul.f32 0.5, %v2963_v24  ;;  %4290 = vmatmul.msk.f32.gmra.mxu0 %vm850_vm1, %v6997_v3  ;;  %v3402_v42 = vmul.f32 %v4566_v18, %v3274_v35  ;;  %v2430_v11 = vmul.f32 0.5, %v4564_v6  ;;  %v7840_v35 = vld [vmem:[#allocation31_spill] sm:$0xff]  ;;  %v2646_v49 = vadd.f32 %v2614_v19, %v2017_v28  ;;  %7841 = vst [vmem:[#allocation92_spill] sm:$0xff] %v7026_v13 }
 0x30a   : > { %4575 = vrcp.f32 %v3339_v4  ;;  %v3058_v46 = vmul.f32 0.5, %v4568_v10  ;;  %v4570_v2 = vpop.eup %4569  ;;  %v7019_v24 = vmul.f32 %v7840_v35, %v1209_v29  ;;  %v2368_v4 = vmul.f32 0.5, %v2336_v17  ;;  %v7842_v10 = vld [vmem:[#allocation34_spill] sm:$0xff] }
 0x30b   : > { %4577 = vtanh.f32 %v2995_v15  ;;  %3615 = vmatmul.f32.gmra.mxu3 %v3402_v42  ;;  %v7022_v50 = vadd.f32 %v6988_v57, %v1209_v29  ;;  %v7024_v27 = vadd.f32 0.5, %v1806_v12  ;;  %v1116_v63 = vmul.f32 0.5, %v1084_v59  ;;  %v7033_v15 = vpop.f32.mrf.mxu3  ;;  %v7038_v17 = vld [vmem:[%s7588_s1 + $0x3f0] sm:$0xff]  ;;  %v7845_v12 = vld [vmem:[#allocation109_spill] sm:$0xff] }
 0x30c   : > { %v3090_v51 = vadd.f32 0.5, %v3058_v46  ;;  %v3172_v18 = vpop.f32.mrf.mxu1  ;;  %v4572_v39 = vpop.eup %4571  ;;  %v7029_v61 = vmul.f32 %v7842_v10, %v1210_v62  ;;  %v1712_v6 = vsub.f32 %v6992_v47, %v7843_v55  ;;  %7844 = vst [vmem:[#allocation97_spill] sm:$0xff] %v7033_v15  ;;  %v1986_v1 = vmul.f32 %v7845_v12, %v6811_v0  ;;  %v7847_v10 = vld [vmem:[#allocation136_spill] sm:$0xff]  ;;  %v7848_v0 = vld [vmem:[#allocation138_spill] sm:$0xff] }
 0x30d   : > { %v4574_v29 = vpop.eup %4573  ;;  %v1179_v59 = vmul.f32 0.5, %v4570_v2  ;;  %v3275_v46 = vadd.f32 %v3243_v5, %v2646_v49  ;;  %v2615_v55 = vmul.f32 %v7847_v10, %v2461_v23  ;;  %v2462_v15 = vadd.f32 0.5, %v2430_v11  ;;  %v7852_v10 = vld [vmem:[#allocation110_spill] sm:$0xff] }
 0x30e   : > { %v3308_v42 = vadd.f32 %v3090_v51, %v2679_v14  ;;  %v2896_v19 = vpop.f32.mrf.mxu0  ;;  %v7846_v14 = vld [vmem:[#allocation79_spill] sm:$0xff]  ;;  %4579 = vtanh.f32 %v2368_v4  ;;  %v2337_v5 = vsub.f32 %v6824_v38, %v7848_v0  ;;  %v1744_v49 = vmul.f32 0.5, %v1712_v6 }
 0x30f   : > { %v2964_v33 = vsub.f32 %v6734_v32, %v2896_v19  ;;  %4327 = vmatmul.msk.f32.gmra.mxu1 %vm850_vm1, %v6961_v21  ;;  %v7047_v35 = vadd.f32 %v6665_v9, %v7846_v14  ;;  %v1807_v21 = vmul.f32 0.5, %v4572_v39  ;;  %v4754_v9 = vld [vmem:[%s5215_s17 + $0x80] sm:$0xff]  ;;  %v2018_v23 = vadd.f32 %v1986_v1, %v6832_v52  ;;  %v7069_v1 = vld [vmem:[%s7588_s1 + $0x3f8] sm:$0xff] }
 0x310   : > { %v4576_v28 = vpop.eup %4575  ;;  %v3340_v13 = vmax.f32 %v3308_v42, 1e-20  ;;  %3520 = vmatmul.f32.gmra.mxu2 %v4754_v9  ;;  %v7057_v11 = vadd.f32 %v7024_v27, %v1210_v62  ;;  %v3244_v4 = vmul.f32 %v3172_v18, %v3090_v51  ;;  %v7849_v42 = vld [vmem:[#allocation42_spill] sm:$0xff]  ;;  %v7850_v52 = vld [vmem:[#allocation48_spill] sm:$0xff]  ;;  %v7082_v0 = vpop.f32.mrf.mxu2 }
 0x311   : > { %v4578_v36 = vpop.eup %4577  ;;  %v2996_v2 = vmul.f32 0.5, %v2964_v33  ;;  %4291 = vmatmul.msk.f32.gmra.mxu0 %vm850_vm1, %v7038_v17  ;;  %v3403_v32 = vmul.f32 %v4576_v28, %v3275_v46  ;;  %v1085_v12 = vsub.f32 %v7047_v35, %v7849_v42  ;;  %v2680_v33 = vadd.f32 %v2462_v15, %v6874_v22 }
 0x312   : > { %4581 = vrcp.f32 %v3340_v13  ;;  %v3059_v19 = vmul.f32 0.5, %v4578_v36  ;;  %v2431_v46 = vmul.f32 0.5, %v4574_v29  ;;  %v2647_v13 = vadd.f32 %v2615_v55, %v2018_v23  ;;  %v7074_v29 = vld [vmem:[%s7592_s5] ss:$0 sm:$0xff] }
 0x313   : > { %4583 = vtanh.f32 %v2996_v2  ;;  %3618 = vmatmul.f32.gmra.mxu3 %v3403_v32  ;;  %v2369_v36 = vmul.f32 0.5, %v2337_v5  ;;  %v1211_v28 = vadd.f32 0.5, %v1179_v59  ;;  %v7062_v14 = vadd.f32 0.5, %v1807_v21  ;;  %v7088_v23 = vpop.f32.mrf.mxu3 }
 0x314   : > { %v3091_v39 = vadd.f32 0.5, %v3059_v19  ;;  %v3175_v6 = vpop.f32.mrf.mxu1  ;;  %4585 = vtanh.f32 %v1116_v63  ;;  %v1713_v62 = vsub.f32 %v7047_v35, %v7850_v52  ;;  %v4580_v22 = vpop.eup %4579  ;;  %v7851_v63 = vld [vmem:[#allocation83_spill] sm:$0xff]  ;;  %v1987_v55 = vmul.f32 %v7852_v10, %v6842_v60  ;;  %7854 = vst [vmem:[#allocation24_spill] sm:$0xff] %v7088_v23  ;;  %v7855_v60 = vld [vmem:[#allocation141_spill] sm:$0xff]  ;;  %v4757_v23 = vld [vmem:[%s5215_s17 + $0x90] sm:$0xff] }
 0x315   : > { %4587 = vtanh.f32 %v1744_v49  ;;  %v7078_v59 = vadd.f32 %v7074_v29, %v7851_v63  ;;  %v3276_v5 = vadd.f32 %v3244_v4, %v2647_v13  ;;  %v1117_v21 = vmul.f32 0.5, %v1085_v12  ;;  %v7853_v49 = vld [vmem:[#allocation139_spill] sm:$0xff] }
 0x316   : > { %v3309_v51 = vadd.f32 %v3091_v39, %v2680_v33  ;;  %v2899_v18 = vpop.f32.mrf.mxu0  ;;  %v2616_v19 = vmul.f32 %v7853_v49, %v2462_v15  ;;  %v2463_v9 = vadd.f32 0.5, %v2431_v46  ;;  %4589 = vtanh.f32 %v2369_v36  ;;  %v4756_v46 = vld [vmem:[%s5215_s17 + $0x88] sm:$0xff]  ;;  %v7858_v49 = vld [vmem:[#allocation86_spill] sm:$0xff] }
 0x317   : > { %v2965_v2 = vsub.f32 %v6777_v58, %v2899_v18  ;;  %4328 = vmatmul.msk.f32.gmra.mxu1 %vm850_vm1, %v6997_v3  ;;  %v2338_v52 = vsub.f32 %v6856_v31, %v7855_v60  ;;  %v7856_v3 = vld [vmem:[#allocation37_spill] sm:$0xff]  ;;  %v1745_v12 = vmul.f32 0.5, %v1713_v62  ;;  %v2019_v63 = vadd.f32 %v1987_v55, %v6868_v30 }
 0x318   : > { %v4582_v32 = vpop.eup %4581  ;;  %v3341_v42 = vmax.f32 %v3309_v51, 1e-20  ;;  %v7095_v13 = vmul.f32 %v7856_v3, %v1211_v28  ;;  %3523 = vmatmul.f32.gmra.mxu2 %v4756_v46  ;;  %v7857_v51 = vld [vmem:[#allocation46_spill] sm:$0xff]  ;;  %v3245_v10 = vmul.f32 %v3175_v6, %v3091_v39  ;;  %v2681_v62 = vadd.f32 %v2463_v9, %v6913_v26  ;;  %v7859_v39 = vld [vmem:[#allocation52_spill] sm:$0xff]  ;;  %v7860_v26 = vld [vmem:[#allocation111_spill] sm:$0xff] }
 0x319   : > { %v4584_v33 = vpop.eup %4583  ;;  %v2997_v4 = vmul.f32 0.5, %v2965_v2  ;;  %4292 = vmatmul.msk.f32.gmra.mxu0 %vm850_vm1, %v7069_v1  ;;  %v3404_v58 = vmul.f32 %v4582_v32, %v3276_v5  ;;  %v1086_v36 = vsub.f32 %v7078_v59, %v7857_v51  ;;  %v7103_v5 = vadd.f32 %v7074_v29, %v7858_v49 }
 0x31a   : > { %4591 = vrcp.f32 %v3341_v42  ;;  %v3060_v15 = vmul.f32 0.5, %v4584_v33  ;;  %v4586_v18 = vpop.eup %4585  ;;  %v2432_v32 = vmul.f32 0.5, %v4580_v22  ;;  %v2648_v60 = vadd.f32 %v2616_v19, %v2019_v63 }
 0x31b   : > { %4593 = vtanh.f32 %v2997_v4  ;;  %3621 = vmatmul.f32.gmra.mxu3 %v3404_v58  ;;  %v4588_v2 = vpop.eup %4587  ;;  %v2370_v3 = vmul.f32 0.5, %v2338_v52  ;;  %v7107_v46 = vadd.f32 %v7062_v14, %v1211_v28  ;;  %v1180_v30 = vmul.f32 0.5, %v4586_v18  ;;  %v7116_v28 = vpop.f32.mrf.mxu2  ;;  %v7861_v52 = vld [vmem:[#allocation50_spill] sm:$0xff] }
 0x31c   : > { %v3092_v42 = vadd.f32 0.5, %v3060_v15  ;;  %v3178_v33 = vpop.f32.mrf.mxu1  ;;  %4595 = vtanh.f32 %v1117_v21  ;;  %v1714_v6 = vsub.f32 %v7078_v59, %v7859_v39  ;;  %v4590_v58 = vpop.eup %4589  ;;  %v1118_v51 = vmul.f32 0.5, %v1086_v36  ;;  %v7862_v18 = vld [vmem:[#allocation142_spill] sm:$0xff] }
 0x31d   : > { %4597 = vtanh.f32 %v1745_v12  ;;  %v1988_v22 = vmul.f32 %v7860_v26, %v6877_v7  ;;  %v3277_v15 = vadd.f32 %v3245_v10, %v2648_v60  ;;  %v1087_v12 = vsub.f32 %v7103_v5, %v7861_v52  ;;  %v7863_v7 = vld [vmem:[#allocation146_spill] sm:$0xff] }
 0x31e   : > { %v3310_v55 = vadd.f32 %v3092_v42, %v2681_v62  ;;  %v2902_v4 = vpop.f32.mrf.mxu0  ;;  %v2617_v63 = vmul.f32 %v7862_v18, %v2463_v9  ;;  %v2464_v49 = vadd.f32 0.5, %v2432_v32  ;;  %4599 = vtanh.f32 %v2370_v3  ;;  %v7865_v32 = vld [vmem:[#allocation56_spill] sm:$0xff] }
 0x31f   : > { %v2966_v19 = vsub.f32 %v6824_v38, %v2902_v4  ;;  %4329 = vmatmul.msk.f32.gmra.mxu1 %vm850_vm1, %v7038_v17  ;;  %v2339_v10 = vsub.f32 %v6900_v53, %v7863_v7  ;;  %v1808_v39 = vmul.f32 0.5, %v4588_v2  ;;  %v1746_v17 = vmul.f32 0.5, %v1714_v6  ;;  %v7123_v4 = vpop.f32.mrf.mxu3 }
 0x320   : > { %v4592_v21 = vpop.eup %4591  ;;  %v3342_v36 = vmax.f32 %v3310_v55, 1e-20  ;;  %7864 = vst [vmem:[#allocation55_spill] sm:$0xff] %v7123_v4  ;;  %3526 = vmatmul.f32.gmra.mxu2 %v4757_v23  ;;  %v2020_v9 = vadd.f32 %v1988_v22, %v6881_v20  ;;  %v1715_v55 = vsub.f32 %v7103_v5, %v7865_v32  ;;  %v3246_v3 = vmul.f32 %v3178_v33, %v3092_v42  ;;  %v7866_v33 = vld [vmem:[#allocation112_spill] sm:$0xff] }
 0x321   : > { %v4594_v62 = vpop.eup %4593  ;;  %v2998_v38 = vmul.f32 0.5, %v2966_v19  ;;  %v3405_v60 = vmul.f32 %v4592_v21, %v3277_v15  ;;  %v1119_v19 = vmul.f32 0.5, %v1087_v12  ;;  %v2682_v2 = vadd.f32 %v2464_v49, %v6951_v34 }
 0x322   : > { %4601 = vrcp.f32 %v3342_v36  ;;  %v3061_v26 = vmul.f32 0.5, %v4594_v62  ;;  %v4596_v52 = vpop.eup %4595  ;;  %v2433_v6 = vmul.f32 0.5, %v4590_v58  ;;  %v2649_v36 = vadd.f32 %v2617_v63, %v2020_v9 }
 0x323   : > { %4603 = vtanh.f32 %v2998_v38  ;;  %3624 = vmatmul.f32.gmra.mxu3 %v3405_v60  ;;  %v4598_v18 = vpop.eup %4597  ;;  %v2371_v62 = vmul.f32 0.5, %v2339_v10  ;;  %v1212_v7 = vadd.f32 0.5, %v1180_v30  ;;  %v7130_v23 = vadd.f32 0.5, %v1808_v39  ;;  %v7137_v30 = vpop.f32.mrf.mxu2 }
 0x324   : > { %v3093_v15 = vadd.f32 0.5, %v3061_v26  ;;  %v3181_v21 = vpop.f32.mrf.mxu1  ;;  %4605 = vtanh.f32 %v1118_v51  ;;  %v1181_v20 = vmul.f32 0.5, %v4596_v52  ;;  %v4600_v42 = vpop.eup %4599  ;;  %v1989_v38 = vmul.f32 %v7866_v33, %v6918_v43  ;;  %v7867_v51 = vld [vmem:[#allocation147_spill] sm:$0xff]  ;;  %v7868_v26 = vld [vmem:[#allocation149_spill] sm:$0xff] }
 0x325   : > { %4607 = vtanh.f32 %v1746_v17  ;;  %v1747_v12 = vmul.f32 0.5, %v1715_v55  ;;  %v3278_v60 = vadd.f32 %v3246_v3, %v2649_v36  ;;  %v2618_v63 = vmul.f32 %v7867_v51, %v2464_v49  ;;  %v4758_v3 = vld [vmem:[%s5215_s17 + $0x98] sm:$0xff]  ;;  %v7869_v36 = vld [vmem:[#allocation88_spill] sm:$0xff] }
 0x326   : > { %v3311_v22 = vadd.f32 %v3093_v15, %v2682_v2  ;;  %v2905_v32 = vpop.f32.mrf.mxu0  ;;  %v2465_v10 = vadd.f32 0.5, %v2433_v6  ;;  %4609 = vtanh.f32 %v1119_v19  ;;  %v2340_v43 = vsub.f32 %v6944_v45, %v7868_v26 }
 0x327   : > { %v2967_v34 = vsub.f32 %v6856_v31, %v2905_v32  ;;  %4330 = vmatmul.msk.f32.gmra.mxu1 %vm850_vm1, %v7069_v1  ;;  %4611 = vtanh.f32 %v2371_v62  ;;  %v1213_v31 = vadd.f32 0.5, %v1181_v20  ;;  %v1809_v55 = vmul.f32 0.5, %v4598_v18  ;;  %v7870_v20 = vld [vmem:[#allocation41_spill] sm:$0xff]  ;;  %v7152_v33 = vpop.f32.mrf.mxu3 }
 0x328   : > { %v4602_v58 = vpop.eup %4601  ;;  %v3343_v39 = vmax.f32 %v3311_v22, 1e-20  ;;  %3529 = vmatmul.f32.gmra.mxu2 %v4758_v3  ;;  %v7145_v49 = vadd.f32 %v7074_v29, %v7869_v36  ;;  %v2021_v19 = vadd.f32 %v1989_v38, %v6921_v56  ;;  %v3247_v6 = vmul.f32 %v3181_v21, %v3093_v15  ;;  %7871 = vst [vmem:[#allocation123_spill] sm:$0xff] %v7152_v33  ;;  %v7872_v15 = vld [vmem:[#allocation45_spill] sm:$0xff]  ;;  %v7875_v36 = vld [vmem:[#allocation151_spill] sm:$0xff] }
 0x329   : > { %v4604_v17 = vpop.eup %4603  ;;  %v2999_v52 = vmul.f32 0.5, %v2967_v34  ;;  %v3406_v9 = vmul.f32 %v4602_v58, %v3278_v60  ;;  %v2683_v22 = vadd.f32 %v2465_v10, %v7015_v25  ;;  %v2434_v32 = vmul.f32 0.5, %v4600_v42 }
 0x32a   : > { %4613 = vrcp.f32 %v3343_v39  ;;  %v3062_v1 = vmul.f32 0.5, %v4604_v17  ;;  %v4606_v2 = vpop.eup %4605  ;;  %v7150_v18 = vmul.f32 %v7870_v20, %v1212_v7  ;;  %v2650_v58 = vadd.f32 %v2618_v63, %v2021_v19  ;;  %v7874_v63 = vld [vmem:[#allocation113_spill] sm:$0xff] }
 0x32b   : > { %4615 = vtanh.f32 %v2999_v52  ;;  %3627 = vmatmul.f32.gmra.mxu3 %v3406_v9  ;;  %v4608_v62 = vpop.eup %4607  ;;  %v2372_v51 = vmul.f32 0.5, %v2340_v43  ;;  %v7155_v39 = vadd.f32 %v7130_v23, %v1212_v7  ;;  %v7158_v21 = vmul.f32 %v7872_v15, %v1213_v31  ;;  %v7873_v52 = vld [vmem:[#allocation54_spill] sm:$0xff]  ;;  %v7876_v15 = vld [vmem:[#allocation152_spill] sm:$0xff] }
 0x32c   : > { %v3094_v60 = vadd.f32 0.5, %v3062_v1  ;;  %v3184_v34 = vpop.f32.mrf.mxu1  ;;  %4617 = vtanh.f32 %v1747_v12  ;;  %v4610_v56 = vpop.eup %4609  ;;  %v7160_v38 = vadd.f32 0.5, %v1809_v55  ;;  %v1182_v25 = vmul.f32 0.5, %v4606_v2 }
 0x32d   : > { %v4612_v26 = vpop.eup %4611  ;;  %v1088_v9 = vsub.f32 %v7145_v49, %v7873_v52  ;;  %v1990_v43 = vmul.f32 %v7874_v63, %v6975_v44  ;;  %v3279_v1 = vadd.f32 %v3247_v6, %v2650_v58  ;;  %v7167_v12 = vpop.f32.mrf.mxu2  ;;  %v2619_v55 = vmul.f32 %v7875_v36, %v2465_v10 }
 0x32e   : > { %v3312_v42 = vadd.f32 %v3094_v60, %v2683_v22  ;;  %v2908_v17 = vpop.f32.mrf.mxu0  ;;  %v2466_v19 = vadd.f32 0.5, %v2434_v32  ;;  %v1810_v2 = vmul.f32 0.5, %v4608_v62  ;;  %4619 = vtanh.f32 %v2372_v51 }
 0x32f   : > { %v2968_v7 = vsub.f32 %v6900_v53, %v2908_v17  ;;  %v2341_v52 = vsub.f32 %v6992_v47, %v7876_v15  ;;  %v7173_v44 = vadd.f32 %v7160_v38, %v1213_v31  ;;  %v7877_v53 = vld [vmem:[#allocation60_spill] sm:$0xff]  ;;  %v1120_v62 = vmul.f32 0.5, %v1088_v9 }
 0x330   : > { %v4614_v3 = vpop.eup %4613  ;;  %v3344_v22 = vmax.f32 %v3312_v42, 1e-20  ;;  %v1716_v6 = vsub.f32 %v7145_v49, %v7877_v53  ;;  %v4759_v17 = vld [vmem:[%s5215_s17 + $0xa0] sm:$0xff]  ;;  %v2022_v32 = vadd.f32 %v1990_v43, %v6981_v8  ;;  %v3248_v51 = vmul.f32 %v3184_v34, %v3094_v60  ;;  %v7186_v60 = vpop.f32.mrf.mxu3  ;;  %v7880_v34 = vld [vmem:[#allocation114_spill] sm:$0xff] }
 0x331   : > { %v4616_v20 = vpop.eup %4615  ;;  %v3000_v33 = vmul.f32 0.5, %v2968_v7  ;;  %v3407_v4 = vmul.f32 %v4614_v3, %v3279_v1  ;;  %3532 = vmatmul.f32.gmra.mxu2 %v4759_v17  ;;  %v2684_v42 = vadd.f32 %v2466_v19, %v7022_v50  ;;  %v2435_v63 = vmul.f32 0.5, %v4612_v26  ;;  %7879 = vst [vmem:[#allocation94_spill] sm:$0xff] %v7186_v60 }
 0x332   : > { %4621 = vrcp.f32 %v3344_v22  ;;  %v3063_v58 = vmul.f32 0.5, %v4616_v20  ;;  %v4618_v10 = vpop.eup %4617  ;;  %v1183_v1 = vmul.f32 0.5, %v4610_v56  ;;  %v2651_v3 = vadd.f32 %v2619_v55, %v2022_v32  ;;  %v7878_v20 = vld [vmem:[#allocation89_spill] sm:$0xff]  ;;  %v7882_v32 = vld [vmem:[#allocation11_spill] sm:$0xff] }
 0x333   : > { %4623 = vtanh.f32 %v3000_v33  ;;  %3630 = vmatmul.f32.gmra.mxu3 %v3407_v4  ;;  %v2373_v36 = vmul.f32 0.5, %v2341_v52  ;;  %v1214_v15 = vadd.f32 0.5, %v1182_v25  ;;  %v7180_v22 = vadd.f32 0.5, %v1810_v2  ;;  %v7881_v2 = vld [vmem:[#allocation39_spill] sm:$0xff] }
 0x334   : > { %v3095_v31 = vadd.f32 0.5, %v3063_v58  ;;  %v3187_v7 = vpop.f32.mrf.mxu1  ;;  %v7184_v53 = vadd.f32 %v7074_v29, %v7878_v20  ;;  %v1811_v9 = vmul.f32 0.5, %v4618_v10  ;;  %v1748_v8 = vmul.f32 0.5, %v1716_v6  ;;  %v4620_v50 = vpop.eup %4619 }
 0x335   : > { %v1991_v56 = vmul.f32 %v7880_v34, %v6988_v57  ;;  %4625 = vtanh.f32 %v1120_v62  ;;  %v3280_v26 = vadd.f32 %v3248_v51, %v2651_v3  ;;  %v7191_v43 = vpop.f32.mrf.mxu2  ;;  %v2620_v52 = vmul.f32 %v7881_v2, %v2466_v19  ;;  %v7883_v51 = vld [vmem:[#allocation58_spill] sm:$0xff]  ;;  %v7884_v3 = vld [vmem:[#allocation49_spill] sm:$0xff] }
 0x336   : > { %v3313_v4 = vadd.f32 %v3095_v31, %v2684_v42  ;;  %v2911_v33 = vpop.f32.mrf.mxu0  ;;  %v2467_v58 = vadd.f32 0.5, %v2435_v63  ;;  %v7194_v6 = vadd.f32 0.5, %v1183_v1  ;;  %4627 = vtanh.f32 %v2373_v36  ;;  %v4760_v19 = vld [vmem:[%s5215_s17 + $0xa8] sm:$0xff] }
 0x337   : > { %v2969_v25 = vsub.f32 %v6944_v45, %v2911_v33  ;;  %v2342_v42 = vsub.f32 %v7047_v35, %v7882_v32  ;;  %v1089_v45 = vsub.f32 %v7184_v53, %v7883_v51  ;;  %v7201_v20 = vmul.f32 %v7884_v3, %v1214_v15 }
 0x338   : > { %v4622_v55 = vpop.eup %4621  ;;  %v3345_v17 = vmax.f32 %v3313_v4, 1e-20  ;;  %v2023_v63 = vadd.f32 %v1991_v56, %v7019_v24  ;;  %v7206_v1 = vadd.f32 %v7180_v22, %v1214_v15  ;;  %v3249_v36 = vmul.f32 %v3187_v7, %v3095_v31  ;;  %v7218_v31 = vld [vmem:[%s7595_s8] ss:$0 sm:$0xff]  ;;  %v7886_v7 = vld [vmem:[#allocation90_spill] sm:$0xff] }
 0x339   : > { %v4624_v10 = vpop.eup %4623  ;;  %v3001_v57 = vmul.f32 0.5, %v2969_v25  ;;  %v3408_v62 = vmul.f32 %v4622_v55, %v3280_v26  ;;  %3535 = vmatmul.f32.gmra.mxu2 %v4760_v19  ;;  %v2685_v4 = vadd.f32 %v2467_v58, %v7057_v11  ;;  %v2436_v34 = vmul.f32 0.5, %v4620_v50 }
 0x33a   : > { %4629 = vrcp.f32 %v3345_v17  ;;  %v3064_v33 = vmul.f32 0.5, %v4624_v10  ;;  %v2652_v2 = vadd.f32 %v2620_v52, %v2023_v63  ;;  %v2374_v17 = vmul.f32 0.5, %v2342_v42  ;;  %v7885_v10 = vld [vmem:[#allocation53_spill] sm:$0xff] }
 0x33b   : > { %4631 = vtanh.f32 %v3001_v57  ;;  %3633 = vmatmul.f32.gmra.mxu3 %v3408_v62  ;;  %v4626_v55 = vpop.eup %4625  ;;  %v7211_v32 = vmul.f32 %v7885_v10, %v7194_v6  ;;  %v7213_v24 = vadd.f32 0.5, %v1811_v9  ;;  %v1121_v11 = vmul.f32 0.5, %v1089_v45  ;;  %v7888_v9 = vld [vmem:[#allocation116_spill] sm:$0xff] }
 0x33c   : > { %4633 = vtanh.f32 %v1748_v8  ;;  %v3096_v26 = vadd.f32 0.5, %v3064_v33  ;;  %v3190_v25 = vpop.f32.mrf.mxu1  ;;  %v7222_v15 = vadd.f32 %v7074_v29, %v7886_v7  ;;  %v7887_v8 = vld [vmem:[#allocation64_spill] sm:$0xff]  ;;  %v4628_v57 = vpop.eup %4627  ;;  %v1992_v62 = vmul.f32 %v7888_v9, %v7024_v27  ;;  %v4761_v9 = vld [vmem:[%s5215_s17 + $0xb0] sm:$0xff] }
 0x33d   : > { %v1717_v50 = vsub.f32 %v7184_v53, %v7887_v8  ;;  %v3281_v51 = vadd.f32 %v3249_v36, %v2652_v2  ;;  %v7231_v33 = vpop.f32.mrf.mxu2  ;;  %v2621_v63 = vmul.f32 %v6642_v54, %v2467_v58  ;;  %v2468_v10 = vadd.f32 0.5, %v2436_v34  ;;  %v7889_v2 = vld [vmem:[#allocation62_spill] sm:$0xff] }
 0x33e   : > { %v3314_v56 = vadd.f32 %v3096_v26, %v2685_v4  ;;  %v2914_v52 = vpop.f32.mrf.mxu0  ;;  %v3586_v42 = vpop.f32.mrf.mxu3  ;;  %v2343_v4 = vsub.f32 %v7078_v59, %v6673_v40  ;;  %4635 = vtanh.f32 %v2374_v17  ;;  %v2024_v54 = vadd.f32 %v1992_v62, %v7029_v61 }
 0x33f   : > { %v2970_v3 = vsub.f32 %v6992_v47, %v2914_v52  ;;  %v3587_v45 = vadd.f32 %v3586_v42, %v7116_v28  ;;  %v1090_v28 = vsub.f32 %v7222_v15, %v7889_v2  ;;  %v1749_v52 = vmul.f32 0.5, %v1717_v50 }
 0x340   : > { %v4630_v19 = vpop.eup %4629  ;;  %v3346_v7 = vmax.f32 %v3314_v56, 1e-20  ;;  %v3250_v40 = vmul.f32 %v3190_v25, %v3096_v26  ;;  %v2686_v34 = vadd.f32 %v2468_v10, %v7107_v46  ;;  %v2437_v17 = vmul.f32 0.5, %v4628_v57 }
 0x341   : > { %v4632_v8 = vpop.eup %4631  ;;  %v3002_v60 = vmul.f32 0.5, %v2970_v3  ;;  %v3686_v27 = vadd.f32 %v7218_v31, %v3587_v45  ;;  %v3409_v36 = vmul.f32 %v4630_v19, %v3281_v51  ;;  %3538 = vmatmul.f32.gmra.mxu2 %v4761_v9  ;;  %v2375_v56 = vmul.f32 0.5, %v2343_v4  ;;  %v7891_v4 = vld [vmem:[#allocation117_spill] sm:$0xff] }
 0x342   : > { %v4634_v47 = vpop.eup %4633  ;;  %4637 = vrcp.f32 %v3346_v7  ;;  %v3065_v42 = vmul.f32 0.5, %v4632_v8  ;;  %v2653_v45 = vadd.f32 %v2621_v63, %v2024_v54  ;;  %v1184_v19 = vmul.f32 0.5, %v4626_v55 }
 0x343   : > { %4639 = vtanh.f32 %v3002_v60  ;;  %v3718_v58 = vmax.f32 %v3686_v27, 0.0  ;;  %3636 = vmatmul.f32.gmra.mxu3 %v3409_v36  ;;  %v1812_v50 = vmul.f32 0.5, %v4634_v47  ;;  %v1122_v61 = vmul.f32 0.5, %v1090_v28  ;;  %v7890_v60 = vld [vmem:[#allocation68_spill] sm:$0xff] }
 0x344   : > { %v3097_v51 = vadd.f32 0.5, %v3065_v42  ;;  %v3193_v3 = vpop.f32.mrf.mxu1  ;;  %4641 = vtanh.f32 %v1121_v11  ;;  %v1718_v26 = vsub.f32 %v7222_v15, %v7890_v60  ;;  %v4636_v62 = vpop.eup %4635  ;;  %v1993_v63 = vmul.f32 %v7891_v4, %v7062_v14  ;;  %v7892_v4 = vld [vmem:[#allocation91_spill] sm:$0xff] }
 0x345   : > { %3750 = vst [vmem:[%s7244_s19] sm:$0xff] %v3718_v58  ;;  %4643 = vtanh.f32 %v1749_v52  ;;  %v3282_v55 = vadd.f32 %v3250_v40, %v2653_v45  ;;  %v7253_v8 = vpop.f32.mrf.mxu2  ;;  %v2622_v36 = vmul.f32 %v6680_v41, %v2468_v10  ;;  %v2469_v47 = vadd.f32 0.5, %v2437_v17  ;;  %v4762_v40 = vld [vmem:[%s5215_s17 + $0xb8] sm:$0xff] }
 0x346   : > { %v3315_v25 = vadd.f32 %v3097_v51, %v2686_v34  ;;  %v2917_v46 = vpop.f32.mrf.mxu0  ;;  %v3589_v57 = vpop.f32.mrf.mxu3  ;;  %4645 = vtanh.f32 %v2375_v56  ;;  %v2344_v52 = vsub.f32 %v7103_v5, %v6716_v48  ;;  %v2025_v10 = vadd.f32 %v1993_v63, %v7095_v13 }
 0x347   : > { %v2971_v11 = vsub.f32 %v7047_v35, %v2917_v46  ;;  %v3590_v7 = vadd.f32 %v3589_v57, %v7137_v30  ;;  %v7261_v35 = vadd.f32 %v7213_v24, %v7194_v6  ;;  %v1750_v30 = vmul.f32 0.5, %v1718_v26 }
 0x348   : > { %v4638_v27 = vpop.eup %4637  ;;  %v3347_v2 = vmax.f32 %v3315_v25, 1e-20  ;;  %v3251_v58 = vmul.f32 %v3193_v3, %v3097_v51  ;;  %v2687_v17 = vadd.f32 %v2469_v47, %v7155_v39  ;;  %v2438_v56 = vmul.f32 0.5, %v4636_v62 }
 0x349   : > { %v4640_v28 = vpop.eup %4639  ;;  %v3003_v42 = vmul.f32 0.5, %v2971_v11  ;;  %v3687_v14 = vadd.f32 %v7218_v31, %v3590_v7  ;;  %v3410_v9 = vmul.f32 %v4638_v27, %v3282_v55  ;;  %3541 = vmatmul.f32.gmra.mxu2 %v4762_v40  ;;  %v1216_v45 = vadd.f32 0.5, %v1184_v19  ;;  %v7893_v19 = vld [vmem:[#allocation119_spill] sm:$0xff] }
 0x34a   : > { %4647 = vrcp.f32 %v3347_v2  ;;  %v3066_v54 = vmul.f32 0.5, %v4640_v28  ;;  %v4642_v41 = vpop.eup %4641  ;;  %v2654_v26 = vadd.f32 %v2622_v36, %v2025_v10  ;;  %v2376_v25 = vmul.f32 0.5, %v2344_v52  ;;  %v7894_v27 = vld [vmem:[#allocation15_spill] sm:$0xff]  ;;  %v7895_v28 = vld [vmem:[#allocation9_spill] sm:$0xff] }
 0x34b   : > { %4649 = vtanh.f32 %v3003_v42  ;;  %v3719_v48 = vmax.f32 %v3687_v14, 0.0  ;;  %3639 = vmatmul.f32.gmra.mxu3 %v3410_v9  ;;  %v4644_v34 = vpop.eup %4643  ;;  %v7266_v46 = vadd.f32 0.5, %v1812_v50  ;;  %v7271_v13 = vadd.f32 %v7074_v29, %v7892_v4 }
 0x34c   : > { %v3098_v6 = vadd.f32 0.5, %v3066_v54  ;;  %v3196_v60 = vpop.f32.mrf.mxu1  ;;  %4651 = vtanh.f32 %v1122_v61  ;;  %v4646_v57 = vpop.eup %4645  ;;  %v1185_v51 = vmul.f32 0.5, %v4642_v41  ;;  %v1994_v62 = vmul.f32 %v7893_v19, %v7130_v23  ;;  %v4763_v41 = vld [vmem:[%s5215_s17 + $0xc0] sm:$0xff] }
 0x34d   : > { %3751 = vst [vmem:[%s7244_s19 + $0x8] sm:$0xff] %v3719_v48  ;;  %4653 = vtanh.f32 %v1750_v30  ;;  %v3283_v55 = vadd.f32 %v3251_v58, %v2654_v26  ;;  %v7277_v61 = vpop.f32.mrf.mxu2  ;;  %v2623_v36 = vmul.f32 %v7894_v27, %v2469_v47  ;;  %v2470_v2 = vadd.f32 0.5, %v2438_v56 }
 0x34e   : > { %v3316_v3 = vadd.f32 %v3098_v6, %v2687_v17  ;;  %v2920_v63 = vpop.f32.mrf.mxu0  ;;  %v3592_v39 = vpop.f32.mrf.mxu3  ;;  %v2345_v52 = vsub.f32 %v7145_v49, %v7895_v28  ;;  %4655 = vtanh.f32 %v2376_v25  ;;  %v1813_v54 = vmul.f32 0.5, %v4644_v34 }
 0x34f   : > { %v2972_v11 = vsub.f32 %v7078_v59, %v2920_v63  ;;  %v3593_v50 = vadd.f32 %v3592_v39, %v7167_v12  ;;  %v7896_v59 = vld [vmem:[#allocation66_spill] sm:$0xff]  ;;  %v2026_v10 = vadd.f32 %v1994_v62, %v7150_v18  ;;  %v3252_v58 = vmul.f32 %v3196_v60, %v3098_v6  ;;  %v7897_v63 = vld [vmem:[#allocation57_spill] sm:$0xff]  ;;  %v7898_v60 = vld [vmem:[#allocation72_spill] sm:$0xff] }
 0x350   : > { %v4648_v7 = vpop.eup %4647  ;;  %v3348_v42 = vmax.f32 %v3316_v3, 1e-20  ;;  %v1091_v12 = vsub.f32 %v7271_v13, %v7896_v59  ;;  %v2688_v56 = vadd.f32 %v2470_v2, %v7173_v44  ;;  %v2439_v26 = vmul.f32 0.5, %v4646_v57  ;;  %v7901_v59 = vld [vmem:[#allocation14_spill] sm:$0xff] }
 0x351   : > { %v4650_v14 = vpop.eup %4649  ;;  %v3004_v9 = vmul.f32 0.5, %v2972_v11  ;;  %v3688_v23 = vadd.f32 %v7218_v31, %v3593_v50  ;;  %v3411_v30 = vmul.f32 %v4648_v7, %v3283_v55  ;;  %3544 = vmatmul.f32.gmra.mxu2 %v4763_v41  ;;  %v2377_v25 = vmul.f32 0.5, %v2345_v52  ;;  %v7899_v7 = vld [vmem:[#allocation122_spill] sm:$0xff] }
 0x352   : > { %4657 = vrcp.f32 %v3348_v42  ;;  %v3067_v40 = vmul.f32 0.5, %v4650_v14  ;;  %v4652_v47 = vpop.eup %4651  ;;  %v2655_v34 = vadd.f32 %v2623_v36, %v2026_v10  ;;  %v7289_v39 = vmul.f32 %v7897_v63, %v1216_v45  ;;  %v7900_v42 = vld [vmem:[#allocation43_spill] sm:$0xff]  ;;  %v4764_v10 = vld [vmem:[%s5215_s17 + $0xc8] sm:$0xff] }
 0x353   : > { %4659 = vtanh.f32 %v3004_v9  ;;  %v3720_v48 = vmax.f32 %v3688_v23, 0.0  ;;  %3642 = vmatmul.f32.gmra.mxu3 %v3411_v30  ;;  %v4654_v17 = vpop.eup %4653  ;;  %v7292_v19 = vadd.f32 %v7266_v46, %v1216_v45  ;;  %v7294_v55 = vadd.f32 0.5, %v1185_v51 }
 0x354   : > { %v3099_v4 = vadd.f32 0.5, %v3067_v40  ;;  %v3199_v3 = vpop.f32.mrf.mxu1  ;;  %v1123_v18 = vmul.f32 0.5, %v1091_v12  ;;  %v7297_v6 = vadd.f32 0.5, %v1813_v54  ;;  %v1719_v44 = vsub.f32 %v7271_v13, %v7898_v60  ;;  %v4656_v50 = vpop.eup %4655 }
 0x355   : > { %3752 = vst [vmem:[%s7244_s19 + $0x10] sm:$0xff] %v3720_v48  ;;  %v1995_v27 = vmul.f32 %v7899_v7, %v7160_v38  ;;  %v3284_v36 = vadd.f32 %v3252_v58, %v2655_v34  ;;  %v7305_v28 = vpop.f32.mrf.mxu2  ;;  %v2624_v14 = vmul.f32 %v7900_v42, %v2470_v2  ;;  %v2471_v9 = vadd.f32 0.5, %v2439_v26  ;;  %v7902_v26 = vld [vmem:[#allocation61_spill] sm:$0xff] }
 0x356   : > { %v3317_v57 = vadd.f32 %v3099_v4, %v2688_v56  ;;  %v2923_v62 = vpop.f32.mrf.mxu0  ;;  %v3595_v11 = vpop.f32.mrf.mxu3  ;;  %4661 = vtanh.f32 %v2377_v25  ;;  %v2346_v12 = vsub.f32 %v7184_v53, %v7901_v59  ;;  %v1751_v41 = vmul.f32 0.5, %v1719_v44 }
 0x357   : > { %v2973_v45 = vsub.f32 %v7103_v5, %v2923_v62  ;;  %v3596_v51 = vadd.f32 %v3595_v11, %v7191_v43  ;;  %v1186_v5 = vmul.f32 0.5, %v4652_v47  ;;  %v2027_v2 = vadd.f32 %v1995_v27, %v7158_v21  ;;  %v7903_v21 = vld [vmem:[#allocation93_spill] sm:$0xff] }
 0x358   : > { %v4658_v52 = vpop.eup %4657  ;;  %v3349_v23 = vmax.f32 %v3317_v57, 1e-20  ;;  %v3253_v58 = vmul.f32 %v3199_v3, %v3099_v4  ;;  %v2689_v56 = vadd.f32 %v2471_v9, %v7206_v1  ;;  %v7316_v25 = vmul.f32 %v7902_v26, %v7294_v55 }
 0x359   : > { %v4660_v30 = vpop.eup %4659  ;;  %v3005_v54 = vmul.f32 0.5, %v2973_v45  ;;  %v3689_v38 = vadd.f32 %v7218_v31, %v3596_v51  ;;  %v3412_v40 = vmul.f32 %v4658_v52, %v3284_v36  ;;  %3547 = vmatmul.f32.gmra.mxu2 %v4764_v10  ;;  %v2440_v34 = vmul.f32 0.5, %v4656_v50  ;;  %v7904_v50 = vld [vmem:[#allocation126_spill] sm:$0xff] }
 0x35a   : > { %4663 = vrcp.f32 %v3349_v23  ;;  %v3068_v43 = vmul.f32 0.5, %v4660_v30  ;;  %v2656_v60 = vadd.f32 %v2624_v14, %v2027_v2  ;;  %v2378_v44 = vmul.f32 0.5, %v2346_v12  ;;  %v7905_v52 = vld [vmem:[#allocation18_spill] sm:$0xff]  ;;  %v7906_v23 = vld [vmem:[#allocation47_spill] sm:$0xff] }
 0x35b   : > { %4665 = vtanh.f32 %v3005_v54  ;;  %v3721_v48 = vmax.f32 %v3689_v38, 0.0  ;;  %3645 = vmatmul.f32.gmra.mxu3 %v3412_v40  ;;  %v1814_v57 = vmul.f32 0.5, %v4654_v17  ;;  %v7321_v4 = vadd.f32 %v7074_v29, %v7903_v21  ;;  %v7908_v40 = vld [vmem:[#allocation76_spill] sm:$0xff] }
 0x35c   : > { %v3100_v47 = vadd.f32 0.5, %v3068_v43  ;;  %v3202_v63 = vpop.f32.mrf.mxu1  ;;  %4667 = vtanh.f32 %v1123_v18  ;;  %v4662_v62 = vpop.eup %4661  ;;  %v7323_v3 = vadd.f32 0.5, %v1186_v5  ;;  %v1996_v27 = vmul.f32 %v7904_v50, %v7180_v22 }
 0x35d   : > { %3753 = vst [vmem:[%s7244_s19 + $0x18] sm:$0xff] %v3721_v48  ;;  %4669 = vtanh.f32 %v1751_v41  ;;  %v3285_v36 = vadd.f32 %v3253_v58, %v2656_v60  ;;  %v7329_v18 = vpop.f32.mrf.mxu2  ;;  %v2625_v42 = vmul.f32 %v7905_v52, %v2471_v9  ;;  %v2472_v14 = vadd.f32 0.5, %v2440_v34  ;;  %v4765_v9 = vld [vmem:[%s5215_s17 + $0xd0] sm:$0xff] }
 0x35e   : > { %v3318_v1 = vadd.f32 %v3100_v47, %v2689_v56  ;;  %v2926_v11 = vpop.f32.mrf.mxu0  ;;  %v3598_v7 = vpop.f32.mrf.mxu3  ;;  %v2347_v30 = vsub.f32 %v7222_v15, %v7906_v23  ;;  %4671 = vtanh.f32 %v2378_v44  ;;  %v1720_v5 = vsub.f32 %v7321_v4, %v7908_v40  ;;  %v7911_v23 = vld [vmem:[#allocation17_spill] sm:$0xff] }
 0x35f   : > { %v2974_v45 = vsub.f32 %v7145_v49, %v2926_v11  ;;  %v3599_v17 = vadd.f32 %v3598_v7, %v7231_v33  ;;  %v7907_v49 = vld [vmem:[#allocation70_spill] sm:$0xff]  ;;  %v2028_v10 = vadd.f32 %v1996_v27, %v7201_v20  ;;  %v3254_v2 = vmul.f32 %v3202_v63, %v3100_v47  ;;  %v7909_v11 = vld [vmem:[#allocation65_spill] sm:$0xff] }
 0x360   : > { %v4664_v51 = vpop.eup %4663  ;;  %v3350_v59 = vmax.f32 %v3318_v1, 1e-20  ;;  %v1092_v33 = vsub.f32 %v7321_v4, %v7907_v49  ;;  %v2690_v56 = vadd.f32 %v2472_v14, %v7261_v35  ;;  %v2441_v26 = vmul.f32 0.5, %v4662_v62 }
 0x361   : > { %v4666_v12 = vpop.eup %4665  ;;  %v3006_v54 = vmul.f32 0.5, %v2974_v45  ;;  %v3690_v22 = vadd.f32 %v7218_v31, %v3599_v17  ;;  %v3413_v38 = vmul.f32 %v4664_v51, %v3285_v36  ;;  %3550 = vmatmul.f32.gmra.mxu2 %v4765_v9  ;;  %v2379_v34 = vmul.f32 0.5, %v2347_v30  ;;  %v7910_v45 = vld [vmem:[#allocation130_spill] sm:$0xff] }
 0x362   : > { %4673 = vrcp.f32 %v3350_v59  ;;  %v3069_v41 = vmul.f32 0.5, %v4666_v12  ;;  %v4668_v43 = vpop.eup %4667  ;;  %v2657_v21 = vadd.f32 %v2625_v42, %v2028_v10  ;;  %v7344_v1 = vadd.f32 %v7297_v6, %v7294_v55 }
 0x363   : > { %4675 = vtanh.f32 %v3006_v54  ;;  %v3722_v58 = vmax.f32 %v3690_v22, 0.0  ;;  %3648 = vmatmul.f32.gmra.mxu3 %v3413_v38  ;;  %v4670_v48 = vpop.eup %4669  ;;  %v7348_v7 = vmul.f32 %v7909_v11, %v7323_v3  ;;  %v7350_v20 = vadd.f32 0.5, %v1814_v57  ;;  %v7912_v22 = vld [vmem:[#allocation10_spill] sm:$0xff] }
 0x364   : > { %v3101_v60 = vadd.f32 0.5, %v3069_v41  ;;  %v3205_v44 = vpop.f32.mrf.mxu1  ;;  %v1124_v47 = vmul.f32 0.5, %v1092_v33  ;;  %v1187_v63 = vmul.f32 0.5, %v4668_v43  ;;  %v1752_v50 = vmul.f32 0.5, %v1720_v5  ;;  %v4672_v36 = vpop.eup %4671  ;;  %v4766_v41 = vld [vmem:[%s5215_s17 + $0xd8] sm:$0xff] }
 0x365   : > { %3754 = vst [vmem:[%s7244_s19 + $0x20] sm:$0xff] %v3722_v58  ;;  %v1997_v17 = vmul.f32 %v7910_v45, %v7213_v24  ;;  %v3286_v51 = vadd.f32 %v3254_v2, %v2657_v21  ;;  %v7357_v42 = vpop.f32.mrf.mxu2  ;;  %v2626_v30 = vmul.f32 %v7911_v23, %v2472_v14  ;;  %v2473_v59 = vadd.f32 0.5, %v2441_v26 }
 0x366   : > { %v3319_v35 = vadd.f32 %v3101_v60, %v2690_v56  ;;  %v2929_v62 = vpop.f32.mrf.mxu0  ;;  %v3601_v27 = vpop.f32.mrf.mxu3  ;;  %4677 = vtanh.f32 %v2379_v34  ;;  %v2348_v38 = vsub.f32 %v7271_v13, %v7912_v22  ;;  %v1815_v40 = vmul.f32 0.5, %v4670_v48 }
 0x367   : > { %v2975_v55 = vsub.f32 %v7184_v53, %v2929_v62  ;;  %v3602_v52 = vadd.f32 %v3601_v27, %v7253_v8  ;;  %v7913_v53 = vld [vmem:[#allocation96_spill] sm:$0xff]  ;;  %v2029_v14 = vadd.f32 %v1997_v17, %v7211_v32  ;;  %v3255_v9 = vmul.f32 %v3205_v44, %v3101_v60  ;;  %v7914_v32 = vld [vmem:[#allocation74_spill] sm:$0xff] }
 0x368   : > { %v4674_v57 = vpop.eup %4673  ;;  %v3351_v12 = vmax.f32 %v3319_v35, 1e-20  ;;  %v7365_v8 = vadd.f32 %v7074_v29, %v7913_v53  ;;  %v7371_v10 = vadd.f32 %v7350_v20, %v7323_v3  ;;  %v2691_v2 = vadd.f32 %v2473_v59, %v7292_v19  ;;  %v7915_v19 = vld [vmem:[#allocation131_spill] sm:$0xff] }
 0x369   : > { %v4676_v54 = vpop.eup %4675  ;;  %v3007_v49 = vmul.f32 0.5, %v2975_v55  ;;  %v3691_v24 = vadd.f32 %v7218_v31, %v3602_v52  ;;  %v3414_v33 = vmul.f32 %v4674_v57, %v3286_v51  ;;  %3553 = vmatmul.f32.gmra.mxu2 %v4766_v41  ;;  %v2442_v58 = vmul.f32 0.5, %v4672_v36  ;;  %v7916_v51 = vld [vmem:[#allocation51_spill] sm:$0xff] }
 0x36a   : > { %4679 = vrcp.f32 %v3351_v12  ;;  %v3070_v5 = vmul.f32 0.5, %v4676_v54  ;;  %v2658_v26 = vadd.f32 %v2626_v30, %v2029_v14  ;;  %v1219_v34 = vadd.f32 0.5, %v1187_v63  ;;  %v7918_v54 = vld [vmem:[#allocation80_spill] sm:$0xff] }
 0x36b   : > { %4681 = vtanh.f32 %v3007_v49  ;;  %v3723_v43 = vmax.f32 %v3691_v24, 0.0  ;;  %3651 = vmatmul.f32.gmra.mxu3 %v3414_v33  ;;  %v2380_v21 = vmul.f32 0.5, %v2348_v38  ;;  %v1093_v60 = vsub.f32 %v7365_v8, %v7914_v32  ;;  %v4767_v38 = vld [vmem:[%s5215_s17 + $0xe0] sm:$0xff] }
 0x36c   : > { %v3102_v56 = vadd.f32 0.5, %v3070_v5  ;;  %v3208_v48 = vpop.f32.mrf.mxu1  ;;  %4683 = vtanh.f32 %v1124_v47  ;;  %v4678_v11 = vpop.eup %4677  ;;  %v7377_v44 = vadd.f32 0.5, %v1815_v40  ;;  %v1998_v27 = vmul.f32 %v7915_v19, %v7266_v46 }
 0x36d   : > { %3755 = vst [vmem:[%s7244_s19 + $0x28] sm:$0xff] %v3723_v43  ;;  %4685 = vtanh.f32 %v1752_v50  ;;  %v3287_v36 = vadd.f32 %v3255_v9, %v2658_v26  ;;  %v7383_v47 = vpop.f32.mrf.mxu2  ;;  %v2627_v55 = vmul.f32 %v7916_v51, %v2473_v59  ;;  %v2474_v52 = vadd.f32 0.5, %v2442_v58 }
 0x36e   : > { %v3320_v35 = vadd.f32 %v3102_v56, %v2691_v2  ;;  %v2932_v3 = vpop.f32.mrf.mxu0  ;;  %v3604_v62 = vpop.f32.mrf.mxu3  ;;  %v2349_v50 = vsub.f32 %v7321_v4, %v6938_v16  ;;  %4687 = vtanh.f32 %v2380_v21  ;;  %v1721_v22 = vsub.f32 %v7365_v8, %v7918_v54  ;;  %v7919_v2 = vld [vmem:[#allocation69_spill] sm:$0xff] }
 0x36f   : > { %v2976_v45 = vsub.f32 %v7222_v15, %v2932_v3  ;;  %v3605_v63 = vadd.f32 %v3604_v62, %v7277_v61  ;;  %v7917_v15 = vld [vmem:[#allocation98_spill] sm:$0xff]  ;;  %v2030_v16 = vadd.f32 %v1998_v27, %v7289_v39  ;;  %v3256_v24 = vmul.f32 %v3208_v48, %v3102_v56 }
 0x370   : > { %v4680_v17 = vpop.eup %4679  ;;  %v3352_v57 = vmax.f32 %v3320_v35, 1e-20  ;;  %v7391_v61 = vadd.f32 %v7074_v29, %v7917_v15  ;;  %v2692_v40 = vadd.f32 %v2474_v52, %v7344_v1  ;;  %v2443_v29 = vmul.f32 0.5, %v4678_v11  ;;  %v7920_v39 = vld [vmem:[#allocation78_spill] sm:$0xff] }
 0x371   : > { %v4682_v23 = vpop.eup %4681  ;;  %v3008_v30 = vmul.f32 0.5, %v2976_v45  ;;  %v3692_v46 = vadd.f32 %v7218_v31, %v3605_v63  ;;  %v3415_v12 = vmul.f32 %v4680_v17, %v3287_v36  ;;  %3556 = vmatmul.f32.gmra.mxu2 %v4767_v38  ;;  %v2381_v5 = vmul.f32 0.5, %v2349_v50  ;;  %v7921_v3 = vld [vmem:[#allocation134_spill] sm:$0xff] }
 0x372   : > { %4689 = vrcp.f32 %v3352_v57  ;;  %v3071_v59 = vmul.f32 0.5, %v4682_v23  ;;  %v4684_v49 = vpop.eup %4683  ;;  %v1125_v9 = vmul.f32 0.5, %v1093_v60  ;;  %v2659_v43 = vadd.f32 %v2627_v55, %v2030_v16  ;;  %v7922_v55 = vld [vmem:[#allocation21_spill] sm:$0xff] }
 0x373   : > { %4691 = vtanh.f32 %v3008_v30  ;;  %v3724_v33 = vmax.f32 %v3692_v46, 0.0  ;;  %3654 = vmatmul.f32.gmra.mxu3 %v3415_v12  ;;  %v4686_v53 = vpop.eup %4685  ;;  %v7399_v58 = vmul.f32 %v7919_v2, %v1219_v34  ;;  %v7402_v26 = vadd.f32 %v7377_v44, %v1219_v34  ;;  %v7923_v30 = vld [vmem:[#allocation84_spill] sm:$0xff]  ;;  %v4768_v12 = vld [vmem:[%s5215_s17 + $0xe8] sm:$0xff] }
 0x374   : > { %v3103_v41 = vadd.f32 0.5, %v3071_v59  ;;  %v3211_v14 = vpop.f32.mrf.mxu1  ;;  %v1094_v56 = vsub.f32 %v7391_v61, %v7920_v39  ;;  %v1188_v48 = vmul.f32 0.5, %v4684_v49  ;;  %v1753_v21 = vmul.f32 0.5, %v1721_v22  ;;  %v4688_v35 = vpop.eup %4687 }
 0x375   : > { %3756 = vst [vmem:[%s7244_s19 + $0x30] sm:$0xff] %v3724_v33  ;;  %v1999_v60 = vmul.f32 %v7921_v3, %v7297_v6  ;;  %v3288_v62 = vadd.f32 %v3256_v24, %v2659_v43  ;;  %v7411_v34 = vpop.f32.mrf.mxu2  ;;  %v2628_v45 = vmul.f32 %v6946_v37, %v2474_v52  ;;  %v2475_v63 = vadd.f32 0.5, %v2443_v29 }
 0x376   : > { %v3321_v32 = vadd.f32 %v3103_v41, %v2692_v40  ;;  %v2935_v1 = vpop.f32.mrf.mxu0  ;;  %v3607_v11 = vpop.f32.mrf.mxu3  ;;  %4693 = vtanh.f32 %v2381_v5  ;;  %v2350_v50 = vsub.f32 %v7365_v8, %v7922_v55  ;;  %v3257_v52 = vmul.f32 %v3211_v14, %v3103_v41  ;;  %v7924_v14 = vld [vmem:[#allocation137_spill] sm:$0xff] }
 0x377   : > { %v2977_v19 = vsub.f32 %v7271_v13, %v2935_v1  ;;  %v3608_v27 = vadd.f32 %v3607_v11, %v7305_v28  ;;  %v1126_v13 = vmul.f32 0.5, %v1094_v56  ;;  %v1722_v28 = vsub.f32 %v7391_v61, %v7923_v30  ;;  %v7925_v56 = vld [vmem:[#allocation20_spill] sm:$0xff] }
 0x378   : > { %v4690_v36 = vpop.eup %4689  ;;  %v3353_v17 = vmax.f32 %v3321_v32, 1e-20  ;;  %v2031_v37 = vadd.f32 %v1999_v60, %v7316_v25  ;;  %v2693_v54 = vadd.f32 %v2475_v63, %v7371_v10  ;;  %v2444_v22 = vmul.f32 0.5, %v4688_v35  ;;  %v7926_v32 = vld [vmem:[#allocation92_spill] sm:$0xff] }
 0x379   : > { %v4692_v51 = vpop.eup %4691  ;;  %v3009_v57 = vmul.f32 0.5, %v2977_v19  ;;  %v3693_v6 = vadd.f32 %v7218_v31, %v3608_v27  ;;  %v3416_v23 = vmul.f32 %v4690_v36, %v3288_v62  ;;  %3559 = vmatmul.f32.gmra.mxu2 %v4768_v12  ;;  %v1816_v16 = vmul.f32 0.5, %v4686_v53  ;;  %v7927_v62 = vld [vmem:[#allocation101_spill] sm:$0xff] }
 0x37a   : > { %4695 = vrcp.f32 %v3353_v17  ;;  %v3072_v46 = vmul.f32 0.5, %v4692_v51  ;;  %v2660_v49 = vadd.f32 %v2628_v45, %v2031_v37  ;;  %v2382_v24 = vmul.f32 0.5, %v2350_v50  ;;  %v4770_v45 = vld [vmem:[%s5215_s17 + $0xf0] sm:$0xff] }
 0x37b   : > { %4697 = vtanh.f32 %v3009_v57  ;;  %v3725_v15 = vmax.f32 %v3693_v6, 0.0  ;;  %3657 = vmatmul.f32.gmra.mxu3 %v3416_v23  ;;  %v7423_v40 = vadd.f32 0.5, %v1188_v48  ;;  %v1754_v25 = vmul.f32 0.5, %v1722_v28  ;;  %v7928_v28 = vld [vmem:[#allocation73_spill] sm:$0xff] }
 0x37c   : > { %4699 = vtanh.f32 %v1125_v9  ;;  %v3104_v59 = vadd.f32 0.5, %v3072_v46  ;;  %v3214_v38 = vpop.f32.mrf.mxu1  ;;  %v4694_v33 = vpop.eup %4693  ;;  %v2000_v10 = vmul.f32 %v7924_v14, %v7350_v20  ;;  %v3289_v9 = vadd.f32 %v3257_v52, %v2660_v49  ;;  %v7932_v14 = vld [vmem:[#allocation97_spill] sm:$0xff] }
 0x37d   : > { %4701 = vtanh.f32 %v1753_v21  ;;  %3757 = vst [vmem:[%s7244_s19 + $0x38] sm:$0xff] %v3725_v15  ;;  %v7429_v53 = vpop.f32.mrf.mxu2  ;;  %v2629_v48 = vmul.f32 %v7925_v56, %v2475_v63  ;;  %v2476_v21 = vadd.f32 0.5, %v2444_v22  ;;  %v2351_v1 = vsub.f32 %v7391_v61, %v7926_v32 }
 0x37e   : > { %4703 = vtanh.f32 %v1126_v13  ;;  %v3322_v29 = vadd.f32 %v3104_v59, %v2693_v54  ;;  %v2938_v5 = vpop.f32.mrf.mxu0  ;;  %v3610_v41 = vpop.f32.mrf.mxu3  ;;  %v7441_v27 = vadd.f32 0.5, %v1816_v16  ;;  %v2032_v17 = vadd.f32 %v2000_v10, %v7348_v7  ;;  %v7929_v7 = vld [vmem:[#allocation82_spill] sm:$0xff]  ;;  %v7930_v54 = vld [vmem:[#allocation87_spill] sm:$0xff]  ;;  %v7931_v16 = vld [vmem:[#allocation140_spill] sm:$0xff] }
 0x37f   : > { %v2978_v43 = vsub.f32 %v7321_v4, %v2938_v5  ;;  %v3611_v2 = vadd.f32 %v3610_v41, %v7329_v18  ;;  %4705 = vtanh.f32 %v2382_v24  ;;  %v4769_v18 = vld [vmem:[%s7592_s5] ss:$0 sm:$0xff]  ;;  %v3258_v51 = vmul.f32 %v3214_v38, %v3104_v59 }
 0x380   : > { %v4696_v39 = vpop.eup %4695  ;;  %v3354_v11 = vmax.f32 %v3322_v29, 1e-20  ;;  %v7439_v19 = vadd.f32 %v4769_v18, %v7927_v62  ;;  %v2694_v57 = vadd.f32 %v2476_v21, %v7402_v26  ;;  %v2445_v6 = vmul.f32 0.5, %v4694_v33 }
 0x381   : > { %v4698_v35 = vpop.eup %4697  ;;  %v3010_v3 = vmul.f32 0.5, %v2978_v43  ;;  %v3694_v20 = vadd.f32 %v7218_v31, %v3611_v2  ;;  %v3417_v60 = vmul.f32 %v4696_v39, %v3289_v9  ;;  %3562 = vmatmul.f32.gmra.mxu2 %v4770_v45  ;;  %v2383_v23 = vmul.f32 0.5, %v2351_v1  ;;  %v4771_v1 = vld [vmem:[%s5215_s17 + $0xf8] sm:$0xff]  ;;  %s4793_s17 = scalar_lea.hbm %s7596_s9, 512 }
 0x382   : > { %v4700_v4 = vpop.eup %4699  ;;  %4707 = vrcp.f32 %v3354_v11  ;;  %v3073_v36 = vmul.f32 0.5, %v4698_v35  ;;  %v7448_v46 = vmul.f32 %v7928_v28, %v7423_v40  ;;  %v2661_v12 = vadd.f32 %v2629_v48, %v2032_v17  ;;  %p4795_p6 = scmp.lt.s32.totalorder %s4793_s17, %s4789_s15 }
 0x383   : > { %v4702_v63 = vpop.eup %4701  ;;  %4709 = vtanh.f32 %v3010_v3  ;;  %v3726_v55 = vmax.f32 %v3694_v20, 0.0  ;;  %3660 = vmatmul.f32.gmra.mxu3 %v3417_v60  ;;  %v1189_v37 = vmul.f32 0.5, %v4700_v4  ;;  %v1095_v52 = vsub.f32 %v7439_v19, %v7929_v7  ;;  %v7934_v7 = vld [vmem:[#allocation24_spill] sm:$0xff] }
 0x384   : > { %v4704_v50 = vpop.eup %4703  ;;  %v3105_v13 = vadd.f32 0.5, %v3073_v36  ;;  %v3217_v30 = vpop.f32.mrf.mxu1  ;;  %4711 = vtanh.f32 %v1754_v25  ;;  %v1817_v15 = vmul.f32 0.5, %v4702_v63  ;;  %v1723_v22 = vsub.f32 %v7439_v19, %v7930_v54  ;;  %p4796_p7 = por %p4795_p6, %p4794_p4 }
 0x385   : > { %3758 = vst [vmem:[%s7244_s19 + $0x40] sm:$0xff] %v3726_v55  ;;  %v4706_v49 = vpop.eup %4705  ;;  %v2001_v24 = vmul.f32 %v7931_v16, %v7377_v44  ;;  %v3290_v33 = vadd.f32 %v3258_v51, %v2661_v12  ;;  %v7459_v5 = vpop.f32.mrf.mxu2  ;;  %v2630_v10 = vmul.f32 %v7932_v14, %v2476_v21  ;;  %v2477_v9 = vadd.f32 0.5, %v2445_v6  ;;  %v7933_v6 = vld [vmem:[#allocation143_spill] sm:$0xff] }
 0x386   : > { %v3323_v26 = vadd.f32 %v3105_v13, %v2694_v57  ;;  %v2941_v59 = vpop.f32.mrf.mxu0  ;;  %v3613_v38 = vpop.f32.mrf.mxu3  ;;  %4713 = vtanh.f32 %v2383_v23  ;;  %v2352_v39 = vsub.f32 %v7439_v19, %v7082_v0  ;;  %v3259_v35 = vmul.f32 %v3217_v30, %v3105_v13  ;;  %p4797_p8 = pnand %p4796_p7, %p4792_p3 }
 0x387   : > { %v2979_v29 = vsub.f32 %v7365_v8, %v2941_v59  ;;  %v3614_v25 = vadd.f32 %v3613_v38, %v7357_v42  ;;  %v1127_v8 = vmul.f32 0.5, %v1095_v52  ;;  %v2066_v42 = vadd.f32 %v7441_v27, %v7423_v40 }
 0x388   : > { %v4708_v41 = vpop.eup %4707  ;;  %v3355_v43 = vmax.f32 %v3323_v26, 1e-20  ;;  %v2033_v11 = vadd.f32 %v2001_v24, %v7399_v58  ;;  %v1755_v20 = vmul.f32 0.5, %v1723_v22  ;;  %v2446_v60 = vmul.f32 0.5, %v4706_v49 }
 0x389   : > { %v4710_v2 = vpop.eup %4709  ;;  %v3011_v56 = vmul.f32 0.5, %v2979_v29  ;;  %v3695_v44 = vadd.f32 %v7218_v31, %v3614_v25  ;;  %v3418_v48 = vmul.f32 %v4708_v41, %v3290_v33  ;;  %3565 = vmatmul.f32.gmra.mxu2 %v4771_v1  ;;  %v2695_v0 = vadd.f32 %v2477_v9, %v2066_v42 }
 0x38a   : > { %4715 = vrcp.f32 %v3355_v43  ;;  %v3074_v32 = vmul.f32 0.5, %v4710_v2  ;;  %v4712_v21 = vpop.eup %4711  ;;  %v1221_v62 = vadd.f32 0.5, %v1189_v37  ;;  %v1849_v36 = vadd.f32 0.5, %v1817_v15 }
 0x38b   : > { %4717 = vtanh.f32 %v3011_v56  ;;  %v3727_v3 = vmax.f32 %v3695_v44, 0.0  ;;  %3663 = vmatmul.f32.gmra.mxu3 %v3418_v48  ;;  %v2662_v40 = vadd.f32 %v2630_v10, %v2033_v11  ;;  %v2384_v45 = vmul.f32 0.5, %v2352_v39  ;;  %v7935_v44 = vld [vmem:[#allocation145_spill] sm:$0xff] }
 0x38c   : > { %v3106_v4 = vadd.f32 0.5, %v3074_v32  ;;  %v3220_v18 = vpop.f32.mrf.mxu1  ;;  %v4714_v63 = vpop.eup %4713  ;;  %v1190_v17 = vmul.f32 0.5, %v4704_v50  ;;  %v1818_v51 = vmul.f32 0.5, %v4712_v21  ;;  %4719 = vtanh.f32 %v1127_v8  ;;  %v7936_v21 = vld [vmem:[#allocation77_spill] sm:$0xff] }
 0x38d   : > { %3759 = vst [vmem:[%s7244_s19 + $0x48] sm:$0xff] %v3727_v3  ;;  %v2002_v23 = vmul.f32 %v7933_v6, %v7441_v27  ;;  %v3291_v13 = vadd.f32 %v3259_v35, %v2662_v40  ;;  %v7474_v12 = vpop.f32.mrf.mxu2  ;;  %v2631_v52 = vmul.f32 %v7934_v7, %v2477_v9  ;;  %4721 = vtanh.f32 %v1755_v20 }
 0x38e   : > { %v3324_v55 = vadd.f32 %v3106_v4, %v2695_v0  ;;  %v2944_v58 = vpop.f32.mrf.mxu0  ;;  %v3616_v57 = vpop.f32.mrf.mxu3  ;;  %v2478_v50 = vadd.f32 0.5, %v2446_v60  ;;  %4723 = vtanh.f32 %v2384_v45  ;;  %v2067_v27 = vadd.f32 %v1849_v36, %v1221_v62  ;;  %v7937_v60 = vld [vmem:[#allocation55_spill] sm:$0xff] }
 0x38f   : > { %v2980_v30 = vsub.f32 %v7391_v61, %v2944_v58  ;;  %v3617_v28 = vadd.f32 %v3616_v57, %v7383_v47  ;;  %v7478_v38 = vadd.f32 0.5, %v1190_v17  ;;  %v2034_v61 = vadd.f32 %v2002_v23, %v7448_v46 }
 0x390   : > { %v4716_v37 = vpop.eup %4715  ;;  %v3356_v15 = vmax.f32 %v3324_v55, 1e-20  ;;  %v3260_v49 = vmul.f32 %v3220_v18, %v3106_v4  ;;  %v1850_v33 = vadd.f32 0.5, %v1818_v51  ;;  %v2696_v29 = vadd.f32 %v2478_v50, %v2067_v27 }
 0x391   : > { %v4718_v54 = vpop.eup %4717  ;;  %v3012_v22 = vmul.f32 0.5, %v2980_v30  ;;  %v3696_v26 = vadd.f32 %v7218_v31, %v3617_v28  ;;  %v3419_v59 = vmul.f32 %v4716_v37, %v3291_v13  ;;  %v2447_v25 = vmul.f32 0.5, %v4714_v63  ;;  %v7938_v28 = vld [vmem:[#allocation148_spill] sm:$0xff] }
 0x392   : > { %4725 = vrcp.f32 %v3356_v15  ;;  %v3075_v47 = vmul.f32 0.5, %v4718_v54  ;;  %v4720_v24 = vpop.eup %4719  ;;  %v2663_v10 = vadd.f32 %v2631_v52, %v2034_v61  ;;  %v2003_v48 = vmul.f32 %v7935_v44, %v1849_v36 }
 0x393   : > { %4727 = vtanh.f32 %v3012_v22  ;;  %v3728_v16 = vmax.f32 %v3696_v26, 0.0  ;;  %3666 = vmatmul.f32.gmra.mxu3 %v3419_v59  ;;  %v4722_v9 = vpop.eup %4721  ;;  %v1374_v11 = vmul.f32 %v7936_v21, %v1221_v62  ;;  %v2068_v35 = vadd.f32 %v1850_v33, %v7478_v38  ;;  %v7939_v59 = vld [vmem:[#allocation81_spill] sm:$0xff] }
 0x394   : > { %v3107_v41 = vadd.f32 0.5, %v3075_v47  ;;  %v3223_v14 = vpop.f32.mrf.mxu1  ;;  %v4724_v56 = vpop.eup %4723  ;;  %v3292_v46 = vadd.f32 %v3260_v49, %v2663_v10  ;;  %v2479_v3 = vadd.f32 0.5, %v2447_v25  ;;  %v2632_v4 = vmul.f32 %v7937_v60, %v2478_v50  ;;  %v7940_v47 = vld [vmem:[#allocation123_spill] sm:$0xff]  ;;  %v7500_v49 = vld [vmem:[%s7595_s8] ss:$0 sm:$0xff] }
 0x395   : > { %3760 = vst [vmem:[%s7244_s19 + $0x50] sm:$0xff] %v3728_v16  ;;  %v7485_v32 = vpop.f32.mrf.mxu2  ;;  %v1819_v45 = vmul.f32 0.5, %v4722_v9  ;;  %v2035_v63 = vadd.f32 %v2003_v48, %v1374_v11  ;;  %v2448_v55 = vmul.f32 0.5, %v4724_v56  ;;  %v2004_v37 = vmul.f32 %v7938_v28, %v1850_v33  ;;  %v7943_v11 = vld [vmem:[#allocation94_spill] sm:$0xff] }
 0x396   : > { %v3325_v43 = vadd.f32 %v3107_v41, %v2696_v29  ;;  %v2947_v2 = vpop.f32.mrf.mxu0  ;;  %v3619_v39 = vpop.f32.mrf.mxu3  ;;  %v3261_v17 = vmul.f32 %v3223_v14, %v3107_v41  ;;  %v2697_v51 = vadd.f32 %v2479_v3, %v2068_v35  ;;  %v1375_v27 = vmul.f32 %v7939_v59, %v7478_v38 }
 0x397   : > { %v2981_v8 = vsub.f32 %v7439_v19, %v2947_v2  ;;  %v3620_v42 = vadd.f32 %v3619_v39, %v7411_v34  ;;  %v1191_v19 = vmul.f32 0.5, %v4720_v24  ;;  %v2664_v57 = vadd.f32 %v2632_v4, %v2035_v63  ;;  %v7941_v2 = vld [vmem:[#allocation12_spill] sm:$0xff] }
 0x398   : > { %v4726_v1 = vpop.eup %4725  ;;  %v3357_v0 = vmax.f32 %v3325_v43, 1e-20  ;;  %v1851_v23 = vadd.f32 0.5, %v1819_v45  ;;  %v2480_v54 = vadd.f32 0.5, %v2448_v55  ;;  %v2633_v61 = vmul.f32 %v7940_v47, %v2479_v3 }
 0x399   : > { %v4728_v20 = vpop.eup %4727  ;;  %v3013_v18 = vmul.f32 0.5, %v2981_v8  ;;  %v3697_v36 = vadd.f32 %v7218_v31, %v3620_v42  ;;  %v3420_v40 = vmul.f32 %v4726_v1, %v3292_v46  ;;  %v1223_v6 = vadd.f32 0.5, %v1191_v19  ;;  %v7942_v1 = vld [vmem:[#allocation85_spill] sm:$0xff] }
 0x39a   : > { %4729 = vrcp.f32 %v3357_v0  ;;  %v3076_v34 = vmul.f32 0.5, %v4728_v20  ;;  %v3293_v7 = vadd.f32 %v3261_v17, %v2664_v57  ;;  %v2036_v29 = vadd.f32 %v2004_v37, %v1375_v27 }
 0x39b   : > { %4731 = vtanh.f32 %v3013_v18  ;;  %v3729_v62 = vmax.f32 %v3697_v36, 0.0  ;;  %3669 = vmatmul.f32.gmra.mxu3 %v3420_v40  ;;  %v2005_v39 = vmul.f32 %v7941_v2, %v1851_v23  ;;  %v1376_v21 = vmul.f32 %v7942_v1, %v1223_v6 }
 0x39c   : > { %v3108_v58 = vadd.f32 0.5, %v3076_v34  ;;  %v3226_v13 = vpop.f32.mrf.mxu1  ;;  %v2665_v38 = vadd.f32 %v2633_v61, %v2036_v29  ;;  %v2634_v35 = vmul.f32 %v7943_v11, %v2480_v54 }
 0x39d   : > { %3761 = vst [vmem:[%s7244_s19 + $0x58] sm:$0xff] %v3729_v62  ;;  %v3521_v50 = vpop.f32.mrf.mxu2  ;;  %v2037_v20 = vadd.f32 %v2005_v39, %v1376_v21 }
 0x39e   : > { %v3326_v30 = vadd.f32 %v3108_v58, %v2697_v51  ;;  %v3622_v31 = vpop.f32.mrf.mxu3  ;;  %v3262_v25 = vmul.f32 %v3226_v13, %v3108_v58 }
 0x39f   : > { %v3623_v52 = vadd.f32 %v3622_v31, %v7429_v53  ;;  %v2069_v53 = vadd.f32 %v1851_v23, %v1223_v6  ;;  %v2666_v18 = vadd.f32 %v2634_v35, %v2037_v20 }
 0x3a0   : > { %v4730_v15 = vpop.eup %4729  ;;  %v3358_v22 = vmax.f32 %v3326_v30, 1e-20  ;;  %v3294_v56 = vadd.f32 %v3262_v25, %v2665_v38 }
 0x3a1   : > { %v4732_v26 = vpop.eup %4731  ;;  %v3698_v16 = vadd.f32 %v7500_v49, %v3623_v52  ;;  %v3421_v24 = vmul.f32 %v4730_v15, %v3293_v7  ;;  %v2698_v14 = vadd.f32 %v2480_v54, %v2069_v53 }
 0x3a2   : > { %4733 = vrcp.f32 %v3358_v22  ;;  %v3077_v33 = vmul.f32 0.5, %v4732_v26 }
 0x3a3   : > { %v3730_v41 = vmax.f32 %v3698_v16, 0.0  ;;  %3672 = vmatmul.f32.gmra.mxu3 %v3421_v24 }
 0x3a4   : > { %v3109_v10 = vadd.f32 0.5, %v3077_v33  ;;  %v3229_v46 = vpop.f32.mrf.mxu1 }
 0x3a5   : > { %3762 = vst [vmem:[%s7244_s19 + $0x60] sm:$0xff] %v3730_v41  ;;  %v3524_v42 = vpop.f32.mrf.mxu2 }
 0x3a6   : > { %v3327_v9 = vadd.f32 %v3109_v10, %v2698_v14  ;;  %v3625_v43 = vpop.f32.mrf.mxu3  ;;  %v3263_v60 = vmul.f32 %v3229_v46, %v3109_v10 }
 0x3a7   : > { %v3626_v44 = vadd.f32 %v3625_v43, %v7459_v5 }
 0x3a8   : > { %v4734_v48 = vpop.eup %4733  ;;  %v3359_v8 = vmax.f32 %v3327_v9, 1e-20  ;;  %v3295_v36 = vadd.f32 %v3263_v60, %v2666_v18 }
 0x3a9   : > { %v3699_v3 = vadd.f32 %v7500_v49, %v3626_v44  ;;  %v3422_v0 = vmul.f32 %v4734_v48, %v3294_v56 }
 0x3aa   : > { %4735 = vrcp.f32 %v3359_v8 }
 0x3ab   : > { %v3731_v4 = vmax.f32 %v3699_v3, 0.0  ;;  %3675 = vmatmul.f32.gmra.mxu3 %v3422_v0 }
 0x3ad   : > { %3763 = vst [vmem:[%s7244_s19 + $0x68] sm:$0xff] %v3731_v4  ;;  %v3527_v63 = vpop.f32.mrf.mxu2 }
 0x3ae   : > { %v3628_v5 = vpop.f32.mrf.mxu3 }
 0x3af   : > { %v3629_v40 = vadd.f32 %v3628_v5, %v7474_v12 }
 0x3b0   : > { %v4736_v19 = vpop.eup %4735 }
 0x3b1   : > { %v3700_v45 = vadd.f32 %v7500_v49, %v3629_v40  ;;  %v3423_v34 = vmul.f32 %v4736_v19, %v3295_v36 }
 0x3b3   : > { %v3732_v17 = vmax.f32 %v3700_v45, 0.0  ;;  %3678 = vmatmul.f32.gmra.mxu3 %v3423_v34 }
 0x3b5   : > { %3764 = vst [vmem:[%s7244_s19 + $0x70] sm:$0xff] %v3732_v17  ;;  %v3530_v57 = vpop.f32.mrf.mxu2 }
 0x3b6   : > { %v3631_v62 = vpop.f32.mrf.mxu3 }
 0x3b7   : > { %v3632_v51 = vadd.f32 %v3631_v62, %v7485_v32 }
 0x3b9   : > { %v3701_v55 = vadd.f32 %v7500_v49, %v3632_v51 }
 0x3bb   : > { %v3733_v58 = vmax.f32 %v3701_v55, 0.0 }
 0x3bd   : > { %3765 = vst [vmem:[%s7244_s19 + $0x78] sm:$0xff] %v3733_v58  ;;  %v3533_v31 = vpop.f32.mrf.mxu2 }
 0x3be   : > { %v3634_v6 = vpop.f32.mrf.mxu3 }
 0x3bf   : > { %v3635_v12 = vadd.f32 %v3634_v6, %v3521_v50 }
 0x3c1   : > { %v3702_v23 = vadd.f32 %v7500_v49, %v3635_v12 }
 0x3c3   : > { %v3734_v13 = vmax.f32 %v3702_v23, 0.0 }
 0x3c5   : > { %3766 = vst [vmem:[%s7244_s19 + $0x80] sm:$0xff] %v3734_v13  ;;  %v3536_v15 = vpop.f32.mrf.mxu2 }
 0x3c6   : > { %v3637_v30 = vpop.f32.mrf.mxu3 }
 0x3c7   : > { %v3638_v28 = vadd.f32 %v3637_v30, %v3524_v42 }
 0x3c9   : > { %v3703_v37 = vadd.f32 %v7500_v49, %v3638_v28 }
 0x3cb   : > { %v3735_v7 = vmax.f32 %v3703_v37, 0.0 }
 0x3cd   : > { %3767 = vst [vmem:[%s7244_s19 + $0x88] sm:$0xff] %v3735_v7  ;;  %v3539_v27 = vpop.f32.mrf.mxu2 }
 0x3ce   : > { %v3640_v32 = vpop.f32.mrf.mxu3 }
 0x3cf   : > { %v3641_v52 = vadd.f32 %v3640_v32, %v3527_v63 }
 0x3d1   : > { %v3704_v54 = vadd.f32 %v7500_v49, %v3641_v52 }
 0x3d3   : > { %v3736_v22 = vmax.f32 %v3704_v54, 0.0 }
 0x3d5   : > { %3768 = vst [vmem:[%s7244_s19 + $0x90] sm:$0xff] %v3736_v22  ;;  %v3542_v33 = vpop.f32.mrf.mxu2 }
 0x3d6   : > { %v3643_v50 = vpop.f32.mrf.mxu3 }
 0x3d7   : > { %v3644_v26 = vadd.f32 %v3643_v50, %v3530_v57 }
 0x3d9   : > { %v3705_v59 = vadd.f32 %v7500_v49, %v3644_v26 }
 0x3db   : > { %v3737_v47 = vmax.f32 %v3705_v59, 0.0 }
 0x3dd   : > { %3769 = vst [vmem:[%s7244_s19 + $0x98] sm:$0xff] %v3737_v47  ;;  %v3545_v38 = vpop.f32.mrf.mxu2 }
 0x3de   : > { %v3646_v61 = vpop.f32.mrf.mxu3 }
 0x3df   : > { %v3647_v16 = vadd.f32 %v3646_v61, %v3533_v31 }
 0x3e1   : > { %v3706_v24 = vadd.f32 %v7500_v49, %v3647_v16 }
 0x3e3   : > { %v3738_v53 = vmax.f32 %v3706_v24, 0.0 }
 0x3e5   : > { %3770 = vst [vmem:[%s7244_s19 + $0xa0] sm:$0xff] %v3738_v53  ;;  %v3548_v44 = vpop.f32.mrf.mxu2 }
 0x3e6   : > { %v3649_v29 = vpop.f32.mrf.mxu3 }
 0x3e7   : > { %v3650_v25 = vadd.f32 %v3649_v29, %v3536_v15 }
 0x3e9   : > { %v3707_v41 = vadd.f32 %v7500_v49, %v3650_v25 }
 0x3eb   : > { %v3739_v14 = vmax.f32 %v3707_v41, 0.0 }
 0x3ed   : > { %3771 = vst [vmem:[%s7244_s19 + $0xa8] sm:$0xff] %v3739_v14  ;;  %v3551_v21 = vpop.f32.mrf.mxu2 }
 0x3ee   : > { %v3652_v10 = vpop.f32.mrf.mxu3 }
 0x3ef   : > { %v3653_v9 = vadd.f32 %v3652_v10, %v3539_v27 }
 0x3f1   : > { %v3708_v43 = vadd.f32 %v7500_v49, %v3653_v9 }
 0x3f3   : > { %v3740_v2 = vmax.f32 %v3708_v43, 0.0 }
 0x3f5   : > { %3772 = vst [vmem:[%s7244_s19 + $0xb0] sm:$0xff] %v3740_v2  ;;  %v3554_v60 = vpop.f32.mrf.mxu2 }
 0x3f6   : > { %v3655_v39 = vpop.f32.mrf.mxu3 }
 0x3f7   : > { %v3656_v56 = vadd.f32 %v3655_v39, %v3542_v33 }
 0x3f9   : > { %v3709_v48 = vadd.f32 %v7500_v49, %v3656_v56 }
 0x3fb   : > { %v3741_v46 = vmax.f32 %v3709_v48, 0.0 }
 0x3fd   : > { %3773 = vst [vmem:[%s7244_s19 + $0xb8] sm:$0xff] %v3741_v46  ;;  %v3557_v19 = vpop.f32.mrf.mxu2 }
 0x3fe   : > { %v3658_v8 = vpop.f32.mrf.mxu3 }
 0x3ff   : > { %v3659_v42 = vadd.f32 %v3658_v8, %v3545_v38 }
 0x401   : > { %v3710_v1 = vadd.f32 %v7500_v49, %v3659_v42 }
 0x403   : > { %v3742_v11 = vmax.f32 %v3710_v1, 0.0 }
 0x405   : > { %3774 = vst [vmem:[%s7244_s19 + $0xc0] sm:$0xff] %v3742_v11  ;;  %v3560_v51 = vpop.f32.mrf.mxu2 }
 0x406   : > { %v3661_v35 = vpop.f32.mrf.mxu3 }
 0x407   : > { %v3662_v3 = vadd.f32 %v3661_v35, %v3548_v44 }
 0x409   : > { %v3711_v0 = vadd.f32 %v7500_v49, %v3662_v3 }
 0x40b   : > { %v3743_v20 = vmax.f32 %v3711_v0, 0.0 }
 0x40d   : > { %3775 = vst [vmem:[%s7244_s19 + $0xc8] sm:$0xff] %v3743_v20  ;;  %v3563_v23 = vpop.f32.mrf.mxu2 }
 0x40e   : > { %v3664_v4 = vpop.f32.mrf.mxu3 }
 0x40f   : > { %v3665_v18 = vadd.f32 %v3664_v4, %v3551_v21 }
 0x411   : > { %v3712_v5 = vadd.f32 %v7500_v49, %v3665_v18 }
 0x413   : > { %v3744_v36 = vmax.f32 %v3712_v5, 0.0 }
 0x415   : > { %3776 = vst [vmem:[%s7244_s19 + $0xd0] sm:$0xff] %v3744_v36  ;;  %v3566_v7 = vpop.f32.mrf.mxu2 }
 0x416   : > { %v3667_v40 = vpop.f32.mrf.mxu3 }
 0x417   : > { %v3668_v45 = vadd.f32 %v3667_v40, %v3554_v60 }
 0x419   : > { %v3713_v34 = vadd.f32 %v7500_v49, %v3668_v45 }
 0x41b   : > { %v3745_v63 = vmax.f32 %v3713_v34, 0.0 }
 0x41d   : > { %3777 = vst [vmem:[%s7244_s19 + $0xd8] sm:$0xff] %v3745_v63 }
 0x41e   : > { %v3670_v17 = vpop.f32.mrf.mxu3 }
 0x41f   : > { %v3671_v62 = vadd.f32 %v3670_v17, %v3557_v19 }
 0x421   : > { %v3714_v55 = vadd.f32 %v7500_v49, %v3671_v62 }
 0x423   : > { %v3746_v58 = vmax.f32 %v3714_v55, 0.0 }
 0x425   : > { %3778 = vst [vmem:[%s7244_s19 + $0xe0] sm:$0xff] %v3746_v58 }
 0x426   : > { %v3673_v57 = vpop.f32.mrf.mxu3 }
 0x427   : > { %v3674_v6 = vadd.f32 %v3673_v57, %v3560_v51 }
 0x429   : > { %v3715_v12 = vadd.f32 %v7500_v49, %v3674_v6 }
 0x42b   : > { %v3747_v13 = vmax.f32 %v3715_v12, 0.0 }
 0x42d   : > { %3779 = vst [vmem:[%s7244_s19 + $0xe8] sm:$0xff] %v3747_v13 }
 0x42e   : > { %v3676_v30 = vpop.f32.mrf.mxu3 }
 0x42f   : > { %v3677_v31 = vadd.f32 %v3676_v30, %v3563_v23 }
 0x431   : > { %v3716_v28 = vadd.f32 %v7500_v49, %v3677_v31 }
 0x433   : > { %v3748_v37 = vmax.f32 %v3716_v28, 0.0 }
 0x435   : > { %3780 = vst [vmem:[%s7244_s19 + $0xf0] sm:$0xff] %v3748_v37 }
 0x436   : > { %v3679_v32 = vpop.f32.mrf.mxu3 }
 0x437   : > { %v3680_v52 = vadd.f32 %v3679_v32, %v3566_v7 }
 0x439   : > { %v3717_v15 = vadd.f32 %v7500_v49, %v3680_v52 }
 0x43b   : > { %v3749_v54 = vmax.f32 %v3717_v15, 0.0 }
 0x43d   : > { %3781 = vst [vmem:[%s7244_s19 + $0xf8] sm:$0xff] %v3749_v54 }
 0x43e   : > { %4800 = shalt.err (!%p4797_p8)
}
 0x43f   : > { %s4853_s16 = smov 128   ;;  %s4854_s19 = smov 8  }
 0x440   : > { %4358 = dma.vmem_to_hbm [thread:$0]  (%p4948_p5), %s3798_s26, 4096, %s3800_s28, %s3783_s21, %s4853_s16, %s4853_s16, %s4854_s19  }
 0x441 PF: > { %s3814_s18 = sand.u32 1, %s4831_s30   ;;  %p4361_p11 = pnand %p3934_p10, %p4959_p9 }
 0x442   : > { %s3815_s24 = scalar_lea.sflag [#allocation5], %s3814_s18 }
 0x443   : > { %p4362_p12 = pneg %p4361_p11 }
 0x445   : > { %4826 = dma.done.wait (%p4362_p12), %s3815_s24, 4096  }
 0x446   : > { %4828 = vsyncadd (%p4362_p12), %s3815_s24, 4294963200  ;;  %s22_s14 = sadd.s32 1, %s4851_s14   ;;  %s7944_s20 = sld [smem:[#allocation7_spill]] }
 0x447   : > { %p19_p13 = scmp.ge.s32.totalorder %s22_s14, 4   ;;  %s7945_s30 = smov %s4835_s10 }
 0x448   : > { %s7946_s10 = smov %s4839_s11  ;;  %s7947_s11 = smov %s4957_s22 }
 0x449   : > { %s7948_s12 = smov %s4847_s13  ;;  %21 = sbr.rel (!%p19_p13) target bundleno = 7 (0x7), region = 195 }
 0x44c   : > { %s7949_s13 = smov %s7944_s20 }
 0x44e   :  { %3821 = vsyncpa [#allocation5], 1 }
 0x44f   :  { %3823 = vsyncpa [#allocation5 + $0x1], 1 }

</bundles_post_ra>
